<compile_context>
chip_gen: v5e
topology: v5e:2x2
jax: 0.10.0
libtpu: 0.0.40
codegen_flags: <defaults>
</compile_context>

<pallas_src>
import jax
import jax.numpy as jnp
from jax.experimental import pallas as pl
from jax.experimental.pallas import tpu as pltpu

_SQRT_HALF = 0.7071067811865476
_GROUP = 8  # original rows packed per lane-dense group-row (8 * in_features == 128)


def mlp_kernel(x_ref, w1_ref, b1_ref, wd_ref, bd_ref, o_ref):
    # x_ref : (tbg, 128)  lane-dense block: 8 original rows per group-row (compute dtype)
    # w1_ref: (128, 8H)   block-diagonal copies of fc1 weight (compute dtype)
    # b1_ref: (1, 8H)     fc1 bias tiled 8x (f32)
    # wd_ref: (8H, 16)    block-diagonal [+wd, -wd] columns of fused fc2∘fc3 (f32)
    # bd_ref: (1, 16)     tiled [+bd, -bd] (f32)
    # o_ref : (tbg, 16)   interleaved (p, 1-p) pairs -> free reshape to (8*tbg, 2)
    h = jnp.dot(x_ref[...], w1_ref[...], preferred_element_type=jnp.float32)
    h = h + b1_ref[...]
    # exact (erf-based) GELU, matching torch.nn.GELU default; full 128-lane vregs
    h = 0.5 * h * (1.0 + jax.lax.erf(h * _SQRT_HALF))
    # fused fc2∘fc3 reduced to +/- the softmax-difference logit per sub-row
    d = jnp.dot(h, wd_ref[...], preferred_element_type=jnp.float32) + bd_ref[...]
    # softmax over each width-2 pair == [sigmoid(d), sigmoid(-d)]; EUP, no XLU reduce
    o_ref[...] = jax.nn.sigmoid(d).astype(o_ref.dtype)


def mlp_forward(x, w1, b1, w2, b2, w3, b3, *,
                block_rows=16384, compute_dtype=jnp.bfloat16):
    B, F = x.shape
    H = w1.shape[1]
    O = w3.shape[1]
    assert w1.shape == (F, H) and w2.shape == (H, F) and w3.shape == (F, O)
    assert O == 2, "softmax-as-sigmoid fusion hardwires out_features == 2"
    G = _GROUP
    assert G * F == 128, "lane-dense packing assumes 8 * in_features == 128 lanes"

    b1 = jnp.reshape(b1, (1, H)).astype(jnp.float32)
    b2 = jnp.reshape(b2, (1, F)).astype(jnp.float32)
    b3 = jnp.reshape(b3, (1, O)).astype(jnp.float32)

    # ---- one-off host-side algebra (tiny; full precision per review) ----
    hi = jax.lax.Precision.HIGHEST
    w23 = jnp.dot(w2, w3, precision=hi)              # (H, 2)
    b23 = jnp.dot(b2, w3, precision=hi) + b3         # (1, 2)
    wd = (w23[:, 0] - w23[:, 1]).astype(jnp.float32)  # (H,)
    bd = (b23[0, 0] - b23[0, 1]).astype(jnp.float32)  # scalar

    eye = jnp.eye(G, dtype=jnp.float32)
    # block-diagonal fc1 weight for the lane-dense layout: (128, 8H)
    w1_bd = jnp.kron(eye, w1.astype(jnp.float32)).astype(compute_dtype)
    b1_tile = jnp.tile(b1, (1, G))                                    # (1, 8H) f32
    # block-diagonal fused second stage: columns [2g, 2g+1] = [+wd, -wd] in rows g*H:(g+1)*H
    wd_pm = jnp.stack([wd, -wd], axis=1)                              # (H, 2)
    wd_bd = jnp.kron(eye, wd_pm)                                      # (8H, 16) f32
    bd_tile = jnp.tile(jnp.stack([bd, -bd]).reshape(1, 2), (1, G))    # (1, 16) f32

    # ---- lane-dense group view of x (free contiguous reshape; no transpose) ----
    pad = (-B) % G
    if pad:
        # Only <=7 rows; copies x — produce B as a multiple of 8 upstream to avoid it.
        x = jnp.concatenate([x, jnp.zeros((pad, F), x.dtype)], axis=0)
    Bp = B + pad
    Bg = Bp // G
    xr = x.astype(compute_dtype).reshape(Bg, G * F)   # (Bg, 128)

    # ---- tile selection (group-rows per grid step) ----
    tbg = max(8, (block_rows // G // 8) * 8)
    if Bg <= tbg:
        if Bg >= 16:
            # force >=2 grid steps so the "parallel" axis uses both v7x TensorCores
            tbg = (((Bg + 1) // 2) + 7) // 8 * 8
        else:
            tbg = Bg  # single full-array block (block dim == array dim is allowed)
    grid = (pl.cdiv(Bg, tbg),)
    # Ragged final blocks (Bg % tbg != 0): rows are independent, OOB reads produce
    # garbage rows whose stores are dropped, so correctness is unaffected.

    full = lambda a: pl.BlockSpec(a.shape, lambda i: (0, 0))

    out = pl.pallas_call(
        mlp_kernel,
        out_shape=jax.ShapeDtypeStruct((Bg, 2 * G), jnp.float32),
        grid=grid,
        in_specs=[
            pl.BlockSpec((tbg, G * F), lambda i: (i, 0)),   # streamed, double-buffered
            full(w1_bd), full(b1_tile),                     # resident weights (few KiB)
            full(wd_bd), full(bd_tile),
        ],
        out_specs=pl.BlockSpec((tbg, 2 * G), lambda i: (i, 0)),
        compiler_params=pltpu.CompilerParams(
            dimension_semantics=("parallel",),     # megacore split on v7x
            vmem_limit_bytes=48 * 1024 * 1024,     # <= v7x 64 MiB physical; ample on v5e/v6e
        ),
    )(xr, w1_bd, b1_tile, wd_bd, bd_tile)

    # free contiguous reshape back to per-row (p, 1-p) pairs
    return out.reshape(Bp, 2)[:B]


def mlp_reference(x, w1, b1, w2, b2, w3, b3):
    h = x @ w1 + b1
    h = 0.5 * h * (1.0 + jax.lax.erf(h / jnp.sqrt(2.0)))
    y = h @ w2 + b2
    z = y @ w3 + b3
    return jax.nn.softmax(z, axis=-1)


if __name__ == "__main__":
    key = jax.random.PRNGKey(0)

    # module config: in_features=16, mlp_ratio=3.0 -> hidden=48, out=2
    B, F = 4096, 16
    H = int(F * 3.0)

    ks = jax.random.split(key, 7)
    x = jax.random.normal(ks[0], (B, F), dtype=jnp.float32)

    # deterministic, PyTorch-style uniform(-1/sqrt(fan_in), 1/sqrt(fan_in)) init
    def lin_init(kw, kb, fan_in, fan_out):
        bound = 1.0 / jnp.sqrt(float(fan_in))
        w = jax.random.uniform(kw, (fan_in, fan_out), jnp.float32, -bound, bound)
        b = jax.random.uniform(kb, (1, fan_out), jnp.float32, -bound, bound)
        return w, b

    w1, b1 = lin_init(ks[1], ks[2], F, H)
    w2, b2 = lin_init(ks[3], ks[4], H, F)
    w3, b3 = lin_init(ks[5], ks[6], F, 2)

    ref = mlp_reference(x, w1, b1, w2, b2, w3, b3)

    # exact-semantics check (f32 streaming)
    out_f32 = jax.block_until_ready(
        mlp_forward(x, w1, b1, w2, b2, w3, b3, compute_dtype=jnp.float32))
    assert out_f32.shape == (B, 2)
    assert jnp.allclose(out_f32, ref, atol=1e-5, rtol=1e-5), "f32 mismatch vs reference"

    # performance configuration (bf16 streaming of x / fc1 weight); looser tolerance
    out_bf16 = jax.block_until_ready(
        mlp_forward(x, w1, b1, w2, b2, w3, b3, compute_dtype=jnp.bfloat16))
    assert out_bf16.shape == (B, 2)
    assert jnp.allclose(out_bf16, ref, atol=2e-2), "bf16 mismatch vs reference"

    # small-batch path (single block, no grid split)
    out_small = jax.block_until_ready(
        mlp_forward(x[:8], w1, b1, w2, b2, w3, b3, compute_dtype=jnp.float32))
    assert jnp.allclose(out_small, ref[:8], atol=1e-5, rtol=1e-5), "small-batch mismatch"

    print("KERNEL_OK")
</pallas_src>

<mosaic_0001>
module attributes {stable_mosaic.version = 11 : i64} {
  func.func @mlp_kernel(%arg0: i32, %arg1: memref<256x128xf32, #tpu.memory_space<vmem>>, %arg2: memref<128x384xf32, #tpu.memory_space<vmem>>, %arg3: memref<1x384xf32, #tpu.memory_space<vmem>>, %arg4: memref<384x16xf32, #tpu.memory_space<vmem>>, %arg5: memref<1x16xf32, #tpu.memory_space<vmem>>, %arg6: memref<256x16xf32, #tpu.memory_space<vmem>>) attributes {dimension_semantics = [#tpu.dimension_semantics<parallel>], iteration_bounds = array<i64: 2>, scalar_prefetch = 0 : i64, scratch_operands = 0 : i64, tpu.core_type = #tpu.core_type<tc>, window_params = [{transform_indices = @transform_0, window_bounds = array<i64: 256, 128>}, {pipeline_mode = #tpu.pipeline_mode<synchronous>, transform_indices = @transform_1, window_bounds = array<i64: 128, 384>}, {pipeline_mode = #tpu.pipeline_mode<synchronous>, transform_indices = @transform_2, window_bounds = array<i64: 1, 384>}, {pipeline_mode = #tpu.pipeline_mode<synchronous>, transform_indices = @transform_3, window_bounds = array<i64: 384, 16>}, {pipeline_mode = #tpu.pipeline_mode<synchronous>, transform_indices = @transform_4, window_bounds = array<i64: 1, 16>}, {transform_indices = @transform_5, window_bounds = array<i64: 256, 16>}]} {
    %c0 = arith.constant 0 : index
    %c0_0 = arith.constant 0 : index
    %0 = vector.load %arg1[%c0, %c0_0] : memref<256x128xf32, #tpu.memory_space<vmem>>, vector<256x128xf32>
    %c0_1 = arith.constant 0 : index
    %c0_2 = arith.constant 0 : index
    %1 = vector.load %arg2[%c0_1, %c0_2] : memref<128x384xf32, #tpu.memory_space<vmem>>, vector<128x384xf32>
    %cst = arith.constant dense<0.000000e+00> : vector<256x384xf32>
    %2 = tpu.matmul %0, %1, %cst {dimension_numbers = #tpu.dot_dimension_numbers<[1], [0], [0], [1], [0, 0, 1, 1], [], []>} : vector<256x128xf32>, vector<128x384xf32>, vector<256x384xf32> -> vector<256x384xf32>
    %c0_3 = arith.constant 0 : index
    %c0_4 = arith.constant 0 : index
    %3 = vector.load %arg3[%c0_3, %c0_4] : memref<1x384xf32, #tpu.memory_space<vmem>>, vector<1x384xf32>
    %4 = vector.broadcast %3 : vector<1x384xf32> to vector<256x384xf32>
    %5 = arith.addf %2, %4 : vector<256x384xf32>
    %cst_5 = arith.constant 5.000000e-01 : f32
    %6 = vector.broadcast %cst_5 : f32 to vector<256x384xf32>
    %7 = arith.mulf %6, %5 : vector<256x384xf32>
    %cst_6 = arith.constant 0.707106769 : f32
    %8 = vector.broadcast %cst_6 : f32 to vector<256x384xf32>
    %9 = arith.mulf %5, %8 : vector<256x384xf32>
    %10 = math.erf %9 : vector<256x384xf32>
    %cst_7 = arith.constant 1.000000e+00 : f32
    %11 = vector.broadcast %cst_7 : f32 to vector<256x384xf32>
    %12 = arith.addf %11, %10 : vector<256x384xf32>
    %13 = arith.mulf %7, %12 : vector<256x384xf32>
    %c0_8 = arith.constant 0 : index
    %c0_9 = arith.constant 0 : index
    %14 = vector.load %arg4[%c0_8, %c0_9] : memref<384x16xf32, #tpu.memory_space<vmem>>, vector<384x16xf32>
    %cst_10 = arith.constant dense<0.000000e+00> : vector<256x16xf32>
    %15 = tpu.matmul %13, %14, %cst_10 {dimension_numbers = #tpu.dot_dimension_numbers<[1], [0], [0], [1], [0, 0, 1, 1], [], []>} : vector<256x384xf32>, vector<384x16xf32>, vector<256x16xf32> -> vector<256x16xf32>
    %c0_11 = arith.constant 0 : index
    %c0_12 = arith.constant 0 : index
    %16 = vector.load %arg5[%c0_11, %c0_12] : memref<1x16xf32, #tpu.memory_space<vmem>>, vector<1x16xf32>
    %17 = vector.broadcast %16 : vector<1x16xf32> to vector<256x16xf32>
    %18 = arith.addf %15, %17 : vector<256x16xf32>
    %19 = arith.negf %18 : vector<256x16xf32>
    %20 = math.exp %19 : vector<256x16xf32>
    %cst_13 = arith.constant 1.000000e+00 : f32
    %21 = vector.broadcast %cst_13 : f32 to vector<256x16xf32>
    %22 = arith.addf %21, %20 : vector<256x16xf32>
    %23 = arith.divf %21, %22 : vector<256x16xf32>
    %c0_14 = arith.constant 0 : index
    %c0_15 = arith.constant 0 : index
    %24 = vector.load %arg6[%c0_14, %c0_15] : memref<256x16xf32, #tpu.memory_space<vmem>>, vector<256x16xf32>
    tpu.vector_store %arg6[%c0_14, %c0_15], %23 {strides = array<i32>} : memref<256x16xf32, #tpu.memory_space<vmem>>, vector<256x16xf32>,
    return
  }
  func.func @transform_0(%arg0: i32) -> (i32, i32) {
    %c0_i32 = arith.constant 0 : i32
    %c0_i32_0 = arith.constant 0 : i32
    return %arg0, %c0_i32 : i32, i32
  }
  func.func @transform_1(%arg0: i32) -> (i32, i32) {
    %c0_i32 = arith.constant 0 : i32
    %c0_i32_0 = arith.constant 0 : i32
    %c0_i32_1 = arith.constant 0 : i32
    return %c0_i32, %c0_i32_0 : i32, i32
  }
  func.func @transform_2(%arg0: i32) -> (i32, i32) {
    %c0_i32 = arith.constant 0 : i32
    %c0_i32_0 = arith.constant 0 : i32
    %c0_i32_1 = arith.constant 0 : i32
    return %c0_i32, %c0_i32_0 : i32, i32
  }
  func.func @transform_3(%arg0: i32) -> (i32, i32) {
    %c0_i32 = arith.constant 0 : i32
    %c0_i32_0 = arith.constant 0 : i32
    %c0_i32_1 = arith.constant 0 : i32
    return %c0_i32, %c0_i32_0 : i32, i32
  }
  func.func @transform_4(%arg0: i32) -> (i32, i32) {
    %c0_i32 = arith.constant 0 : i32
    %c0_i32_0 = arith.constant 0 : i32
    %c0_i32_1 = arith.constant 0 : i32
    return %c0_i32, %c0_i32_0 : i32, i32
  }
  func.func @transform_5(%arg0: i32) -> (i32, i32) {
    %c0_i32 = arith.constant 0 : i32
    %c0_i32_0 = arith.constant 0 : i32
    return %arg0, %c0_i32 : i32, i32
  }
}

</mosaic_0001>

<bundles_post_ra>
// kernel: tpu_custom_call.1
= control target key start
LH: loop header
LB: loop body
LE: loop exit
PB: predicated region body
PF: predicated region fallthrough
CT: control target
= control target key end

     0   :  { %10 = vsyncpa [#allocation3], 0  ;;  %s12005_s0 = inlined_call_operand.hbm [shape: f32[512,128], index: 0, kind: input, shape index: {}]   ;;  %s12006_s1 = inlined_call_operand.vmem [shape: f32[128,384], index: 1, kind: input, shape index: {}]   ;;  %s12007_s2 = inlined_call_operand.vmem [shape: f32[1,384], index: 2, kind: input, shape index: {}]   ;;  %s12008_s3 = inlined_call_operand.vmem [shape: f32[384,16], index: 3, kind: input, shape index: {}]   ;;  %s12009_s4 = inlined_call_operand.vmem [shape: f32[1,16], index: 4, kind: input, shape index: {}]   ;;  %s12010_s5 = inlined_call_operand.vmem [shape: f32[512,16], index: 5, kind: output, shape index: {}]  }
   0x1   :  { %12 = vsyncpa [#allocation3 + $0x1], 0  ;;  %s6651_s18 = smov 0   ;;  %s6653_s19 = smov 0  }
   0x2   :  { %s6655_s20 = smov 0   ;;  %s6657_s21 = smov 0  }
   0x3 LB: > { %s5999_s22 = sadd.s32 4294967295, %s6617_s21   ;;  %s6671_s23 = sadd.s32 1, %s6617_s21   ;;  %s6617_s21 = sphi %s6657_s21, %s12473_s21   ;;  %s6613_s20 = sphi %s6655_s20, %s12472_s20   ;;  %s6609_s19 = sphi %s6653_s19, %s12471_s19   ;;  %s6605_s18 = sphi %s6651_s18, %s12470_s18  }
   0x4   : > { %s22_s24 = ssub.s32 %s6617_s21, %s6671_s23  ;;  %s25_s25 = sadd.s32 1, %s6613_s20 }
   0x5   : > { %p23_p0 = scmp.eq.s32.totalorder %s22_s24, 0  ;;  %p32_p1 = scmp.ne.s32.totalorder %s6613_s20, %s6609_s19 }
   0x6   : > { %p33_p2 = scmp.eq.s32.totalorder %s6617_s21, 0  ;;  %p38_p3 = scmp.ne.s32.totalorder %s6609_s19, %s6605_s18 }
   0x7   : > { %s6681_s26 = scalar_select %p23_p0, %s6613_s20, %s25_s25  }
   0x8   : > { %p6683_p4 = por %p33_p2, %p32_p1  ;;  %p39_p5 = scmp.eq.s32.totalorder %s5999_s22, 0 }
   0x9   : > { %p6179_p6 = scmp.lt.s32.totalorder %s6617_s21, 2  ;;  %s184_s29 = sand.u32 1, %s6613_s20  }
   0xa   : > { %p6690_p7 = por %p39_p5, %p38_p3  ;;  %s6003_s30 = sshll.u32 %s184_s29, 8 }
   0xb   : > { %s6140_s6 = sshll.u32 %s6617_s21, 8  ;;  %s188_s10 = scalar_lea.vmem [#allocation2], %s6003_s30 }
   0xc   : > { %s193_s9 = scalar_lea.hbm %s12005_s0, %s6140_s6  ;;  %s196_s11 = sshll.u32 %s188_s10, 4  ;;  %s197_s11 = int_to_ptr.vmem [resolvable:$true] %s196_s11 }
   0xd   : > { %s194_s12 = sshll.u32 %s193_s9, 4  ;;  %p6701_p8 = pnand %p6179_p6, %p6683_p4  ;;  %s195_s12 = int_to_ptr.hbm [resolvable:$true] %s194_s12 }
   0xe   : > { %p6006_p9 = scmp.ge.s32.totalorder %s6617_s21, 1  ;;  %s185_s14 = scalar_lea.sflag [#allocation3], %s184_s29 }
   0xf   : > { %s6553_s15 = sshra.s32 %s195_s12, 4  ;;  %p6557_p11 = pneg %p6701_p8  ;;  %s6554_s15 = int_to_ptr.hbm [resolvable:$true] %s6553_s15 }
  0x10   : > { %s6555_s16 = scalar_lea.hbm %s6554_s15, 256  ;;  %s6560_s24 = scalar_lea.hbm %s12005_s0, 512 }
  0x11   : > { %p6556_p10 = scmp.ne.s32.totalorder %s6554_s15, %s6555_s16  ;;  %p6561_p0 = scmp.lt.s32.totalorder %s6554_s15, %s12005_s0 }
  0x12   : > { %p6562_p1 = scmp.lt.s32.totalorder %s6560_s24, %s6555_s16 }
  0x13   : > { %p6558_p12 = pnand %p6557_p11, %p6556_p10 }
  0x14   : > { %p6563_p2 = por %p6562_p1, %p6561_p0 }
  0x15   : > { %p6559_p13 = pneg %p6558_p12 }
  0x17   : > { %p6564_p3 = pnand %p6563_p2, %p6559_p13 }
  0x19   : > { %6567 = shalt.err (!%p6564_p3)
}
  0x1a   : > { %s6619_s29 = smov 128   ;;  %s6620_s30 = smov 8  }
  0x1b   : > { %6178 = dma.hbm_to_vmem [thread:$0]  (!%p6701_p8), %s195_s12, 4096, %s197_s11, %s185_s14, %s6619_s29, %s6619_s29, %s6620_s30  }
  0x1c   : > { %p204_p4 = scmp.lt.s32.totalorder %s6617_s21, 3 }
  0x1e   : > { %p205_p5 = pnand %p6006_p9, %p204_p4 }
  0x20   : > { %208 = sbr.rel (%p205_p5) target bundleno = 1529 (0x5f9), region = 40 }
  0x25   : > { %s210_s6 = sand.u32 1, %s6609_s19  }
  0x26   : > { %s6007_s7 = sshll.u32 %s210_s6, 8  ;;  %s211_s8 = scalar_lea.sflag [#allocation3], %s210_s6 }
  0x27   : > { %s6720_s9 = scalar_lea.vmem [#allocation2], %s6007_s7 }
  0x28   : > { %6600 = dma.done.wait (%p6690_p7), %s211_s8, 4096  }
  0x29   : > { %6602 = vsyncadd (%p6690_p7), %s211_s8, 4294963200  ;;  %v326_v0 = vld [vmem:[%s12006_s1 + $0x168] sm:$0xff]  ;;  %v323_v1 = vld [vmem:[%s12006_s1 + $0x150] sm:$0xff]  ;;  %s11009_s8 = sshll.u32 %s5999_s22, 5 }
  0x2a   : > { %337 = vmatpush.msra.mxu0 %v326_v0  ;;  %6141 = vmatpush.msra.mxu2 %v326_v0  ;;  %v327_v2 = vld [vmem:[%s12006_s1 + $0x170] sm:$0xff]  ;;  %v320_v3 = vld [vmem:[%s12006_s1 + $0x138] sm:$0xff]  ;;  %v321_v5 = vld [vmem:[%s12006_s1 + $0x140] sm:$0xff]  ;;  %p244_p6 = scmp.lt.s32.totalorder %s11009_s8, 63 }
  0x2b   : > { %450 = vmatpush.msra.mxu1 %v327_v2  ;;  %v324_v4 = vld [vmem:[%s12006_s1 + $0x158] sm:$0xff]  ;;  %6157 = vmatpush.msra.mxu3 %v327_v2  ;;  %v317_v6 = vld [vmem:[%s12006_s1 + $0x120] sm:$0xff]  ;;  %v318_v7 = vld [vmem:[%s12006_s1 + $0x128] sm:$0xff] }
  0x2c   : > { %338 = vmatpush.msra.mxu0 %v323_v1  ;;  %6142 = vmatpush.msra.mxu2 %v323_v1  ;;  %v314_v8 = vld [vmem:[%s12006_s1 + $0x108] sm:$0xff]  ;;  %v315_v9 = vld [vmem:[%s12006_s1 + $0x110] sm:$0xff]  ;;  %v312_v11 = vld [vmem:[%s12006_s1 + $0xf8] sm:$0xff]  ;;  %s12475_s8 = smov (!%p244_p6, %s11009_s8), 63 }
  0x2d   : > { %451 = vmatpush.msra.mxu1 %v324_v4  ;;  %6158 = vmatpush.msra.mxu3 %v324_v4  ;;  %v311_v10 = vld [vmem:[%s12006_s1 + $0xf0] sm:$0xff]  ;;  %v308_v12 = vld [vmem:[%s12006_s1 + $0xd8] sm:$0xff]  ;;  %v309_v13 = vld [vmem:[%s12006_s1 + $0xe0] sm:$0xff]  ;;  %s6009_s21 = sshll.u32 %s12475_s8, 3 }
  0x2e   : > { %339 = vmatpush.msra.mxu0 %v320_v3  ;;  %6143 = vmatpush.msra.mxu2 %v320_v3  ;;  %v305_v14 = vld [vmem:[%s12006_s1 + $0xc0] sm:$0xff]  ;;  %v306_v15 = vld [vmem:[%s12006_s1 + $0xc8] sm:$0xff]  ;;  %v303_v17 = vld [vmem:[%s12006_s1 + $0xb0] sm:$0xff]  ;;  %s11091_s12 = scalar_lea.vmem %s12010_s5, %s6009_s21 }
  0x2f   : > { %452 = vmatpush.msra.mxu1 %v321_v5  ;;  %6159 = vmatpush.msra.mxu3 %v321_v5  ;;  %v302_v16 = vld [vmem:[%s12006_s1 + $0xa8] sm:$0xff]  ;;  %v299_v18 = vld [vmem:[%s12006_s1 + $0x90] sm:$0xff]  ;;  %v300_v19 = vld [vmem:[%s12006_s1 + $0x98] sm:$0xff] }
  0x30   : > { %340 = vmatpush.msra.mxu0 %v317_v6  ;;  %6144 = vmatpush.msra.mxu2 %v317_v6  ;;  %v296_v20 = vld [vmem:[%s12006_s1 + $0x78] sm:$0xff]  ;;  %v297_v21 = vld [vmem:[%s12006_s1 + $0x80] sm:$0xff]  ;;  %v294_v23 = vld [vmem:[%s12006_s1 + $0x68] sm:$0xff] }
  0x31   : > { %453 = vmatpush.msra.mxu1 %v318_v7  ;;  %6160 = vmatpush.msra.mxu3 %v318_v7  ;;  %v293_v22 = vld [vmem:[%s12006_s1 + $0x60] sm:$0xff]  ;;  %v290_v24 = vld [vmem:[%s12006_s1 + $0x48] sm:$0xff]  ;;  %v291_v25 = vld [vmem:[%s12006_s1 + $0x50] sm:$0xff] }
  0x32   : > { %341 = vmatpush.msra.mxu0 %v314_v8  ;;  %6145 = vmatpush.msra.mxu2 %v314_v8  ;;  %v287_v26 = vld [vmem:[%s12006_s1 + $0x30] sm:$0xff]  ;;  %v288_v27 = vld [vmem:[%s12006_s1 + $0x38] sm:$0xff]  ;;  %v285_v29 = vld [vmem:[%s12006_s1 + $0x20] sm:$0xff] }
  0x33   : > { %454 = vmatpush.msra.mxu1 %v315_v9  ;;  %6161 = vmatpush.msra.mxu3 %v315_v9  ;;  %v284_v28 = vld [vmem:[%s12006_s1 + $0x18] sm:$0xff]  ;;  %v281_v30 = vld [vmem:[%s12006_s1] sm:$0xff]  ;;  %v282_v34 = vld [vmem:[%s12006_s1 + $0x8] sm:$0xff] }
  0x34   : > { %342 = vmatpush.msra.mxu0 %v311_v10  ;;  %6146 = vmatpush.msra.mxu2 %v311_v10  ;;  %v6820_v31 = vld [vmem:[%s6720_s9] sm:$0xff]  ;;  %v328_v33 = vld [vmem:[%s12006_s1 + $0x178] sm:$0xff]  ;;  %v322_v36 = vld [vmem:[%s12006_s1 + $0x148] sm:$0xff] }
  0x35   : > { %455 = vmatpush.msra.mxu1 %v312_v11  ;;  %6162 = vmatpush.msra.mxu3 %v312_v11  ;;  %v6823_v32 = vld [vmem:[%s6720_s9 + $0x80] sm:$0xff]  ;;  %v319_v37 = vld [vmem:[%s12006_s1 + $0x130] sm:$0xff]  ;;  %v6845_v38 = vld [vmem:[%s6720_s9 + $0x8] sm:$0xff] }
  0x36   : > { %343 = vmatpush.msra.mxu0 %v308_v12  ;;  %6147 = vmatpush.msra.mxu2 %v308_v12  ;;  %v325_v35 = vld [vmem:[%s12006_s1 + $0x160] sm:$0xff]  ;;  %v266_v39 = vld [vmem:[%s6720_s9 + $0x88] sm:$0xff]  ;;  %v316_v40 = vld [vmem:[%s12006_s1 + $0x118] sm:$0xff] }
  0x37   : > { %456 = vmatpush.msra.mxu1 %v309_v13  ;;  %6163 = vmatpush.msra.mxu3 %v309_v13  ;;  %v313_v41 = vld [vmem:[%s12006_s1 + $0x100] sm:$0xff]  ;;  %v6857_v42 = vld [vmem:[%s6720_s9 + $0x10] sm:$0xff]  ;;  %v310_v44 = vld [vmem:[%s12006_s1 + $0xe8] sm:$0xff] }
  0x38   : > { %344 = vmatpush.msra.mxu0 %v305_v14  ;;  %6148 = vmatpush.msra.mxu2 %v305_v14  ;;  %v267_v43 = vld [vmem:[%s6720_s9 + $0x90] sm:$0xff]  ;;  %v6866_v45 = vld [vmem:[%s6720_s9 + $0x18] sm:$0xff]  ;;  %v6875_v48 = vld [vmem:[%s6720_s9 + $0x20] sm:$0xff] }
  0x39   : > { %457 = vmatpush.msra.mxu1 %v306_v15  ;;  %6164 = vmatpush.msra.mxu3 %v306_v15  ;;  %v268_v46 = vld [vmem:[%s6720_s9 + $0x98] sm:$0xff]  ;;  %v307_v47 = vld [vmem:[%s12006_s1 + $0xd0] sm:$0xff]  ;;  %v269_v49 = vld [vmem:[%s6720_s9 + $0xa0] sm:$0xff] }
  0x3a   : > { %345 = vmatpush.msra.mxu0 %v302_v16  ;;  %6149 = vmatpush.msra.mxu2 %v302_v16  ;;  %v304_v50 = vld [vmem:[%s12006_s1 + $0xb8] sm:$0xff]  ;;  %v6884_v51 = vld [vmem:[%s6720_s9 + $0x28] sm:$0xff]  ;;  %v301_v53 = vld [vmem:[%s12006_s1 + $0xa0] sm:$0xff] }
  0x3b   : > { %458 = vmatpush.msra.mxu1 %v303_v17  ;;  %6165 = vmatpush.msra.mxu3 %v303_v17  ;;  %v270_v52 = vld [vmem:[%s6720_s9 + $0xa8] sm:$0xff]  ;;  %v6893_v54 = vld [vmem:[%s6720_s9 + $0x30] sm:$0xff]  ;;  %v6902_v57 = vld [vmem:[%s6720_s9 + $0x38] sm:$0xff] }
  0x3c   : > { %346 = vmatpush.msra.mxu0 %v299_v18  ;;  %6150 = vmatpush.msra.mxu2 %v299_v18  ;;  %v271_v55 = vld [vmem:[%s6720_s9 + $0xb0] sm:$0xff]  ;;  %v298_v56 = vld [vmem:[%s12006_s1 + $0x88] sm:$0xff]  ;;  %v272_v58 = vld [vmem:[%s6720_s9 + $0xb8] sm:$0xff] }
  0x3d   : > { %459 = vmatpush.msra.mxu1 %v300_v19  ;;  %6166 = vmatpush.msra.mxu3 %v300_v19  ;;  %v295_v59 = vld [vmem:[%s12006_s1 + $0x70] sm:$0xff]  ;;  %v6911_v60 = vld [vmem:[%s6720_s9 + $0x40] sm:$0xff]  ;;  %v292_v62 = vld [vmem:[%s12006_s1 + $0x58] sm:$0xff] }
  0x3e   : > { %347 = vmatpush.msra.mxu0 %v296_v20  ;;  %6151 = vmatpush.msra.mxu2 %v296_v20  ;;  %v273_v61 = vld [vmem:[%s6720_s9 + $0xc0] sm:$0xff]  ;;  %v6920_v63 = vld [vmem:[%s6720_s9 + $0x48] sm:$0xff]  ;;  %v6929_v2 = vld [vmem:[%s6720_s9 + $0x50] sm:$0xff] }
  0x3f   : > { %460 = vmatpush.msra.mxu1 %v297_v21  ;;  %6167 = vmatpush.msra.mxu3 %v297_v21  ;;  %v274_v0 = vld [vmem:[%s6720_s9 + $0xc8] sm:$0xff]  ;;  %v289_v1 = vld [vmem:[%s12006_s1 + $0x40] sm:$0xff]  ;;  %v275_v3 = vld [vmem:[%s6720_s9 + $0xd0] sm:$0xff] }
  0x40   : > { %348 = vmatpush.msra.mxu0 %v293_v22  ;;  %6152 = vmatpush.msra.mxu2 %v293_v22  ;;  %v286_v4 = vld [vmem:[%s12006_s1 + $0x28] sm:$0xff]  ;;  %v6938_v5 = vld [vmem:[%s6720_s9 + $0x58] sm:$0xff]  ;;  %v283_v7 = vld [vmem:[%s12006_s1 + $0x10] sm:$0xff] }
  0x41   : > { %461 = vmatpush.msra.mxu1 %v294_v23  ;;  %6168 = vmatpush.msra.mxu3 %v294_v23  ;;  %v276_v6 = vld [vmem:[%s6720_s9 + $0xd8] sm:$0xff]  ;;  %v6947_v8 = vld [vmem:[%s6720_s9 + $0x60] sm:$0xff]  ;;  %v6953_v10 = vld [vmem:[%s6720_s9 + $0x68] sm:$0xff] }
  0x42   : > { %349 = vmatpush.msra.mxu0 %v290_v24  ;;  %6153 = vmatpush.msra.mxu2 %v290_v24  ;;  %v277_v9 = vld [vmem:[%s6720_s9 + $0xe0] sm:$0xff]  ;;  %v278_v11 = vld [vmem:[%s6720_s9 + $0xe8] sm:$0xff]  ;;  %v6959_v12 = vld [vmem:[%s6720_s9 + $0x70] sm:$0xff] }
  0x43   : > { %462 = vmatpush.msra.mxu1 %v291_v25  ;;  %6169 = vmatpush.msra.mxu3 %v291_v25  ;;  %v279_v13 = vld [vmem:[%s6720_s9 + $0xf0] sm:$0xff]  ;;  %v6965_v14 = vld [vmem:[%s6720_s9 + $0x78] sm:$0xff]  ;;  %v4913_v18 = vld [vmem:[%s12008_s3 + $0x68] sm:$0xff] }
  0x44   : > { %350 = vmatpush.msra.mxu0 %v287_v26  ;;  %6154 = vmatpush.msra.mxu2 %v287_v26  ;;  %v280_v15 = vld [vmem:[%s6720_s9 + $0xf8] sm:$0xff]  ;;  %v4914_v17 = vld [vmem:[%s12008_s3 + $0x70] sm:$0xff]  ;;  %v4912_v19 = vld [vmem:[%s12008_s3 + $0x60] sm:$0xff] }
  0x45   : > { %463 = vmatpush.msra.mxu1 %v288_v27  ;;  %6170 = vmatpush.msra.mxu3 %v288_v27  ;;  %v4915_v16 = vld [vmem:[%s12008_s3 + $0x78] sm:$0xff]  ;;  %v4930_v22 = vld [vmem:[%s12008_s3 + $0xf0] sm:$0xff]  ;;  %v4929_v24 = vld [vmem:[%s12008_s3 + $0xe8] sm:$0xff] }
  0x46   : > { %351 = vmatpush.msra.mxu0 %v284_v28  ;;  %6155 = vmatpush.msra.mxu2 %v284_v28  ;;  %v4931_v20 = vld [vmem:[%s12008_s3 + $0xf8] sm:$0xff]  ;;  %v4910_v23 = vld [vmem:[%s12008_s3 + $0x50] sm:$0xff]  ;;  %v4909_v25 = vld [vmem:[%s12008_s3 + $0x48] sm:$0xff] }
  0x47   : > { %464 = vmatpush.msra.mxu1 %v285_v29  ;;  %6171 = vmatpush.msra.mxu3 %v285_v29  ;;  %v4911_v21 = vld [vmem:[%s12008_s3 + $0x58] sm:$0xff]  ;;  %v4928_v26 = vld [vmem:[%s12008_s3 + $0xe0] sm:$0xff] }
  0x48   : > { %352 = vmatpush.msra.mxu0 %v281_v30  ;;  %6156 = vmatpush.msra.mxu2 %v281_v30  ;;  %v4908_v27 = vld [vmem:[%s12008_s3 + $0x40] sm:$0xff]  ;;  %v4927_v28 = vld [vmem:[%s12008_s3 + $0xd8] sm:$0xff]  ;;  %v4926_v30 = vld [vmem:[%s12008_s3 + $0xd0] sm:$0xff] }
  0x49   : > { %353 = vmatmul.f32.vlgmr.msra.gmra.mxu0 %v6820_v31  ;;  %401 = vmatmul.f32.vlgmr.msra.gmra.mxu2 %v6823_v32  ;;  %v4907_v29 = vld [vmem:[%s12008_s3 + $0x38] sm:$0xff] }
  0x4a   : > { %563 = vmatpush.msrb.mxu2 %v328_v33  ;;  %465 = vmatpush.msra.mxu1 %v282_v34  ;;  %v4925_v33 = vld [vmem:[%s12008_s3 + $0xc8] sm:$0xff] }
  0x4b   : > { %466 = vmatmul.f32.vlgmr.msra.gmra.mxu1 %v6820_v31  ;;  %6172 = vmatpush.msra.mxu3 %v282_v34  ;;  %v4905_v34 = vld [vmem:[%s12008_s3 + $0x28] sm:$0xff] }
  0x4c   : > { %564 = vmatpush.msrb.mxu2 %v325_v35  ;;  %514 = vmatmul.f32.vlgmr.msra.gmra.mxu3 %v6823_v32  ;;  %v4924_v35 = vld [vmem:[%s12008_s3 + $0xc0] sm:$0xff] }
  0x4d   : > { %4952 = vmatpush.msrb.mxu3 %v4915_v16  ;;  %5065 = vmatpush.msrb.mxu0 %v4931_v20 }
  0x4e   : > { %565 = vmatpush.msrb.mxu2 %v322_v36  ;;  %v4904_v36 = vld [vmem:[%s12008_s3 + $0x20] sm:$0xff] }
  0x4f   : > { %4953 = vmatpush.msrb.mxu3 %v4914_v17  ;;  %5066 = vmatpush.msrb.mxu0 %v4930_v22 }
  0x50   : > { %566 = vmatpush.msrb.mxu2 %v319_v37  ;;  %v4923_v37 = vld [vmem:[%s12008_s3 + $0xb8] sm:$0xff] }
  0x51   : > { %356 = vmatmul.f32.gmra.mxu0 %v6845_v38  ;;  %404 = vmatmul.f32.gmra.mxu2 %v266_v39 }
  0x52   : > { %567 = vmatpush.msrb.mxu2 %v316_v40  ;;  %4954 = vmatpush.msrb.mxu3 %v4913_v18  ;;  %v329_v40 = vld [vmem:[%s12007_s2] sm:$0x7] }
  0x53   : > { %469 = vmatmul.f32.gmra.mxu1 %v6845_v38  ;;  %5067 = vmatpush.msrb.mxu0 %v4929_v24 }
  0x54   : > { %568 = vmatpush.msrb.mxu2 %v313_v41  ;;  %517 = vmatmul.f32.gmra.mxu3 %v266_v39  ;;  %v4922_v39 = vld [vmem:[%s12008_s3 + $0xb0] sm:$0xff] }
  0x55   : > { %4955 = vmatpush.msrb.mxu3 %v4912_v19  ;;  %5068 = vmatpush.msrb.mxu0 %v4928_v26  ;;  %v4902_v41 = vld [vmem:[%s12008_s3 + $0x10] sm:$0xff] }
  0x56   : > { %569 = vmatpush.msrb.mxu2 %v310_v44  ;;  %v4901_v44 = vld [vmem:[%s12008_s3 + $0x8] sm:$0xff] }
  0x57   : > { %4956 = vmatpush.msrb.mxu3 %v4911_v21  ;;  %5069 = vmatpush.msrb.mxu0 %v4927_v28 }
  0x58   : > { %570 = vmatpush.msrb.mxu2 %v307_v47  ;;  %v4900_v47 = vld [vmem:[%s12008_s3] sm:$0xff] }
  0x59   : > { %359 = vmatmul.f32.gmra.mxu0 %v6857_v42  ;;  %407 = vmatmul.f32.gmra.mxu2 %v267_v43 }
  0x5a   : > { %571 = vmatpush.msrb.mxu2 %v304_v50  ;;  %4957 = vmatpush.msrb.mxu3 %v4910_v23 }
  0x5b   : > { %472 = vmatmul.f32.gmra.mxu1 %v6857_v42  ;;  %5070 = vmatpush.msrb.mxu0 %v4926_v30 }
  0x5c   : > { %520 = vmatmul.f32.gmra.mxu3 %v267_v43  ;;  %572 = vmatpush.msrb.mxu2 %v301_v53  ;;  %v7053_v43 = vperm.slane %v329_v40, 0 }
  0x5d   : > { %4958 = vmatpush.msrb.mxu3 %v4909_v25  ;;  %5071 = vmatpush.msrb.mxu0 %v4925_v33 }
  0x5e   : > { %573 = vmatpush.msrb.mxu2 %v298_v56 }
  0x5f   : > { %4959 = vmatpush.msrb.mxu3 %v4908_v27  ;;  %5072 = vmatpush.msrb.mxu0 %v4924_v35 }
  0x60   : > { %574 = vmatpush.msrb.mxu2 %v295_v59 }
  0x61   : > { %362 = vmatmul.f32.gmra.mxu0 %v6866_v45  ;;  %410 = vmatmul.f32.gmra.mxu2 %v268_v46 }
  0x62   : > { %575 = vmatpush.msrb.mxu2 %v292_v62  ;;  %4960 = vmatpush.msrb.mxu3 %v4907_v29 }
  0x63   : > { %475 = vmatmul.f32.gmra.mxu1 %v6866_v45  ;;  %5073 = vmatpush.msrb.mxu0 %v4923_v37 }
  0x64   : > { %523 = vmatmul.f32.gmra.mxu3 %v268_v46  ;;  %576 = vmatpush.msrb.mxu2 %v289_v1 }
  0x65   : > { %5074 = vmatpush.msrb.mxu0 %v4922_v39 }
  0x66   : > { %577 = vmatpush.msrb.mxu2 %v286_v4 }
  0x68   : > { %578 = vmatpush.msrb.mxu2 %v283_v7 }
  0x69   : > { %365 = vmatmul.f32.gmra.mxu0 %v6875_v48  ;;  %413 = vmatmul.f32.gmra.mxu2 %v269_v49 }
  0x6b   : > { %478 = vmatmul.f32.gmra.mxu1 %v6875_v48 }
  0x6c   : > { %526 = vmatmul.f32.gmra.mxu3 %v269_v49 }
  0x71   : > { %368 = vmatmul.f32.gmra.mxu0 %v6884_v51  ;;  %416 = vmatmul.f32.gmra.mxu2 %v270_v52 }
  0x73   : > { %481 = vmatmul.f32.gmra.mxu1 %v6884_v51 }
  0x74   : > { %529 = vmatmul.f32.gmra.mxu3 %v270_v52  ;;  %v7074_v52 = vperm.slane %v329_v40, 1 }
  0x79   : > { %371 = vmatmul.f32.gmra.mxu0 %v6893_v54  ;;  %419 = vmatmul.f32.gmra.mxu2 %v271_v55 }
  0x7b   : > { %484 = vmatmul.f32.gmra.mxu1 %v6893_v54 }
  0x7c   : > { %532 = vmatmul.f32.gmra.mxu3 %v271_v55 }
  0x81   : > { %374 = vmatmul.f32.gmra.mxu0 %v6902_v57  ;;  %422 = vmatmul.f32.gmra.mxu2 %v272_v58 }
  0x83   : > { %487 = vmatmul.f32.gmra.mxu1 %v6902_v57 }
  0x84   : > { %535 = vmatmul.f32.gmra.mxu3 %v272_v58 }
  0x89   : > { %377 = vmatmul.f32.gmra.mxu0 %v6911_v60  ;;  %425 = vmatmul.f32.gmra.mxu2 %v273_v61 }
  0x8b   : > { %490 = vmatmul.f32.gmra.mxu1 %v6911_v60 }
  0x8c   : > { %538 = vmatmul.f32.gmra.mxu3 %v273_v61 }
  0x91   : > { %380 = vmatmul.f32.gmra.mxu0 %v6920_v63  ;;  %428 = vmatmul.f32.gmra.mxu2 %v274_v0 }
  0x93   : > { %493 = vmatmul.f32.gmra.mxu1 %v6920_v63 }
  0x94   : > { %541 = vmatmul.f32.gmra.mxu3 %v274_v0 }
  0x99   : > { %383 = vmatmul.f32.gmra.mxu0 %v6929_v2  ;;  %431 = vmatmul.f32.gmra.mxu2 %v275_v3 }
  0x9b   : > { %496 = vmatmul.f32.gmra.mxu1 %v6929_v2 }
  0x9c   : > { %544 = vmatmul.f32.gmra.mxu3 %v275_v3 }
  0xa1   : > { %386 = vmatmul.f32.gmra.mxu0 %v6938_v5  ;;  %434 = vmatmul.f32.gmra.mxu2 %v276_v6 }
  0xa3   : > { %499 = vmatmul.f32.gmra.mxu1 %v6938_v5 }
  0xa4   : > { %547 = vmatmul.f32.gmra.mxu3 %v276_v6 }
  0xa9   : > { %389 = vmatmul.f32.gmra.mxu0 %v6947_v8  ;;  %437 = vmatmul.f32.gmra.mxu2 %v277_v9 }
  0xab   : > { %502 = vmatmul.f32.gmra.mxu1 %v6947_v8 }
  0xac   : > { %550 = vmatmul.f32.gmra.mxu3 %v277_v9 }
  0xb1   : > { %392 = vmatmul.f32.gmra.mxu0 %v6953_v10  ;;  %440 = vmatmul.f32.gmra.mxu2 %v278_v11 }
  0xb3   : > { %505 = vmatmul.f32.gmra.mxu1 %v6953_v10 }
  0xb4   : > { %553 = vmatmul.f32.gmra.mxu3 %v278_v11 }
  0xb9   : > { %395 = vmatmul.f32.gmra.mxu0 %v6959_v12  ;;  %443 = vmatmul.f32.gmra.mxu2 %v279_v13 }
  0xbb   : > { %508 = vmatmul.f32.gmra.mxu1 %v6959_v12 }
  0xbc   : > { %556 = vmatmul.f32.gmra.mxu3 %v279_v13 }
  0xc1   : > { %398 = vmatmul.f32.gmra.mxu0 %v6965_v14  ;;  %446 = vmatmul.f32.gmra.mxu2 %v280_v15 }
  0xc3   : > { %511 = vmatmul.f32.gmra.mxu1 %v6965_v14 }
  0xc4   : > { %559 = vmatmul.f32.gmra.mxu3 %v280_v15 }
  0xc6   : > { %v354_v46 = vpop.f32.mrf.mxu0 }
  0xc7   : > { %v7068_v49 = vadd.f32 %v354_v46, %v7053_v43 }
  0xc8   : > { %v467_v53 = vpop.f32.mrf.mxu1 }
  0xc9   : > { %579 = vmatmul.f32.vlgmr.msrb.gmra.mxu2 %v6820_v31  ;;  %v4906_v31 = vld [vmem:[%s12008_s3 + $0x30] sm:$0xff]  ;;  %v7072_v50 = vmul.f32 0.70710677, %v7068_v49  ;;  %v7079_v58 = vadd.f32 %v467_v53, %v7074_v52 }
  0xca   : > { %4961 = vmatpush.msrb.mxu3 %v4906_v31 }
  0xcb   : > { %v868_v55 = vmul.f32 %v7072_v50, %v7072_v50 }
  0xcc   : > { %4962 = vmatpush.msrb.mxu3 %v4905_v34  ;;  %v402_v56 = vpop.f32.mrf.mxu2 }
  0xcd   : > { %v7083_v59 = vadd.f32 %v402_v56, %v7053_v43  ;;  %v7085_v61 = vmin.f32 %v868_v55, 16.0 }
  0xce   : > { %4963 = vmatpush.msrb.mxu3 %v4904_v36  ;;  %v357_v0 = vpop.f32.mrf.mxu0 }
  0xcf   : > { %v870_v62 = vmul.f32 2.1237322e-06, %v7085_v61  ;;  %v7092_v1 = vmul.f32 0.70710677, %v7083_v59  ;;  %v7097_v4 = vadd.f32 %v357_v0, %v7053_v43  ;;  %v881_v9 = vmul.f32 3.8918573e-05, %v7085_v61 }
  0xd0   : > { %v470_v7 = vpop.f32.mrf.mxu1 }
  0xd1   : > { %582 = vmatmul.f32.gmra.mxu2 %v6845_v38  ;;  %v4903_v38 = vld [vmem:[%s12008_s3 + $0x18] sm:$0xff]  ;;  %v2788_v6 = vmul.f32 %v7092_v1, %v7092_v1  ;;  %v7106_v15 = vmul.f32 0.70710677, %v7097_v4  ;;  %v7111_v18 = vadd.f32 %v470_v7, %v7074_v52  ;;  %v882_v19 = vadd.f32 0.001143296, %v881_v9 }
  0xd2   : > { %4964 = vmatpush.msrb.mxu3 %v4903_v38 }
  0xd3   : > { %v988_v20 = vmul.f32 %v7106_v15, %v7106_v15  ;;  %v7121_v24 = vmul.f32 0.70710677, %v7111_v18  ;;  %v883_v26 = vmul.f32 %v882_v19, %v7085_v61 }
  0xd4   : > { %4965 = vmatpush.msrb.mxu3 %v4902_v41  ;;  %v405_v13 = vpop.f32.mrf.mxu2 }
  0xd5   : > { %v7118_v21 = vadd.f32 %v405_v13, %v7053_v43  ;;  %v7126_v27 = vmin.f32 %v988_v20, 16.0  ;;  %v1028_v31 = vmul.f32 %v7121_v24, %v7121_v24  ;;  %v884_v36 = vadd.f32 0.014752088, %v883_v26  ;;  %v4916_v26 = vld [vmem:[%s12008_s3 + $0x80] sm:$0xff] }
  0xd6   : > { %4966 = vmatpush.msrb.mxu3 %v4901_v44  ;;  %v360_v35 = vpop.f32.mrf.mxu0 }
  0xd7   : > { %v7129_v28 = vmul.f32 0.70710677, %v7118_v21  ;;  %v7138_v40 = vmin.f32 %v1028_v31, 16.0  ;;  %v7141_v41 = vadd.f32 %v360_v35, %v7053_v43 }
  0xd8   : > { %4967 = vmatpush.msrb.mxu3 %v4900_v47 }
  0xd9   : > { %585 = vmatmul.f32.gmra.mxu2 %v6857_v42  ;;  %v4921_v42 = vld [vmem:[%s12008_s3 + $0xa8] sm:$0xff]  ;;  %v2908_v37 = vmul.f32 %v7129_v28, %v7129_v28  ;;  %v1030_v46 = vmul.f32 2.1237322e-06, %v7138_v40  ;;  %v7152_v55 = vmul.f32 0.70710677, %v7141_v41 }
  0xda   : > { %5075 = vmatpush.msrb.mxu0 %v4921_v42 }
  0xdb   : > { %v7147_v47 = vmin.f32 %v2908_v37, 16.0  ;;  %v1031_v0 = vadd.f32 0.00028619796, %v1030_v46  ;;  %v1108_v13 = vmul.f32 %v7152_v55, %v7152_v55 }
  0xdc   : > { %v408_v33 = vpop.f32.mrf.mxu2 }
  0xdd   : > { %12073 = vst [vmem:[#allocation6_spill] sm:$0xff] %v7147_v47  ;;  %v7167_v20 = vadd.f32 %v408_v33, %v7053_v43 }
  0xe1   : > { %588 = vmatmul.f32.gmra.mxu2 %v6866_v45  ;;  %v4920_v45 = vld [vmem:[%s12008_s3 + $0xa0] sm:$0xff] }
  0xe2   : > { %5076 = vmatpush.msrb.mxu0 %v4920_v45  ;;  %v885_v45 = vmul.f32 %v884_v36, %v7085_v61  ;;  %v7183_v36 = vmul.f32 0.70710677, %v7167_v20 }
  0xe9   : > { %591 = vmatmul.f32.gmra.mxu2 %v6875_v48  ;;  %v4919_v48 = vld [vmem:[%s12008_s3 + $0x98] sm:$0xff] }
  0xea   : > { %5077 = vmatpush.msrb.mxu0 %v4919_v48 }
  0xf1   : > { %594 = vmatmul.f32.gmra.mxu2 %v6884_v51  ;;  %v7088_v51 = vmul.f32 0.70710677, %v7079_v58 }
  0xf3   : > { %v908_v3 = vmul.f32 %v7088_v51, %v7088_v51 }
  0xf5   : > { %v7103_v11 = vmin.f32 %v908_v3, 16.0  ;;  %v7155_v3 = vpop.f32.mrf.mxu2 }
  0xf7   : > { %v910_v17 = vmul.f32 2.1237322e-06, %v7103_v11 }
  0xf9   : > { %597 = vmatmul.f32.gmra.mxu2 %v6893_v54  ;;  %v871_v54 = vadd.f32 0.00028619796, %v870_v62  ;;  %v911_v23 = vadd.f32 0.00028619796, %v910_v17 }
  0xfb   : > { %v872_v16 = vmul.f32 %v871_v54, %v7085_v61  ;;  %v912_v30 = vmul.f32 %v911_v23, %v7103_v11  ;;  %v2910_v54 = vmul.f32 2.1237322e-06, %v7147_v47  ;;  %v1032_v23 = vmul.f32 %v1031_v0, %v7138_v40 }
  0xfd   : > { %v873_v22 = vadd.f32 0.0036580483, %v872_v16  ;;  %v913_v39 = vadd.f32 0.0036580483, %v912_v30  ;;  %v4918_v16 = vld [vmem:[%s12008_s3 + $0x90] sm:$0xff]  ;;  %v7194_v46 = vpop.f32.mrf.mxu2 }
  0xfe   : > { %5078 = vmatpush.msrb.mxu0 %v4918_v16  ;;  %v7212_v16 = vmul.f32 0.5, %v7083_v59 }
  0xff   : > { %v874_v29 = vmul.f32 %v873_v22, %v7085_v61  ;;  %v914_v53 = vmul.f32 %v913_v39, %v7103_v11 }
 0x100   : > { %12074 = vst [vmem:[#allocation7_spill] sm:$0xff] %v7212_v16 }
 0x101   : > { %600 = vmatmul.f32.gmra.mxu2 %v6902_v57  ;;  %v7113_v57 = vmin.f32 %v2788_v6, 16.0  ;;  %v875_v38 = vadd.f32 0.05243302, %v874_v29  ;;  %v915_v9 = vadd.f32 0.05243302, %v914_v53 }
 0x102   : > { %v2911_v29 = vadd.f32 0.00028619796, %v2910_v54 }
 0x103   : > { %12072 = vst [vmem:[#allocation5_spill] sm:$0xff] %v7113_v57  ;;  %v2790_v25 = vmul.f32 2.1237322e-06, %v7113_v57  ;;  %v876_v48 = vmul.f32 %v875_v38, %v7085_v61  ;;  %v916_v33 = vmul.f32 %v915_v9, %v7103_v11  ;;  %v1033_v38 = vadd.f32 0.0036580483, %v1032_v23 }
 0x104   : > { %v7206_v9 = vmul.f32 0.5, %v7068_v49 }
 0x105   : > { %v2791_v34 = vadd.f32 0.00028619796, %v2790_v25  ;;  %v877_v7 = vadd.f32 0.18741608, %v876_v48  ;;  %v4917_v25 = vld [vmem:[%s12008_s3 + $0x88] sm:$0xff]  ;;  %v1034_v0 = vmul.f32 %v1033_v38, %v7138_v40 }
 0x106   : > { %5079 = vmatpush.msrb.mxu0 %v4917_v25  ;;  %v1001_v48 = vmul.f32 3.8918573e-05, %v7126_v27 }
 0x107   : > { %v2792_v42 = vmul.f32 %v2791_v34, %v7113_v57  ;;  %v878_v31 = vmul.f32 %v877_v7, %v7085_v61  ;;  %v7179_v34 = vmin.f32 %v1108_v13, 16.0  ;;  %v7209_v13 = vmul.f32 0.5, %v7079_v58 }
 0x108   : > { %5080 = vmatpush.msrb.mxu0 %v4916_v26 }
 0x109   : > { %603 = vmatmul.f32.gmra.mxu2 %v6911_v60  ;;  %v990_v60 = vmul.f32 2.1237322e-06, %v7126_v27  ;;  %v2793_v56 = vadd.f32 0.0036580483, %v2792_v42  ;;  %v1110_v39 = vmul.f32 2.1237322e-06, %v7179_v34 }
 0x10a   : > { %v879_v53 = vadd.f32 1.1283791, %v878_v31 }
 0x10b   : > { %v991_v44 = vadd.f32 0.00028619796, %v990_v60  ;;  %v2794_v17 = vmul.f32 %v2793_v56, %v7113_v57  ;;  %v1111_v54 = vadd.f32 0.00028619796, %v1110_v39 }
 0x10c   : > { %v880_v25 = vmul.f32 %v879_v53, %v7072_v50 }
 0x10d   : > { %v992_v62 = vmul.f32 %v991_v44, %v7126_v27  ;;  %v2795_v60 = vadd.f32 0.05243302, %v2794_v17  ;;  %v2912_v44 = vmul.f32 %v2911_v29, %v7147_v47  ;;  %v1112_v58 = vmul.f32 %v1111_v54, %v7179_v34 }
 0x10f   : > { %v993_v19 = vadd.f32 0.0036580483, %v992_v62  ;;  %v2796_v56 = vmul.f32 %v2795_v60, %v7113_v57 }
 0x111   : > { %606 = vmatmul.f32.gmra.mxu2 %v6920_v63  ;;  %v886_v63 = vadd.f32 0.112945676, %v885_v45  ;;  %v994_v35 = vmul.f32 %v993_v19, %v7126_v27  ;;  %v917_v45 = vadd.f32 0.18741608, %v916_v33  ;;  %v2797_v26 = vadd.f32 0.18741608, %v2796_v56  ;;  %v363_v56 = vpop.f32.mrf.mxu0 }
 0x113   : > { %v887_v6 = vmul.f32 %v886_v63, %v7085_v61  ;;  %v995_v62 = vadd.f32 0.05243302, %v994_v35  ;;  %v3028_v63 = vmul.f32 %v7183_v36, %v7183_v36  ;;  %v918_v17 = vmul.f32 %v917_v45, %v7103_v11 }
 0x115   : > { %v888_v22 = vadd.f32 0.4994258, %v887_v6  ;;  %v996_v29 = vmul.f32 %v995_v62, %v7126_v27  ;;  %v7218_v49 = vmin.f32 %v3028_v63, 16.0  ;;  %v7230_v39 = vadd.f32 1.1283791, %v918_v17  ;;  %v7235_v62 = vpop.f32.mrf.mxu2 }
 0x117   : > { %v889_v30 = vmul.f32 %v888_v22, %v7085_v61  ;;  %v921_v61 = vmul.f32 3.8918573e-05, %v7103_v11  ;;  %v1002_v22 = vadd.f32 0.001143296, %v1001_v48  ;;  %12075 = vst [vmem:[#allocation8_spill] sm:$0xff] %v7218_v49 }
 0x118   : > { %v997_v48 = vadd.f32 0.18741608, %v996_v29 }
 0x119   : > { %609 = vmatmul.f32.gmra.mxu2 %v6929_v2  ;;  %v473_v2 = vpop.f32.mrf.mxu1  ;;  %v7185_v37 = vadd.f32 1.0, %v889_v30  ;;  %v922_v7 = vadd.f32 0.001143296, %v921_v61  ;;  %v1003_v50 = vmul.f32 %v1002_v22, %v7126_v27  ;;  %v3030_v61 = vmul.f32 2.1237322e-06, %v7218_v49 }
 0x11a   : > { %v7189_v42 = vadd.f32 %v473_v2, %v7074_v52  ;;  %v1035_v2 = vadd.f32 0.05243302, %v1034_v0  ;;  %v1041_v0 = vmul.f32 3.8918573e-05, %v7138_v40  ;;  %v1113_v22 = vadd.f32 0.0036580483, %v1112_v58 }
 0x11b   : > { %6215 = vrcp.f32 %v7185_v37  ;;  %v923_v19 = vmul.f32 %v922_v7, %v7103_v11  ;;  %v902_v33 = vand.u32 2147483648, %v7185_v37  ;;  %vm896_vm0 = vweird.f32 %v7185_v37  ;;  %v4947_v58 = vld [vmem:[%s12008_s3 + $0x178] sm:$0xff] }
 0x11c   : > { %v7203_v6 = vmul.f32 0.70710677, %v7189_v42  ;;  %v900_v38 = vand.u32 2147483647, %v7185_v37  ;;  %v1004_v45 = vadd.f32 0.014752088, %v1003_v50  ;;  %v1036_v53 = vmul.f32 %v1035_v2, %v7138_v40  ;;  %5178 = vmatpush.msrb.mxu1 %v4947_v58 }
 0x11d   : > { %v924_v60 = vadd.f32 0.014752088, %v923_v19  ;;  %v903_v7 = vor.u32 1.1754944e-38, %v902_v33  ;;  %v3031_v2 = vadd.f32 0.00028619796, %v3030_v61  ;;  %v7251_v50 = vadd.f32 %v363_v56, %v7053_v43 }
 0x11e   : > { %v1148_v59 = vmul.f32 %v7203_v6, %v7203_v6  ;;  %v1005_v17 = vmul.f32 %v1004_v45, %v7126_v27  ;;  %vm901_vm3 = vcmp.eq.f32.partialorder %v900_v38, 8.507059e+37  ;;  %v412_v38 = vadd.f32 %v7155_v3, %v7053_v43 }
 0x11f   : > { %v1114_v45 = vmul.f32 %v1113_v22, %v7179_v34  ;;  %v7268_v3 = vmul.f32 0.70710677, %v7251_v50 }
 0x120   : > { %v7238_v54 = vmin.f32 %v1148_v59, 16.0  ;;  %v7274_v22 = vmul.f32 0.70710677, %v412_v38 }
 0x121   : > { %612 = vmatmul.f32.gmra.mxu2 %v6938_v5  ;;  %v2913_v5 = vadd.f32 0.0036580483, %v2912_v44  ;;  %v6216_v23 = vpop.eup %6215  ;;  %v925_v44 = vmul.f32 %v924_v60, %v7103_v11  ;;  %v1006_v60 = vadd.f32 0.112945676, %v1005_v17 }
 0x122   : > { %v892_v30 = vmul.f32 %v6216_v23, %v7185_v37  ;;  %vm897_vm1 = vweird.f32 %v6216_v23  ;;  %v2798_v37 = vmul.f32 %v2797_v26, %v7113_v57  ;;  %v1037_v26 = vadd.f32 0.18741608, %v1036_v53 }
 0x123   : > { %v2914_v31 = vmul.f32 %v2913_v5, %v7147_v47  ;;  %vm7242_vm2 = vmor %vm896_vm0, %vm897_vm1  ;;  %v926_v5 = vadd.f32 0.112945676, %v925_v44 }
 0x124   : > { %v893_v35 = vsub.f32 1.0, %v892_v30  ;;  %v1150_v30 = vmul.f32 2.1237322e-06, %v7238_v54  ;;  %v2799_v17 = vadd.f32 1.1283791, %v2798_v37  ;;  %v1228_v37 = vmul.f32 %v7268_v3, %v7268_v3 }
 0x125   : > { %v2915_v19 = vadd.f32 0.05243302, %v2914_v31  ;;  %v927_v59 = vmul.f32 %v926_v5, %v7103_v11  ;;  %v1042_v31 = vadd.f32 0.001143296, %v1041_v0  ;;  %v3032_v0 = vmul.f32 %v3031_v2, %v7218_v49 }
 0x126   : > { %v894_v63 = vmul.f32 %v6216_v23, %v893_v35  ;;  %v998_v35 = vmul.f32 %v997_v48, %v7126_v27  ;;  %v1115_v2 = vadd.f32 0.05243302, %v1114_v45 }
 0x127   : > { %v928_v44 = vadd.f32 0.4994258, %v927_v59  ;;  %v1043_v53 = vmul.f32 %v1042_v31, %v7138_v40  ;;  %v7276_v59 = vpop.f32.mrf.mxu2  ;;  %v3033_v58 = vadd.f32 0.0036580483, %v3032_v0 }
 0x128   : > { %v895_v29 = vadd.f32 %v6216_v23, %v894_v63  ;;  %v1007_v63 = vmul.f32 %v1006_v60, %v7126_v27 }
 0x129   : > { %615 = vmatmul.f32.gmra.mxu2 %v6947_v8  ;;  %v1151_v8 = vadd.f32 0.00028619796, %v1150_v30  ;;  %v929_v48 = vmul.f32 %v928_v44, %v7103_v11  ;;  %v366_v30 = vpop.f32.mrf.mxu0  ;;  %v3148_v44 = vmul.f32 %v7274_v22, %v7274_v22 }
 0x12a   : > { %v899_v33 = vsel %vm7242_vm2, %v6216_v23, %v895_v29  ;;  %v2916_v23 = vmul.f32 %v2915_v19, %v7147_v47  ;;  %v1008_v5 = vadd.f32 0.4994258, %v1007_v63  ;;  %v999_v29 = vadd.f32 1.1283791, %v998_v35 }
 0x12b   : > { %v904_v61 = vsel %vm901_vm3, %v903_v7, %v899_v33  ;;  %v930_v19 = vadd.f32 1.0, %v929_v48  ;;  %v1152_v31 = vmul.f32 %v1151_v8, %v7238_v54  ;;  %v1044_v35 = vadd.f32 0.014752088, %v1043_v53 }
 0x12c   : > { %v905_v56 = vmul.f32 %v904_v61, %v880_v25  ;;  %v7272_v25 = vmul.f32 0.5, %v7118_v21  ;;  %v1009_v60 = vmul.f32 %v1008_v5, %v7126_v27  ;;  %v2917_v33 = vadd.f32 0.18741608, %v2916_v23 }
 0x12d   : > { %6217 = vrcp.f32 %v930_v19  ;;  %v1038_v21 = vmul.f32 %v1037_v26, %v7138_v40  ;;  %v7290_v27 = vadd.f32 %v366_v30, %v7053_v43  ;;  %v7295_v63 = vmul.f32 %v2799_v17, %v7092_v1 }
 0x12e   : > { %v6010_v7 = vclamps-f32 %v905_v56, 1.0  ;;  %12078 = vst [vmem:[#allocation9_spill] sm:$0xff] %v7272_v25  ;;  %v7292_v56 = vadd.f32 1.0, %v1009_v60  ;;  %v7299_v26 = vmul.f32 %v7230_v39, %v7088_v51  ;;  %v7303_v23 = vmul.f32 0.5, %v7167_v20 }
 0x12f   : > { %12079 = vst [vmem:[#allocation10_spill] sm:$0xff] %v7295_v63  ;;  %v2918_v0 = vmul.f32 %v2917_v33, %v7147_v47  ;;  %v3034_v8 = vmul.f32 %v3033_v58, %v7218_v49  ;;  %v1153_v48 = vadd.f32 0.0036580483, %v1152_v31  ;;  %v7310_v1 = vmul.f32 %v999_v29, %v7106_v15  ;;  %v7331_v58 = vpop.f32.mrf.mxu2 }
 0x130   : > { %v4708_v11 = vadd.f32 1.0, %v6010_v7  ;;  %12080 = vst [vmem:[#allocation11_spill] sm:$0xff] %v7303_v23  ;;  %6219 = vrcp.f32 %v7292_v56  ;;  %v7312_v51 = vadd.f32 1.1283791, %v1038_v21  ;;  %v7314_v39 = vmin.f32 %v1228_v37, 16.0 }
 0x131   : > { %618 = vmatmul.f32.gmra.mxu2 %v6953_v10  ;;  %v476_v10 = vpop.f32.mrf.mxu1  ;;  %v1045_v20 = vmul.f32 %v1044_v35, %v7138_v40  ;;  %v7317_v5 = vmul.f32 0.5, %v412_v38  ;;  %v7325_v17 = vmul.f32 0.70710677, %v7290_v27  ;;  %v7328_v30 = vadd.f32 1.1283791, %v2918_v0 }
 0x132   : > { %v4804_v61 = vmul.f32 %v4708_v11, %v7206_v9  ;;  %v7287_v45 = vadd.f32 %v476_v10, %v7074_v52  ;;  %v1116_v9 = vmul.f32 %v1115_v2, %v7179_v34  ;;  %v1230_v15 = vmul.f32 2.1237322e-06, %v7314_v39 }
 0x133   : > { %v6218_v7 = vpop.eup %6217  ;;  %12081 = vst [vmem:[#allocation12_spill] sm:$0xff] %v7317_v5  ;;  %v940_v2 = vand.u32 2147483647, %v930_v19  ;;  %v3035_v11 = vadd.f32 0.05243302, %v3034_v8  ;;  %v1154_v60 = vmul.f32 %v1153_v48, %v7238_v54  ;;  %v942_v38 = vand.u32 2147483648, %v930_v19 }
 0x134   : > { %4968 = vmatmul.f32.vlgmr.msrb.gmra.mxu3 %v4804_v61  ;;  %v7322_v53 = vmul.f32 0.70710677, %v7287_v45  ;;  %v1117_v10 = vadd.f32 0.18741608, %v1116_v9  ;;  %v932_v29 = vmul.f32 %v6218_v7, %v930_v19  ;;  %vm936_vm4 = vweird.f32 %v930_v19 }
 0x135   : > { %vm937_vm5 = vweird.f32 %v6218_v7  ;;  %v1046_v31 = vadd.f32 0.112945676, %v1045_v20  ;;  %v1348_v35 = vmul.f32 %v7325_v17, %v7325_v17  ;;  %v1231_v9 = vadd.f32 0.00028619796, %v1230_v15 }
 0x136   : > { %v933_v33 = vsub.f32 1.0, %v932_v29  ;;  %v6220_v21 = vpop.eup %6219  ;;  %v1268_v61 = vmul.f32 %v7322_v53, %v7322_v53  ;;  %vm7342_vm6 = vcmp.eq.f32.partialorder %v940_v2, 8.507059e+37  ;;  %vm7348_vm7 = vmor %vm936_vm4, %vm937_vm5  ;;  %v943_v20 = vor.u32 1.1754944e-38, %v942_v38 }
 0x137   : > { %v1012_v8 = vmul.f32 %v6220_v21, %v7292_v56  ;;  %vm1016_vm8 = vweird.f32 %v7292_v56  ;;  %v1047_v15 = vmul.f32 %v1046_v31, %v7138_v40  ;;  %vm1017_vm9 = vweird.f32 %v6220_v21  ;;  %v4946_v31 = vld [vmem:[%s12008_s3 + $0x170] sm:$0xff] }
 0x138   : > { %v934_v0 = vmul.f32 %v6218_v7, %v933_v33  ;;  %v1020_v33 = vand.u32 2147483647, %v7292_v56  ;;  %v7356_v23 = vmin.f32 %v1268_v61, 16.0  ;;  %vm7375_vm10 = vmor %vm1016_vm8, %vm1017_vm9  ;;  %5179 = vmatpush.msrb.mxu1 %v4946_v31  ;;  %v1155_v47 = vadd.f32 0.05243302, %v1154_v60 }
 0x139   : > { %621 = vmatmul.f32.gmra.mxu2 %v6959_v12  ;;  %v7319_v12 = vmin.f32 %v3148_v44, 16.0  ;;  %v7340_v44 = vadd.f32 %v7194_v46, %v7053_v43  ;;  %v1022_v46 = vand.u32 2147483648, %v7292_v56  ;;  %v1013_v2 = vsub.f32 1.0, %v1012_v8 }
 0x13a   : > { %v935_v29 = vadd.f32 %v6218_v7, %v934_v0  ;;  %v1048_v63 = vadd.f32 0.4994258, %v1047_v15  ;;  %v1121_v0 = vmul.f32 3.8918573e-05, %v7179_v34  ;;  %vm1021_vm11 = vcmp.eq.f32.partialorder %v1020_v33, 8.507059e+37 }
 0x13b   : > { %12082 = vst [vmem:[#allocation13_spill] sm:$0xff] %v7319_v12  ;;  %v3150_v37 = vmul.f32 2.1237322e-06, %v7319_v12  ;;  %v7361_v25 = vmul.f32 0.70710677, %v7340_v44  ;;  %v1014_v16 = vmul.f32 %v6220_v21, %v1013_v2  ;;  %v1118_v2 = vmul.f32 %v1117_v10, %v7179_v34 }
 0x13c   : > { %v939_v38 = vsel %vm7348_vm7, %v6218_v7, %v935_v29  ;;  %v1023_v7 = vor.u32 1.1754944e-38, %v1022_v46  ;;  %v1049_v29 = vmul.f32 %v1048_v63, %v7138_v40  ;;  %v1232_v19 = vmul.f32 %v1231_v9, %v7314_v39  ;;  %v7388_v46 = vpop.f32.mrf.mxu2 }
 0x13d   : > { %v3151_v5 = vadd.f32 0.00028619796, %v3150_v37  ;;  %v1270_v37 = vmul.f32 2.1237322e-06, %v7356_v23  ;;  %v1015_v15 = vadd.f32 %v6220_v21, %v1014_v16  ;;  %v3036_v40 = vmul.f32 %v3035_v11, %v7218_v49 }
 0x13e   : > { %v7386_v57 = vadd.f32 1.0, %v1049_v29  ;;  %v3268_v63 = vmul.f32 %v7361_v25, %v7361_v25  ;;  %v1233_v31 = vadd.f32 0.0036580483, %v1232_v19 }
 0x13f   : > { %v1271_v16 = vadd.f32 0.00028619796, %v1270_v37  ;;  %v3037_v19 = vadd.f32 0.18741608, %v3036_v40 }
 0x140   : > { %6221 = vrcp.f32 %v7386_v57  ;;  %vm1056_vm12 = vweird.f32 %v7386_v57 }
 0x141   : > { %624 = vmatmul.f32.gmra.mxu2 %v6965_v14  ;;  %v7358_v14 = vmin.f32 %v1348_v35, 16.0  ;;  %v944_v35 = vsel %vm7342_vm6, %v943_v20, %v939_v38  ;;  %v3152_v20 = vmul.f32 %v3151_v5, %v7319_v12  ;;  %v1019_v38 = vsel %vm7375_vm10, %v6220_v21, %v1015_v15  ;;  %v479_v5 = vpop.f32.mrf.mxu1 }
 0x142   : > { %v945_v48 = vmul.f32 %v944_v35, %v7299_v26  ;;  %v1122_v26 = vadd.f32 0.001143296, %v1121_v0  ;;  %v1024_v10 = vsel %vm1021_vm11, %v1023_v7, %v1019_v38  ;;  %v1156_v21 = vmul.f32 %v1155_v47, %v7238_v54  ;;  %v369_v35 = vpop.f32.mrf.mxu0 }
 0x143   : > { %v1350_v61 = vmul.f32 2.1237322e-06, %v7358_v14  ;;  %v1025_v33 = vmul.f32 %v1024_v10, %v7310_v1  ;;  %v3153_v0 = vadd.f32 0.0036580483, %v3152_v20  ;;  %v7403_v7 = vmul.f32 %v7312_v51, %v7121_v24 }
 0x144   : > { %v6011_v56 = vclamps-f32 %v945_v48, 1.0  ;;  %v1123_v8 = vmul.f32 %v1122_v26, %v7179_v34  ;;  %v1272_v1 = vmul.f32 %v1271_v16, %v7356_v23  ;;  %v7406_v48 = vmin.f32 %v3268_v63, 16.0 }
 0x145   : > { %v1351_v60 = vadd.f32 0.00028619796, %v1350_v61  ;;  %v6013_v37 = vclamps-f32 %v1025_v33, 1.0  ;;  %v1161_v61 = vmul.f32 3.8918573e-05, %v7238_v54  ;;  %v7409_v47 = vadd.f32 %v479_v5, %v7074_v52 }
 0x146   : > { %v4709_v9 = vadd.f32 1.0, %v6011_v56  ;;  %12089 = vst [vmem:[#allocation14_spill] sm:$0xff] %v7406_v48  ;;  %v1157_v24 = vadd.f32 0.18741608, %v1156_v21  ;;  %v1234_v51 = vmul.f32 %v1233_v31, %v7314_v39  ;;  %v7420_v20 = vadd.f32 %v369_v35, %v7053_v43  ;;  %v6222_v56 = vpop.eup %6221 }
 0x147   : > { %v1352_v15 = vmul.f32 %v1351_v60, %v7358_v14  ;;  %v4711_v29 = vadd.f32 1.0, %v6013_v37  ;;  %v3154_v38 = vmul.f32 %v3153_v0, %v7319_v12  ;;  %v1124_v16 = vadd.f32 0.014752088, %v1123_v8 }
 0x148   : > { %v4805_v11 = vmul.f32 %v4709_v9, %v7209_v13  ;;  %v7415_v13 = vadd.f32 1.1283791, %v1118_v2  ;;  %v3270_v2 = vmul.f32 2.1237322e-06, %v7406_v48  ;;  %v7425_v63 = vmul.f32 0.70710677, %v7409_v47 }
 0x149   : > { %627 = vmatmul.f32.gmra.mxu2 %v6823_v32  ;;  %v679_v32 = vmul.f32 0.5, %v7097_v4  ;;  %v7413_v4 = vmul.f32 %v7328_v30, %v7129_v28  ;;  %v1162_v28 = vadd.f32 0.001143296, %v1161_v61  ;;  %v1273_v30 = vadd.f32 0.0036580483, %v1272_v1 }
 0x14a   : > { %5081 = vmatmul.f32.vlgmr.msrb.gmra.mxu0 %v4805_v11  ;;  %v1052_v40 = vmul.f32 %v6222_v56, %v7386_v57  ;;  %v1353_v10 = vadd.f32 0.0036580483, %v1352_v15  ;;  %v1062_v60 = vand.u32 2147483648, %v7386_v57  ;;  %v1125_v5 = vmul.f32 %v1124_v16, %v7179_v34 }
 0x14b   : > { %12090 = vst [vmem:[#allocation15_spill] sm:$0xff] %v7413_v4  ;;  %v4807_v26 = vmul.f32 %v4711_v29, %v679_v32  ;;  %vm1057_vm13 = vweird.f32 %v6222_v56  ;;  %v1060_v33 = vand.u32 2147483647, %v7386_v57  ;;  %v1163_v21 = vmul.f32 %v1162_v28, %v7238_v54 }
 0x14c   : > { %v1053_v9 = vsub.f32 1.0, %v1052_v40  ;;  %v3038_v31 = vmul.f32 %v3037_v19, %v7218_v49  ;;  %v1235_v0 = vadd.f32 0.05243302, %v1234_v51  ;;  %v7435_v32 = vmul.f32 0.70710677, %v7420_v20  ;;  %vm7442_vm14 = vmor %vm1056_vm12, %vm1057_vm13 }
 0x14d   : > { %4971 = vmatmul.f32.gmra.mxu3 %v4807_v26  ;;  %v1126_v35 = vadd.f32 0.112945676, %v1125_v5  ;;  %v3155_v11 = vadd.f32 0.05243302, %v3154_v38  ;;  %v3271_v37 = vadd.f32 0.00028619796, %v3270_v2  ;;  %v1274_v1 = vmul.f32 %v1273_v30, %v7356_v23 }
 0x14e   : > { %v1054_v8 = vmul.f32 %v6222_v56, %v1053_v9  ;;  %v1164_v61 = vadd.f32 0.014752088, %v1163_v21  ;;  %v1388_v15 = vmul.f32 %v7425_v63, %v7425_v63  ;;  %v1063_v19 = vor.u32 1.1754944e-38, %v1062_v60 }
 0x14f   : > { %v1127_v51 = vmul.f32 %v1126_v35, %v7179_v34  ;;  %v1354_v26 = vmul.f32 %v1353_v10, %v7358_v14  ;;  %vm1061_vm15 = vcmp.eq.f32.partialorder %v1060_v33, 8.507059e+37  ;;  %v3039_v28 = vadd.f32 1.1283791, %v3038_v31 }
 0x150   : > { %v1055_v38 = vadd.f32 %v6222_v56, %v1054_v8  ;;  %v1165_v16 = vmul.f32 %v1164_v61, %v7238_v54  ;;  %v1468_v30 = vmul.f32 %v7435_v32, %v7435_v32  ;;  %v7453_v57 = vadd.f32 %v7235_v62, %v7053_v43  ;;  %v482_v61 = vpop.f32.mrf.mxu1 }
 0x151   : > { %v1128_v2 = vadd.f32 0.4994258, %v1127_v51  ;;  %v1158_v40 = vmul.f32 %v1157_v24, %v7238_v54  ;;  %v3272_v60 = vmul.f32 %v3271_v37, %v7406_v48  ;;  %v1236_v9 = vmul.f32 %v1235_v0, %v7314_v39 }
 0x152   : > { %v1059_v10 = vsel %vm7442_vm14, %v6222_v56, %v1055_v38  ;;  %v1166_v5 = vadd.f32 0.112945676, %v1165_v16  ;;  %v7460_v33 = vmin.f32 %v1388_v15, 16.0  ;;  %v3156_v35 = vmul.f32 %v3155_v11, %v7319_v12 }
 0x153   : > { %v1064_v21 = vsel %vm1061_vm15, %v1063_v19, %v1059_v10  ;;  %v1129_v31 = vmul.f32 %v1128_v2, %v7179_v34  ;;  %v1275_v62 = vadd.f32 0.05243302, %v1274_v1  ;;  %v1355_v8 = vadd.f32 0.05243302, %v1354_v26  ;;  %v7487_v2 = vpop.f32.mrf.mxu2 }
 0x154   : > { %v1065_v24 = vmul.f32 %v1064_v21, %v7403_v7  ;;  %v1390_v37 = vmul.f32 2.1237322e-06, %v7460_v33  ;;  %v7466_v51 = vmin.f32 %v1468_v30, 16.0  ;;  %v7469_v56 = vmul.f32 0.70710677, %v7453_v57 }
 0x155   : > { %v7471_v0 = vadd.f32 1.0, %v1129_v31  ;;  %v3273_v15 = vadd.f32 0.0036580483, %v3272_v60  ;;  %v680_v34 = vmul.f32 0.5, %v7111_v18  ;;  %v1167_v11 = vmul.f32 %v1166_v5, %v7238_v54  ;;  %v4945_v18 = vld [vmem:[%s12008_s3 + $0x168] sm:$0xff] }
 0x156   : > { %v6014_v29 = vclamps-f32 %v1065_v24, 1.0  ;;  %v1159_v1 = vadd.f32 1.1283791, %v1158_v40  ;;  %v1470_v19 = vmul.f32 2.1237322e-06, %v7466_v51  ;;  %v7477_v7 = vadd.f32 %v482_v61, %v7074_v52  ;;  %v6535_v40 = vld [vmem:[%s6720_s9 + $0x88] sm:$0xff]  ;;  %5180 = vmatpush.msrb.mxu1 %v4945_v18 }
 0x157   : > { %6223 = vrcp.f32 %v7471_v0  ;;  %v7482_v26 = vmul.f32 %v7415_v13, %v7152_v55  ;;  %v1237_v38 = vadd.f32 0.18741608, %v1236_v9  ;;  %v3157_v16 = vadd.f32 0.18741608, %v3156_v35  ;;  %630 = vmatmul.f32.gmra.mxu2 %v6535_v40 }
 0x158   : > { %v4712_v30 = vadd.f32 1.0, %v6014_v29  ;;  %v1391_v60 = vadd.f32 0.00028619796, %v1390_v37  ;;  %v3388_v10 = vmul.f32 %v7469_v56, %v7469_v56  ;;  %v1168_v5 = vadd.f32 0.4994258, %v1167_v11 }
 0x159   : > { %v1241_v55 = vmul.f32 3.8918573e-05, %v7314_v39  ;;  %v1276_v13 = vmul.f32 %v1275_v62, %v7356_v23  ;;  %v1356_v9 = vmul.f32 %v1355_v8, %v7358_v14  ;;  %v3274_v21 = vmul.f32 %v3273_v15, %v7406_v48 }
 0x15a   : > { %v4808_v31 = vmul.f32 %v4712_v30, %v680_v34  ;;  %v7497_v35 = vmul.f32 0.5, %v7340_v44  ;;  %v1471_v61 = vadd.f32 0.00028619796, %v1470_v19  ;;  %v7500_v24 = vmul.f32 0.70710677, %v7477_v7 }
 0x15b   : > { %v1169_v37 = vmul.f32 %v1168_v5, %v7238_v54  ;;  %v7504_v29 = vmul.f32 %v3039_v28, %v7183_v36  ;;  %v7507_v11 = vmul.f32 %v1159_v1, %v7203_v6  ;;  %v1238_v62 = vmul.f32 %v1237_v38, %v7314_v39  ;;  %v372_v38 = vpop.f32.mrf.mxu0 }
 0x15c   : > { %12093 = vst [vmem:[#allocation16_spill] sm:$0xff] %v7497_v35  ;;  %v3158_v8 = vmul.f32 %v3157_v16, %v7319_v12  ;;  %5084 = vmatmul.f32.gmra.mxu0 %v4808_v31  ;;  %v1392_v44 = vmul.f32 %v1391_v60, %v7460_v33  ;;  %v7512_v34 = vmin.f32 %v3388_v10, 16.0  ;;  %v1242_v30 = vadd.f32 0.001143296, %v1241_v55 }
 0x15d   : > { %12094 = vst [vmem:[#allocation17_spill] sm:$0xff] %v7504_v29  ;;  %v6224_v15 = vpop.eup %6223  ;;  %v7514_v19 = vadd.f32 1.0, %v1169_v37  ;;  %v1277_v54 = vadd.f32 0.18741608, %v1276_v13  ;;  %v1357_v18 = vadd.f32 0.18741608, %v1356_v9  ;;  %v1472_v6 = vmul.f32 %v1471_v61, %v7466_v51 }
 0x15e   : > { %12095 = vst [vmem:[#allocation18_spill] sm:$0xff] %v7512_v34  ;;  %v3275_v36 = vadd.f32 0.05243302, %v3274_v21  ;;  %v1132_v28 = vmul.f32 %v6224_v15, %v7471_v0  ;;  %v1508_v1 = vmul.f32 %v7500_v24, %v7500_v24  ;;  %v1142_v16 = vand.u32 2147483648, %v7471_v0 }
 0x15f   : > { %6225 = vrcp.f32 %v7514_v19  ;;  %vm1136_vm0 = vweird.f32 %v7471_v0  ;;  %vm1137_vm1 = vweird.f32 %v6224_v15  ;;  %v1140_v60 = vand.u32 2147483647, %v7471_v0 }
 0x160   : > { %v1133_v40 = vsub.f32 1.0, %v1132_v28  ;;  %v7524_v10 = vadd.f32 1.1283791, %v1238_v62  ;;  %v1393_v5 = vadd.f32 0.0036580483, %v1392_v44  ;;  %v1243_v13 = vmul.f32 %v1242_v30, %v7314_v39  ;;  %vm7541_vm2 = vmor %vm1136_vm0, %vm1137_vm1 }
 0x161   : > { %v3390_v55 = vmul.f32 2.1237322e-06, %v7512_v34  ;;  %v7528_v9 = vadd.f32 1.1283791, %v3158_v8  ;;  %v7531_v21 = vmul.f32 0.5, %v7453_v57  ;;  %v7534_v31 = vadd.f32 %v372_v38, %v7053_v43 }
 0x162   : > { %v1134_v61 = vmul.f32 %v6224_v15, %v1133_v40  ;;  %v1278_v37 = vmul.f32 %v1277_v54, %v7356_v23  ;;  %v7538_v0 = vmul.f32 %v1357_v18, %v7358_v14  ;;  %v3276_v62 = vmul.f32 %v3275_v36, %v7406_v48 }
 0x163   : > { %12096 = vst [vmem:[#allocation19_spill] sm:$0xff] %v7531_v21  ;;  %v1143_v8 = vor.u32 1.1754944e-38, %v1142_v16  ;;  %v1473_v30 = vadd.f32 0.0036580483, %v1472_v6  ;;  %v7545_v28 = vmin.f32 %v1508_v1, 16.0  ;;  %vm1141_vm3 = vcmp.eq.f32.partialorder %v1140_v60, 8.507059e+37 }
 0x164   : > { %12097 = vst [vmem:[#allocation20_spill] sm:$0xff] %v7534_v31  ;;  %v1135_v57 = vadd.f32 %v6224_v15, %v1134_v61  ;;  %v1394_v40 = vmul.f32 %v1393_v5, %v7460_v33  ;;  %v3391_v21 = vadd.f32 0.00028619796, %v3390_v55  ;;  %v7550_v54 = vadd.f32 %v7276_v59, %v7053_v43 }
 0x165   : > { %v6226_v38 = vpop.eup %6225  ;;  %v1244_v18 = vadd.f32 0.014752088, %v1243_v13  ;;  %v1510_v36 = vmul.f32 2.1237322e-06, %v7545_v28  ;;  %v1281_v1 = vmul.f32 3.8918573e-05, %v7356_v23  ;;  %vm1176_vm4 = vweird.f32 %v7514_v19 }
 0x166   : > { %v1139_v35 = vsel %vm7541_vm2, %v6224_v15, %v1135_v57  ;;  %v1172_v6 = vmul.f32 %v6226_v38, %v7514_v19  ;;  %v1180_v60 = vand.u32 2147483647, %v7514_v19  ;;  %v1182_v5 = vand.u32 2147483648, %v7514_v19 }
 0x167   : > { %v1144_v16 = vsel %vm1141_vm3, %v1143_v8, %v1139_v35  ;;  %vm1177_vm5 = vweird.f32 %v6226_v38  ;;  %v1245_v13 = vmul.f32 %v1244_v18, %v7314_v39  ;;  %v1395_v61 = vadd.f32 0.05243302, %v1394_v40  ;;  %v485_v8 = vpop.f32.mrf.mxu1 }
 0x168   : > { %v1145_v59 = vmul.f32 %v1144_v16, %v7482_v26  ;;  %v1173_v55 = vsub.f32 1.0, %v1172_v6  ;;  %v1474_v15 = vmul.f32 %v1473_v30, %v7466_v51  ;;  %v7564_v44 = vmul.f32 0.70710677, %v7534_v31  ;;  %vm7573_vm6 = vmor %vm1176_vm4, %vm1177_vm5 }
 0x169   : > { %v682_v35 = vmul.f32 0.5, %v7141_v41  ;;  %v1246_v4 = vadd.f32 0.112945676, %v1245_v13  ;;  %v1282_v12 = vadd.f32 0.001143296, %v1281_v1  ;;  %v3392_v49 = vmul.f32 %v3391_v21, %v7512_v34 }
 0x16a   : > { %v6016_v57 = vclamps-f32 %v1145_v59, 1.0  ;;  %v1174_v29 = vmul.f32 %v6226_v38, %v1173_v55  ;;  %v1511_v26 = vadd.f32 0.00028619796, %v1510_v36  ;;  %v7569_v6 = vmul.f32 0.70710677, %v7550_v54 }
 0x16b   : > { %v1183_v40 = vor.u32 1.1754944e-38, %v1182_v5  ;;  %vm1181_vm7 = vcmp.eq.f32.partialorder %v1180_v60, 8.507059e+37  ;;  %v1247_v16 = vmul.f32 %v1246_v4, %v7314_v39  ;;  %v3277_v59 = vadd.f32 0.18741608, %v3276_v62 }
 0x16c   : > { %v4714_v18 = vadd.f32 1.0, %v6016_v57  ;;  %v1175_v41 = vadd.f32 %v6226_v38, %v1174_v29  ;;  %v1396_v1 = vmul.f32 %v1395_v61, %v7460_v33  ;;  %v1588_v21 = vmul.f32 %v7564_v44, %v7564_v44 }
 0x16d   : > { %v7582_v36 = vadd.f32 %v485_v8, %v7074_v52  ;;  %v1248_v13 = vadd.f32 0.4994258, %v1247_v16  ;;  %v1283_v5 = vmul.f32 %v1282_v12, %v7356_v23  ;;  %v1279_v29 = vadd.f32 1.1283791, %v1278_v37  ;;  %v375_v16 = vpop.f32.mrf.mxu0 }
 0x16e   : > { %v4810_v19 = vmul.f32 %v4714_v18, %v682_v35  ;;  %v1179_v55 = vsel %vm7573_vm6, %v6226_v38, %v1175_v41  ;;  %v1475_v60 = vadd.f32 0.05243302, %v1474_v15  ;;  %v1512_v4 = vmul.f32 %v1511_v26, %v7545_v28 }
 0x16f   : > { %12102 = vst [vmem:[#allocation21_spill] sm:$0xff] %v7582_v36  ;;  %v1184_v62 = vsel %vm1181_vm7, %v1183_v40, %v1179_v55  ;;  %v3393_v57 = vadd.f32 0.0036580483, %v3392_v49  ;;  %v3508_v61 = vmul.f32 %v7569_v6, %v7569_v6  ;;  %v1249_v35 = vmul.f32 %v1248_v13, %v7314_v39 }
 0x170   : > { %4974 = vmatmul.f32.gmra.mxu3 %v4810_v19  ;;  %v1185_v8 = vmul.f32 %v1184_v62, %v7507_v11  ;;  %v3278_v30 = vmul.f32 %v3277_v59, %v7406_v48  ;;  %v1397_v38 = vadd.f32 0.18741608, %v1396_v1  ;;  %v7593_v18 = vmin.f32 %v1588_v21, 16.0 }
 0x171   : > { %v7596_v12 = vmul.f32 0.70710677, %v7582_v36  ;;  %v683_v37 = vmul.f32 0.5, %v7189_v42  ;;  %v7599_v49 = vadd.f32 1.0, %v1249_v35  ;;  %v1284_v26 = vadd.f32 0.014752088, %v1283_v5 }
 0x172   : > { %v6017_v15 = vclamps-f32 %v1185_v8, 1.0  ;;  %v7603_v40 = vmul.f32 %v7524_v10, %v7268_v3  ;;  %v1359_v39 = vadd.f32 1.1283791, %v7538_v0  ;;  %v1513_v11 = vadd.f32 0.0036580483, %v1512_v4 }
 0x173   : > { %v1590_v41 = vmul.f32 2.1237322e-06, %v7593_v18  ;;  %v1476_v59 = vmul.f32 %v1475_v60, %v7466_v51  ;;  %v7608_v1 = vmin.f32 %v3508_v61, 16.0  ;;  %6227 = vrcp.f32 %v7599_v49 }
 0x174   : > { %v4715_v21 = vadd.f32 1.0, %v6017_v15  ;;  %v3279_v42 = vadd.f32 1.1283791, %v3278_v30  ;;  %v1398_v19 = vmul.f32 %v1397_v38, %v7460_v33  ;;  %v3394_v55 = vmul.f32 %v3393_v57, %v7512_v34  ;;  %v515_v38 = vpop.f32.mrf.mxu3 }
 0x175   : > { %12103 = vst [vmem:[#allocation22_spill] sm:$0xff] %v7608_v1  ;;  %v1628_v3 = vmul.f32 %v7596_v12, %v7596_v12  ;;  %v7617_v10 = vmul.f32 %v7528_v9, %v7274_v22  ;;  %v7620_v0 = vadd.f32 %v375_v16, %v7053_v43  ;;  %v1285_v5 = vmul.f32 %v1284_v26, %v7356_v23  ;;  %v4944_v16 = vld [vmem:[%s12008_s3 + $0x160] sm:$0xff] }
 0x176   : > { %v4811_v13 = vmul.f32 %v4715_v21, %v683_v37  ;;  %v7624_v60 = vmul.f32 %v1279_v29, %v7322_v53  ;;  %v1514_v4 = vmul.f32 %v1513_v11, %v7545_v28  ;;  %v1591_v62 = vadd.f32 0.00028619796, %v1590_v41  ;;  %v6536_v21 = vld [vmem:[%s6720_s9 + $0x90] sm:$0xff]  ;;  %5181 = vmatpush.msrb.mxu1 %v4944_v16 }
 0x177   : > { %12104 = vst [vmem:[#allocation23_spill] sm:$0xff] %v7617_v10  ;;  %v7628_v57 = vmul.f32 0.5, %v7550_v54  ;;  %v7631_v61 = vmul.f32 %v1359_v39, %v7325_v17  ;;  %v1477_v22 = vadd.f32 0.18741608, %v1476_v59  ;;  %v3510_v9 = vmul.f32 2.1237322e-06, %v7608_v1  ;;  %v7653_v59 = vpop.f32.mrf.mxu2  ;;  %633 = vmatmul.f32.gmra.mxu2 %v6536_v21 }
 0x178   : > { %12105 = vst [vmem:[#allocation24_spill] sm:$0xff] %v7620_v0  ;;  %5087 = vmatmul.f32.gmra.mxu0 %v4811_v13  ;;  %v1286_v8 = vadd.f32 0.112945676, %v1285_v5  ;;  %v7635_v35 = vmul.f32 %v3279_v42, %v7361_v25  ;;  %v1399_v53 = vadd.f32 1.1283791, %v1398_v19  ;;  %v7637_v30 = vmin.f32 %v1628_v3, 16.0 }
 0x179   : > { %12106 = vst [vmem:[#allocation25_spill] sm:$0xff] %v7628_v57  ;;  %v3395_v29 = vadd.f32 0.05243302, %v3394_v55  ;;  %v6228_v37 = vpop.eup %6227  ;;  %v7640_v54 = vmul.f32 0.70710677, %v7620_v0  ;;  %v7643_v17 = vadd.f32 %v515_v38, %v7074_v52  ;;  %v1592_v25 = vmul.f32 %v1591_v62, %v7593_v18 }
 0x17a   : > { %12107 = vst [vmem:[#allocation26_spill] sm:$0xff] %v7635_v35  ;;  %v1287_v15 = vmul.f32 %v1286_v8, %v7356_v23  ;;  %v1361_v26 = vmul.f32 3.8918573e-05, %v7358_v14  ;;  %v1515_v39 = vadd.f32 0.05243302, %v1514_v4  ;;  %v1252_v41 = vmul.f32 %v6228_v37, %v7599_v49 }
 0x17b   : > { %v1630_v11 = vmul.f32 2.1237322e-06, %v7637_v30  ;;  %12108 = vst [vmem:[#allocation27_spill] sm:$0xff] %v7653_v59  ;;  %v1478_v42 = vmul.f32 %v1477_v22, %v7466_v51  ;;  %v3511_v19 = vadd.f32 0.00028619796, %v3510_v9  ;;  %v1262_v55 = vand.u32 2147483648, %v7599_v49 }
 0x17c   : > { %v1288_v3 = vadd.f32 0.4994258, %v1287_v15  ;;  %v1253_v13 = vsub.f32 1.0, %v1252_v41  ;;  %vm1256_vm8 = vweird.f32 %v7599_v49  ;;  %vm1257_vm9 = vweird.f32 %v6228_v37 }
 0x17d   : > { %v1260_v5 = vand.u32 2147483647, %v7599_v49  ;;  %v1708_v4 = vmul.f32 %v7640_v54, %v7640_v54  ;;  %v7663_v62 = vmul.f32 0.70710677, %v7643_v17  ;;  %v1362_v22 = vadd.f32 0.001143296, %v1361_v26  ;;  %vm7669_vm10 = vmor %vm1256_vm8, %vm1257_vm9 }
 0x17e   : > { %v1289_v8 = vmul.f32 %v1288_v3, %v7356_v23  ;;  %v3396_v9 = vmul.f32 %v3395_v29, %v7512_v34  ;;  %v1593_v38 = vadd.f32 0.0036580483, %v1592_v25  ;;  %v1254_v15 = vmul.f32 %v6228_v37, %v1253_v13  ;;  %v488_v25 = vpop.f32.mrf.mxu1 }
 0x17f   : > { %v1401_v41 = vmul.f32 3.8918573e-05, %v7460_v33  ;;  %v1516_v16 = vmul.f32 %v1515_v39, %v7545_v28  ;;  %v1631_v21 = vadd.f32 0.00028619796, %v1630_v11  ;;  %v1263_v57 = vor.u32 1.1754944e-38, %v1262_v55 }
 0x180   : > { %v7673_v35 = vadd.f32 1.0, %v1289_v8  ;;  %v3512_v10 = vmul.f32 %v3511_v19, %v7608_v1  ;;  %v7678_v23 = vadd.f32 %v7331_v58, %v7053_v43  ;;  %v1255_v29 = vadd.f32 %v6228_v37, %v1254_v15 }
 0x181   : > { %vm1261_vm11 = vcmp.eq.f32.partialorder %v1260_v5, 8.507059e+37  ;;  %v7680_v26 = vmin.f32 %v1708_v4, 16.0  ;;  %v2828_v39 = vmul.f32 %v7663_v62, %v7663_v62  ;;  %v1363_v11 = vmul.f32 %v1362_v22, %v7358_v14 }
 0x182   : > { %6229 = vrcp.f32 %v7673_v35  ;;  %v7686_v55 = vadd.f32 1.1283791, %v1478_v42  ;;  %v1594_v19 = vmul.f32 %v1593_v38, %v7593_v18  ;;  %v1259_v58 = vsel %vm7669_vm10, %v6228_v37, %v1255_v29 }
 0x183   : > { %v1402_v3 = vadd.f32 0.001143296, %v1401_v41  ;;  %v3397_v13 = vadd.f32 0.18741608, %v3396_v9  ;;  %v1632_v5 = vmul.f32 %v1631_v21, %v7637_v30  ;;  %v1710_v4 = vmul.f32 2.1237322e-06, %v7680_v26 }
 0x184   : > { %v1264_v8 = vsel %vm1261_vm11, %v1263_v57, %v1259_v58  ;;  %v1517_v15 = vadd.f32 0.18741608, %v1516_v16  ;;  %v7694_v48 = vmul.f32 0.70710677, %v7678_v23  ;;  %v7697_v22 = vadd.f32 %v488_v25, %v7074_v52 }
 0x185   : > { %v1265_v42 = vmul.f32 %v1264_v8, %v7603_v40  ;;  %v7701_v38 = vmul.f32 %v1399_v53, %v7425_v63  ;;  %v3513_v37 = vadd.f32 0.0036580483, %v3512_v10  ;;  %v7703_v41 = vmin.f32 %v2828_v39, 16.0 }
 0x186   : > { %12111 = vst [vmem:[#allocation28_spill] sm:$0xff] %v7697_v22  ;;  %v1364_v9 = vadd.f32 0.014752088, %v1363_v11  ;;  %v1595_v21 = vadd.f32 0.05243302, %v1594_v19  ;;  %v685_v49 = vmul.f32 0.5, %v7251_v50  ;;  %v1403_v16 = vmul.f32 %v1402_v3, %v7460_v33 }
 0x187   : > { %12112 = vst [vmem:[#allocation29_spill] sm:$0xff] %v7703_v41  ;;  %v6019_v57 = vclamps-f32 %v1265_v42, 1.0  ;;  %v1633_v58 = vadd.f32 0.0036580483, %v1632_v5  ;;  %v1711_v0 = vadd.f32 0.00028619796, %v1710_v4  ;;  %v3628_v63 = vmul.f32 %v7694_v48, %v7694_v48 }
 0x188   : > { %v6230_v29 = vpop.eup %6229  ;;  %v2830_v25 = vmul.f32 2.1237322e-06, %v7703_v41  ;;  %v1365_v40 = vmul.f32 %v1364_v9, %v7358_v14  ;;  %v7712_v10 = vmul.f32 0.70710677, %v7697_v22  ;;  %vm1296_vm12 = vweird.f32 %v7673_v35 }
 0x189   : > { %v4717_v53 = vadd.f32 1.0, %v6019_v57  ;;  %v1292_v39 = vmul.f32 %v6230_v29, %v7673_v35  ;;  %v1300_v50 = vand.u32 2147483647, %v7673_v35  ;;  %v1302_v11 = vand.u32 2147483648, %v7673_v35 }
 0x18a   : > { %v1366_v19 = vadd.f32 0.112945676, %v1365_v40  ;;  %vm1297_vm13 = vweird.f32 %v6230_v29  ;;  %v1404_v4 = vadd.f32 0.014752088, %v1403_v16  ;;  %v1596_v8 = vmul.f32 %v1595_v21, %v7593_v18 }
 0x18b   : > { %v4813_v3 = vmul.f32 %v4717_v53, %v685_v49  ;;  %v1293_v5 = vsub.f32 1.0, %v1292_v39  ;;  %v3514_v42 = vmul.f32 %v3513_v37, %v7608_v1  ;;  %v1712_v9 = vmul.f32 %v1711_v0, %v7680_v26  ;;  %vm7728_vm14 = vmor %vm1296_vm12, %vm1297_vm13  ;;  %v378_v53 = vpop.f32.mrf.mxu0 }
 0x18c   : > { %v1367_v57 = vmul.f32 %v1366_v19, %v7358_v14  ;;  %v1634_v22 = vmul.f32 %v1633_v58, %v7637_v30  ;;  %v2831_v36 = vadd.f32 0.00028619796, %v2830_v25  ;;  %v1748_v31 = vmul.f32 %v7712_v10, %v7712_v10 }
 0x18d   : > { %4977 = vmatmul.f32.gmra.mxu3 %v4813_v3  ;;  %v1294_v40 = vmul.f32 %v6230_v29, %v1293_v5  ;;  %v3398_v49 = vmul.f32 %v3397_v13, %v7512_v34  ;;  %v1303_v37 = vor.u32 1.1754944e-38, %v1302_v11  ;;  %v1405_v16 = vmul.f32 %v1404_v4, %v7460_v33 }
 0x18e   : > { %v1368_v0 = vadd.f32 0.4994258, %v1367_v57  ;;  %v1518_v58 = vmul.f32 %v1517_v15, %v7545_v28  ;;  %v7734_v25 = vmin.f32 %v3628_v63, 16.0  ;;  %vm1301_vm15 = vcmp.eq.f32.partialorder %v1300_v50, 8.507059e+37 }
 0x18f   : > { %v1295_v39 = vadd.f32 %v6230_v29, %v1294_v40  ;;  %v1597_v19 = vadd.f32 0.18741608, %v1596_v8  ;;  %v3515_v3 = vadd.f32 0.05243302, %v3514_v42  ;;  %v1713_v13 = vadd.f32 0.0036580483, %v1712_v9  ;;  %v518_v40 = vpop.f32.mrf.mxu3 }
 0x190   : > { %12115 = vst [vmem:[#allocation30_spill] sm:$0xff] %v7734_v25  ;;  %v1369_v35 = vmul.f32 %v1368_v0, %v7358_v14  ;;  %v1635_v5 = vadd.f32 0.05243302, %v1634_v22  ;;  %v2832_v34 = vmul.f32 %v2831_v36, %v7703_v41  ;;  %v7738_v59 = vmin.f32 %v1748_v31, 16.0 }
 0x191   : > { %v1299_v11 = vsel %vm7728_vm14, %v6230_v29, %v1295_v39  ;;  %v7743_v15 = vadd.f32 %v378_v53, %v7053_v43  ;;  %v1406_v50 = vadd.f32 0.112945676, %v1405_v16  ;;  %v3399_v8 = vadd.f32 1.1283791, %v3398_v49 }
 0x192   : > { %v1304_v63 = vsel %vm1301_vm15, %v1303_v37, %v1299_v11  ;;  %v7745_v4 = vadd.f32 1.0, %v1369_v35  ;;  %v3630_v42 = vmul.f32 2.1237322e-06, %v7734_v25  ;;  %v1750_v14 = vmul.f32 2.1237322e-06, %v7738_v59 }
 0x193   : > { %v1305_v22 = vmul.f32 %v1304_v63, %v7624_v60  ;;  %v1519_v36 = vadd.f32 1.1283791, %v1518_v58  ;;  %v3516_v31 = vmul.f32 %v3515_v3, %v7608_v1  ;;  %v1714_v9 = vmul.f32 %v1713_v13, %v7680_v26  ;;  %v7767_v3 = vpop.f32.mrf.mxu2 }
 0x194   : > { %6231 = vrcp.f32 %v7745_v4  ;;  %v1598_v29 = vmul.f32 %v1597_v19, %v7593_v18  ;;  %v1636_v57 = vmul.f32 %v1635_v5, %v7637_v30  ;;  %v686_v49 = vmul.f32 0.5, %v7287_v45  ;;  %12116 = vst [vmem:[#allocation31_spill] sm:$0xff] %v7767_v3  ;;  %v6537_v45 = vld [vmem:[%s6720_s9 + $0x98] sm:$0xff] }
 0x195   : > { %v6020_v21 = vclamps-f32 %v1305_v22, 1.0  ;;  %v2833_v37 = vadd.f32 0.0036580483, %v2832_v34  ;;  %v7757_v0 = vmul.f32 0.70710677, %v7743_v15  ;;  %v7760_v60 = vadd.f32 %v518_v40, %v7074_v52  ;;  %636 = vmatmul.f32.gmra.mxu2 %v6537_v45 }
 0x196   : > { %v1407_v16 = vmul.f32 %v1406_v50, %v7460_v33  ;;  %v7765_v58 = vmul.f32 %v7686_v55, %v7435_v32  ;;  %v3631_v53 = vadd.f32 0.00028619796, %v3630_v42  ;;  %v1751_v39 = vadd.f32 0.00028619796, %v1750_v14  ;;  %v4943_v32 = vld [vmem:[%s12008_s3 + $0x158] sm:$0xff] }
 0x197   : > { %v4718_v19 = vadd.f32 1.0, %v6020_v21  ;;  %v7771_v34 = vmul.f32 %v3399_v8, %v7469_v56  ;;  %v1715_v13 = vadd.f32 0.05243302, %v1714_v9  ;;  %v7774_v35 = vmul.f32 0.5, %v7643_v17  ;;  %5182 = vmatpush.msrb.mxu1 %v4943_v32 }
 0x198   : > { %v1408_v5 = vadd.f32 0.4994258, %v1407_v16  ;;  %v1599_v55 = vadd.f32 1.1283791, %v1598_v29  ;;  %v3517_v11 = vadd.f32 0.18741608, %v3516_v31  ;;  %v1828_v14 = vmul.f32 %v7757_v0, %v7757_v0 }
 0x199   : > { %12117 = vst [vmem:[#allocation32_spill] sm:$0xff] %v7771_v34  ;;  %v1637_v63 = vadd.f32 0.18741608, %v1636_v57  ;;  %v4814_v50 = vmul.f32 %v4718_v19, %v686_v49  ;;  %v7782_v56 = vmul.f32 0.70710677, %v7760_v60  ;;  %v2834_v22 = vmul.f32 %v2833_v37, %v7703_v41 }
 0x19a   : > { %12118 = vst [vmem:[#allocation33_spill] sm:$0xff] %v7774_v35  ;;  %v6232_v42 = vpop.eup %6231  ;;  %v1409_v17 = vmul.f32 %v1408_v5, %v7460_v33  ;;  %v1481_v8 = vmul.f32 3.8918573e-05, %v7466_v51  ;;  %v3632_v9 = vmul.f32 %v3631_v53, %v7734_v25  ;;  %v1752_v31 = vmul.f32 %v1751_v39, %v7738_v59 }
 0x19b   : > { %5090 = vmatmul.f32.gmra.mxu0 %v4814_v50  ;;  %v1372_v29 = vmul.f32 %v6232_v42, %v7745_v4  ;;  %v1716_v57 = vmul.f32 %v1715_v13, %v7680_v26  ;;  %v7793_v40 = vadd.f32 %v7388_v46, %v7053_v43  ;;  %v1382_v49 = vand.u32 2147483648, %v7745_v4 }
 0x19c   : > { %v7796_v33 = vadd.f32 1.0, %v1409_v17  ;;  %vm1376_vm0 = vweird.f32 %v7745_v4  ;;  %vm1377_vm1 = vweird.f32 %v6232_v42  ;;  %v1380_v37 = vand.u32 2147483647, %v7745_v4 }
 0x19d   : > { %v1373_v21 = vsub.f32 1.0, %v1372_v29  ;;  %v7800_v16 = vmin.f32 %v1828_v14, 16.0  ;;  %v2948_v53 = vmul.f32 %v7782_v56, %v7782_v56  ;;  %v1482_v39 = vadd.f32 0.001143296, %v1481_v8  ;;  %vm7813_vm2 = vmor %vm1376_vm0, %vm1377_vm1 }
 0x19e   : > { %6233 = vrcp.f32 %v7796_v33  ;;  %v7806_v46 = vmul.f32 %v1519_v36, %v7500_v24  ;;  %v3633_v19 = vadd.f32 0.0036580483, %v3632_v9  ;;  %v1753_v45 = vadd.f32 0.0036580483, %v1752_v31 }
 0x19f   : > { %v1374_v13 = vmul.f32 %v6232_v42, %v1373_v21  ;;  %v7809_v5 = vmul.f32 %v1599_v55, %v7564_v44  ;;  %v3518_v32 = vmul.f32 %v3517_v11, %v7608_v1  ;;  %v1830_v4 = vmul.f32 2.1237322e-06, %v7800_v16 }
 0x1a0   : > { %v1383_v14 = vor.u32 1.1754944e-38, %v1382_v49  ;;  %v1638_v17 = vmul.f32 %v1637_v63, %v7637_v30  ;;  %v7819_v24 = vmul.f32 0.70710677, %v7793_v40  ;;  %vm1381_vm3 = vcmp.eq.f32.partialorder %v1380_v37, 8.507059e+37 }
 0x1a1   : > { %12119 = vst [vmem:[#allocation34_spill] sm:$0xff] %v7809_v5  ;;  %v1375_v36 = vadd.f32 %v6232_v42, %v1374_v13  ;;  %v1717_v8 = vadd.f32 0.18741608, %v1716_v57  ;;  %v2835_v9 = vadd.f32 0.05243302, %v2834_v22  ;;  %v7821_v44 = vmin.f32 %v2948_v53, 16.0  ;;  %v491_v53 = vpop.f32.mrf.mxu1 }
 0x1a2   : > { %12122 = vst [vmem:[#allocation35_spill] sm:$0xff] %v7819_v24  ;;  %v1483_v55 = vmul.f32 %v1482_v39, %v7466_v51  ;;  %v3634_v11 = vmul.f32 %v3633_v19, %v7734_v25  ;;  %v1754_v31 = vmul.f32 %v1753_v45, %v7738_v59  ;;  %v1521_v63 = vmul.f32 3.8918573e-05, %v7545_v28 }
 0x1a3   : > { %12123 = vst [vmem:[#allocation36_spill] sm:$0xff] %v7821_v44  ;;  %v1379_v29 = vsel %vm7813_vm2, %v6232_v42, %v1375_v36  ;;  %v1831_v21 = vadd.f32 0.00028619796, %v1830_v4  ;;  %v2950_v13 = vmul.f32 2.1237322e-06, %v7821_v44  ;;  %v3748_v22 = vmul.f32 %v7819_v24, %v7819_v24 }
 0x1a4   : > { %v6234_v49 = vpop.eup %6233  ;;  %v1384_v37 = vsel %vm1381_vm3, %v1383_v14, %v1379_v29  ;;  %v1484_v57 = vadd.f32 0.014752088, %v1483_v55  ;;  %v688_v39 = vmul.f32 0.5, %v7290_v27  ;;  %vm1416_vm4 = vweird.f32 %v7796_v33 }
 0x1a5   : > { %v1385_v19 = vmul.f32 %v1384_v37, %v7631_v61  ;;  %v1412_v45 = vmul.f32 %v6234_v49, %v7796_v33  ;;  %v1420_v42 = vand.u32 2147483647, %v7796_v33  ;;  %v1422_v4 = vand.u32 2147483648, %v7796_v33 }
 0x1a6   : > { %v1485_v50 = vmul.f32 %v1484_v57, %v7466_v51  ;;  %vm1417_vm5 = vweird.f32 %v6234_v49  ;;  %v1522_v55 = vadd.f32 0.001143296, %v1521_v63  ;;  %v1832_v29 = vmul.f32 %v1831_v21, %v7800_v16 }
 0x1a7   : > { %v6022_v14 = vclamps-f32 %v1385_v19, 1.0  ;;  %v1413_v36 = vsub.f32 1.0, %v1412_v45  ;;  %v2951_v34 = vadd.f32 0.00028619796, %v2950_v13  ;;  %v7841_v27 = vadd.f32 %v491_v53, %v7074_v52  ;;  %vm7849_vm6 = vmor %vm1416_vm4, %vm1417_vm5 }
 0x1a8   : > { %v1486_v61 = vadd.f32 0.112945676, %v1485_v50  ;;  %v2836_v37 = vmul.f32 %v2835_v9, %v7703_v41  ;;  %v1523_v3 = vmul.f32 %v1522_v55, %v7545_v28  ;;  %v3635_v24 = vadd.f32 0.05243302, %v3634_v11 }
 0x1a9   : > { %v4720_v1 = vadd.f32 1.0, %v6022_v14  ;;  %v1414_v35 = vmul.f32 %v6234_v49, %v1413_v36  ;;  %v7845_v5 = vmin.f32 %v3748_v22, 16.0  ;;  %v1423_v21 = vor.u32 1.1754944e-38, %v1422_v4 }
 0x1aa   : > { %v1487_v13 = vmul.f32 %v1486_v61, %v7466_v51  ;;  %v1755_v57 = vadd.f32 0.05243302, %v1754_v31  ;;  %vm1421_vm7 = vcmp.eq.f32.partialorder %v1420_v42, 8.507059e+37  ;;  %v1833_v9 = vadd.f32 0.0036580483, %v1832_v29 }
 0x1ab   : > { %12124 = vst [vmem:[#allocation37_spill] sm:$0xff] %v7845_v5  ;;  %v4816_v53 = vmul.f32 %v4720_v1, %v688_v39  ;;  %v1415_v19 = vadd.f32 %v6234_v49, %v1414_v35  ;;  %v2952_v45 = vmul.f32 %v2951_v34, %v7821_v44  ;;  %v7856_v11 = vmul.f32 0.70710677, %v7841_v27  ;;  %v381_v34 = vpop.f32.mrf.mxu0 }
 0x1ac   : > { %v1488_v22 = vadd.f32 0.4994258, %v1487_v13  ;;  %v3519_v50 = vadd.f32 1.1283791, %v3518_v32  ;;  %v1639_v33 = vadd.f32 1.1283791, %v1638_v17  ;;  %v1718_v36 = vmul.f32 %v1717_v8, %v7680_v26  ;;  %v521_v13 = vpop.f32.mrf.mxu3 }
 0x1ad   : > { %4980 = vmatmul.f32.gmra.mxu3 %v4816_v53  ;;  %v1419_v14 = vsel %vm7849_vm6, %v6234_v49, %v1415_v19  ;;  %v1524_v4 = vadd.f32 0.014752088, %v1523_v3  ;;  %v2837_v31 = vadd.f32 0.18741608, %v2836_v37  ;;  %v3750_v1 = vmul.f32 2.1237322e-06, %v7845_v5 }
 0x1ae   : > { %v1424_v35 = vsel %vm1421_vm7, %v1423_v21, %v1419_v14  ;;  %v3636_v39 = vmul.f32 %v3635_v24, %v7734_v25  ;;  %v1489_v55 = vmul.f32 %v1488_v22, %v7466_v51  ;;  %v1601_v32 = vmul.f32 3.8918573e-05, %v7593_v18 }
 0x1af   : > { %v1425_v42 = vmul.f32 %v1424_v35, %v7701_v38  ;;  %v1756_v17 = vmul.f32 %v1755_v57, %v7738_v59  ;;  %v1834_v49 = vmul.f32 %v1833_v9, %v7800_v16  ;;  %v2953_v3 = vadd.f32 0.0036580483, %v2952_v45 }
 0x1b0   : > { %v1868_v8 = vmul.f32 %v7856_v11, %v7856_v11  ;;  %v689_v29 = vmul.f32 0.5, %v7409_v47  ;;  %v7871_v37 = vadd.f32 1.0, %v1489_v55  ;;  %v1525_v24 = vmul.f32 %v1524_v4, %v7545_v28 }
 0x1b1   : > { %v6023_v61 = vclamps-f32 %v1425_v42, 1.0  ;;  %v7875_v38 = vmul.f32 %v3519_v50, %v7569_v6  ;;  %v1719_v51 = vadd.f32 1.1283791, %v1718_v36  ;;  %v3751_v63 = vadd.f32 0.00028619796, %v3750_v1 }
 0x1b2   : > { %v7878_v21 = vadd.f32 %v381_v34, %v7053_v43  ;;  %v7881_v57 = vadd.f32 %v521_v13, %v7074_v52  ;;  %6235 = vrcp.f32 %v7871_v37  ;;  %v1602_v47 = vadd.f32 0.001143296, %v1601_v32 }
 0x1b3   : > { %12127 = vst [vmem:[#allocation38_spill] sm:$0xff] %v7875_v38  ;;  %v4721_v53 = vadd.f32 1.0, %v6023_v61  ;;  %v2838_v19 = vmul.f32 %v2837_v31, %v7703_v41  ;;  %v3637_v9 = vadd.f32 0.18741608, %v3636_v39  ;;  %v1757_v45 = vadd.f32 0.18741608, %v1756_v17 }
 0x1b4   : > { %v1835_v22 = vadd.f32 0.05243302, %v1834_v49  ;;  %v2954_v6 = vmul.f32 %v2953_v3, %v7821_v44  ;;  %v7886_v50 = vmin.f32 %v1868_v8, 16.0  ;;  %v1526_v4 = vadd.f32 0.112945676, %v1525_v24  ;;  %v4942_v17 = vld [vmem:[%s12008_s3 + $0x150] sm:$0xff]  ;;  %v7914_v49 = vpop.f32.mrf.mxu2 }
 0x1b5   : > { %v4817_v14 = vmul.f32 %v4721_v53, %v689_v29  ;;  %v7889_v36 = vmul.f32 %v1639_v33, %v7596_v12  ;;  %v7892_v1 = vmul.f32 0.5, %v7678_v23  ;;  %v3752_v35 = vmul.f32 %v3751_v63, %v7845_v5  ;;  %v6538_v3 = vld [vmem:[%s6720_s9 + $0xa0] sm:$0xff]  ;;  %5183 = vmatpush.msrb.mxu1 %v4942_v17 }
 0x1b6   : > { %v7896_v31 = vmul.f32 0.70710677, %v7878_v21  ;;  %v1870_v39 = vmul.f32 2.1237322e-06, %v7886_v50  ;;  %v7900_v34 = vmul.f32 0.70710677, %v7881_v57  ;;  %v1527_v42 = vmul.f32 %v1526_v4, %v7545_v28  ;;  %639 = vmatmul.f32.gmra.mxu2 %v6538_v3 }
 0x1b7   : > { %12128 = vst [vmem:[#allocation39_spill] sm:$0xff] %v7892_v1  ;;  %5093 = vmatmul.f32.gmra.mxu0 %v4817_v14  ;;  %v1603_v55 = vmul.f32 %v1602_v47, %v7593_v18  ;;  %v7905_v12 = vmul.f32 %v1719_v51, %v7640_v54  ;;  %v2839_v23 = vadd.f32 1.1283791, %v2838_v19  ;;  %v3638_v33 = vmul.f32 %v3637_v9, %v7734_v25 }
 0x1b8   : > { %v7909_v32 = vmul.f32 0.5, %v7743_v15  ;;  %v6236_v8 = vpop.eup %6235  ;;  %v1758_v29 = vmul.f32 %v1757_v45, %v7738_v59  ;;  %v1836_v54 = vmul.f32 %v1835_v22, %v7800_v16  ;;  %v2955_v61 = vadd.f32 0.05243302, %v2954_v6 }
 0x1b9   : > { %v1528_v24 = vadd.f32 0.4994258, %v1527_v42  ;;  %v3753_v51 = vadd.f32 0.0036580483, %v3752_v35  ;;  %v1948_v15 = vmul.f32 %v7896_v31, %v7896_v31  ;;  %v1492_v63 = vmul.f32 %v6236_v8, %v7871_v37 }
 0x1ba   : > { %v1604_v13 = vadd.f32 0.014752088, %v1603_v55  ;;  %v1871_v53 = vadd.f32 0.00028619796, %v1870_v39  ;;  %v3068_v47 = vmul.f32 %v7900_v34, %v7900_v34  ;;  %v1502_v19 = vand.u32 2147483648, %v7871_v37 }
 0x1bb   : > { %v1529_v9 = vmul.f32 %v1528_v24, %v7545_v28  ;;  %v1493_v45 = vsub.f32 1.0, %v1492_v63  ;;  %vm1496_vm8 = vweird.f32 %v7871_v37  ;;  %vm1497_vm9 = vweird.f32 %v6236_v8 }
 0x1bc   : > { %v1500_v22 = vand.u32 2147483647, %v7871_v37  ;;  %v3639_v6 = vadd.f32 1.1283791, %v3638_v33  ;;  %v2956_v14 = vmul.f32 %v2955_v61, %v7821_v44  ;;  %v1605_v35 = vmul.f32 %v1604_v13, %v7593_v18  ;;  %vm7937_vm10 = vmor %vm1496_vm8, %vm1497_vm9 }
 0x1bd   : > { %v7929_v4 = vadd.f32 1.0, %v1529_v9  ;;  %v1759_v39 = vadd.f32 1.1283791, %v1758_v29  ;;  %v1837_v42 = vadd.f32 0.18741608, %v1836_v54  ;;  %v7932_v55 = vmin.f32 %v1948_v15, 16.0 }
 0x1be   : > { %v1494_v17 = vmul.f32 %v6236_v8, %v1493_v45  ;;  %v3754_v28 = vmul.f32 %v3753_v51, %v7845_v5  ;;  %v7935_v3 = vmin.f32 %v3068_v47, 16.0  ;;  %v1503_v37 = vor.u32 1.1754944e-38, %v1502_v19 }
 0x1bf   : > { %6237 = vrcp.f32 %v7929_v4  ;;  %v1872_v33 = vmul.f32 %v1871_v53, %v7886_v50  ;;  %v1950_v61 = vmul.f32 2.1237322e-06, %v7932_v55  ;;  %vm1501_vm11 = vcmp.eq.f32.partialorder %v1500_v22, 8.507059e+37 }
 0x1c0   : > { %12129 = vst [vmem:[#allocation40_spill] sm:$0xff] %v7935_v3  ;;  %v1495_v29 = vadd.f32 %v6236_v8, %v1494_v17  ;;  %v7945_v54 = vmul.f32 %v2839_v23, %v7663_v62  ;;  %v2957_v15 = vadd.f32 0.18741608, %v2956_v14  ;;  %v3070_v51 = vmul.f32 2.1237322e-06, %v7935_v3 }
 0x1c1   : > { %v1606_v63 = vadd.f32 0.112945676, %v1605_v35  ;;  %v7949_v13 = vmul.f32 %v3639_v6, %v7694_v48  ;;  %v7952_v47 = vmul.f32 0.5, %v7760_v60  ;;  %v7956_v53 = vadd.f32 %v7487_v2, %v7053_v43  ;;  %v494_v60 = vpop.f32.mrf.mxu1 }
 0x1c2   : > { %12132 = vst [vmem:[#allocation41_spill] sm:$0xff] %v7945_v54  ;;  %v1499_v19 = vsel %vm7937_vm10, %v6236_v8, %v1495_v29  ;;  %v7961_v62 = vmul.f32 %v1759_v39, %v7712_v10  ;;  %v1838_v23 = vmul.f32 %v1837_v42, %v7800_v16  ;;  %v3755_v48 = vadd.f32 0.05243302, %v3754_v28 }
 0x1c3   : > { %12133 = vst [vmem:[#allocation42_spill] sm:$0xff] %v7949_v13  ;;  %v1504_v9 = vsel %vm1501_vm11, %v1503_v37, %v1499_v19  ;;  %v1607_v45 = vmul.f32 %v1606_v63, %v7593_v18  ;;  %v1873_v22 = vadd.f32 0.0036580483, %v1872_v33  ;;  %v1951_v6 = vadd.f32 0.00028619796, %v1950_v61 }
 0x1c4   : > { %12134 = vst [vmem:[#allocation43_spill] sm:$0xff] %v7952_v47  ;;  %v1505_v14 = vmul.f32 %v1504_v9, %v7765_v58  ;;  %v2958_v2 = vmul.f32 %v2957_v15, %v7821_v44  ;;  %v3071_v17 = vadd.f32 0.00028619796, %v3070_v51  ;;  %v1641_v8 = vmul.f32 3.8918573e-05, %v7637_v30  ;;  %v12146_v47 = vld [vmem:[#allocation27_spill] sm:$0xff] }
 0x1c5   : > { %v6238_v35 = vpop.eup %6237  ;;  %v1608_v24 = vadd.f32 0.4994258, %v1607_v45  ;;  %v7969_v10 = vmul.f32 0.70710677, %v7956_v53  ;;  %v691_v39 = vmul.f32 0.5, %v7420_v20  ;;  %v7974_v37 = vadd.f32 %v494_v60, %v7074_v52 }
 0x1c6   : > { %v6025_v42 = vclamps-f32 %v1505_v14, 1.0  ;;  %v1532_v28 = vmul.f32 %v6238_v35, %v7929_v4  ;;  %vm1536_vm12 = vweird.f32 %v7929_v4  ;;  %v1542_v58 = vand.u32 2147483648, %v7929_v4 }
 0x1c7   : > { %v1609_v33 = vmul.f32 %v1608_v24, %v7593_v18  ;;  %vm1537_vm13 = vweird.f32 %v6238_v35  ;;  %v1540_v15 = vand.u32 2147483647, %v7929_v4  ;;  %v3756_v51 = vmul.f32 %v3755_v48, %v7845_v5 }
 0x1c8   : > { %v4723_v61 = vadd.f32 1.0, %v6025_v42  ;;  %v1533_v29 = vsub.f32 1.0, %v1532_v28  ;;  %v1952_v20 = vmul.f32 %v1951_v6, %v7932_v55  ;;  %v3072_v63 = vmul.f32 %v3071_v17, %v7935_v3  ;;  %vm7995_vm14 = vmor %vm1536_vm12, %vm1537_vm13 }
 0x1c9   : > { %v1642_v19 = vadd.f32 0.001143296, %v1641_v8  ;;  %v3868_v9 = vmul.f32 %v7969_v10, %v7969_v10  ;;  %v7985_v14 = vadd.f32 1.0, %v1609_v33  ;;  %v1839_v18 = vadd.f32 1.1283791, %v1838_v23  ;;  %v384_v8 = vpop.f32.mrf.mxu0 }
 0x1ca   : > { %v4819_v45 = vmul.f32 %v4723_v61, %v691_v39  ;;  %v1534_v60 = vmul.f32 %v6238_v35, %v1533_v29  ;;  %v7988_v24 = vmul.f32 0.5, %v7793_v40  ;;  %v7991_v42 = vmul.f32 0.70710677, %v7974_v37 }
 0x1cb   : > { %v1543_v6 = vor.u32 1.1754944e-38, %v1542_v58  ;;  %v2959_v17 = vadd.f32 1.1283791, %v2958_v2  ;;  %vm1541_vm15 = vcmp.eq.f32.partialorder %v1540_v15, 8.507059e+37  ;;  %6239 = vrcp.f32 %v7985_v14  ;;  %v524_v58 = vpop.f32.mrf.mxu3 }
 0x1cc   : > { %12135 = vst [vmem:[#allocation44_spill] sm:$0xff] %v7988_v24  ;;  %4983 = vmatmul.f32.gmra.mxu3 %v4819_v45  ;;  %v1535_v39 = vadd.f32 %v6238_v35, %v1534_v60  ;;  %v3757_v23 = vadd.f32 0.18741608, %v3756_v51  ;;  %v1874_v40 = vmul.f32 %v1873_v22, %v7886_v50  ;;  %v1953_v28 = vadd.f32 0.0036580483, %v1952_v20 }
 0x1cd   : > { %v1643_v33 = vmul.f32 %v1642_v19, %v7637_v30  ;;  %v8003_v4 = vmul.f32 0.5, %v7841_v27  ;;  %v3073_v61 = vadd.f32 0.0036580483, %v3072_v63  ;;  %v8005_v29 = vmin.f32 %v3868_v9, 16.0 }
 0x1ce   : > { %v1539_v2 = vsel %vm7995_vm14, %v6238_v35, %v1535_v39  ;;  %v1988_v15 = vmul.f32 %v7991_v42, %v7991_v42  ;;  %v8012_v51 = vadd.f32 %v384_v8, %v7053_v43  ;;  %v8015_v22 = vadd.f32 %v524_v58, %v7074_v52 }
 0x1cf   : > { %12138 = vst [vmem:[#allocation45_spill] sm:$0xff] %v8005_v29  ;;  %v1544_v20 = vsel %vm1541_vm15, %v1543_v6, %v1539_v2  ;;  %v8018_v27 = vmul.f32 %v1839_v18, %v7757_v0  ;;  %v8021_v63 = vmul.f32 %v2959_v17, %v7782_v56  ;;  %v8024_v19 = vmul.f32 0.5, %v7878_v21 }
 0x1d0   : > { %v1545_v35 = vmul.f32 %v1544_v20, %v7806_v46  ;;  %v3758_v9 = vmul.f32 %v3757_v23, %v7845_v5  ;;  %v1875_v45 = vadd.f32 0.05243302, %v1874_v40  ;;  %v1954_v60 = vmul.f32 %v1953_v28, %v7932_v55 }
 0x1d1   : > { %12139 = vst [vmem:[#allocation46_spill] sm:$0xff] %v8021_v63  ;;  %v1644_v48 = vadd.f32 0.014752088, %v1643_v33  ;;  %v6240_v8 = vpop.eup %6239  ;;  %v3074_v6 = vmul.f32 %v3073_v61, %v7935_v3  ;;  %v3870_v0 = vmul.f32 2.1237322e-06, %v8005_v29  ;;  %v692_v18 = vmul.f32 0.5, %v7477_v7 }
 0x1d2   : > { %12140 = vst [vmem:[#allocation47_spill] sm:$0xff] %v8024_v19  ;;  %v6026_v56 = vclamps-f32 %v1545_v35, 1.0  ;;  %v8032_v17 = vmin.f32 %v1988_v15, 16.0  ;;  %v8035_v21 = vmul.f32 0.70710677, %v8012_v51  ;;  %v1612_v39 = vmul.f32 %v6240_v8, %v7985_v14 }
 0x1d3   : > { %v8038_v46 = vmul.f32 0.70710677, %v8015_v22  ;;  %v1622_v40 = vand.u32 2147483648, %v7985_v14  ;;  %v1645_v28 = vmul.f32 %v1644_v48, %v7637_v30  ;;  %v1721_v33 = vmul.f32 3.8918573e-05, %v7680_v26 }
 0x1d4   : > { %v4724_v23 = vadd.f32 1.0, %v6026_v56  ;;  %v1613_v61 = vsub.f32 1.0, %v1612_v39  ;;  %vm1616_vm0 = vweird.f32 %v7985_v14  ;;  %vm1617_vm1 = vweird.f32 %v6240_v8 }
 0x1d5   : > { %v1620_v7 = vand.u32 2147483647, %v7985_v14  ;;  %v1876_v58 = vmul.f32 %v1875_v45, %v7886_v50  ;;  %v3871_v2 = vadd.f32 0.00028619796, %v3870_v0  ;;  %v1646_v20 = vadd.f32 0.112945676, %v1645_v28  ;;  %vm8050_vm2 = vmor %vm1616_vm0, %vm1617_vm1  ;;  %v8064_v28 = vpop.f32.mrf.mxu2 }
 0x1d6   : > { %v4820_v15 = vmul.f32 %v4724_v23, %v692_v18  ;;  %v1955_v35 = vadd.f32 0.05243302, %v1954_v60  ;;  %v3075_v56 = vadd.f32 0.05243302, %v3074_v6  ;;  %v1990_v24 = vmul.f32 2.1237322e-06, %v8032_v17 }
 0x1d7   : > { %v1614_v1 = vmul.f32 %v6240_v8, %v1613_v61  ;;  %v2068_v48 = vmul.f32 %v8035_v21, %v8035_v21  ;;  %v1623_v14 = vor.u32 1.1754944e-38, %v1622_v40  ;;  %v1647_v45 = vmul.f32 %v1646_v20, %v7637_v30  ;;  %v4941_v23 = vld [vmem:[%s12008_s3 + $0x148] sm:$0xff]  ;;  %12145 = vst [vmem:[#allocation48_spill] sm:$0xff] %v8064_v28 }
 0x1d8   : > { %5096 = vmatmul.f32.gmra.mxu0 %v4820_v15  ;;  %v1722_v0 = vadd.f32 0.001143296, %v1721_v33  ;;  %v3188_v60 = vmul.f32 %v8038_v46, %v8038_v46  ;;  %vm8057_vm3 = vcmp.eq.f32.partialorder %v1620_v7, 8.507059e+37  ;;  %v1761_v61 = vmul.f32 3.8918573e-05, %v7738_v59  ;;  %v6539_v40 = vld [vmem:[%s6720_s9 + $0xa8] sm:$0xff]  ;;  %5184 = vmatpush.msrb.mxu1 %v4941_v23 }
 0x1d9   : > { %v1615_v18 = vadd.f32 %v6240_v8, %v1614_v1  ;;  %642 = vmatmul.f32.gmra.mxu2 %v6539_v40  ;;  %v3759_v15 = vadd.f32 1.1283791, %v3758_v9  ;;  %v1877_v33 = vadd.f32 0.18741608, %v1876_v58  ;;  %v3872_v20 = vmul.f32 %v3871_v2, %v8005_v29 }
 0x1da   : > { %v1648_v13 = vadd.f32 0.4994258, %v1647_v45  ;;  %v1956_v1 = vmul.f32 %v1955_v35, %v7932_v55  ;;  %v1991_v7 = vadd.f32 0.00028619796, %v1990_v24  ;;  %v1723_v5 = vmul.f32 %v1722_v0, %v7680_v26  ;;  %v12147_v24 = vld [vmem:[#allocation34_spill] sm:$0xff] }
 0x1db   : > { %v1619_v38 = vsel %vm8050_vm2, %v6240_v8, %v1615_v18  ;;  %v8073_v25 = vmin.f32 %v2068_v48, 16.0  ;;  %v8077_v63 = vadd.f32 %v12146_v47, %v7053_v43  ;;  %v3076_v2 = vmul.f32 %v3075_v56, %v7935_v3 }
 0x1dc   : > { %v1624_v9 = vsel %vm8057_vm3, %v1623_v14, %v1619_v38  ;;  %v1649_v58 = vmul.f32 %v1648_v13, %v7637_v30  ;;  %v8083_v35 = vmin.f32 %v3188_v60, 16.0  ;;  %v1762_v8 = vadd.f32 0.001143296, %v1761_v61  ;;  %v497_v38 = vpop.f32.mrf.mxu1  ;;  %v12149_v14 = vld [vmem:[#allocation20_spill] sm:$0xff] }
 0x1dd   : > { %v1625_v39 = vmul.f32 %v1624_v9, %v12147_v24  ;;  %v8087_v45 = vmul.f32 0.5, %v7881_v57  ;;  %v3873_v48 = vadd.f32 0.0036580483, %v3872_v20  ;;  %v2070_v0 = vmul.f32 2.1237322e-06, %v8073_v25 }
 0x1de   : > { %v8090_v47 = vadd.f32 1.0, %v1649_v58  ;;  %v3190_v18 = vmul.f32 2.1237322e-06, %v8083_v35  ;;  %v694_v30 = vmul.f32 0.5, %v12149_v14  ;;  %v1724_v56 = vadd.f32 0.014752088, %v1723_v5 }
 0x1df   : > { %12148 = vst [vmem:[#allocation27_spill] sm:$0xff] %v8087_v45  ;;  %v6028_v13 = vclamps-f32 %v1625_v39, 1.0  ;;  %v1878_v60 = vmul.f32 %v1877_v33, %v7886_v50  ;;  %v1992_v6 = vmul.f32 %v1991_v7, %v8032_v17  ;;  %v8097_v23 = vmul.f32 0.70710677, %v8077_v63  ;;  %v12150_v33 = vld [vmem:[#allocation35_spill] sm:$0xff] }
 0x1e0   : > { %6241 = vrcp.f32 %v8090_v47  ;;  %v1957_v57 = vadd.f32 0.18741608, %v1956_v1  ;;  %v3077_v61 = vadd.f32 0.18741608, %v3076_v2  ;;  %v1763_v20 = vmul.f32 %v1762_v8, %v7738_v59 }
 0x1e1   : > { %v4726_v40 = vadd.f32 1.0, %v6028_v13  ;;  %v3874_v9 = vmul.f32 %v3873_v48, %v8005_v29  ;;  %v2071_v58 = vadd.f32 0.00028619796, %v2070_v0  ;;  %v8103_v24 = vadd.f32 %v497_v38, %v7074_v52  ;;  %v387_v48 = vpop.f32.mrf.mxu0 }
 0x1e2   : > { %v1725_v5 = vmul.f32 %v1724_v56, %v7680_v26  ;;  %v8107_v7 = vmul.f32 %v3759_v15, %v12150_v33  ;;  %v8110_v39 = vmul.f32 0.5, %v7956_v53  ;;  %v3191_v14 = vadd.f32 0.00028619796, %v3190_v18 }
 0x1e3   : > { %v4822_v1 = vmul.f32 %v4726_v40, %v694_v30  ;;  %v1879_v2 = vadd.f32 1.1283791, %v1878_v60  ;;  %v1993_v13 = vadd.f32 0.0036580483, %v1992_v6  ;;  %v3988_v8 = vmul.f32 %v8097_v23, %v8097_v23 }
 0x1e4   : > { %12151 = vst [vmem:[#allocation34_spill] sm:$0xff] %v8107_v7  ;;  %v1726_v0 = vadd.f32 0.112945676, %v1725_v5  ;;  %v1958_v38 = vmul.f32 %v1957_v57, %v7932_v55  ;;  %v3078_v45 = vmul.f32 %v3077_v61, %v7935_v3  ;;  %v8117_v56 = vmul.f32 0.5, %v7974_v37  ;;  %v4940_v3 = vld [vmem:[%s12008_s3 + $0x140] sm:$0xff] }
 0x1e5   : > { %12152 = vst [vmem:[#allocation20_spill] sm:$0xff] %v8110_v39  ;;  %4986 = vmatmul.f32.gmra.mxu3 %v4822_v1  ;;  %v1764_v15 = vadd.f32 0.014752088, %v1763_v20  ;;  %v3875_v33 = vadd.f32 0.05243302, %v3874_v9  ;;  %v2072_v18 = vmul.f32 %v2071_v58, %v8073_v25  ;;  %v3192_v6 = vmul.f32 %v3191_v14, %v8083_v35  ;;  %5185 = vmatpush.msrb.mxu1 %v4940_v3 }
 0x1e6   : > { %12153 = vst [vmem:[#allocation35_spill] sm:$0xff] %v8117_v56  ;;  %v6242_v53 = vpop.eup %6241  ;;  %v8121_v30 = vmul.f32 0.70710677, %v8103_v24  ;;  %v1727_v60 = vmul.f32 %v1726_v0, %v7680_v26  ;;  %v8126_v57 = vadd.f32 %v387_v48, %v7053_v43  ;;  %v1994_v40 = vmul.f32 %v1993_v13, %v8032_v17 }
 0x1e7   : > { %v1652_v61 = vmul.f32 %v6242_v53, %v8090_v47  ;;  %v1765_v37 = vmul.f32 %v1764_v15, %v7738_v59  ;;  %v8131_v20 = vmin.f32 %v3988_v8, 16.0  ;;  %v1662_v9 = vand.u32 2147483648, %v8090_v47 }
 0x1e8   : > { %v1728_v58 = vadd.f32 0.4994258, %v1727_v60  ;;  %vm1656_vm4 = vweird.f32 %v8090_v47  ;;  %vm1657_vm5 = vweird.f32 %v6242_v53  ;;  %v1660_v14 = vand.u32 2147483647, %v8090_v47 }
 0x1e9   : > { %12154 = vst [vmem:[#allocation49_spill] sm:$0xff] %v8131_v20  ;;  %v1653_v5 = vsub.f32 1.0, %v1652_v61  ;;  %v2073_v1 = vadd.f32 0.0036580483, %v2072_v18  ;;  %v2108_v48 = vmul.f32 %v8121_v30, %v8121_v30  ;;  %v1766_v15 = vadd.f32 0.112945676, %v1765_v37  ;;  %vm8143_vm6 = vmor %vm1656_vm4, %vm1657_vm5 }
 0x1ea   : > { %v1729_v0 = vmul.f32 %v1728_v58, %v7680_v26  ;;  %v1959_v39 = vadd.f32 1.1283791, %v1958_v38  ;;  %v3193_v13 = vadd.f32 0.0036580483, %v3192_v6  ;;  %v8140_v8 = vmul.f32 0.70710677, %v8126_v57 }
 0x1eb   : > { %v1654_v7 = vmul.f32 %v6242_v53, %v1653_v5  ;;  %v3079_v60 = vadd.f32 1.1283791, %v3078_v45  ;;  %v3990_v61 = vmul.f32 2.1237322e-06, %v8131_v20  ;;  %v1663_v47 = vor.u32 1.1754944e-38, %v1662_v9 }
 0x1ec   : > { %v8147_v18 = vadd.f32 1.0, %v1729_v0  ;;  %v3876_v54 = vmul.f32 %v3875_v33, %v8005_v29  ;;  %v1995_v26 = vadd.f32 0.05243302, %v1994_v40  ;;  %vm1661_vm7 = vcmp.eq.f32.partialorder %v1660_v14, 8.507059e+37  ;;  %v527_v40 = vpop.f32.mrf.mxu3 }
 0x1ed   : > { %v1655_v37 = vadd.f32 %v6242_v53, %v1654_v7  ;;  %v2074_v38 = vmul.f32 %v2073_v1, %v8073_v25  ;;  %v8151_v6 = vmin.f32 %v2108_v48, 16.0  ;;  %v1767_v45 = vmul.f32 %v1766_v15, %v7738_v59 }
 0x1ee   : > { %6243 = vrcp.f32 %v8147_v18  ;;  %v8156_v58 = vmul.f32 %v1879_v2, %v7856_v11  ;;  %v3194_v9 = vmul.f32 %v3193_v13, %v8083_v35  ;;  %v2188_v33 = vmul.f32 %v8140_v8, %v8140_v8  ;;  %v6540_v13 = vld [vmem:[%s6720_s9 + $0xb0] sm:$0xff] }
 0x1ef   : > { %v1659_v7 = vsel %vm8143_vm6, %v6242_v53, %v1655_v37  ;;  %v3991_v5 = vadd.f32 0.00028619796, %v3990_v61  ;;  %v2110_v14 = vmul.f32 2.1237322e-06, %v8151_v6  ;;  %v8165_v1 = vadd.f32 %v527_v40, %v7074_v52  ;;  %v8177_v53 = vpop.f32.mrf.mxu2  ;;  %645 = vmatmul.f32.gmra.mxu2 %v6540_v13 }
 0x1f0   : > { %v1664_v48 = vsel %vm1661_vm7, %v1663_v47, %v1659_v7  ;;  %v8168_v0 = vmul.f32 %v1959_v39, %v7896_v31  ;;  %v8171_v11 = vmul.f32 %v3079_v60, %v7900_v34  ;;  %v3877_v2 = vadd.f32 0.18741608, %v3876_v54  ;;  %12159 = vst [vmem:[#allocation52_spill] sm:$0xff] %v8177_v53  ;;  %v12160_v31 = vld [vmem:[#allocation31_spill] sm:$0xff] }
 0x1f1   : > { %v1665_v15 = vmul.f32 %v1664_v48, %v7889_v36  ;;  %v1996_v61 = vmul.f32 %v1995_v26, %v8032_v17  ;;  %v2075_v47 = vadd.f32 0.05243302, %v2074_v38  ;;  %v8183_v39 = vadd.f32 %v12160_v31, %v7053_v43  ;;  %v12161_v36 = vld [vmem:[#allocation21_spill] sm:$0xff] }
 0x1f2   : > { %12157 = vst [vmem:[#allocation50_spill] sm:$0xff] %v8168_v0  ;;  %v1768_v34 = vadd.f32 0.4994258, %v1767_v45  ;;  %v3195_v54 = vadd.f32 0.05243302, %v3194_v9  ;;  %v8185_v60 = vmin.f32 %v2188_v33, 16.0  ;;  %v3992_v48 = vmul.f32 %v3991_v5, %v8131_v20 }
 0x1f3   : > { %12158 = vst [vmem:[#allocation51_spill] sm:$0xff] %v8171_v11  ;;  %v695_v37 = vmul.f32 0.5, %v12161_v36  ;;  %v6029_v40 = vclamps-f32 %v1665_v15, 1.0  ;;  %v2111_v11 = vadd.f32 0.00028619796, %v2110_v14  ;;  %vm1736_vm8 = vweird.f32 %v8147_v18 }
 0x1f4   : > { %v6244_v7 = vpop.eup %6243  ;;  %v8190_v13 = vmul.f32 0.70710677, %v8165_v1  ;;  %v1769_v26 = vmul.f32 %v1768_v34, %v7738_v59  ;;  %v2190_v38 = vmul.f32 2.1237322e-06, %v8185_v60  ;;  %v1841_v9 = vmul.f32 3.8918573e-05, %v7800_v16 }
 0x1f5   : > { %v4727_v31 = vadd.f32 1.0, %v6029_v40  ;;  %v1732_v45 = vmul.f32 %v6244_v7, %v8147_v18  ;;  %v8197_v33 = vmul.f32 0.70710677, %v8183_v39  ;;  %v1742_v5 = vand.u32 2147483648, %v8147_v18 }
 0x1f6   : > { %v8201_v14 = vadd.f32 1.0, %v1769_v26  ;;  %vm1737_vm9 = vweird.f32 %v6244_v7  ;;  %v1740_v59 = vand.u32 2147483647, %v8147_v18  ;;  %v2076_v34 = vmul.f32 %v2075_v47, %v8073_v25 }
 0x1f7   : > { %v4823_v15 = vmul.f32 %v4727_v31, %v695_v37  ;;  %v1733_v3 = vsub.f32 1.0, %v1732_v45  ;;  %v3993_v36 = vadd.f32 0.0036580483, %v3992_v48  ;;  %v3308_v40 = vmul.f32 %v8190_v13, %v8190_v13  ;;  %vm8218_vm10 = vmor %vm1736_vm8, %vm1737_vm9 }
 0x1f8   : > { %6245 = vrcp.f32 %v8201_v14  ;;  %v8209_v44 = vmul.f32 0.5, %v8012_v51  ;;  %v2112_v41 = vmul.f32 %v2111_v11, %v8151_v6  ;;  %v1842_v37 = vadd.f32 0.001143296, %v1841_v9 }
 0x1f9   : > { %5099 = vmatmul.f32.gmra.mxu0 %v4823_v15  ;;  %v1734_v26 = vmul.f32 %v6244_v7, %v1733_v3  ;;  %v3878_v31 = vmul.f32 %v3877_v2, %v8005_v29  ;;  %v8214_v45 = vmul.f32 0.5, %v8015_v22  ;;  %v2191_v47 = vadd.f32 0.00028619796, %v2190_v38  ;;  %v500_v15 = vpop.f32.mrf.mxu1 }
 0x1fa   : > { %12162 = vst [vmem:[#allocation31_spill] sm:$0xff] %v8209_v44  ;;  %v1743_v53 = vor.u32 1.1754944e-38, %v1742_v5  ;;  %v1997_v51 = vadd.f32 0.18741608, %v1996_v61  ;;  %v4108_v11 = vmul.f32 %v8197_v33, %v8197_v33  ;;  %vm1741_vm11 = vcmp.eq.f32.partialorder %v1740_v59, 8.507059e+37 }
 0x1fb   : > { %12163 = vst [vmem:[#allocation21_spill] sm:$0xff] %v8214_v45  ;;  %v1735_v3 = vadd.f32 %v6244_v7, %v1734_v26  ;;  %v2077_v9 = vadd.f32 0.18741608, %v2076_v34  ;;  %v3196_v2 = vmul.f32 %v3195_v54, %v8083_v35  ;;  %v3994_v22 = vmul.f32 %v3993_v36, %v8131_v20 }
 0x1fc   : > { %v8226_v38 = vmin.f32 %v3308_v40, 16.0  ;;  %v2113_v18 = vadd.f32 0.0036580483, %v2112_v41  ;;  %v1843_v5 = vmul.f32 %v1842_v37, %v7800_v16  ;;  %v1881_v61 = vmul.f32 3.8918573e-05, %v7886_v50  ;;  %v12167_v40 = vld [vmem:[#allocation24_spill] sm:$0xff] }
 0x1fd   : > { %v1739_v45 = vsel %vm8218_vm10, %v6244_v7, %v1735_v3  ;;  %v2192_v44 = vmul.f32 %v2191_v47, %v8185_v60  ;;  %v8235_v34 = vadd.f32 %v500_v15, %v7074_v52  ;;  %v8237_v36 = vmin.f32 %v4108_v11, 16.0 }
 0x1fe   : > { %v6246_v29 = vpop.eup %6245  ;;  %v3310_v59 = vmul.f32 2.1237322e-06, %v8226_v38  ;;  %v1744_v54 = vsel %vm1741_vm11, %v1743_v53, %v1739_v45  ;;  %v697_v41 = vmul.f32 0.5, %v12167_v40  ;;  %vm1776_vm12 = vweird.f32 %v8201_v14 }
 0x1ff   : > { %12166 = vst [vmem:[#allocation53_spill] sm:$0xff] %v8237_v36  ;;  %v1745_v26 = vmul.f32 %v1744_v54, %v7905_v12  ;;  %v1772_v7 = vmul.f32 %v6246_v29, %v8201_v14  ;;  %v1780_v37 = vand.u32 2147483647, %v8201_v14  ;;  %v1782_v47 = vand.u32 2147483648, %v8201_v14 }
 0x200   : > { %v1844_v48 = vadd.f32 0.014752088, %v1843_v5  ;;  %vm1777_vm13 = vweird.f32 %v6246_v29  ;;  %v1882_v15 = vadd.f32 0.001143296, %v1881_v61  ;;  %v3995_v53 = vadd.f32 0.05243302, %v3994_v22 }
 0x201   : > { %v6031_v3 = vclamps-f32 %v1745_v26, 1.0  ;;  %v1773_v56 = vsub.f32 1.0, %v1772_v7  ;;  %v3311_v45 = vadd.f32 0.00028619796, %v3310_v59  ;;  %v8246_v11 = vmul.f32 0.70710677, %v8235_v34  ;;  %vm8254_vm14 = vmor %vm1776_vm12, %vm1777_vm13 }
 0x202   : > { %v1845_v12 = vmul.f32 %v1844_v48, %v7800_v16  ;;  %v2193_v54 = vadd.f32 0.0036580483, %v2192_v44  ;;  %v1883_v19 = vmul.f32 %v1882_v15, %v7886_v50  ;;  %v2114_v0 = vmul.f32 %v2113_v18, %v8151_v6 }
 0x203   : > { %v4729_v40 = vadd.f32 1.0, %v6031_v3  ;;  %v1774_v28 = vmul.f32 %v6246_v29, %v1773_v56  ;;  %v4110_v5 = vmul.f32 2.1237322e-06, %v8237_v36  ;;  %v1783_v22 = vor.u32 1.1754944e-38, %v1782_v47 }
 0x204   : > { %v1846_v59 = vadd.f32 0.112945676, %v1845_v12  ;;  %vm1781_vm15 = vcmp.eq.f32.partialorder %v1780_v37, 8.507059e+37  ;;  %v1884_v44 = vadd.f32 0.014752088, %v1883_v19  ;;  %v3312_v56 = vmul.f32 %v3311_v45, %v8226_v38 }
 0x205   : > { %v4825_v26 = vmul.f32 %v4729_v40, %v697_v41  ;;  %v1775_v7 = vadd.f32 %v6246_v29, %v1774_v28  ;;  %v3879_v48 = vadd.f32 1.1283791, %v3878_v31  ;;  %v2228_v18 = vmul.f32 %v8246_v11, %v8246_v11 }
 0x206   : > { %v1847_v3 = vmul.f32 %v1846_v59, %v7800_v16  ;;  %v3197_v15 = vadd.f32 0.18741608, %v3196_v2  ;;  %v3996_v14 = vmul.f32 %v3995_v53, %v8131_v20  ;;  %v1885_v41 = vmul.f32 %v1884_v44, %v7886_v50 }
 0x207   : > { %4989 = vmatmul.f32.gmra.mxu3 %v4825_v26  ;;  %v1779_v47 = vsel %vm8254_vm14, %v6246_v29, %v1775_v7  ;;  %v1998_v28 = vmul.f32 %v1997_v51, %v8032_v17  ;;  %v2115_v19 = vadd.f32 0.05243302, %v2114_v0  ;;  %v2078_v45 = vmul.f32 %v2077_v9, %v8073_v25  ;;  %v12170_v51 = vld [vmem:[#allocation28_spill] sm:$0xff] }
 0x208   : > { %v1784_v31 = vsel %vm1781_vm15, %v1783_v22, %v1779_v47  ;;  %v1848_v37 = vadd.f32 0.4994258, %v1847_v3  ;;  %v2194_v12 = vmul.f32 %v2193_v54, %v8185_v60  ;;  %v4111_v40 = vadd.f32 0.00028619796, %v4110_v5  ;;  %v390_v47 = vpop.f32.mrf.mxu0 }
 0x209   : > { %v1785_v2 = vmul.f32 %v1784_v31, %v7961_v62  ;;  %v3313_v59 = vadd.f32 0.0036580483, %v3312_v56  ;;  %v8270_v53 = vmin.f32 %v2228_v18, 16.0  ;;  %v1886_v29 = vadd.f32 0.112945676, %v1885_v41 }
 0x20a   : > { %v1849_v61 = vmul.f32 %v1848_v37, %v7800_v16  ;;  %v3198_v26 = vmul.f32 %v3197_v15, %v8083_v35  ;;  %v3997_v7 = vadd.f32 0.18741608, %v3996_v14  ;;  %v698_v0 = vmul.f32 0.5, %v12170_v51  ;;  %v4939_v37 = vld [vmem:[%s12008_s3 + $0x138] sm:$0xff] }
 0x20b   : > { %v6032_v22 = vclamps-f32 %v1785_v2, 1.0  ;;  %v1999_v44 = vadd.f32 1.1283791, %v1998_v28  ;;  %v2116_v9 = vmul.f32 %v2115_v19, %v8151_v6  ;;  %v2230_v54 = vmul.f32 2.1237322e-06, %v8270_v53  ;;  %v6541_v2 = vld [vmem:[%s6720_s9 + $0xb8] sm:$0xff]  ;;  %5186 = vmatpush.msrb.mxu1 %v4939_v37 }
 0x20c   : > { %v8277_v5 = vadd.f32 1.0, %v1849_v61  ;;  %v4112_v62 = vmul.f32 %v4111_v40, %v8237_v36  ;;  %v1887_v16 = vmul.f32 %v1886_v29, %v7886_v50  ;;  %v1961_v18 = vmul.f32 3.8918573e-05, %v7932_v55  ;;  %v8291_v40 = vpop.f32.mrf.mxu2  ;;  %648 = vmatmul.f32.gmra.mxu2 %v6541_v2 }
 0x20d   : > { %v4730_v56 = vadd.f32 1.0, %v6032_v22  ;;  %v8283_v3 = vmul.f32 0.5, %v8077_v63  ;;  %v2195_v15 = vadd.f32 0.05243302, %v2194_v12  ;;  %v3314_v14 = vmul.f32 %v3313_v59, %v8226_v38 }
 0x20e   : > { %6247 = vrcp.f32 %v8277_v5  ;;  %v2079_v41 = vadd.f32 1.1283791, %v2078_v45  ;;  %v3199_v28 = vadd.f32 1.1283791, %v3198_v26  ;;  %v3998_v19 = vmul.f32 %v3997_v7, %v8131_v20 }
 0x20f   : > { %12171 = vst [vmem:[#allocation24_spill] sm:$0xff] %v8283_v3  ;;  %v4826_v31 = vmul.f32 %v4730_v56, %v698_v0  ;;  %v8295_v63 = vmul.f32 %v3879_v48, %v7969_v10  ;;  %v2117_v12 = vadd.f32 0.18741608, %v2116_v9  ;;  %v2231_v59 = vadd.f32 0.00028619796, %v2230_v54  ;;  %v530_v54 = vpop.f32.mrf.mxu3 }
 0x210   : > { %v1888_v61 = vadd.f32 0.4994258, %v1887_v16  ;;  %v8298_v45 = vmul.f32 %v1999_v44, %v7991_v42  ;;  %v4113_v29 = vadd.f32 0.0036580483, %v4112_v62  ;;  %v8301_v26 = vadd.f32 %v390_v47, %v7053_v43 }
 0x211   : > { %12172 = vst [vmem:[#allocation28_spill] sm:$0xff] %v8295_v63  ;;  %5102 = vmatmul.f32.gmra.mxu0 %v4826_v31  ;;  %v1962_v7 = vadd.f32 0.001143296, %v1961_v18  ;;  %v8304_v51 = vmul.f32 0.5, %v8103_v24  ;;  %v2196_v0 = vmul.f32 %v2195_v15, %v8185_v60  ;;  %v3315_v10 = vadd.f32 0.05243302, %v3314_v14 }
 0x212   : > { %v1889_v48 = vmul.f32 %v1888_v61, %v7886_v50  ;;  %v8309_v22 = vmul.f32 %v2079_v41, %v8035_v21  ;;  %v8312_v42 = vmul.f32 %v3199_v28, %v8038_v46  ;;  %v3999_v44 = vadd.f32 1.1283791, %v3998_v19 }
 0x213   : > { %v8315_v9 = vmul.f32 0.5, %v8126_v57  ;;  %v2118_v24 = vmul.f32 %v2117_v12, %v8151_v6  ;;  %v2232_v56 = vmul.f32 %v2231_v59, %v8270_v53  ;;  %v8320_v16 = vadd.f32 %v530_v54, %v7074_v52 }
 0x214   : > { %v6248_v62 = vpop.eup %6247  ;;  %v8322_v50 = vadd.f32 1.0, %v1889_v48  ;;  %v4114_v21 = vmul.f32 %v4113_v29, %v8237_v36  ;;  %v8326_v46 = vmul.f32 0.70710677, %v8301_v26  ;;  %v1963_v57 = vmul.f32 %v1962_v7, %v7932_v55 }
 0x215   : > { %v1852_v18 = vmul.f32 %v6248_v62, %v8277_v5  ;;  %v2197_v15 = vadd.f32 0.18741608, %v2196_v0  ;;  %v3316_v14 = vmul.f32 %v3315_v10, %v8226_v38  ;;  %v1862_v47 = vand.u32 2147483648, %v8277_v5 }
 0x216   : > { %6249 = vrcp.f32 %v8322_v50  ;;  %vm1856_vm0 = vweird.f32 %v8277_v5  ;;  %vm1857_vm1 = vweird.f32 %v6248_v62  ;;  %v1860_v28 = vand.u32 2147483647, %v8277_v5 }
 0x217   : > { %v1853_v41 = vsub.f32 1.0, %v1852_v18  ;;  %v8336_v19 = vmul.f32 %v3999_v44, %v8097_v23  ;;  %v8339_v31 = vmul.f32 0.5, %v8165_v1  ;;  %v2233_v37 = vadd.f32 0.0036580483, %v2232_v56  ;;  %vm8352_vm2 = vmor %vm1856_vm0, %vm1857_vm1 }
 0x218   : > { %v8342_v2 = vmul.f32 0.70710677, %v8320_v16  ;;  %v4115_v12 = vadd.f32 0.05243302, %v4114_v21  ;;  %v2308_v59 = vmul.f32 %v8326_v46, %v8326_v46  ;;  %v1964_v29 = vadd.f32 0.014752088, %v1963_v57 }
 0x219   : > { %12173 = vst [vmem:[#allocation54_spill] sm:$0xff] %v8336_v19  ;;  %v1854_v61 = vmul.f32 %v6248_v62, %v1853_v41  ;;  %v8346_v7 = vadd.f32 1.1283791, %v2118_v24  ;;  %v2198_v5 = vmul.f32 %v2197_v15, %v8185_v60  ;;  %v8350_v23 = vmul.f32 0.5, %v8183_v39  ;;  %v503_v15 = vpop.f32.mrf.mxu1 }
 0x21a   : > { %12174 = vst [vmem:[#allocation55_spill] sm:$0xff] %v8339_v31  ;;  %v1863_v0 = vor.u32 1.1754944e-38, %v1862_v47  ;;  %v3317_v10 = vadd.f32 0.18741608, %v3316_v14  ;;  %vm1861_vm3 = vcmp.eq.f32.partialorder %v1860_v28, 8.507059e+37  ;;  %v1965_v44 = vmul.f32 %v1964_v29, %v7932_v55 }
 0x21b   : > { %12175 = vst [vmem:[#allocation56_spill] sm:$0xff] %v8350_v23  ;;  %v1855_v48 = vadd.f32 %v6248_v62, %v1854_v61  ;;  %v2234_v56 = vmul.f32 %v2233_v37, %v8270_v53  ;;  %v3428_v24 = vmul.f32 %v8342_v2, %v8342_v2  ;;  %v8362_v39 = vadd.f32 %v7914_v49, %v7053_v43 }
 0x21c   : > { %v6250_v54 = vpop.eup %6249  ;;  %v2001_v21 = vmul.f32 3.8918573e-05, %v8032_v17  ;;  %v4116_v18 = vmul.f32 %v4115_v12, %v8237_v36  ;;  %v8366_v57 = vmin.f32 %v2308_v59, 16.0  ;;  %vm1896_vm4 = vweird.f32 %v8322_v50 }
 0x21d   : > { %v1859_v14 = vsel %vm8352_vm2, %v6248_v62, %v1855_v48  ;;  %v1892_v47 = vmul.f32 %v6250_v54, %v8322_v50  ;;  %v1900_v28 = vand.u32 2147483647, %v8322_v50  ;;  %v1902_v49 = vand.u32 2147483648, %v8322_v50 }
 0x21e   : > { %v1864_v41 = vsel %vm1861_vm3, %v1863_v0, %v1859_v14  ;;  %vm1897_vm5 = vweird.f32 %v6250_v54  ;;  %v1966_v12 = vadd.f32 0.112945676, %v1965_v44  ;;  %v8375_v59 = vmin.f32 %v3428_v24, 16.0 }
 0x21f   : > { %v1865_v37 = vmul.f32 %v1864_v41, %v8018_v27  ;;  %v1893_v61 = vsub.f32 1.0, %v1892_v47  ;;  %v8378_v29 = vmul.f32 0.70710677, %v8362_v39  ;;  %v8381_v62 = vadd.f32 %v503_v15, %v7074_v52  ;;  %vm8389_vm6 = vmor %vm1896_vm4, %vm1897_vm5 }
 0x220   : > { %12178 = vst [vmem:[#allocation57_spill] sm:$0xff] %v8375_v59  ;;  %v2002_v1 = vadd.f32 0.001143296, %v2001_v21  ;;  %v2235_v0 = vadd.f32 0.05243302, %v2234_v56  ;;  %v1967_v23 = vmul.f32 %v1966_v12, %v7932_v55  ;;  %v3318_v3 = vmul.f32 %v3317_v10, %v8226_v38 }
 0x221   : > { %v6034_v48 = vclamps-f32 %v1865_v37, 1.0  ;;  %v1894_v14 = vmul.f32 %v6250_v54, %v1893_v61  ;;  %v2310_v27 = vmul.f32 2.1237322e-06, %v8366_v57  ;;  %v3430_v44 = vmul.f32 2.1237322e-06, %v8375_v59 }
 0x222   : > { %v1903_v15 = vor.u32 1.1754944e-38, %v1902_v49  ;;  %vm1901_vm7 = vcmp.eq.f32.partialorder %v1900_v28, 8.507059e+37  ;;  %v1968_v56 = vadd.f32 0.4994258, %v1967_v23  ;;  %v4117_v41 = vadd.f32 0.18741608, %v4116_v18 }
 0x223   : > { %v4732_v47 = vadd.f32 1.0, %v6034_v48  ;;  %v1895_v21 = vadd.f32 %v6250_v54, %v1894_v14  ;;  %v4228_v37 = vmul.f32 %v8378_v29, %v8378_v29  ;;  %v8396_v10 = vmul.f32 0.70710677, %v8381_v62 }
 0x224   : > { %v2003_v61 = vmul.f32 %v2002_v1, %v8032_v17  ;;  %v2199_v12 = vadd.f32 1.1283791, %v2198_v5  ;;  %v1969_v49 = vmul.f32 %v1968_v56, %v7932_v55  ;;  %v2236_v28 = vmul.f32 %v2235_v0, %v8270_v53  ;;  %v393_v56 = vpop.f32.mrf.mxu0 }
 0x225   : > { %v4828_v50 = vmul.f32 %v4732_v47, %v7909_v32  ;;  %v1899_v19 = vsel %vm8389_vm6, %v6250_v54, %v1895_v21  ;;  %v2311_v23 = vadd.f32 0.00028619796, %v2310_v27  ;;  %v3431_v18 = vadd.f32 0.00028619796, %v3430_v44 }
 0x226   : > { %v1904_v48 = vsel %vm1901_vm7, %v1903_v15, %v1899_v19  ;;  %v3319_v14 = vadd.f32 1.1283791, %v3318_v3  ;;  %v8405_v63 = vadd.f32 1.0, %v1969_v49  ;;  %v2081_v5 = vmul.f32 3.8918573e-05, %v8073_v25 }
 0x227   : > { %4992 = vmatmul.f32.gmra.mxu3 %v4828_v50  ;;  %v1905_v20 = vmul.f32 %v1904_v48, %v8156_v58  ;;  %v4118_v32 = vmul.f32 %v4117_v41, %v8237_v36  ;;  %v8409_v1 = vmin.f32 %v4228_v37, 16.0  ;;  %v2348_v55 = vmul.f32 %v8396_v10, %v8396_v10 }
 0x228   : > { %v2004_v54 = vadd.f32 0.014752088, %v2003_v61  ;;  %v8415_v0 = vmul.f32 %v8346_v7, %v8121_v30  ;;  %v8418_v3 = vmul.f32 0.5, %v8235_v34  ;;  %6251 = vrcp.f32 %v8405_v63 }
 0x229   : > { %12181 = vst [vmem:[#allocation58_spill] sm:$0xff] %v8409_v1  ;;  %v6035_v58 = vclamps-f32 %v1905_v20, 1.0  ;;  %v8422_v19 = vmul.f32 %v2199_v12, %v8140_v8  ;;  %v2237_v27 = vadd.f32 0.18741608, %v2236_v28  ;;  %v2312_v44 = vmul.f32 %v2311_v23, %v8366_v57  ;;  %v533_v23 = vpop.f32.mrf.mxu3 }
 0x22a   : > { %v3432_v24 = vmul.f32 %v3431_v18, %v8375_v59  ;;  %v8427_v15 = vmul.f32 %v3319_v14, %v8190_v13  ;;  %v2005_v30 = vmul.f32 %v2004_v54, %v8032_v17  ;;  %v2082_v7 = vadd.f32 0.001143296, %v2081_v5 }
 0x22b   : > { %v4733_v47 = vadd.f32 1.0, %v6035_v58  ;;  %v8430_v34 = vadd.f32 1.1283791, %v4118_v32  ;;  %v8433_v20 = vmul.f32 0.5, %v8301_v26  ;;  %v4230_v8 = vmul.f32 2.1237322e-06, %v8409_v1 }
 0x22c   : > { %12182 = vst [vmem:[#allocation59_spill] sm:$0xff] %v8427_v15  ;;  %v8436_v21 = vmin.f32 %v2348_v55, 16.0  ;;  %v2006_v37 = vadd.f32 0.112945676, %v2005_v30  ;;  %v2083_v13 = vmul.f32 %v2082_v7, %v8073_v25  ;;  %v2121_v61 = vmul.f32 3.8918573e-05, %v8151_v6 }
 0x22d   : > { %v4829_v41 = vmul.f32 %v4733_v47, %v8003_v4  ;;  %v2238_v12 = vmul.f32 %v2237_v27, %v8270_v53  ;;  %v2313_v50 = vadd.f32 0.0036580483, %v2312_v44  ;;  %v3433_v49 = vadd.f32 0.0036580483, %v3432_v24  ;;  %v4938_v58 = vld [vmem:[%s12008_s3 + $0x130] sm:$0xff]  ;;  %v8455_v27 = vpop.f32.mrf.mxu2  ;;  %v6542_v44 = vld [vmem:[%s6720_s9 + $0xc0] sm:$0xff] }
 0x22e   : > { %v2350_v26 = vmul.f32 2.1237322e-06, %v8436_v21  ;;  %v6252_v28 = vpop.eup %6251  ;;  %v2007_v18 = vmul.f32 %v2006_v37, %v8032_v17  ;;  %v2084_v48 = vadd.f32 0.014752088, %v2083_v13  ;;  %v2122_v14 = vadd.f32 0.001143296, %v2121_v61  ;;  %651 = vmatmul.f32.gmra.mxu2 %v6542_v44  ;;  %5187 = vmatpush.msrb.mxu1 %v4938_v58 }
 0x22f   : > { %5105 = vmatmul.f32.gmra.mxu0 %v4829_v41  ;;  %v2201_v4 = vmul.f32 3.8918573e-05, %v8185_v60  ;;  %v4231_v5 = vadd.f32 0.00028619796, %v4230_v8  ;;  %v8446_v32 = vadd.f32 %v393_v56, %v7053_v43  ;;  %v8449_v55 = vadd.f32 %v533_v23, %v7074_v52 }
 0x230   : > { %v1972_v54 = vmul.f32 %v6252_v28, %v8405_v63  ;;  %vm1976_vm8 = vweird.f32 %v8405_v63  ;;  %v1982_v24 = vand.u32 2147483648, %v8405_v63  ;;  %v2008_v47 = vadd.f32 0.4994258, %v2007_v18 }
 0x231   : > { %v2085_v30 = vmul.f32 %v2084_v48, %v8073_v25  ;;  %vm1977_vm9 = vweird.f32 %v6252_v28  ;;  %v1980_v8 = vand.u32 2147483647, %v8405_v63  ;;  %v2123_v56 = vmul.f32 %v2122_v14, %v8151_v6 }
 0x232   : > { %v1973_v7 = vsub.f32 1.0, %v1972_v54  ;;  %v2314_v41 = vmul.f32 %v2313_v50, %v8366_v57  ;;  %v2009_v37 = vmul.f32 %v2008_v47, %v8032_v17  ;;  %v2202_v61 = vadd.f32 0.001143296, %v2201_v4  ;;  %vm8474_vm10 = vmor %vm1976_vm8, %vm1977_vm9 }
 0x233   : > { %v2086_v13 = vadd.f32 0.112945676, %v2085_v30  ;;  %v2351_v23 = vadd.f32 0.00028619796, %v2350_v26  ;;  %v8466_v44 = vmul.f32 0.70710677, %v8446_v32  ;;  %v4232_v48 = vmul.f32 %v4231_v5, %v8409_v1 }
 0x234   : > { %v1974_v18 = vmul.f32 %v6252_v28, %v1973_v7  ;;  %v2124_v58 = vadd.f32 0.014752088, %v2123_v56  ;;  %v8470_v54 = vmul.f32 0.70710677, %v8449_v55  ;;  %v1983_v17 = vor.u32 1.1754944e-38, %v1982_v24 }
 0x235   : > { %v8478_v50 = vadd.f32 1.0, %v2009_v37  ;;  %v2239_v26 = vadd.f32 1.1283791, %v2238_v12  ;;  %vm1981_vm11 = vcmp.eq.f32.partialorder %v1980_v8, 8.507059e+37  ;;  %v2087_v47 = vmul.f32 %v2086_v13, %v8073_v25 }
 0x236   : > { %v1975_v4 = vadd.f32 %v6252_v28, %v1974_v18  ;;  %v3434_v30 = vmul.f32 %v3433_v49, %v8375_v59  ;;  %v2125_v5 = vmul.f32 %v2124_v58, %v8151_v6  ;;  %v2203_v63 = vmul.f32 %v2202_v61, %v8185_v60  ;;  %v12187_v61 = vld [vmem:[#allocation50_spill] sm:$0xff] }
 0x237   : > { %6253 = vrcp.f32 %v8478_v50  ;;  %v2315_v7 = vadd.f32 0.05243302, %v2314_v41  ;;  %v2428_v56 = vmul.f32 %v8466_v44, %v8466_v44  ;;  %v2088_v12 = vadd.f32 0.4994258, %v2087_v47 }
 0x238   : > { %v1979_v24 = vsel %vm8474_vm10, %v6252_v28, %v1975_v4  ;;  %v4233_v37 = vadd.f32 0.0036580483, %v4232_v48  ;;  %v2352_v8 = vmul.f32 %v2351_v23, %v8436_v21  ;;  %v3548_v49 = vmul.f32 %v8470_v54, %v8470_v54 }
 0x239   : > { %v1984_v13 = vsel %vm1981_vm11, %v1983_v17, %v1979_v24  ;;  %v8494_v18 = vmul.f32 %v8430_v34, %v8197_v33  ;;  %v8497_v41 = vmul.f32 0.5, %v8320_v16  ;;  %v2089_v14 = vmul.f32 %v2088_v12, %v8073_v25 }
 0x23a   : > { %v1985_v58 = vmul.f32 %v1984_v13, %v12187_v61  ;;  %v8502_v28 = vmul.f32 %v2239_v26, %v8246_v11  ;;  %v3435_v48 = vadd.f32 0.05243302, %v3434_v30  ;;  %v2126_v23 = vadd.f32 0.112945676, %v2125_v5  ;;  %v8525_v61 = vpop.f32.mrf.mxu2 }
 0x23b   : > { %12185 = vst [vmem:[#allocation60_spill] sm:$0xff] %v8494_v18  ;;  %v2204_v4 = vadd.f32 0.014752088, %v2203_v63  ;;  %v2316_v47 = vmul.f32 %v2315_v7, %v8366_v57  ;;  %v8505_v17 = vmin.f32 %v2428_v56, 16.0  ;;  %v8507_v33 = vadd.f32 1.0, %v2089_v14  ;;  %v12189_v56 = vld [vmem:[#allocation47_spill] sm:$0xff] }
 0x23c   : > { %12186 = vst [vmem:[#allocation61_spill] sm:$0xff] %v8497_v41  ;;  %v6037_v24 = vclamps-f32 %v1985_v58, 1.0  ;;  %v4234_v16 = vmul.f32 %v4233_v37, %v8409_v1  ;;  %v2353_v18 = vadd.f32 0.0036580483, %v2352_v8  ;;  %v8510_v13 = vmin.f32 %v3548_v49, 16.0  ;;  %v4937_v49 = vld [vmem:[%s12008_s3 + $0x128] sm:$0xff] }
 0x23d   : > { %v6254_v34 = vpop.eup %6253  ;;  %v2127_v25 = vmul.f32 %v2126_v23, %v8151_v6  ;;  %v2430_v11 = vmul.f32 2.1237322e-06, %v8505_v17  ;;  %v2241_v5 = vmul.f32 3.8918573e-05, %v8270_v53  ;;  %vm2016_vm12 = vweird.f32 %v8478_v50  ;;  %v6543_v58 = vld [vmem:[%s6720_s9 + $0xc8] sm:$0xff]  ;;  %5188 = vmatpush.msrb.mxu1 %v4937_v49 }
 0x23e   : > { %12188 = vst [vmem:[#allocation50_spill] sm:$0xff] %v8510_v13  ;;  %v4735_v26 = vadd.f32 1.0, %v6037_v24  ;;  %v2012_v30 = vmul.f32 %v6254_v34, %v8478_v50  ;;  %v2022_v63 = vand.u32 2147483648, %v8478_v50  ;;  %6255 = vrcp.f32 %v8507_v33  ;;  %654 = vmatmul.f32.gmra.mxu2 %v6543_v58 }
 0x23f   : > { %v2205_v7 = vmul.f32 %v2204_v4, %v8185_v60  ;;  %vm2017_vm13 = vweird.f32 %v6254_v34  ;;  %v2020_v8 = vand.u32 2147483647, %v8478_v50  ;;  %v8529_v14 = vmul.f32 0.5, %v8362_v39 }
 0x240   : > { %v4831_v12 = vmul.f32 %v4735_v26, %v12189_v56  ;;  %v2013_v37 = vsub.f32 1.0, %v2012_v30  ;;  %v2354_v23 = vmul.f32 %v2353_v18, %v8436_v21  ;;  %v3550_v4 = vmul.f32 2.1237322e-06, %v8510_v13  ;;  %vm8540_vm14 = vmor %vm2016_vm12, %vm2017_vm13 }
 0x241   : > { %12190 = vst [vmem:[#allocation47_spill] sm:$0xff] %v8529_v14  ;;  %v2128_v24 = vadd.f32 0.4994258, %v2127_v25  ;;  %v8534_v26 = vmul.f32 0.5, %v8381_v62  ;;  %v2431_v30 = vadd.f32 0.00028619796, %v2430_v11  ;;  %v3436_v41 = vmul.f32 %v3435_v48, %v8375_v59 }
 0x242   : > { %4995 = vmatmul.f32.gmra.mxu3 %v4831_v12  ;;  %v2014_v56 = vmul.f32 %v6254_v34, %v2013_v37  ;;  %v2242_v36 = vadd.f32 0.001143296, %v2241_v5  ;;  %v2023_v18 = vor.u32 1.1754944e-38, %v2022_v63  ;;  %v2206_v49 = vadd.f32 0.112945676, %v2205_v7 }
 0x243   : > { %v2129_v25 = vmul.f32 %v2128_v24, %v8151_v6  ;;  %v2317_v58 = vadd.f32 0.18741608, %v2316_v47  ;;  %v4235_v62 = vadd.f32 0.05243302, %v4234_v16  ;;  %vm2021_vm15 = vcmp.eq.f32.partialorder %v2020_v8, 8.507059e+37 }
 0x244   : > { %v2015_v14 = vadd.f32 %v6254_v34, %v2014_v56  ;;  %v6256_v11 = vpop.eup %6255  ;;  %v2355_v12 = vadd.f32 0.05243302, %v2354_v23  ;;  %v3551_v5 = vadd.f32 0.00028619796, %v3550_v4  ;;  %v2207_v48 = vmul.f32 %v2206_v49, %v8185_v60  ;;  %v506_v56 = vpop.f32.mrf.mxu1 }
 0x245   : > { %v8545_v37 = vadd.f32 1.0, %v2129_v25  ;;  %v2432_v50 = vmul.f32 %v2431_v30, %v8505_v17  ;;  %v2092_v63 = vmul.f32 %v6256_v11, %v8507_v33  ;;  %v2243_v6 = vmul.f32 %v2242_v36, %v8270_v53 }
 0x246   : > { %v2019_v31 = vsel %vm8540_vm14, %v6254_v34, %v2015_v14  ;;  %vm2096_vm0 = vweird.f32 %v8507_v33  ;;  %v2102_v16 = vand.u32 2147483648, %v8507_v33  ;;  %vm2097_vm1 = vweird.f32 %v6256_v11  ;;  %v12193_v14 = vld [vmem:[#allocation48_spill] sm:$0xff] }
 0x247   : > { %v2024_v47 = vsel %vm2021_vm15, %v2023_v18, %v2019_v31  ;;  %6257 = vrcp.f32 %v8545_v37  ;;  %v2093_v8 = vsub.f32 1.0, %v2092_v63  ;;  %v2100_v23 = vand.u32 2147483647, %v8507_v33  ;;  %vm8568_vm2 = vmor %vm2096_vm0, %vm2097_vm1 }
 0x248   : > { %v2025_v7 = vmul.f32 %v2024_v47, %v8298_v45  ;;  %v3437_v4 = vadd.f32 0.18741608, %v3436_v41  ;;  %v3552_v34 = vmul.f32 %v3551_v5, %v8510_v13  ;;  %v8561_v24 = vadd.f32 %v12193_v14, %v7053_v43 }
 0x249   : > { %v2208_v36 = vadd.f32 0.4994258, %v2207_v48  ;;  %v2318_v31 = vmul.f32 %v2317_v58, %v8366_v57  ;;  %v4236_v30 = vmul.f32 %v4235_v62, %v8409_v1  ;;  %v2094_v18 = vmul.f32 %v6256_v11, %v2093_v8  ;;  %v12196_v8 = vld [vmem:[#allocation35_spill] sm:$0xff] }
 0x24a   : > { %v6038_v39 = vclamps-f32 %v2025_v7, 1.0  ;;  %v2356_v45 = vmul.f32 %v2355_v12, %v8436_v21  ;;  %v2103_v25 = vor.u32 1.1754944e-38, %v2102_v16  ;;  %v2244_v5 = vadd.f32 0.014752088, %v2243_v6 }
 0x24b   : > { %v2209_v49 = vmul.f32 %v2208_v36, %v8185_v60  ;;  %v2433_v48 = vadd.f32 0.0036580483, %v2432_v50  ;;  %v2095_v58 = vadd.f32 %v6256_v11, %v2094_v18  ;;  %vm2101_vm3 = vcmp.eq.f32.partialorder %v2100_v23, 8.507059e+37 }
 0x24c   : > { %v4736_v63 = vadd.f32 1.0, %v6038_v39  ;;  %v3553_v47 = vadd.f32 0.0036580483, %v3552_v34  ;;  %v8574_v7 = vmul.f32 0.70710677, %v8561_v24  ;;  %v8577_v12 = vadd.f32 %v506_v56, %v7074_v52 }
 0x24d   : > { %v6258_v62 = vpop.eup %6257  ;;  %v8579_v33 = vadd.f32 1.0, %v2209_v49  ;;  %v2099_v60 = vsel %vm8568_vm2, %v6256_v11, %v2095_v58  ;;  %vm2136_vm4 = vweird.f32 %v8545_v37  ;;  %v2140_v16 = vand.u32 2147483647, %v8545_v37 }
 0x24e   : > { %v4832_v14 = vmul.f32 %v4736_v63, %v12196_v8  ;;  %v2132_v50 = vmul.f32 %v6258_v62, %v8545_v37  ;;  %v2104_v6 = vsel %vm2101_vm3, %v2103_v25, %v2099_v60  ;;  %v2142_v23 = vand.u32 2147483648, %v8545_v37 }
 0x24f   : > { %v2245_v34 = vmul.f32 %v2244_v5, %v8270_v53  ;;  %v2105_v36 = vmul.f32 %v2104_v6, %v8309_v22  ;;  %vm2137_vm5 = vweird.f32 %v6258_v62  ;;  %6259 = vrcp.f32 %v8579_v33 }
 0x250   : > { %5108 = vmatmul.f32.gmra.mxu0 %v4832_v14  ;;  %v2133_v56 = vsub.f32 1.0, %v2132_v50  ;;  %v4237_v39 = vadd.f32 0.18741608, %v4236_v30  ;;  %v2434_v11 = vmul.f32 %v2433_v48, %v8505_v17  ;;  %v8593_v18 = vmul.f32 0.70710677, %v8577_v12  ;;  %vm8604_vm6 = vmor %vm2136_vm4, %vm2137_vm5 }
 0x251   : > { %v2321_v41 = vmul.f32 3.8918573e-05, %v8366_v57  ;;  %v8596_v25 = vadd.f32 1.1283791, %v2318_v31  ;;  %v3438_v49 = vmul.f32 %v3437_v4, %v8375_v59  ;;  %v6040_v5 = vclamps-f32 %v2105_v36, 1.0  ;;  %v12199_v36 = vld [vmem:[#allocation31_spill] sm:$0xff] }
 0x252   : > { %v2134_v63 = vmul.f32 %v6258_v62, %v2133_v56  ;;  %v2357_v58 = vadd.f32 0.18741608, %v2356_v45  ;;  %v3554_v22 = vmul.f32 %v3553_v47, %v8510_v13  ;;  %v4348_v8 = vmul.f32 %v8574_v7, %v8574_v7 }
 0x253   : > { %v2143_v48 = vor.u32 1.1754944e-38, %v2142_v23  ;;  %v4738_v14 = vadd.f32 1.0, %v6040_v5  ;;  %vm2141_vm7 = vcmp.eq.f32.partialorder %v2140_v16, 8.507059e+37  ;;  %v2246_v60 = vadd.f32 0.112945676, %v2245_v34 }
 0x254   : > { %v2135_v31 = vadd.f32 %v6258_v62, %v2134_v63  ;;  %v4238_v4 = vmul.f32 %v4237_v39, %v8409_v1  ;;  %v2435_v45 = vadd.f32 0.05243302, %v2434_v11  ;;  %v2468_v47 = vmul.f32 %v8593_v18, %v8593_v18  ;;  %v4936_v11 = vld [vmem:[%s12008_s3 + $0x120] sm:$0xff] }
 0x255   : > { %v2322_v50 = vadd.f32 0.001143296, %v2321_v41  ;;  %v6260_v6 = vpop.eup %6259  ;;  %v4834_v37 = vmul.f32 %v4738_v14, %v12199_v36  ;;  %v2247_v23 = vmul.f32 %v2246_v60, %v8270_v53  ;;  %v2361_v5 = vmul.f32 3.8918573e-05, %v8436_v21  ;;  %v8622_v41 = vpop.f32.mrf.mxu2  ;;  %v6544_v14 = vld [vmem:[%s6720_s9 + $0xd0] sm:$0xff]  ;;  %5189 = vmatpush.msrb.mxu1 %v4936_v11 }
 0x256   : > { %v2139_v56 = vsel %vm8604_vm6, %v6258_v62, %v2135_v31  ;;  %v3555_v16 = vadd.f32 0.05243302, %v3554_v22  ;;  %v8616_v34 = vmin.f32 %v4348_v8, 16.0  ;;  %v2212_v39 = vmul.f32 %v6260_v6, %v8579_v33  ;;  %657 = vmatmul.f32.gmra.mxu2 %v6544_v14 }
 0x257   : > { %v2144_v63 = vsel %vm2141_vm7, %v2143_v48, %v2139_v56  ;;  %4998 = vmatmul.f32.gmra.mxu3 %v4834_v37  ;;  %vm2216_vm8 = vweird.f32 %v8579_v33  ;;  %v2222_v22 = vand.u32 2147483648, %v8579_v33  ;;  %v2248_v8 = vadd.f32 0.4994258, %v2247_v23 }
 0x258   : > { %12200 = vst [vmem:[#allocation48_spill] sm:$0xff] %v8616_v34  ;;  %v2145_v62 = vmul.f32 %v2144_v63, %v8415_v0  ;;  %v2213_v30 = vsub.f32 1.0, %v2212_v39  ;;  %vm2217_vm9 = vweird.f32 %v6260_v6  ;;  %v2220_v48 = vand.u32 2147483647, %v8579_v33 }
 0x259   : > { %v2323_v31 = vmul.f32 %v2322_v50, %v8366_v57  ;;  %v8630_v60 = vmin.f32 %v2468_v47, 16.0  ;;  %v2249_v56 = vmul.f32 %v2248_v8, %v8270_v53  ;;  %v2362_v37 = vadd.f32 0.001143296, %v2361_v5  ;;  %vm8638_vm10 = vmor %vm2216_vm8, %vm2217_vm9  ;;  %v396_v8 = vpop.f32.mrf.mxu0 }
 0x25a   : > { %v6041_v36 = vclamps-f32 %v2145_v62, 1.0  ;;  %v2436_v0 = vmul.f32 %v2435_v45, %v8505_v17  ;;  %v4350_v63 = vmul.f32 2.1237322e-06, %v8616_v34  ;;  %v2214_v14 = vmul.f32 %v6260_v6, %v2213_v30 }
 0x25b   : > { %v2324_v1 = vadd.f32 0.014752088, %v2323_v31  ;;  %v2470_v23 = vmul.f32 2.1237322e-06, %v8630_v60  ;;  %v2223_v47 = vor.u32 1.1754944e-38, %v2222_v22  ;;  %v8642_v50 = vadd.f32 1.0, %v2249_v56 }
 0x25c   : > { %v4739_v39 = vadd.f32 1.0, %v6041_v36  ;;  %v3439_v53 = vadd.f32 1.1283791, %v3438_v49  ;;  %v2215_v5 = vadd.f32 %v6260_v6, %v2214_v14  ;;  %vm2221_vm11 = vcmp.eq.f32.partialorder %v2220_v48, 8.507059e+37 }
 0x25d   : > { %v2325_v45 = vmul.f32 %v2324_v1, %v8366_v57  ;;  %v2358_v62 = vmul.f32 %v2357_v58, %v8436_v21  ;;  %6261 = vrcp.f32 %v8642_v50  ;;  %v2363_v33 = vmul.f32 %v2362_v37, %v8436_v21 }
 0x25e   : > { %v4835_v30 = vmul.f32 %v4739_v39, %v8304_v51  ;;  %v4239_v31 = vadd.f32 1.1283791, %v4238_v4  ;;  %v2437_v36 = vadd.f32 0.18741608, %v2436_v0  ;;  %v3556_v22 = vmul.f32 %v3555_v16, %v8510_v13 }
 0x25f   : > { %v2219_v49 = vsel %vm8638_vm10, %v6260_v6, %v2215_v5  ;;  %v4351_v56 = vadd.f32 0.00028619796, %v4350_v63  ;;  %v2471_v48 = vadd.f32 0.00028619796, %v2470_v23  ;;  %v2326_v14 = vadd.f32 0.112945676, %v2325_v45  ;;  %v509_v45 = vpop.f32.mrf.mxu1 }
 0x260   : > { %5111 = vmatmul.f32.gmra.mxu0 %v4835_v30  ;;  %v2224_v1 = vsel %vm2221_vm11, %v2223_v47, %v2219_v49  ;;  %v8654_v58 = vmul.f32 %v8596_v25, %v8326_v46  ;;  %v8657_v51 = vmul.f32 %v3439_v53, %v8342_v2  ;;  %v8660_v4 = vadd.f32 %v396_v8, %v7053_v43 }
 0x261   : > { %v2225_v16 = vmul.f32 %v2224_v1, %v8422_v19  ;;  %v8664_v37 = vmul.f32 0.5, %v8446_v32  ;;  %v8667_v6 = vmul.f32 0.5, %v8449_v55  ;;  %v2327_v0 = vmul.f32 %v2326_v14, %v8366_v57 }
 0x262   : > { %12203 = vst [vmem:[#allocation35_spill] sm:$0xff] %v8657_v51  ;;  %v2364_v63 = vadd.f32 0.014752088, %v2363_v33  ;;  %v8671_v46 = vmul.f32 %v4239_v31, %v8378_v29  ;;  %v2359_v25 = vadd.f32 1.1283791, %v2358_v62  ;;  %v2438_v11 = vmul.f32 %v2437_v36, %v8505_v17  ;;  %v536_v33 = vpop.f32.mrf.mxu3 }
 0x263   : > { %12204 = vst [vmem:[#allocation31_spill] sm:$0xff] %v8667_v6  ;;  %v3557_v2 = vadd.f32 0.18741608, %v3556_v22  ;;  %v6043_v23 = vclamps-f32 %v2225_v16, 1.0  ;;  %v6262_v39 = vpop.eup %6261  ;;  %v4352_v19 = vmul.f32 %v4351_v56, %v8616_v34  ;;  %v2472_v32 = vmul.f32 %v2471_v48, %v8630_v60 }
 0x264   : > { %12205 = vst [vmem:[#allocation62_spill] sm:$0xff] %v8671_v46  ;;  %v2328_v47 = vadd.f32 0.4994258, %v2327_v0  ;;  %v8677_v55 = vmul.f32 0.70710677, %v8660_v4  ;;  %v2252_v5 = vmul.f32 %v6262_v39, %v8642_v50  ;;  %v2365_v29 = vmul.f32 %v2364_v63, %v8436_v21 }
 0x265   : > { %v4741_v53 = vadd.f32 1.0, %v6043_v23  ;;  %vm2256_vm12 = vweird.f32 %v8642_v50  ;;  %v2260_v62 = vand.u32 2147483647, %v8642_v50  ;;  %v2262_v8 = vand.u32 2147483648, %v8642_v50 }
 0x266   : > { %v2329_v30 = vmul.f32 %v2328_v47, %v8366_v57  ;;  %v2253_v36 = vsub.f32 1.0, %v2252_v5  ;;  %vm2257_vm13 = vweird.f32 %v6262_v39  ;;  %v2366_v22 = vadd.f32 0.112945676, %v2365_v29  ;;  %v8712_v5 = vpop.f32.mrf.mxu2  ;;  %v6545_v29 = vld [vmem:[%s6720_s9 + $0xd8] sm:$0xff] }
 0x267   : > { %v4837_v31 = vmul.f32 %v4741_v53, %v8315_v9  ;;  %v8687_v49 = vmul.f32 0.5, %v8561_v24  ;;  %v8690_v56 = vadd.f32 %v536_v33, %v7074_v52  ;;  %v2441_v1 = vmul.f32 3.8918573e-05, %v8505_v17  ;;  %vm8704_vm14 = vmor %vm2256_vm12, %vm2257_vm13  ;;  %660 = vmatmul.f32.gmra.mxu2 %v6545_v29 }
 0x268   : > { %v8692_v48 = vadd.f32 1.0, %v2329_v30  ;;  %v2473_v14 = vadd.f32 0.0036580483, %v2472_v32  ;;  %v8696_v57 = vadd.f32 %v509_v45, %v7074_v52  ;;  %v2254_v9 = vmul.f32 %v6262_v39, %v2253_v36 }
 0x269   : > { %12206 = vst [vmem:[#allocation63_spill] sm:$0xff] %v8687_v49  ;;  %5001 = vmatmul.f32.gmra.mxu3 %v4837_v31  ;;  %v2367_v16 = vmul.f32 %v2366_v22, %v8436_v21  ;;  %v3558_v0 = vmul.f32 %v3557_v2, %v8510_v13  ;;  %v2548_v24 = vmul.f32 %v8677_v55, %v8677_v55  ;;  %v2263_v23 = vor.u32 1.1754944e-38, %v2262_v8  ;;  %v4935_v2 = vld [vmem:[%s12008_s3 + $0x118] sm:$0xff] }
 0x26a   : > { %6263 = vrcp.f32 %v8692_v48  ;;  %v2439_v32 = vadd.f32 1.1283791, %v2438_v11  ;;  %v4353_v47 = vadd.f32 0.0036580483, %v4352_v19  ;;  %v2255_v53 = vadd.f32 %v6262_v39, %v2254_v9  ;;  %5190 = vmatpush.msrb.mxu1 %v4935_v2 }
 0x26b   : > { %vm2261_vm15 = vcmp.eq.f32.partialorder %v2260_v62, 8.507059e+37  ;;  %v8716_v50 = vmul.f32 %v2359_v25, %v8396_v10  ;;  %v8719_v45 = vmul.f32 0.70710677, %v8690_v56  ;;  %v2368_v8 = vadd.f32 0.4994258, %v2367_v16 }
 0x26c   : > { %v2442_v11 = vadd.f32 0.001143296, %v2441_v1  ;;  %v8722_v19 = vmul.f32 0.5, %v8577_v12  ;;  %v2474_v62 = vmul.f32 %v2473_v14, %v8630_v60  ;;  %v8726_v30 = vmul.f32 0.70710677, %v8696_v57 }
 0x26d   : > { %v2259_v33 = vsel %vm8704_vm14, %v6262_v39, %v2255_v53  ;;  %v8730_v31 = vmin.f32 %v2548_v24, 16.0  ;;  %v2369_v25 = vmul.f32 %v2368_v8, %v8436_v21  ;;  %v2481_v36 = vmul.f32 3.8918573e-05, %v8630_v60 }
 0x26e   : > { %v2264_v10 = vsel %vm2261_vm15, %v2263_v23, %v2259_v33  ;;  %v8735_v22 = vmul.f32 %v2439_v32, %v8466_v44  ;;  %v8737_v12 = vadd.f32 1.1283791, %v3558_v0  ;;  %v8740_v1 = vmul.f32 %v4353_v47, %v8616_v34  ;;  %v399_v0 = vpop.f32.mrf.mxu0 }
 0x26f   : > { %v2265_v14 = vmul.f32 %v2264_v10, %v8502_v28  ;;  %v2550_v39 = vmul.f32 2.1237322e-06, %v8730_v31  ;;  %v3668_v16 = vmul.f32 %v8719_v45, %v8719_v45  ;;  %v8746_v24 = vadd.f32 1.0, %v2369_v25 }
 0x270   : > { %v6264_v9 = vpop.eup %6263  ;;  %v2443_v21 = vmul.f32 %v2442_v11, %v8505_v17  ;;  %v2475_v63 = vadd.f32 0.05243302, %v2474_v62  ;;  %v2588_v44 = vmul.f32 %v8726_v30, %v8726_v30  ;;  %vm2336_vm0 = vweird.f32 %v8692_v48 }
 0x271   : > { %v6044_v23 = vclamps-f32 %v2265_v14, 1.0  ;;  %v2332_v32 = vmul.f32 %v6264_v9, %v8692_v48  ;;  %v2342_v28 = vand.u32 2147483648, %v8692_v48  ;;  %6265 = vrcp.f32 %v8746_v24 }
 0x272   : > { %v2482_v47 = vadd.f32 0.001143296, %v2481_v36  ;;  %vm2337_vm1 = vweird.f32 %v6264_v9  ;;  %v2340_v29 = vand.u32 2147483647, %v8692_v48  ;;  %v2551_v8 = vadd.f32 0.00028619796, %v2550_v39 }
 0x273   : > { %v4742_v53 = vadd.f32 1.0, %v6044_v23  ;;  %v2333_v2 = vsub.f32 1.0, %v2332_v32  ;;  %v8756_v11 = vmin.f32 %v3668_v16, 16.0  ;;  %v8759_v62 = vadd.f32 %v399_v0, %v7053_v43  ;;  %vm8768_vm2 = vmor %vm2336_vm0, %vm2337_vm1 }
 0x274   : > { %v2444_v33 = vadd.f32 0.014752088, %v2443_v21  ;;  %v2476_v10 = vmul.f32 %v2475_v63, %v8630_v60  ;;  %v8762_v25 = vmin.f32 %v2588_v44, 16.0  ;;  %v2343_v39 = vor.u32 1.1754944e-38, %v2342_v28 }
 0x275   : > { %v4838_v14 = vmul.f32 %v4742_v53, %v8418_v3  ;;  %v2334_v49 = vmul.f32 %v6264_v9, %v2333_v2  ;;  %v3670_v36 = vmul.f32 2.1237322e-06, %v8756_v11  ;;  %v2483_v21 = vmul.f32 %v2482_v47, %v8630_v60 }
 0x276   : > { %v2445_v16 = vmul.f32 %v2444_v33, %v8505_v17  ;;  %v2590_v63 = vmul.f32 2.1237322e-06, %v8762_v25  ;;  %vm2341_vm3 = vcmp.eq.f32.partialorder %v2340_v29, 8.507059e+37  ;;  %v2561_v3 = vmul.f32 3.8918573e-05, %v8730_v31 }
 0x277   : > { %5114 = vmatmul.f32.gmra.mxu0 %v4838_v14  ;;  %v2335_v44 = vadd.f32 %v6264_v9, %v2334_v49  ;;  %v6266_v0 = vpop.eup %6265  ;;  %v2552_v32 = vmul.f32 %v2551_v8, %v8730_v31  ;;  %v8778_v48 = vmul.f32 0.70710677, %v8759_v62  ;;  %v2484_v2 = vadd.f32 0.014752088, %v2483_v21 }
 0x278   : > { %v2446_v53 = vadd.f32 0.112945676, %v2445_v16  ;;  %v2372_v47 = vmul.f32 %v6266_v0, %v8746_v24  ;;  %vm2376_vm4 = vweird.f32 %v8746_v24  ;;  %v2380_v49 = vand.u32 2147483647, %v8746_v24 }
 0x279   : > { %v2339_v28 = vsel %vm8768_vm2, %v6264_v9, %v2335_v44  ;;  %v2382_v33 = vand.u32 2147483648, %v8746_v24  ;;  %v2485_v8 = vmul.f32 %v2484_v2, %v8630_v60  ;;  %vm2377_vm5 = vweird.f32 %v6266_v0  ;;  %v12211_v9 = vld [vmem:[#allocation52_spill] sm:$0xff] }
 0x27a   : > { %v2344_v29 = vsel %vm2341_vm3, %v2343_v39, %v2339_v28  ;;  %v2447_v14 = vmul.f32 %v2446_v53, %v8505_v17  ;;  %v2373_v16 = vsub.f32 1.0, %v2372_v47  ;;  %v2562_v21 = vadd.f32 0.001143296, %v2561_v3  ;;  %vm8798_vm6 = vmor %vm2376_vm4, %vm2377_vm5  ;;  %v512_v47 = vpop.f32.mrf.mxu1 }
 0x27b   : > { %v2345_v46 = vmul.f32 %v2344_v29, %v8654_v58  ;;  %v2553_v23 = vadd.f32 0.0036580483, %v2552_v32  ;;  %v8791_v44 = vadd.f32 %v12211_v9, %v7053_v43  ;;  %v2486_v51 = vadd.f32 0.112945676, %v2485_v8  ;;  %v8818_v9 = vpop.f32.mrf.mxu2 }
 0x27c   : > { %v2448_v6 = vadd.f32 0.4994258, %v2447_v14  ;;  %v2591_v13 = vadd.f32 0.00028619796, %v2590_v63  ;;  %v2374_v28 = vmul.f32 %v6266_v0, %v2373_v16  ;;  %v2563_v15 = vmul.f32 %v2562_v21, %v8730_v31 }
 0x27d   : > { %v6046_v39 = vclamps-f32 %v2345_v46, 1.0  ;;  %v2477_v53 = vadd.f32 0.18741608, %v2476_v10  ;;  %v2668_v2 = vmul.f32 %v8778_v48, %v8778_v48  ;;  %v2383_v3 = vor.u32 1.1754944e-38, %v2382_v33 }
 0x27e   : > { %v2449_v32 = vmul.f32 %v2448_v6, %v8505_v17  ;;  %v2375_v46 = vadd.f32 %v6266_v0, %v2374_v28  ;;  %vm8803_vm7 = vcmp.eq.f32.partialorder %v2380_v49, 8.507059e+37  ;;  %v2487_v10 = vmul.f32 %v2486_v51, %v8630_v60  ;;  %v4934_v49 = vld [vmem:[%s12008_s3 + $0x110] sm:$0xff]  ;;  %v6546_v51 = vld [vmem:[%s6720_s9 + $0xe0] sm:$0xff] }
 0x27f   : > { %v4744_v63 = vadd.f32 1.0, %v6046_v39  ;;  %v2554_v14 = vmul.f32 %v2553_v23, %v8730_v31  ;;  %v3671_v24 = vadd.f32 0.00028619796, %v3670_v36  ;;  %v2564_v16 = vadd.f32 0.014752088, %v2563_v15  ;;  %663 = vmatmul.f32.gmra.mxu2 %v6546_v51  ;;  %5191 = vmatpush.msrb.mxu1 %v4934_v49 }
 0x280   : > { %v8809_v8 = vadd.f32 1.0, %v2449_v32  ;;  %v2592_v33 = vmul.f32 %v2591_v13, %v8762_v25  ;;  %v2379_v6 = vsel %vm8798_vm6, %v6266_v0, %v2375_v46  ;;  %v2488_v21 = vadd.f32 0.4994258, %v2487_v10 }
 0x281   : > { %v4840_v17 = vmul.f32 %v4744_v63, %v8433_v20  ;;  %v2478_v36 = vmul.f32 %v2477_v53, %v8630_v60  ;;  %v8823_v15 = vadd.f32 %v512_v47, %v7074_v52  ;;  %v2384_v20 = vsel %vm8803_vm7, %v2383_v3, %v2379_v6 }
 0x282   : > { %6267 = vrcp.f32 %v8809_v8  ;;  %v4355_v13 = vadd.f32 0.05243302, %v8740_v1  ;;  %v8830_v0 = vmul.f32 0.70710677, %v8791_v44  ;;  %v8832_v23 = vmin.f32 %v2668_v2, 16.0 }
 0x283   : > { %5004 = vmatmul.f32.gmra.mxu3 %v4840_v17  ;;  %v2385_v39 = vmul.f32 %v2384_v20, %v8716_v50  ;;  %v2555_v28 = vadd.f32 0.05243302, %v2554_v14  ;;  %v3672_v53 = vmul.f32 %v3671_v24, %v8756_v11  ;;  %v2489_v58 = vmul.f32 %v2488_v21, %v8630_v60 }
 0x284   : > { %v2565_v3 = vmul.f32 %v2564_v16, %v8730_v31  ;;  %v8840_v32 = vmul.f32 %v8737_v12, %v8470_v54  ;;  %v2593_v1 = vadd.f32 0.0036580483, %v2592_v33  ;;  %v2670_v47 = vmul.f32 2.1237322e-06, %v8832_v23 }
 0x285   : > { %v6047_v63 = vclamps-f32 %v2385_v39, 1.0  ;;  %v2479_v2 = vadd.f32 1.1283791, %v2478_v36  ;;  %v8844_v46 = vmul.f32 0.5, %v8660_v4  ;;  %v8847_v50 = vmul.f32 0.70710677, %v8823_v15 }
 0x286   : > { %12216 = vst [vmem:[#allocation52_spill] sm:$0xff] %v8840_v32  ;;  %v8849_v29 = vadd.f32 1.0, %v2489_v58  ;;  %v4356_v60 = vmul.f32 %v4355_v13, %v8616_v34  ;;  %v2566_v14 = vadd.f32 0.112945676, %v2565_v3  ;;  %v2601_v54 = vmul.f32 3.8918573e-05, %v8762_v25 }
 0x287   : > { %v4745_v10 = vadd.f32 1.0, %v6047_v63  ;;  %v2556_v24 = vmul.f32 %v2555_v28, %v8730_v31  ;;  %v3673_v16 = vadd.f32 0.0036580483, %v3672_v53  ;;  %v4468_v33 = vmul.f32 %v8830_v0, %v8830_v0 }
 0x288   : > { %v6268_v12 = vpop.eup %6267  ;;  %6269 = vrcp.f32 %v8849_v29  ;;  %v2594_v4 = vmul.f32 %v2593_v1, %v8762_v25  ;;  %v2671_v17 = vadd.f32 0.00028619796, %v2670_v47  ;;  %v2708_v49 = vmul.f32 %v8847_v50, %v8847_v50 }
 0x289   : > { %v4841_v6 = vmul.f32 %v4745_v10, %v8534_v26  ;;  %v2452_v21 = vmul.f32 %v6268_v12, %v8809_v8  ;;  %vm2456_vm8 = vweird.f32 %v8809_v8  ;;  %v2460_v51 = vand.u32 2147483647, %v8809_v8 }
 0x28a   : > { %v2462_v36 = vand.u32 2147483648, %v8809_v8  ;;  %vm2457_vm9 = vweird.f32 %v6268_v12  ;;  %v2567_v13 = vmul.f32 %v2566_v14, %v8730_v31  ;;  %v2602_v39 = vadd.f32 0.001143296, %v2601_v54 }
 0x28b   : > { %5117 = vmatmul.f32.gmra.mxu0 %v4841_v6  ;;  %v2453_v20 = vsub.f32 1.0, %v2452_v21  ;;  %v8866_v28 = vadd.f32 0.18741608, %v4356_v60  ;;  %v2480_v26 = vmul.f32 %v2479_v2, %v8593_v18  ;;  %v3674_v53 = vmul.f32 %v3673_v16, %v8756_v11  ;;  %vm8879_vm10 = vmor %vm2456_vm8, %vm2457_vm9 }
 0x28c   : > { %v8870_v58 = vmin.f32 %v4468_v33, 16.0  ;;  %v2557_v3 = vadd.f32 0.18741608, %v2556_v24  ;;  %v2568_v47 = vadd.f32 0.4994258, %v2567_v13  ;;  %v2603_v63 = vmul.f32 %v2602_v39, %v8762_v25 }
 0x28d   : > { %v2454_v1 = vmul.f32 %v6268_v12, %v2453_v20  ;;  %v2595_v6 = vadd.f32 0.05243302, %v2594_v4  ;;  %v2672_v21 = vmul.f32 %v2671_v17, %v8832_v23  ;;  %v8874_v32 = vmin.f32 %v2708_v49, 16.0 }
 0x28e   : > { %12217 = vst [vmem:[#allocation64_spill] sm:$0xff] %v8870_v58  ;;  %v6270_v10 = vpop.eup %6269  ;;  %v2463_v2 = vor.u32 1.1754944e-38, %v2462_v36  ;;  %vm2461_vm11 = vcmp.eq.f32.partialorder %v2460_v51, 8.507059e+37  ;;  %vm2496_vm12 = vweird.f32 %v8849_v29  ;;  %v2500_v54 = vand.u32 2147483647, %v8849_v29 }
 0x28f   : > { %v2455_v60 = vadd.f32 %v6268_v12, %v2454_v1  ;;  %v2492_v14 = vmul.f32 %v6270_v10, %v8849_v29  ;;  %v2502_v24 = vand.u32 2147483648, %v8849_v29  ;;  %v2569_v16 = vmul.f32 %v2568_v47, %v8730_v31 }
 0x290   : > { %v2681_v33 = vmul.f32 3.8918573e-05, %v8832_v23  ;;  %vm2497_vm13 = vweird.f32 %v6270_v10  ;;  %v2604_v17 = vadd.f32 0.014752088, %v2603_v63  ;;  %v2673_v49 = vadd.f32 0.0036580483, %v2672_v21 }
 0x291   : > { %v2459_v8 = vsel %vm8879_vm10, %v6268_v12, %v2455_v60  ;;  %v2493_v4 = vsub.f32 1.0, %v2492_v14  ;;  %v2710_v51 = vmul.f32 2.1237322e-06, %v8874_v32  ;;  %v8892_v20 = vadd.f32 1.0, %v2569_v16  ;;  %vm8902_vm14 = vmor %vm2496_vm12, %vm2497_vm13 }
 0x292   : > { %v2464_v36 = vsel %vm2461_vm11, %v2463_v2, %v2459_v8  ;;  %v2558_v13 = vmul.f32 %v2557_v3, %v8730_v31  ;;  %v2605_v47 = vmul.f32 %v2604_v17, %v8762_v25  ;;  %v8897_v59 = vadd.f32 0.05243302, %v3674_v53  ;;  %v6547_v53 = vld [vmem:[%s12007_s2] sm:$0x7] }
 0x293   : > { %v2465_v39 = vmul.f32 %v2464_v36, %v8735_v22  ;;  %v2494_v1 = vmul.f32 %v6270_v10, %v2493_v4  ;;  %v2596_v12 = vmul.f32 %v2595_v6, %v8762_v25  ;;  %v2503_v21 = vor.u32 1.1754944e-38, %v2502_v24  ;;  %v539_v24 = vpop.f32.mrf.mxu3  ;;  %v4933_v36 = vld [vmem:[%s12008_s3 + $0x108] sm:$0xff] }
 0x294   : > { %6271 = vrcp.f32 %v8892_v20  ;;  %vm2501_vm15 = vcmp.eq.f32.partialorder %v2500_v54, 8.507059e+37  ;;  %v2682_v22 = vadd.f32 0.001143296, %v2681_v33  ;;  %v2674_v3 = vmul.f32 %v2673_v49, %v8832_v23  ;;  %5192 = vmatpush.msrb.mxu1 %v4933_v36 }
 0x295   : > { %v6049_v18 = vclamps-f32 %v2465_v39, 1.0  ;;  %v2495_v31 = vadd.f32 %v6270_v10, %v2494_v1  ;;  %v2711_v2 = vadd.f32 0.00028619796, %v2710_v51  ;;  %v8911_v6 = vperm.slane %v6547_v53, 2  ;;  %v6548_v1 = vld [vmem:[%s6720_s9 + $0xe8] sm:$0xff] }
 0x296   : > { %v2606_v29 = vadd.f32 0.112945676, %v2605_v47  ;;  %v2559_v60 = vadd.f32 1.1283791, %v2558_v13  ;;  %v4470_v14 = vmul.f32 2.1237322e-06, %v8870_v58  ;;  %v8917_v8 = vadd.f32 %v539_v24, %v7074_v52  ;;  %v8924_v13 = vpop.f32.mrf.mxu2  ;;  %666 = vmatmul.f32.gmra.mxu2 %v6548_v1 }
 0x297   : > { %v4747_v16 = vadd.f32 1.0, %v6049_v18  ;;  %v2499_v54 = vsel %vm8902_vm14, %v6270_v10, %v2495_v31  ;;  %v2597_v33 = vadd.f32 0.18741608, %v2596_v12  ;;  %v2683_v39 = vmul.f32 %v2682_v22, %v8832_v23 }
 0x298   : > { %v2504_v4 = vsel %vm2501_vm15, %v2503_v21, %v2499_v54  ;;  %v2607_v17 = vmul.f32 %v2606_v29, %v8762_v25  ;;  %v2721_v10 = vmul.f32 3.8918573e-05, %v8874_v32  ;;  %v2675_v12 = vadd.f32 0.05243302, %v2674_v3 }
 0x299   : > { %v4843_v49 = vmul.f32 %v4747_v16, %v8664_v37  ;;  %v2505_v51 = vmul.f32 %v2504_v4, %v2480_v26  ;;  %v2712_v63 = vmul.f32 %v2711_v2, %v8874_v32  ;;  %v8932_v37 = vadd.f32 %v8455_v27, %v8911_v6 }
 0x29a   : > { %v6272_v47 = vpop.eup %6271  ;;  %v2608_v26 = vadd.f32 0.4994258, %v2607_v17  ;;  %vm2576_vm0 = vweird.f32 %v8892_v20  ;;  %v2684_v31 = vadd.f32 0.014752088, %v2683_v39  ;;  %v2580_v22 = vand.u32 2147483647, %v8892_v20 }
 0x29b   : > { %5007 = vmatmul.f32.gmra.mxu3 %v4843_v49  ;;  %v6050_v21 = vclamps-f32 %v2505_v51, 1.0  ;;  %v2572_v18 = vmul.f32 %v6272_v47, %v8892_v20  ;;  %vm2577_vm1 = vweird.f32 %v6272_v47  ;;  %v2582_v3 = vand.u32 2147483648, %v8892_v20 }
 0x29c   : > { %v2609_v2 = vmul.f32 %v2608_v26, %v8762_v25  ;;  %v2685_v27 = vmul.f32 %v2684_v31, %v8832_v23  ;;  %v2722_v24 = vadd.f32 0.001143296, %v2721_v10  ;;  %v8941_v16 = vmul.f32 0.5, %v8690_v56  ;;  %vm8954_vm2 = vmor %vm2576_vm0, %vm2577_vm1 }
 0x29d   : > { %v4748_v53 = vadd.f32 1.0, %v6050_v21  ;;  %v2573_v29 = vsub.f32 1.0, %v2572_v18  ;;  %v2713_v54 = vadd.f32 0.0036580483, %v2712_v63  ;;  %v8944_v4 = vmul.f32 0.70710677, %v8932_v37 }
 0x29e   : > { %12222 = vst [vmem:[#allocation65_spill] sm:$0xff] %v8941_v16  ;;  %v8946_v17 = vadd.f32 1.0, %v2609_v2  ;;  %v2686_v36 = vadd.f32 0.112945676, %v2685_v27  ;;  %v2723_v39 = vmul.f32 %v2722_v24, %v8874_v32  ;;  %v2560_v1 = vmul.f32 %v2559_v60, %v8677_v55  ;;  %v12247_v16 = vld [vmem:[#allocation15_spill] sm:$0xff] }
 0x29f   : > { %v4844_v49 = vmul.f32 %v4748_v53, %v8722_v19  ;;  %v2574_v51 = vmul.f32 %v6272_v47, %v2573_v29  ;;  %v4471_v26 = vadd.f32 0.00028619796, %v4470_v14  ;;  %v2583_v10 = vor.u32 1.1754944e-38, %v2582_v3  ;;  %v12226_v29 = vld [vmem:[#allocation5_spill] sm:$0xff] }
 0x2a0   : > { %6273 = vrcp.f32 %v8946_v17  ;;  %v2598_v63 = vmul.f32 %v2597_v33, %v8762_v25  ;;  %v8961_v19 = vmul.f32 0.70710677, %v8917_v8  ;;  %vm2581_vm3 = vcmp.eq.f32.partialorder %v2580_v22, 8.507059e+37 }
 0x2a1   : > { %5120 = vmatmul.f32.gmra.mxu0 %v4844_v49  ;;  %v2575_v21 = vadd.f32 %v6272_v47, %v2574_v51  ;;  %v2676_v55 = vmul.f32 %v2675_v12, %v8832_v23  ;;  %v2714_v60 = vmul.f32 %v2713_v54, %v8874_v32  ;;  %v2687_v20 = vmul.f32 %v2686_v36, %v8832_v23 }
 0x2a2   : > { %v2724_v14 = vadd.f32 0.014752088, %v2723_v39  ;;  %v4358_v18 = vmul.f32 %v8866_v28, %v8616_v34  ;;  %v8969_v31 = vmul.f32 0.5, %v8791_v44  ;;  %v948_v25 = vmul.f32 %v8944_v4, %v8944_v4 }
 0x2a3   : > { %v2579_v33 = vsel %vm8954_vm2, %v6272_v47, %v2575_v21  ;;  %v3676_v12 = vmul.f32 %v8897_v59, %v8756_v11  ;;  %v4472_v22 = vmul.f32 %v4471_v26, %v8870_v58  ;;  %v2688_v2 = vadd.f32 0.4994258, %v2687_v20 }
 0x2a4   : > { %12225 = vst [vmem:[#allocation66_spill] sm:$0xff] %v8969_v31  ;;  %v2584_v3 = vsel %vm2581_vm3, %v2583_v10, %v2579_v33  ;;  %v3788_v53 = vmul.f32 %v8961_v19, %v8961_v19  ;;  %v2725_v44 = vmul.f32 %v2724_v14, %v8874_v32  ;;  %v2801_v27 = vmul.f32 3.8918573e-05, %v12226_v29 }
 0x2a5   : > { %v2585_v28 = vmul.f32 %v2584_v3, %v2560_v1  ;;  %v2599_v54 = vadd.f32 1.1283791, %v2598_v63  ;;  %v2677_v49 = vadd.f32 0.18741608, %v2676_v55  ;;  %v2715_v51 = vadd.f32 0.05243302, %v2714_v60 }
 0x2a6   : > { %v6274_v24 = vpop.eup %6273  ;;  %v2689_v47 = vmul.f32 %v2688_v2, %v8832_v23  ;;  %v8983_v36 = vmin.f32 %v948_v25, 16.0  ;;  %vm2616_vm4 = vweird.f32 %v8946_v17  ;;  %v2620_v26 = vand.u32 2147483647, %v8946_v17 }
 0x2a7   : > { %v6052_v59 = vclamps-f32 %v2585_v28, 1.0  ;;  %v2612_v39 = vmul.f32 %v6274_v24, %v8946_v17  ;;  %v2622_v1 = vand.u32 2147483648, %v8946_v17  ;;  %v2726_v10 = vadd.f32 0.112945676, %v2725_v44  ;;  %v9015_v17 = vpop.f32.mrf.mxu2 }
 0x2a8   : > { %v8989_v56 = vadd.f32 1.0, %v2689_v47  ;;  %vm2617_vm5 = vweird.f32 %v6274_v24  ;;  %v2802_v55 = vadd.f32 0.001143296, %v2801_v27  ;;  %v8991_v60 = vadd.f32 1.1283791, %v4358_v18 }
 0x2a9   : > { %v4750_v21 = vadd.f32 1.0, %v6052_v59  ;;  %v2613_v63 = vsub.f32 1.0, %v2612_v39  ;;  %v3677_v20 = vadd.f32 0.18741608, %v3676_v12  ;;  %v4473_v14 = vadd.f32 0.0036580483, %v4472_v22  ;;  %vm9002_vm6 = vmor %vm2616_vm4, %vm2617_vm5 }
 0x2aa   : > { %6275 = vrcp.f32 %v8989_v56  ;;  %v2600_v25 = vmul.f32 %v2599_v54, %v8726_v30  ;;  %v8995_v33 = vmin.f32 %v3788_v53, 16.0  ;;  %v2678_v28 = vmul.f32 %v2677_v49, %v8832_v23  ;;  %v4932_v23 = vld [vmem:[%s12008_s3 + $0x100] sm:$0xff]  ;;  %v6549_v54 = vld [vmem:[%s6720_s9 + $0xf0] sm:$0xff] }
 0x2ab   : > { %v4846_v3 = vmul.f32 %v4750_v21, %v8844_v46  ;;  %v2614_v2 = vmul.f32 %v6274_v24, %v2613_v63  ;;  %v2716_v44 = vmul.f32 %v2715_v51, %v8874_v32  ;;  %v2623_v12 = vor.u32 1.1754944e-38, %v2622_v1  ;;  %669 = vmatmul.f32.gmra.mxu2 %v6549_v54  ;;  %5193 = vmatpush.msrb.mxu1 %v4932_v23 }
 0x2ac   : > { %v2727_v22 = vmul.f32 %v2726_v10, %v8874_v32  ;;  %v950_v30 = vmul.f32 2.1237322e-06, %v8983_v36  ;;  %vm9008_vm7 = vcmp.eq.f32.partialorder %v2620_v26, 8.507059e+37  ;;  %v2803_v27 = vmul.f32 %v2802_v55, %v12226_v29 }
 0x2ad   : > { %5010 = vmatmul.f32.gmra.mxu3 %v4846_v3  ;;  %v2615_v53 = vadd.f32 %v6274_v24, %v2614_v2  ;;  %v9020_v49 = vmul.f32 %v3677_v20, %v8756_v11  ;;  %v4474_v51 = vmul.f32 %v4473_v14, %v8870_v58  ;;  %v719_v47 = vmul.f32 0.5, %v8696_v57 }
 0x2ae   : > { %v2728_v59 = vadd.f32 0.4994258, %v2727_v22  ;;  %v3790_v39 = vmul.f32 2.1237322e-06, %v8995_v33  ;;  %v9027_v26 = vadd.f32 %v8291_v40, %v7053_v43  ;;  %v2804_v10 = vadd.f32 0.014752088, %v2803_v27 }
 0x2af   : > { %v2619_v1 = vsel %vm9002_vm6, %v6274_v24, %v2615_v53  ;;  %v2679_v63 = vadd.f32 1.1283791, %v2678_v28  ;;  %v2717_v55 = vadd.f32 0.18741608, %v2716_v44  ;;  %v951_v14 = vadd.f32 0.00028619796, %v950_v30 }
 0x2b0   : > { %v6276_v21 = vpop.eup %6275  ;;  %v2624_v20 = vsel %vm9008_vm7, %v2623_v12, %v2619_v1  ;;  %v2729_v57 = vmul.f32 %v2728_v59, %v8874_v32  ;;  %v12231_v22 = vld [vmem:[#allocation6_spill] sm:$0xff]  ;;  %vm2696_vm8 = vweird.f32 %v8989_v56  ;;  %v2702_v43 = vand.u32 2147483648, %v8989_v56 }
 0x2b1   : > { %v2625_v3 = vmul.f32 %v2624_v20, %v2600_v25  ;;  %v2692_v2 = vmul.f32 %v6276_v21, %v8989_v56  ;;  %v2921_v23 = vmul.f32 3.8918573e-05, %v12231_v22  ;;  %v2805_v24 = vmul.f32 %v2804_v10, %v12226_v29 }
 0x2b2   : > { %v9038_v40 = vadd.f32 1.0, %v2729_v57  ;;  %vm2697_vm9 = vweird.f32 %v6276_v21  ;;  %v2700_v18 = vand.u32 2147483647, %v8989_v56  ;;  %v9042_v12 = vadd.f32 0.05243302, %v4474_v51 }
 0x2b3   : > { %v6053_v28 = vclamps-f32 %v2625_v3, 1.0  ;;  %v2693_v44 = vsub.f32 1.0, %v2692_v2  ;;  %v3791_v25 = vadd.f32 0.00028619796, %v3790_v39  ;;  %v9045_v30 = vmul.f32 0.70710677, %v9027_v26  ;;  %vm9053_vm10 = vmor %vm2696_vm8, %vm2697_vm9 }
 0x2b4   : > { %6277 = vrcp.f32 %v9038_v40  ;;  %v2718_v53 = vmul.f32 %v2717_v55, %v8874_v32  ;;  %v2922_v54 = vadd.f32 0.001143296, %v2921_v23  ;;  %v2680_v59 = vmul.f32 %v2679_v63, %v8778_v48  ;;  %v12234_v3 = vld [vmem:[#allocation8_spill] sm:$0xff]  ;;  %v12235_v23 = vld [vmem:[#allocation29_spill] sm:$0xff] }
 0x2b5   : > { %v4751_v46 = vadd.f32 1.0, %v6053_v28  ;;  %v2694_v27 = vmul.f32 %v6276_v21, %v2693_v44  ;;  %v952_v1 = vmul.f32 %v951_v14, %v8983_v36  ;;  %v2703_v39 = vor.u32 1.1754944e-38, %v2702_v43 }
 0x2b6   : > { %v2806_v10 = vadd.f32 0.112945676, %v2805_v24  ;;  %vm2701_vm11 = vcmp.eq.f32.partialorder %v2700_v18, 8.507059e+37  ;;  %v3041_v32 = vmul.f32 3.8918573e-05, %v12234_v3  ;;  %v721_v55 = vmul.f32 0.5, %v8759_v62 }
 0x2b7   : > { %v4847_v20 = vmul.f32 %v4751_v46, %v719_v47  ;;  %v2695_v57 = vadd.f32 %v6276_v21, %v2694_v27  ;;  %v3792_v2 = vmul.f32 %v3791_v25, %v8995_v33  ;;  %v4588_v48 = vmul.f32 %v9045_v30, %v9045_v30 }
 0x2b8   : > { %v2807_v56 = vmul.f32 %v2806_v10, %v12226_v29  ;;  %v2719_v63 = vadd.f32 1.1283791, %v2718_v53  ;;  %v2841_v47 = vmul.f32 3.8918573e-05, %v12235_v23  ;;  %v2923_v43 = vmul.f32 %v2922_v54, %v12231_v22 }
 0x2b9   : > { %5123 = vmatmul.f32.gmra.mxu0 %v4847_v20  ;;  %v2699_v14 = vsel %vm9053_vm10, %v6276_v21, %v2695_v57  ;;  %v953_v28 = vadd.f32 0.0036580483, %v952_v1  ;;  %v9069_v62 = vadd.f32 %v8525_v61, %v8911_v6  ;;  %vm2736_vm12 = vweird.f32 %v9038_v40 }
 0x2ba   : > { %v6278_v24 = vpop.eup %6277  ;;  %v2704_v44 = vsel %vm2701_vm11, %v2703_v39, %v2699_v14  ;;  %v2808_v18 = vadd.f32 0.4994258, %v2807_v56  ;;  %v3042_v53 = vadd.f32 0.001143296, %v3041_v32  ;;  %v2740_v21 = vand.u32 2147483647, %v9038_v40 }
 0x2bb   : > { %v2705_v25 = vmul.f32 %v2704_v44, %v2680_v59  ;;  %v2732_v46 = vmul.f32 %v6278_v24, %v9038_v40  ;;  %v2742_v27 = vand.u32 2147483648, %v9038_v40  ;;  %v2842_v51 = vadd.f32 0.001143296, %v2841_v47 }
 0x2bc   : > { %v2809_v54 = vmul.f32 %v2808_v18, %v12226_v29  ;;  %vm2737_vm13 = vweird.f32 %v6278_v24  ;;  %v2924_v61 = vadd.f32 0.014752088, %v2923_v43  ;;  %v954_v39 = vmul.f32 %v953_v28, %v8983_v36 }
 0x2bd   : > { %v6055_v1 = vclamps-f32 %v2705_v25, 1.0  ;;  %v2733_v10 = vsub.f32 1.0, %v2732_v46  ;;  %v9078_v59 = vmul.f32 0.70710677, %v9069_v62  ;;  %v2843_v57 = vmul.f32 %v2842_v51, %v12235_v23  ;;  %vm9089_vm14 = vmor %vm2736_vm12, %vm2737_vm13 }
 0x2be   : > { %v9080_v20 = vadd.f32 1.0, %v2809_v54  ;;  %v2925_v14 = vmul.f32 %v2924_v61, %v12231_v22  ;;  %v3043_v29 = vmul.f32 %v3042_v53, %v12234_v3  ;;  %v3793_v47 = vadd.f32 0.0036580483, %v3792_v2 }
 0x2bf   : > { %v4753_v32 = vadd.f32 1.0, %v6055_v1  ;;  %v2734_v56 = vmul.f32 %v6278_v24, %v2733_v10  ;;  %v9085_v44 = vmin.f32 %v4588_v48, 16.0  ;;  %v2743_v28 = vor.u32 1.1754944e-38, %v2742_v27 }
 0x2c0   : > { %6279 = vrcp.f32 %v9080_v20  ;;  %v2720_v18 = vmul.f32 %v2719_v63, %v8847_v50  ;;  %vm2741_vm15 = vcmp.eq.f32.partialorder %v2740_v21, 8.507059e+37  ;;  %v955_v54 = vadd.f32 0.05243302, %v954_v39  ;;  %v12239_v39 = vld [vmem:[#allocation13_spill] sm:$0xff] }
 0x2c1   : > { %12236 = vst [vmem:[#allocation5_spill] sm:$0xff] %v9085_v44  ;;  %v4849_v25 = vmul.f32 %v4753_v32, %v721_v55  ;;  %v2735_v46 = vadd.f32 %v6278_v24, %v2734_v56  ;;  %v1068_v2 = vmul.f32 %v9078_v59, %v9078_v59  ;;  %v2844_v48 = vadd.f32 0.014752088, %v2843_v57 }
 0x2c2   : > { %v2926_v53 = vadd.f32 0.112945676, %v2925_v14  ;;  %v9099_v40 = vmul.f32 %v9042_v12, %v8870_v58  ;;  %v722_v51 = vmul.f32 0.5, %v8823_v15  ;;  %v3044_v50 = vadd.f32 0.014752088, %v3043_v29 }
 0x2c3   : > { %5013 = vmatmul.f32.gmra.mxu3 %v4849_v25  ;;  %v2739_v27 = vsel %vm9089_vm14, %v6278_v24, %v2735_v46  ;;  %v3794_v55 = vmul.f32 %v3793_v47, %v8995_v33  ;;  %v2845_v21 = vmul.f32 %v2844_v48, %v12235_v23  ;;  %v4590_v10 = vmul.f32 2.1237322e-06, %v9085_v44 }
 0x2c4   : > { %v2744_v63 = vsel %vm2741_vm15, %v2743_v28, %v2739_v27  ;;  %v2927_v1 = vmul.f32 %v2926_v53, %v12231_v22  ;;  %v3045_v12 = vmul.f32 %v3044_v50, %v12234_v3  ;;  %v3161_v57 = vmul.f32 3.8918573e-05, %v12239_v39 }
 0x2c5   : > { %v2745_v61 = vmul.f32 %v2744_v63, %v2720_v18  ;;  %v956_v32 = vmul.f32 %v955_v54, %v8983_v36  ;;  %v9111_v56 = vmin.f32 %v1068_v2, 16.0  ;;  %v2846_v24 = vadd.f32 0.112945676, %v2845_v21 }
 0x2c6   : > { %v6280_v15 = vpop.eup %6279  ;;  %v2928_v14 = vadd.f32 0.4994258, %v2927_v1  ;;  %v2820_v43 = vand.u32 2147483647, %v9080_v20  ;;  %v3046_v28 = vadd.f32 0.112945676, %v3045_v12  ;;  %vm2816_vm1 = vweird.f32 %v9080_v20 }
 0x2c7   : > { %v6056_v29 = vclamps-f32 %v2745_v61, 1.0  ;;  %v2812_v47 = vmul.f32 %v6280_v15, %v9080_v20  ;;  %v2822_v25 = vand.u32 2147483648, %v9080_v20  ;;  %v2847_v18 = vmul.f32 %v2846_v24, %v12235_v23 }
 0x2c8   : > { %v2929_v46 = vmul.f32 %v2928_v14, %v12231_v22  ;;  %v3162_v48 = vadd.f32 0.001143296, %v3161_v57  ;;  %v961_v54 = vmul.f32 3.8918573e-05, %v8983_v36  ;;  %v3047_v2 = vmul.f32 %v3046_v28, %v12234_v3 }
 0x2c9   : > { %v4754_v53 = vadd.f32 1.0, %v6056_v29  ;;  %v2813_v27 = vsub.f32 1.0, %v2812_v47  ;;  %vm2817_vm0 = vweird.f32 %v6280_v15  ;;  %v2848_v50 = vadd.f32 0.4994258, %v2847_v18 }
 0x2ca   : > { %v9120_v63 = vadd.f32 1.0, %v2929_v46  ;;  %v3163_v21 = vmul.f32 %v3162_v48, %v12239_v39  ;;  %v962_v12 = vadd.f32 0.001143296, %v961_v54  ;;  %v3048_v31 = vadd.f32 0.4994258, %v3047_v2  ;;  %vm2818_vm2 = vmor %vm2816_vm1, %vm2817_vm0 }
 0x2cb   : > { %v4850_v1 = vmul.f32 %v4754_v53, %v722_v51  ;;  %v2814_v61 = vmul.f32 %v6280_v15, %v2813_v27  ;;  %v3795_v24 = vadd.f32 0.05243302, %v3794_v55  ;;  %v957_v34 = vadd.f32 0.18741608, %v956_v32  ;;  %v12241_v53 = vld [vmem:[#allocation10_spill] sm:$0xff] }
 0x2cc   : > { %v2849_v22 = vmul.f32 %v2848_v50, %v12235_v23  ;;  %6281 = vrcp.f32 %v9120_v63  ;;  %v1070_v57 = vmul.f32 2.1237322e-06, %v9111_v56  ;;  %v963_v29 = vmul.f32 %v962_v12, %v8983_v36 }
 0x2cd   : > { %5126 = vmatmul.f32.gmra.mxu0 %v4850_v1  ;;  %v2815_v14 = vadd.f32 %v6280_v15, %v2814_v61  ;;  %v2823_v51 = vor.u32 1.1754944e-38, %v2822_v25  ;;  %v3049_v55 = vmul.f32 %v3048_v31, %v12234_v3  ;;  %v3164_v32 = vadd.f32 0.014752088, %v3163_v21  ;;  %v12242_v1 = vld [vmem:[#allocation14_spill] sm:$0xff] }
 0x2ce   : > { %v9129_v47 = vadd.f32 1.0, %v2849_v22  ;;  %v4591_v28 = vadd.f32 0.00028619796, %v4590_v10  ;;  %vm2821_vm3 = vcmp.eq.f32.partialorder %v2820_v43, 8.507059e+37  ;;  %v964_v18 = vadd.f32 0.014752088, %v963_v29 }
 0x2cf   : > { %v2819_v23 = vsel %vm2818_vm2, %v6280_v15, %v2815_v14  ;;  %v9134_v46 = vmul.f32 %v8991_v60, %v8574_v7  ;;  %v958_v20 = vmul.f32 %v957_v34, %v8983_v36  ;;  %v9139_v25 = vadd.f32 1.1283791, %v9020_v49  ;;  %v542_v49 = vpop.f32.mrf.mxu3 }
 0x2d0   : > { %v2824_v48 = vsel %vm2821_vm3, %v2823_v51, %v2819_v23  ;;  %6283 = vrcp.f32 %v9129_v47  ;;  %v965_v31 = vmul.f32 %v964_v18, %v8983_v36  ;;  %v9143_v3 = vadd.f32 1.0, %v3049_v55  ;;  %v9166_v51 = vpop.f32.mrf.mxu2  ;;  %v6550_v18 = vld [vmem:[%s6720_s9 + $0xf8] sm:$0xff] }
 0x2d1   : > { %12240 = vst [vmem:[#allocation6_spill] sm:$0xff] %v9134_v46  ;;  %v2825_v27 = vmul.f32 %v2824_v48, %v12241_v53  ;;  %v9146_v15 = vadd.f32 0.18741608, %v9099_v40  ;;  %v9149_v7 = vmul.f32 %v3795_v24, %v8995_v33  ;;  %v1071_v34 = vadd.f32 0.00028619796, %v1070_v57  ;;  %672 = vmatmul.f32.gmra.mxu2 %v6550_v18 }
 0x2d2   : > { %v6282_v10 = vpop.eup %6281  ;;  %v3165_v60 = vmul.f32 %v3164_v32, %v12239_v39  ;;  %v9153_v43 = vmul.f32 %v4591_v28, %v9085_v44  ;;  %v966_v2 = vadd.f32 0.112945676, %v965_v31  ;;  %v9157_v21 = vadd.f32 %v542_v49, %v7074_v52  ;;  %v12243_v32 = vld [vmem:[#allocation36_spill] sm:$0xff] }
 0x2d3   : > { %v6058_v54 = vclamps-f32 %v2825_v27, 1.0  ;;  %v2932_v50 = vmul.f32 %v6282_v10, %v9120_v63  ;;  %v9159_v40 = vadd.f32 1.1283791, %v958_v20  ;;  %6285 = vrcp.f32 %v9143_v3  ;;  %v12244_v20 = vld [vmem:[#allocation7_spill] sm:$0xff] }
 0x2d4   : > { %v3281_v61 = vmul.f32 3.8918573e-05, %v12242_v1  ;;  %v967_v24 = vmul.f32 %v966_v2, %v8983_v36  ;;  %v2940_v57 = vand.u32 2147483647, %v9120_v63  ;;  %v1072_v29 = vmul.f32 %v1071_v34, %v9111_v56 }
 0x2d5   : > { %v4756_v12 = vadd.f32 1.0, %v6058_v54  ;;  %v2933_v22 = vsub.f32 1.0, %v2932_v50  ;;  %v2942_v55 = vand.u32 2147483648, %v9120_v63  ;;  %v2961_v28 = vmul.f32 3.8918573e-05, %v12243_v32 }
 0x2d6   : > { %v6284_v14 = vpop.eup %6283  ;;  %v3166_v23 = vadd.f32 0.112945676, %v3165_v60  ;;  %vm2856_vm4 = vweird.f32 %v9129_v47  ;;  %v968_v27 = vadd.f32 0.4994258, %v967_v24  ;;  %v2862_v31 = vand.u32 2147483648, %v9129_v47 }
 0x2d7   : > { %v4852_v48 = vmul.f32 %v4756_v12, %v12244_v20  ;;  %v2852_v53 = vmul.f32 %v6284_v14, %v9129_v47  ;;  %v2934_v49 = vmul.f32 %v6282_v10, %v2933_v22  ;;  %vm2937_vm5 = vweird.f32 %v6282_v10 }
 0x2d8   : > { %v2962_v34 = vadd.f32 0.001143296, %v2961_v28  ;;  %vm2857_vm6 = vweird.f32 %v6284_v14  ;;  %v2860_v2 = vand.u32 2147483647, %v9129_v47  ;;  %v969_v60 = vmul.f32 %v968_v27, %v8983_v36 }
 0x2d9   : > { %5016 = vmatmul.f32.gmra.mxu3 %v4852_v48  ;;  %v2853_v54 = vsub.f32 1.0, %v2852_v53  ;;  %v9177_v50 = vpop.eup %6285  ;;  %v2935_v12 = vadd.f32 %v6282_v10, %v2934_v49  ;;  %vm2936_vm7 = vweird.f32 %v9120_v63  ;;  %v3167_v24 = vmul.f32 %v3166_v23, %v12239_v39  ;;  %vm9188_vm9 = vmor %vm2856_vm4, %vm2857_vm6 }
 0x2da   : > { %v2963_v18 = vmul.f32 %v2962_v34, %v12243_v32  ;;  %v9182_v22 = vadd.f32 1.0, %v969_v60  ;;  %vm2938_vm8 = vmor %vm2936_vm7, %vm2937_vm5  ;;  %v3052_v28 = vmul.f32 %v9177_v50, %v9143_v3  ;;  %v3282_v48 = vadd.f32 0.001143296, %v3281_v61 }
 0x2db   : > { %v2854_v20 = vmul.f32 %v6284_v14, %v2853_v54  ;;  %v2863_v53 = vor.u32 1.1754944e-38, %v2862_v31  ;;  %v2939_v63 = vsel %vm2938_vm8, %v6282_v10, %v2935_v12  ;;  %v2943_v27 = vor.u32 1.1754944e-38, %v2942_v55 }
 0x2dc   : > { %v2964_v49 = vadd.f32 0.014752088, %v2963_v18  ;;  %vm2861_vm10 = vcmp.eq.f32.partialorder %v2860_v2, 8.507059e+37  ;;  %6287 = vrcp.f32 %v9182_v22  ;;  %vm2941_vm11 = vcmp.eq.f32.partialorder %v2940_v57, 8.507059e+37  ;;  %v12248_v18 = vld [vmem:[#allocation41_spill] sm:$0xff] }
 0x2dd   : > { %v2855_v34 = vadd.f32 %v6284_v14, %v2854_v20  ;;  %v2944_v23 = vsel %vm2941_vm11, %v2943_v27, %v2939_v63  ;;  %v3060_v61 = vand.u32 2147483647, %v9143_v3  ;;  %v3168_v60 = vadd.f32 0.4994258, %v3167_v24 }
 0x2de   : > { %v2965_v54 = vmul.f32 %v2964_v49, %v12243_v32  ;;  %v1073_v47 = vadd.f32 0.0036580483, %v1072_v29  ;;  %v2945_v31 = vmul.f32 %v2944_v23, %v12247_v16  ;;  %v3053_v10 = vsub.f32 1.0, %v3052_v28 }
 0x2df   : > { %v2859_v46 = vsel %vm9188_vm9, %v6284_v14, %v2855_v34  ;;  %v9200_v55 = vadd.f32 %v8622_v41, %v8911_v6  ;;  %v3062_v57 = vand.u32 2147483648, %v9143_v3  ;;  %v3283_v29 = vmul.f32 %v3282_v48, %v12242_v1 }
 0x2e0   : > { %v2864_v2 = vsel %vm2861_vm10, %v2863_v53, %v2859_v46  ;;  %v2966_v12 = vadd.f32 0.112945676, %v2965_v54  ;;  %v6061_v63 = vclamps-f32 %v2945_v31, 1.0  ;;  %v3054_v24 = vmul.f32 %v9177_v50, %v3053_v10  ;;  %v12251_v54 = vld [vmem:[#allocation9_spill] sm:$0xff] }
 0x2e1   : > { %v2865_v20 = vmul.f32 %v2864_v2, %v12248_v18  ;;  %vm3056_vm12 = vweird.f32 %v9143_v3  ;;  %vm9208_vm13 = vcmp.eq.f32.partialorder %v3060_v61, 8.507059e+37  ;;  %v3169_v41 = vmul.f32 %v3168_v60, %v12239_v39  ;;  %v12252_v18 = vld [vmem:[#allocation33_spill] sm:$0xff] }
 0x2e2   : > { %v2967_v14 = vmul.f32 %v2966_v12, %v12243_v32  ;;  %v6288_v46 = vpop.eup %6287  ;;  %v4759_v36 = vadd.f32 1.0, %v6061_v63  ;;  %v1081_v53 = vmul.f32 3.8918573e-05, %v9111_v56  ;;  %vm3057_vm14 = vweird.f32 %v9177_v50 }
 0x2e3   : > { %v6059_v28 = vclamps-f32 %v2865_v20, 1.0  ;;  %v972_v27 = vmul.f32 %v6288_v46, %v9182_v22  ;;  %v980_v48 = vand.u32 2147483647, %v9182_v22  ;;  %v3063_v34 = vor.u32 1.1754944e-38, %v3062_v57  ;;  %vm3058_vm15 = vmor %vm3056_vm12, %vm3057_vm14 }
 0x2e4   : > { %v2968_v49 = vadd.f32 0.4994258, %v2967_v14  ;;  %v4855_v61 = vmul.f32 %v4759_v36, %v12251_v54  ;;  %v1082_v31 = vadd.f32 0.001143296, %v1081_v53  ;;  %v3055_v10 = vadd.f32 %v9177_v50, %v3054_v24  ;;  %v12253_v36 = vld [vmem:[#allocation17_spill] sm:$0xff] }
 0x2e5   : > { %v4757_v23 = vadd.f32 1.0, %v6059_v28  ;;  %v973_v39 = vsub.f32 1.0, %v972_v27  ;;  %v982_v60 = vand.u32 2147483648, %v9182_v22  ;;  %v9223_v12 = vadd.f32 1.0, %v3169_v41 }
 0x2e6   : > { %v2969_v2 = vmul.f32 %v2968_v49, %v12243_v32  ;;  %5019 = vmatmul.f32.gmra.mxu3 %v4855_v61  ;;  %v1083_v57 = vmul.f32 %v1082_v31, %v9111_v56  ;;  %v3059_v63 = vsel %vm3058_vm15, %v9177_v50, %v3055_v10  ;;  %v3284_v14 = vadd.f32 0.014752088, %v3283_v29 }
 0x2e7   : > { %v4853_v20 = vmul.f32 %v4757_v23, %v12252_v18  ;;  %v974_v28 = vmul.f32 %v6288_v46, %v973_v39  ;;  %vm977_vm0 = vweird.f32 %v6288_v46  ;;  %v3064_v32 = vsel %vm9208_vm13, %v3063_v34, %v3059_v63  ;;  %v12254_v18 = vld [vmem:[#allocation18_spill] sm:$0xff] }
 0x2e8   : > { %v9228_v24 = vadd.f32 1.0, %v2969_v2  ;;  %v9233_v3 = vmul.f32 0.70710677, %v9157_v21  ;;  %v1084_v41 = vadd.f32 0.014752088, %v1083_v57  ;;  %v3065_v53 = vmul.f32 %v3064_v32, %v12253_v36 }
 0x2e9   : > { %5129 = vmatmul.f32.gmra.mxu0 %v4853_v20  ;;  %6289 = vrcp.f32 %v9223_v12  ;;  %v1074_v27 = vmul.f32 %v1073_v47, %v9111_v56  ;;  %v975_v50 = vadd.f32 %v6288_v46, %v974_v28  ;;  %vm976_vm1 = vweird.f32 %v9182_v22 }
 0x2ea   : > { %6291 = vrcp.f32 %v9228_v24  ;;  %v9241_v29 = vmul.f32 0.70710677, %v9200_v55  ;;  %vm978_vm2 = vmor %vm976_vm1, %vm977_vm0  ;;  %v983_v16 = vor.u32 1.1754944e-38, %v982_v60  ;;  %v1085_v49 = vmul.f32 %v1084_v41, %v9111_v56 }
 0x2eb   : > { %v6064_v34 = vclamps-f32 %v3065_v53, 1.0  ;;  %v960_v23 = vmul.f32 %v9159_v40, %v8944_v4  ;;  %v979_v54 = vsel %vm978_vm2, %v6288_v46, %v975_v50  ;;  %vm981_vm3 = vcmp.eq.f32.partialorder %v980_v48, 8.507059e+37  ;;  %v12255_v48 = vld [vmem:[#allocation11_spill] sm:$0xff] }
 0x2ec   : > { %v3285_v47 = vmul.f32 %v3284_v14, %v12242_v1  ;;  %v4593_v61 = vadd.f32 0.0036580483, %v9153_v43  ;;  %v3908_v22 = vmul.f32 %v9233_v3, %v9233_v3  ;;  %v984_v31 = vsel %vm981_vm3, %v983_v16, %v979_v54 }
 0x2ed   : > { %v1086_v10 = vadd.f32 0.112945676, %v1085_v49  ;;  %v678_v39 = vmul.f32 0.5, %v8932_v37  ;;  %v985_v60 = vmul.f32 %v984_v31, %v960_v23  ;;  %v4762_v2 = vadd.f32 1.0, %v6064_v34 }
 0x2ee   : > { %v3401_v20 = vmul.f32 3.8918573e-05, %v12254_v18  ;;  %v1075_v63 = vadd.f32 0.05243302, %v1074_v27  ;;  %v1188_v4 = vmul.f32 %v9241_v29, %v9241_v29  ;;  %vm2976_vm4 = vweird.f32 %v9228_v24  ;;  %v9261_v27 = vpop.f32.mrf.mxu3 }
 0x2ef   : > { %v6290_v57 = vpop.eup %6289  ;;  %v1087_v43 = vmul.f32 %v1086_v10, %v9111_v56  ;;  %v6012_v46 = vclamps-f32 %v985_v60, 1.0  ;;  %v4858_v14 = vmul.f32 %v4762_v2, %v12255_v48  ;;  %v3286_v37 = vadd.f32 0.112945676, %v3285_v47 }
 0x2f0   : > { %v6292_v40 = vpop.eup %6291  ;;  %v3172_v28 = vmul.f32 %v6290_v57, %v9223_v12  ;;  %v2980_v41 = vand.u32 2147483647, %v9228_v24  ;;  %v2982_v36 = vand.u32 2147483648, %v9228_v24  ;;  %v3180_v49 = vand.u32 2147483647, %v9223_v12 }
 0x2f1   : > { %v2972_v32 = vmul.f32 %v6292_v40, %v9228_v24  ;;  %v1088_v53 = vadd.f32 0.4994258, %v1087_v43  ;;  %v4710_v50 = vadd.f32 1.0, %v6012_v46  ;;  %5022 = vmatmul.f32.gmra.mxu3 %v4858_v14  ;;  %v3402_v34 = vadd.f32 0.001143296, %v3401_v20 }
 0x2f2   : > { %v3173_v16 = vsub.f32 1.0, %v3172_v28  ;;  %vm2977_vm5 = vweird.f32 %v6292_v40  ;;  %v3182_v47 = vand.u32 2147483648, %v9223_v12  ;;  %vm3177_vm6 = vweird.f32 %v6290_v57 }
 0x2f3   : > { %v2973_v23 = vsub.f32 1.0, %v2972_v32  ;;  %v1089_v54 = vmul.f32 %v1088_v53, %v9111_v56  ;;  %v4806_v31 = vmul.f32 %v4710_v50, %v678_v39  ;;  %v3287_v60 = vmul.f32 %v3286_v37, %v12242_v1  ;;  %vm9273_vm8 = vmor %vm2976_vm4, %vm2977_vm5 }
 0x2f4   : > { %v3174_v10 = vmul.f32 %v6290_v57, %v3173_v16  ;;  %v1076_v2 = vmul.f32 %v1075_v63, %v9111_v56  ;;  %vm3176_vm7 = vweird.f32 %v9223_v12  ;;  %v2983_v48 = vor.u32 1.1754944e-38, %v2982_v36 }
 0x2f5   : > { %v2974_v43 = vmul.f32 %v6292_v40, %v2973_v23  ;;  %v9268_v46 = vadd.f32 1.0, %v1089_v54  ;;  %5194 = vmatmul.f32.vlgmr.msrb.gmra.mxu1 %v4806_v31  ;;  %v3288_v14 = vadd.f32 0.4994258, %v3287_v60  ;;  %v3403_v28 = vmul.f32 %v3402_v34, %v12254_v18  ;;  %vm3178_vm10 = vmor %vm3176_vm7, %vm3177_vm6 }
 0x2f6   : > { %v3175_v39 = vadd.f32 %v6290_v57, %v3174_v10  ;;  %vm2981_vm9 = vcmp.eq.f32.partialorder %v2980_v41, 8.507059e+37  ;;  %v3183_v63 = vor.u32 1.1754944e-38, %v3182_v47  ;;  %v9280_v12 = vmin.f32 %v1188_v4, 16.0  ;;  %v12258_v4 = vld [vmem:[#allocation46_spill] sm:$0xff] }
 0x2f7   : > { %v2975_v37 = vadd.f32 %v6292_v40, %v2974_v43  ;;  %6293 = vrcp.f32 %v9268_v46  ;;  %vm3181_vm11 = vcmp.eq.f32.partialorder %v3180_v49, 8.507059e+37  ;;  %v3289_v24 = vmul.f32 %v3288_v14, %v12242_v1  ;;  %v12260_v1 = vld [vmem:[#allocation22_spill] sm:$0xff] }
 0x2f8   : > { %v3179_v32 = vsel %vm3178_vm10, %v6290_v57, %v3175_v39  ;;  %v4478_v36 = vmul.f32 %v9146_v15, %v8870_v58  ;;  %v4594_v53 = vmul.f32 %v4593_v61, %v9085_v44  ;;  %v9288_v16 = vmin.f32 %v3908_v22, 16.0  ;;  %v12259_v57 = vld [vmem:[#allocation23_spill] sm:$0xff] }
 0x2f9   : > { %v2979_v50 = vsel %vm9273_vm8, %v6292_v40, %v2975_v37  ;;  %v3184_v41 = vsel %vm3181_vm11, %v3183_v63, %v3179_v32  ;;  %v1077_v34 = vadd.f32 0.18741608, %v1076_v2  ;;  %v3404_v54 = vadd.f32 0.014752088, %v3403_v28 }
 0x2fa   : > { %v2984_v23 = vsel %vm2981_vm9, %v2983_v48, %v2979_v50  ;;  %v3185_v49 = vmul.f32 %v3184_v41, %v12259_v57  ;;  %v9292_v31 = vadd.f32 1.0, %v3289_v24  ;;  %v3521_v10 = vmul.f32 3.8918573e-05, %v12260_v1  ;;  %v12262_v41 = vld [vmem:[#allocation43_spill] sm:$0xff] }
 0x2fb   : > { %v2985_v47 = vmul.f32 %v2984_v23, %v12258_v4  ;;  %v9297_v15 = vmul.f32 %v9139_v25, %v8719_v45  ;;  %v3797_v61 = vadd.f32 0.18741608, %v9149_v7  ;;  %v3910_v22 = vmul.f32 2.1237322e-06, %v9288_v16  ;;  %v12261_v7 = vld [vmem:[#allocation40_spill] sm:$0xff] }
 0x2fc   : > { %v1190_v40 = vmul.f32 2.1237322e-06, %v9280_v12  ;;  %v9302_v2 = vadd.f32 1.1283791, %v4478_v36  ;;  %v6067_v20 = vclamps-f32 %v3185_v49, 1.0  ;;  %6295 = vrcp.f32 %v9292_v31 }
 0x2fd   : > { %v6294_v60 = vpop.eup %6293  ;;  %v6062_v43 = vclamps-f32 %v2985_v47, 1.0  ;;  %v4595_v48 = vadd.f32 0.05243302, %v4594_v53  ;;  %v1078_v39 = vmul.f32 %v1077_v34, %v9111_v56  ;;  %v3405_v45 = vmul.f32 %v3404_v54, %v12254_v18  ;;  %v12263_v34 = vld [vmem:[#allocation12_spill] sm:$0xff] }
 0x2fe   : > { %v1092_v14 = vmul.f32 %v6294_v60, %v9268_v46  ;;  %v3081_v28 = vmul.f32 3.8918573e-05, %v12261_v7  ;;  %v4765_v37 = vadd.f32 1.0, %v6067_v20  ;;  %v3522_v63 = vadd.f32 0.001143296, %v3521_v10 }
 0x2ff   : > { %v4760_v25 = vadd.f32 1.0, %v6062_v43  ;;  %v9310_v32 = vmul.f32 %v3797_v61, %v8995_v33  ;;  %v3911_v24 = vadd.f32 0.00028619796, %v3910_v22  ;;  %v1191_v36 = vadd.f32 0.00028619796, %v1190_v40  ;;  %v9321_v61 = vpop.f32.mrf.mxu3 }
 0x300   : > { %v1093_v50 = vsub.f32 1.0, %v1092_v14  ;;  %v1102_v53 = vand.u32 2147483648, %v9268_v46  ;;  %v3082_v56 = vadd.f32 0.001143296, %v3081_v28  ;;  %v4861_v4 = vmul.f32 %v4765_v37, %v12263_v34 }
 0x301   : > { %v4856_v23 = vmul.f32 %v4760_v25, %v12262_v41  ;;  %v1079_v47 = vadd.f32 1.1283791, %v1078_v39  ;;  %vm1097_vm12 = vweird.f32 %v6294_v60  ;;  %v1100_v57 = vand.u32 2147483647, %v9268_v46 }
 0x302   : > { %v1094_v54 = vmul.f32 %v6294_v60, %v1093_v50  ;;  %v9316_v49 = vpop.eup %6295  ;;  %v9319_v10 = vmul.f32 %v4595_v48, %v9085_v44  ;;  %v3083_v22 = vmul.f32 %v3082_v56, %v12261_v7  ;;  %5025 = vmatmul.f32.gmra.mxu3 %v4861_v4  ;;  %v3406_v40 = vadd.f32 0.112945676, %v3405_v45 }
 0x303   : > { %5132 = vmatmul.f32.gmra.mxu0 %v4856_v23  ;;  %v3523_v43 = vmul.f32 %v3522_v63, %v12260_v1  ;;  %v1192_v20 = vmul.f32 %v1191_v36, %v9280_v12  ;;  %vm1096_vm13 = vweird.f32 %v9268_v46  ;;  %v3292_v14 = vmul.f32 %v9316_v49, %v9292_v31 }
 0x304   : > { %v1095_v39 = vadd.f32 %v6294_v60, %v1094_v54  ;;  %v3912_v48 = vmul.f32 %v3911_v24, %v9288_v16  ;;  %vm1098_vm14 = vmor %vm1096_vm13, %vm1097_vm12  ;;  %v1103_v25 = vor.u32 1.1754944e-38, %v1102_v53  ;;  %v3084_v28 = vadd.f32 0.014752088, %v3083_v22 }
 0x305   : > { %v3407_v37 = vmul.f32 %v3406_v40, %v12254_v18  ;;  %v1080_v45 = vmul.f32 %v1079_v47, %v9078_v59  ;;  %vm1101_vm15 = vcmp.eq.f32.partialorder %v1100_v57, 8.507059e+37  ;;  %v3293_v63 = vsub.f32 1.0, %v3292_v14 }
 0x306   : > { %v1099_v50 = vsel %vm1098_vm14, %v6294_v60, %v1095_v39  ;;  %v3085_v41 = vmul.f32 %v3084_v28, %v12261_v7  ;;  %v3524_v23 = vadd.f32 0.014752088, %v3523_v43  ;;  %v9336_v56 = vadd.f32 %v9261_v27, %v7074_v52 }
 0x307   : > { %v1104_v36 = vsel %vm1101_vm15, %v1103_v25, %v1099_v50  ;;  %v3408_v46 = vadd.f32 0.4994258, %v3407_v37  ;;  %v1193_v24 = vadd.f32 0.0036580483, %v1192_v20  ;;  %v3294_v53 = vmul.f32 %v9316_v49, %v3293_v63 }
 0x308   : > { %v1105_v34 = vmul.f32 %v1104_v36, %v1080_v45  ;;  %v3913_v4 = vadd.f32 0.0036580483, %v3912_v48  ;;  %v3086_v54 = vadd.f32 0.112945676, %v3085_v41  ;;  %vm3297_vm0 = vweird.f32 %v9316_v49  ;;  %v12266_v41 = vld [vmem:[#allocation30_spill] sm:$0xff] }
 0x309   : > { %v3409_v59 = vmul.f32 %v3408_v46, %v12254_v18  ;;  %v3295_v47 = vadd.f32 %v9316_v49, %v3294_v53  ;;  %v3302_v57 = vand.u32 2147483648, %v9292_v31  ;;  %v3525_v22 = vmul.f32 %v3524_v23, %v12260_v1 }
 0x30a   : > { %v6015_v60 = vclamps-f32 %v1105_v34, 1.0  ;;  %v3087_v27 = vmul.f32 %v3086_v54, %v12261_v7  ;;  %vm3296_vm1 = vweird.f32 %v9292_v31  ;;  %v3300_v40 = vand.u32 2147483647, %v9292_v31 }
 0x30b   : > { %v9347_v43 = vadd.f32 1.0, %v3409_v59  ;;  %v9350_v20 = vmul.f32 0.70710677, %v9336_v56  ;;  %v1194_v18 = vmul.f32 %v1193_v24, %v9280_v12  ;;  %v681_v39 = vmul.f32 0.5, %v9069_v62  ;;  %vm9354_vm2 = vmor %vm3296_vm1, %vm3297_vm0 }
 0x30c   : > { %v4713_v14 = vadd.f32 1.0, %v6015_v60  ;;  %v3088_v25 = vadd.f32 0.4994258, %v3087_v27  ;;  %v1201_v28 = vmul.f32 3.8918573e-05, %v9280_v12  ;;  %v3299_v31 = vsel %vm9354_vm2, %v9316_v49, %v3295_v47 }
 0x30d   : > { %6297 = vrcp.f32 %v9347_v43  ;;  %v3914_v37 = vmul.f32 %v3913_v4, %v9288_v16  ;;  %v3303_v50 = vor.u32 1.1754944e-38, %v3302_v57  ;;  %v3526_v63 = vadd.f32 0.112945676, %v3525_v22 }
 0x30e   : > { %v4809_v45 = vmul.f32 %v4713_v14, %v681_v39  ;;  %v3089_v62 = vmul.f32 %v3088_v25, %v12261_v7  ;;  %v1202_v36 = vadd.f32 0.001143296, %v1201_v28  ;;  %vm3301_vm3 = vcmp.eq.f32.partialorder %v3300_v40, 8.507059e+37 }
 0x30f   : > { %v3641_v46 = vmul.f32 3.8918573e-05, %v12266_v41  ;;  %v9368_v23 = vmul.f32 %v9302_v2, %v8830_v0  ;;  %v9371_v24 = vmul.f32 0.5, %v8917_v8  ;;  %v4028_v49 = vmul.f32 %v9350_v20, %v9350_v20  ;;  %v12269_v8 = vld [vmem:[#allocation26_spill] sm:$0xff] }
 0x310   : > { %5197 = vmatmul.f32.gmra.mxu1 %v4809_v45  ;;  %v3304_v34 = vsel %vm3301_vm3, %v3303_v50, %v3299_v31  ;;  %v9376_v53 = vmul.f32 0.5, %v9027_v26  ;;  %v1195_v7 = vadd.f32 0.05243302, %v1194_v18  ;;  %v9378_v4 = vadd.f32 1.0, %v3089_v62  ;;  %v12271_v50 = vld [vmem:[#allocation37_spill] sm:$0xff]  ;;  %v12272_v62 = vld [vmem:[#allocation16_spill] sm:$0xff] }
 0x311   : > { %12267 = vst [vmem:[#allocation8_spill] sm:$0xff] %v9368_v23  ;;  %v1203_v54 = vmul.f32 %v1202_v36, %v9280_v12  ;;  %v9382_v59 = vadd.f32 1.1283791, %v9310_v32  ;;  %v4597_v0 = vadd.f32 0.18741608, %v9319_v10  ;;  %v3305_v2 = vmul.f32 %v3304_v34, %v12269_v8  ;;  %v9416_v8 = vpop.f32.mrf.mxu3 }
 0x312   : > { %12268 = vst [vmem:[#allocation29_spill] sm:$0xff] %v9376_v53  ;;  %v3527_v60 = vmul.f32 %v3526_v63, %v12260_v1  ;;  %v3915_v57 = vadd.f32 0.05243302, %v3914_v37  ;;  %v9389_v26 = vadd.f32 %v8712_v5, %v8911_v6  ;;  %6299 = vrcp.f32 %v9378_v4 }
 0x313   : > { %v6298_v47 = vpop.eup %6297  ;;  %v3642_v22 = vadd.f32 0.001143296, %v3641_v46  ;;  %v9392_v27 = vmin.f32 %v4028_v49, 16.0  ;;  %v1204_v40 = vadd.f32 0.014752088, %v1203_v54  ;;  %v6070_v32 = vclamps-f32 %v3305_v2, 1.0 }
 0x314   : > { %v3412_v18 = vmul.f32 %v6298_v47, %v9347_v43  ;;  %v9397_v10 = vadd.f32 %v9321_v61, %v7074_v52  ;;  %v1196_v39 = vmul.f32 %v1195_v7, %v9280_v12  ;;  %v3420_v14 = vand.u32 2147483647, %v9347_v43  ;;  %v12277_v7 = vld [vmem:[#allocation32_spill] sm:$0xff] }
 0x315   : > { %12270 = vst [vmem:[#allocation13_spill] sm:$0xff] %v9392_v27  ;;  %v3422_v5 = vand.u32 2147483648, %v9347_v43  ;;  %v1205_v48 = vmul.f32 %v1204_v40, %v9280_v12  ;;  %v4768_v25 = vadd.f32 1.0, %v6070_v32  ;;  %v3528_v31 = vadd.f32 0.4994258, %v3527_v60 }
 0x316   : > { %v3413_v28 = vsub.f32 1.0, %v3412_v18  ;;  %v9404_v37 = vmul.f32 0.70710677, %v9389_v26  ;;  %vm3417_vm4 = vweird.f32 %v6298_v47  ;;  %v3643_v45 = vmul.f32 %v3642_v22, %v12266_v41 }
 0x317   : > { %v3761_v61 = vmul.f32 3.8918573e-05, %v12271_v50  ;;  %v1206_v63 = vadd.f32 0.112945676, %v1205_v48  ;;  %v4864_v36 = vmul.f32 %v4768_v25, %v12272_v62  ;;  %v3529_v49 = vmul.f32 %v3528_v31, %v12260_v1 }
 0x318   : > { %v3414_v46 = vmul.f32 %v6298_v47, %v3413_v28  ;;  %v6300_v34 = vpop.eup %6299  ;;  %vm3096_vm5 = vweird.f32 %v9378_v4  ;;  %vm3416_vm6 = vweird.f32 %v9347_v43  ;;  %vm9412_vm7 = vcmp.eq.f32.partialorder %v3420_v14, 8.507059e+37 }
 0x319   : > { %v3423_v54 = vor.u32 1.1754944e-38, %v3422_v5  ;;  %v3092_v2 = vmul.f32 %v6300_v34, %v9378_v4  ;;  %v1207_v60 = vmul.f32 %v1206_v63, %v9280_v12  ;;  %5028 = vmatmul.f32.gmra.mxu3 %v4864_v36  ;;  %v3644_v40 = vadd.f32 0.014752088, %v3643_v45  ;;  %vm3418_vm8 = vmor %vm3416_vm6, %vm3417_vm4 }
 0x31a   : > { %v3415_v22 = vadd.f32 %v6298_v47, %v3414_v46  ;;  %v3100_v1 = vand.u32 2147483647, %v9378_v4  ;;  %v3102_v32 = vand.u32 2147483648, %v9378_v4  ;;  %v9423_v43 = vadd.f32 1.0, %v3529_v49 }
 0x31b   : > { %v3762_v18 = vadd.f32 0.001143296, %v3761_v61  ;;  %v3093_v14 = vsub.f32 1.0, %v3092_v2  ;;  %vm3097_vm9 = vweird.f32 %v6300_v34  ;;  %v1208_v5 = vadd.f32 0.4994258, %v1207_v60 }
 0x31c   : > { %v3419_v48 = vsel %vm3418_vm8, %v6298_v47, %v3415_v22  ;;  %v4030_v25 = vmul.f32 2.1237322e-06, %v9392_v27  ;;  %v1308_v28 = vmul.f32 %v9404_v37, %v9404_v37  ;;  %6301 = vrcp.f32 %v9423_v43  ;;  %vm9439_vm10 = vmor %vm3096_vm5, %vm3097_vm9 }
 0x31d   : > { %v3424_v31 = vsel %vm9412_vm7, %v3423_v54, %v3419_v48  ;;  %v9432_v45 = vmul.f32 0.70710677, %v9397_v10  ;;  %v3094_v63 = vmul.f32 %v6300_v34, %v3093_v14  ;;  %v1209_v61 = vmul.f32 %v1208_v5, %v9280_v12 }
 0x31e   : > { %v3645_v62 = vmul.f32 %v3644_v40, %v12266_v41  ;;  %v4598_v47 = vmul.f32 %v4597_v0, %v9085_v44  ;;  %v1197_v36 = vadd.f32 0.18741608, %v1196_v39  ;;  %v3103_v49 = vor.u32 1.1754944e-38, %v3102_v32 }
 0x31f   : > { %v3425_v54 = vmul.f32 %v3424_v31, %v12277_v7  ;;  %v3095_v2 = vadd.f32 %v6300_v34, %v3094_v63  ;;  %vm3101_vm11 = vcmp.eq.f32.partialorder %v3100_v1, 8.507059e+37  ;;  %v9444_v60 = vadd.f32 1.0, %v1209_v61  ;;  %v12279_v31 = vld [vmem:[#allocation51_spill] sm:$0xff] }
 0x320   : > { %v3763_v22 = vmul.f32 %v3762_v18, %v12271_v50  ;;  %v3916_v40 = vmul.f32 %v3915_v57, %v9288_v16  ;;  %v4031_v14 = vadd.f32 0.00028619796, %v4030_v25  ;;  %v9448_v0 = vmin.f32 %v1308_v28, 16.0 }
 0x321   : > { %v6073_v39 = vclamps-f32 %v3425_v54, 1.0  ;;  %v4148_v4 = vmul.f32 %v9432_v45, %v9432_v45  ;;  %v3099_v32 = vsel %vm9439_vm10, %v6300_v34, %v3095_v2  ;;  %6303 = vrcp.f32 %v9444_v60  ;;  %v12280_v54 = vld [vmem:[#allocation19_spill] sm:$0xff] }
 0x322   : > { %v3646_v5 = vadd.f32 0.112945676, %v3645_v62  ;;  %v6302_v1 = vpop.eup %6301  ;;  %v9456_v48 = vmul.f32 0.5, %v9157_v21  ;;  %v1198_v18 = vmul.f32 %v1197_v36, %v9280_v12  ;;  %v3104_v57 = vsel %vm3101_vm11, %v3103_v49, %v3099_v32  ;;  %v9469_v49 = vpop.f32.mrf.mxu3 }
 0x323   : > { %v4771_v25 = vadd.f32 1.0, %v6073_v39  ;;  %v9459_v28 = vadd.f32 1.1283791, %v4598_v47  ;;  %v3105_v63 = vmul.f32 %v3104_v57, %v12279_v31  ;;  %v3532_v61 = vmul.f32 %v6302_v1, %v9423_v43  ;;  %v12282_v31 = vld [vmem:[#allocation27_spill] sm:$0xff] }
 0x324   : > { %12278 = vst [vmem:[#allocation10_spill] sm:$0xff] %v9456_v48  ;;  %v3764_v7 = vadd.f32 0.014752088, %v3763_v22  ;;  %v3917_v46 = vadd.f32 0.18741608, %v3916_v40  ;;  %v4032_v34 = vmul.f32 %v4031_v14, %v9392_v27  ;;  %v9466_v21 = vmin.f32 %v4148_v4, 16.0 }
 0x325   : > { %v1310_v62 = vmul.f32 2.1237322e-06, %v9448_v0  ;;  %v4867_v2 = vmul.f32 %v4771_v25, %v12280_v54  ;;  %v6065_v53 = vclamps-f32 %v3105_v63, 1.0  ;;  %v3533_v12 = vsub.f32 1.0, %v3532_v61 }
 0x326   : > { %12281 = vst [vmem:[#allocation14_spill] sm:$0xff] %v9466_v21  ;;  %v3647_v36 = vmul.f32 %v3646_v5, %v12266_v41  ;;  %v1199_v47 = vadd.f32 1.1283791, %v1198_v18  ;;  %v9473_v39 = vadd.f32 %v8818_v9, %v8911_v6  ;;  %vm3537_vm12 = vweird.f32 %v6302_v1 }
 0x327   : > { %5031 = vmatmul.f32.gmra.mxu3 %v4867_v2  ;;  %v3542_v22 = vand.u32 2147483648, %v9423_v43  ;;  %v6304_v40 = vpop.eup %6303  ;;  %v4763_v14 = vadd.f32 1.0, %v6065_v53  ;;  %v3534_v32 = vmul.f32 %v6302_v1, %v3533_v12  ;;  %v3765_v57 = vmul.f32 %v3764_v7, %v12271_v50 }
 0x328   : > { %v3648_v4 = vadd.f32 0.4994258, %v3647_v36  ;;  %v1311_v25 = vadd.f32 0.00028619796, %v1310_v62  ;;  %v1212_v5 = vmul.f32 %v6304_v40, %v9444_v60  ;;  %vm3536_vm13 = vweird.f32 %v9423_v43 }
 0x329   : > { %v3540_v18 = vand.u32 2147483647, %v9423_v43  ;;  %v4859_v9 = vmul.f32 %v4763_v14, %v12282_v31  ;;  %v3201_v63 = vmul.f32 3.8918573e-05, %v8083_v35  ;;  %v3535_v61 = vadd.f32 %v6302_v1, %v3534_v32  ;;  %vm3538_vm14 = vmor %vm3536_vm13, %vm3537_vm12 }
 0x32a   : > { %v3649_v54 = vmul.f32 %v3648_v4, %v12266_v41  ;;  %v9484_v53 = vmul.f32 0.70710677, %v9473_v39  ;;  %v1213_v2 = vsub.f32 1.0, %v1212_v5  ;;  %v1222_v7 = vand.u32 2147483648, %v9444_v60 }
 0x32b   : > { %v3543_v62 = vor.u32 1.1754944e-38, %v3542_v22  ;;  %5135 = vmatmul.f32.gmra.mxu0 %v4859_v9  ;;  %v3202_v12 = vadd.f32 0.001143296, %v3201_v63  ;;  %v3539_v36 = vsel %vm3538_vm14, %v6302_v1, %v3535_v61  ;;  %v3766_v14 = vadd.f32 0.112945676, %v3765_v57  ;;  %v12283_v1 = vld [vmem:[#allocation38_spill] sm:$0xff] }
 0x32c   : > { %v9488_v43 = vadd.f32 1.0, %v3649_v54  ;;  %v1214_v31 = vmul.f32 %v6304_v40, %v1213_v2  ;;  %vm1217_vm15 = vweird.f32 %v6304_v40  ;;  %v1220_v32 = vand.u32 2147483647, %v9444_v60 }
 0x32d   : > { %vm3541_vm0 = vcmp.eq.f32.partialorder %v3540_v18, 8.507059e+37  ;;  %v4150_v41 = vmul.f32 2.1237322e-06, %v9466_v21  ;;  %v3203_v4 = vmul.f32 %v3202_v12, %v8083_v35  ;;  %v1312_v22 = vmul.f32 %v1311_v25, %v9448_v0 }
 0x32e   : > { %v3544_v5 = vsel %vm3541_vm0, %v3543_v62, %v3539_v36  ;;  %6305 = vrcp.f32 %v9488_v43  ;;  %v1215_v9 = vadd.f32 %v6304_v40, %v1214_v31  ;;  %vm1216_vm1 = vweird.f32 %v9444_v60  ;;  %v12284_v31 = vld [vmem:[#allocation45_spill] sm:$0xff] }
 0x32f   : > { %v3545_v63 = vmul.f32 %v3544_v5, %v12283_v1  ;;  %v1200_v57 = vmul.f32 %v1199_v47, %v9241_v29  ;;  %vm1218_vm2 = vmor %vm1216_vm1, %vm1217_vm15  ;;  %v1223_v61 = vor.u32 1.1754944e-38, %v1222_v7  ;;  %v3204_v54 = vadd.f32 0.014752088, %v3203_v4 }
 0x330   : > { %v3767_v18 = vmul.f32 %v3766_v14, %v12271_v50  ;;  %v1428_v2 = vmul.f32 %v9484_v53, %v9484_v53  ;;  %v1219_v62 = vsel %vm1218_vm2, %v6304_v40, %v1215_v9  ;;  %vm1221_vm3 = vcmp.eq.f32.partialorder %v1220_v32, 8.507059e+37 }
 0x331   : > { %v6076_v12 = vclamps-f32 %v3545_v63, 1.0  ;;  %v9502_v25 = vmul.f32 %v3917_v46, %v9288_v16  ;;  %v1224_v36 = vsel %vm1221_vm3, %v1223_v61, %v1219_v62  ;;  %v3205_v60 = vmul.f32 %v3204_v54, %v8083_v35 }
 0x332   : > { %v3881_v5 = vmul.f32 3.8918573e-05, %v12284_v31  ;;  %v4033_v29 = vadd.f32 0.0036580483, %v4032_v34  ;;  %v4151_v47 = vadd.f32 0.00028619796, %v4150_v41  ;;  %v1225_v4 = vmul.f32 %v1224_v36, %v1200_v57  ;;  %v9527_v36 = vpop.f32.mrf.mxu3 }
 0x333   : > { %v1313_v7 = vadd.f32 0.0036580483, %v1312_v22  ;;  %v9510_v14 = vadd.f32 %v9416_v8, %v7074_v52  ;;  %v3206_v40 = vadd.f32 0.112945676, %v3205_v60  ;;  %v4774_v32 = vadd.f32 1.0, %v6076_v12  ;;  %v12285_v22 = vld [vmem:[#allocation25_spill] sm:$0xff] }
 0x334   : > { %v9506_v1 = vpop.eup %6305  ;;  %v3768_v9 = vadd.f32 0.4994258, %v3767_v18  ;;  %v9512_v46 = vmin.f32 %v1428_v2, 16.0  ;;  %v9516_v63 = vadd.f32 %v8924_v13, %v8911_v6  ;;  %v6018_v61 = vclamps-f32 %v1225_v4, 1.0 }
 0x335   : > { %v3652_v34 = vmul.f32 %v9506_v1, %v9488_v43  ;;  %v3207_v41 = vmul.f32 %v3206_v40, %v8083_v35  ;;  %v4870_v57 = vmul.f32 %v4774_v32, %v12285_v22  ;;  %v3882_v54 = vadd.f32 0.001143296, %v3881_v5 }
 0x336   : > { %v3769_v8 = vmul.f32 %v3768_v9, %v12271_v50  ;;  %v4034_v62 = vmul.f32 %v4033_v29, %v9392_v27  ;;  %v684_v18 = vmul.f32 0.5, %v9200_v55  ;;  %v4716_v2 = vadd.f32 1.0, %v6018_v61 }
 0x337   : > { %v1321_v12 = vmul.f32 3.8918573e-05, %v9448_v0  ;;  %v4152_v13 = vmul.f32 %v4151_v47, %v9466_v21  ;;  %v3208_v60 = vadd.f32 0.4994258, %v3207_v41  ;;  %5034 = vmatmul.f32.gmra.mxu3 %v4870_v57  ;;  %v3653_v4 = vsub.f32 1.0, %v3652_v34 }
 0x338   : > { %v9529_v40 = vadd.f32 1.0, %v3769_v8  ;;  %v9532_v32 = vmul.f32 0.70710677, %v9510_v14  ;;  %v1314_v50 = vmul.f32 %v1313_v7, %v9448_v0  ;;  %v1430_v5 = vmul.f32 2.1237322e-06, %v9512_v46 }
 0x339   : > { %v4812_v55 = vmul.f32 %v4716_v2, %v684_v18  ;;  %v9537_v29 = vmul.f32 0.70710677, %v9516_v63  ;;  %v3209_v47 = vmul.f32 %v3208_v60, %v8083_v35  ;;  %v1322_v9 = vadd.f32 0.001143296, %v1321_v12 }
 0x33a   : > { %12286 = vst [vmem:[#allocation36_spill] sm:$0xff] %v9532_v32  ;;  %v3883_v61 = vmul.f32 %v3882_v54, %v12284_v31  ;;  %v3654_v34 = vmul.f32 %v9506_v1, %v3653_v4  ;;  %vm3657_vm4 = vweird.f32 %v9506_v1  ;;  %v3662_v41 = vand.u32 2147483648, %v9488_v43 }
 0x33b   : > { %5200 = vmatmul.f32.gmra.mxu1 %v4812_v55  ;;  %6307 = vrcp.f32 %v9529_v40  ;;  %v4035_v7 = vadd.f32 0.05243302, %v4034_v62  ;;  %v9545_v22 = vadd.f32 1.0, %v3209_v47  ;;  %v1323_v57 = vmul.f32 %v1322_v9, %v9448_v0 }
 0x33c   : > { %v3660_v8 = vand.u32 2147483647, %v9488_v43  ;;  %v4153_v35 = vadd.f32 0.0036580483, %v4152_v13  ;;  %v4268_v54 = vmul.f32 %v9532_v32, %v9532_v32  ;;  %v3655_v18 = vadd.f32 %v9506_v1, %v3654_v34 }
 0x33d   : > { %vm3656_vm5 = vweird.f32 %v9488_v43  ;;  %v1315_v2 = vadd.f32 0.05243302, %v1314_v50  ;;  %v1431_v12 = vadd.f32 0.00028619796, %v1430_v5  ;;  %6309 = vrcp.f32 %v9545_v22 }
 0x33e   : > { %vm3658_vm6 = vmor %vm3656_vm5, %vm3657_vm4  ;;  %v3884_v62 = vadd.f32 0.014752088, %v3883_v61  ;;  %v1548_v60 = vmul.f32 %v9537_v29, %v9537_v29  ;;  %v1324_v4 = vadd.f32 0.014752088, %v1323_v57  ;;  %v3663_v13 = vor.u32 1.1754944e-38, %v3662_v41 }
 0x33f   : > { %v3659_v55 = vsel %vm3658_vm6, %v9506_v1, %v3655_v18  ;;  %v9559_v47 = vmul.f32 %v9382_v59, %v8961_v19  ;;  %v9563_v43 = vmul.f32 %v9459_v28, %v9045_v30  ;;  %v9566_v50 = vadd.f32 1.1283791, %v9502_v25  ;;  %v12288_v19 = vld [vmem:[#allocation42_spill] sm:$0xff] }
 0x340   : > { %vm3661_vm7 = vcmp.eq.f32.partialorder %v3660_v8, 8.507059e+37  ;;  %v4036_v9 = vmul.f32 %v4035_v7, %v9392_v27  ;;  %v4154_v61 = vmul.f32 %v4153_v35, %v9466_v21  ;;  %v1325_v1 = vmul.f32 %v1324_v4, %v9448_v0 }
 0x341   : > { %12287 = vst [vmem:[#allocation7_spill] sm:$0xff] %v9563_v43  ;;  %v6308_v5 = vpop.eup %6307  ;;  %v3664_v34 = vsel %vm3661_vm7, %v3663_v13, %v3659_v55  ;;  %v9571_v41 = vmin.f32 %v4268_v54, 16.0  ;;  %v3885_v30 = vmul.f32 %v3884_v62, %v12284_v31  ;;  %v1316_v28 = vmul.f32 %v1315_v2, %v9448_v0 }
 0x342   : > { %v3665_v59 = vmul.f32 %v3664_v34, %v12288_v19  ;;  %v3772_v57 = vmul.f32 %v6308_v5, %v9529_v40  ;;  %v1432_v25 = vmul.f32 %v1431_v12, %v9512_v46  ;;  %v9578_v8 = vmin.f32 %v1548_v60, 16.0 }
 0x343   : > { %v1326_v7 = vadd.f32 0.112945676, %v1325_v1  ;;  %v6310_v18 = vpop.eup %6309  ;;  %v3780_v4 = vand.u32 2147483647, %v9529_v40  ;;  %v3782_v54 = vand.u32 2147483648, %v9529_v40  ;;  %vm3216_vm8 = vweird.f32 %v9545_v22 }
 0x344   : > { %v6079_v35 = vclamps-f32 %v3665_v59, 1.0  ;;  %v3773_v43 = vsub.f32 1.0, %v3772_v57  ;;  %v3212_v55 = vmul.f32 %v6310_v18, %v9545_v22  ;;  %v3222_v62 = vand.u32 2147483648, %v9545_v22  ;;  %v12289_v57 = vld [vmem:[#allocation39_spill] sm:$0xff] }
 0x345   : > { %v1327_v2 = vmul.f32 %v1326_v7, %v9448_v0  ;;  %vm3777_vm9 = vweird.f32 %v6308_v5  ;;  %v3886_v60 = vadd.f32 0.112945676, %v3885_v30  ;;  %vm3217_vm10 = vweird.f32 %v6310_v18 }
 0x346   : > { %v4777_v13 = vadd.f32 1.0, %v6079_v35  ;;  %v3774_v12 = vmul.f32 %v6308_v5, %v3773_v43  ;;  %v3213_v1 = vsub.f32 1.0, %v3212_v55  ;;  %v3220_v34 = vand.u32 2147483647, %v9545_v22  ;;  %v9591_v35 = vpop.f32.mrf.mxu3  ;;  %vm9595_vm13 = vmor %vm3216_vm8, %vm3217_vm10 }
 0x347   : > { %v1328_v19 = vadd.f32 0.4994258, %v1327_v2  ;;  %v1433_v59 = vadd.f32 0.0036580483, %v1432_v25  ;;  %vm3776_vm11 = vweird.f32 %v9529_v40  ;;  %v1550_v58 = vmul.f32 2.1237322e-06, %v9578_v8 }
 0x348   : > { %v4873_v23 = vmul.f32 %v4777_v13, %v12289_v57  ;;  %v3775_v44 = vadd.f32 %v6308_v5, %v3774_v12  ;;  %v3214_v48 = vmul.f32 %v6310_v18, %v3213_v1  ;;  %vm3778_vm12 = vmor %vm3776_vm11, %vm3777_vm9  ;;  %v3783_v43 = vor.u32 1.1754944e-38, %v3782_v54 }
 0x349   : > { %v1329_v7 = vmul.f32 %v1328_v19, %v9448_v0  ;;  %v3223_v25 = vor.u32 1.1754944e-38, %v3222_v62  ;;  %vm3781_vm14 = vcmp.eq.f32.partialorder %v3780_v4, 8.507059e+37  ;;  %v3887_v40 = vmul.f32 %v3886_v60, %v12284_v31  ;;  %v12292_v19 = vld [vmem:[#allocation34_spill] sm:$0xff] }
 0x34a   : > { %5037 = vmatmul.f32.gmra.mxu3 %v4873_v23  ;;  %v3779_v55 = vsel %vm3778_vm12, %v6308_v5, %v3775_v44  ;;  %v3215_v2 = vadd.f32 %v6310_v18, %v3214_v48  ;;  %vm3221_vm15 = vcmp.eq.f32.partialorder %v3220_v34, 8.507059e+37  ;;  %v4270_v54 = vmul.f32 2.1237322e-06, %v9571_v41 }
 0x34b   : > { %v9600_v13 = vadd.f32 1.0, %v1329_v7  ;;  %v3784_v12 = vsel %vm3781_vm14, %v3783_v43, %v3779_v55  ;;  %v1317_v1 = vadd.f32 0.18741608, %v1316_v28  ;;  %v1434_v22 = vmul.f32 %v1433_v59, %v9512_v46 }
 0x34c   : > { %v3785_v57 = vmul.f32 %v3784_v12, %v12292_v19  ;;  %v9605_v32 = vadd.f32 0.18741608, %v4036_v9  ;;  %v9607_v62 = vadd.f32 0.05243302, %v4154_v61  ;;  %v3219_v44 = vsel %vm9595_vm13, %v6310_v18, %v3215_v2 }
 0x34d   : > { %6311 = vrcp.f32 %v9600_v13  ;;  %v9614_v23 = vadd.f32 %v9015_v17, %v8911_v6  ;;  %v3224_v48 = vsel %vm3221_vm15, %v3223_v25, %v3219_v44  ;;  %v3888_v28 = vadd.f32 0.4994258, %v3887_v40  ;;  %v604_v17 = vpop.f32.mrf.mxu2  ;;  %v12294_v40 = vld [vmem:[#allocation44_spill] sm:$0xff] }
 0x34e   : > { %v6082_v5 = vclamps-f32 %v3785_v57, 1.0  ;;  %v1551_v4 = vadd.f32 0.00028619796, %v1550_v58  ;;  %v3225_v60 = vmul.f32 %v3224_v48, %v8312_v42  ;;  %v3321_v9 = vmul.f32 3.8918573e-05, %v8226_v38 }
 0x34f   : > { %v1441_v61 = vmul.f32 3.8918573e-05, %v9512_v46  ;;  %v4271_v34 = vadd.f32 0.00028619796, %v4270_v54  ;;  %v1318_v59 = vmul.f32 %v1317_v1, %v9448_v0  ;;  %v1435_v18 = vadd.f32 0.05243302, %v1434_v22 }
 0x350   : > { %v4780_v7 = vadd.f32 1.0, %v6082_v5  ;;  %v9621_v43 = vmul.f32 0.5, %v9336_v56  ;;  %v6068_v30 = vclamps-f32 %v3225_v60, 1.0  ;;  %v3322_v25 = vadd.f32 0.001143296, %v3321_v9  ;;  %v12296_v5 = vld [vmem:[#allocation21_spill] sm:$0xff] }
 0x351   : > { %v1442_v55 = vadd.f32 0.001143296, %v1441_v61  ;;  %v9625_v58 = vadd.f32 %v9469_v49, %v7074_v52  ;;  %v9628_v42 = vmul.f32 0.70710677, %v9614_v23  ;;  %v3889_v0 = vmul.f32 %v3888_v28, %v12284_v31  ;;  %v9636_v49 = vpop.f32.mrf.mxu3 }
 0x352   : > { %12293 = vst [vmem:[#allocation15_spill] sm:$0xff] %v9621_v43  ;;  %v4876_v2 = vmul.f32 %v4780_v7, %v12294_v40  ;;  %v1552_v54 = vmul.f32 %v1551_v4, %v9578_v8  ;;  %v4766_v56 = vadd.f32 1.0, %v6068_v30  ;;  %v3323_v1 = vmul.f32 %v3322_v25, %v8226_v38 }
 0x353   : > { %v6312_v12 = vpop.eup %6311  ;;  %v1443_v22 = vmul.f32 %v1442_v55, %v9512_v46  ;;  %v4272_v19 = vmul.f32 %v4271_v34, %v9571_v41  ;;  %v1319_v57 = vadd.f32 1.1283791, %v1318_v59  ;;  %12295 = vst [vmem:[#allocation41_spill] sm:$0xff] %v9636_v49  ;;  %v9639_v44 = vadd.f32 %v604_v17, %v8911_v6 }
 0x354   : > { %v1332_v48 = vmul.f32 %v6312_v12, %v9600_v13  ;;  %5040 = vmatmul.f32.gmra.mxu3 %v4876_v2  ;;  %v1436_v31 = vmul.f32 %v1435_v18, %v9512_v46  ;;  %v4862_v28 = vmul.f32 %v4766_v56, %v12296_v5  ;;  %v3324_v4 = vadd.f32 0.014752088, %v3323_v1 }
 0x355   : > { %v1444_v60 = vadd.f32 0.014752088, %v1443_v22  ;;  %v9645_v9 = vmul.f32 0.70710677, %v9625_v58  ;;  %v1668_v61 = vmul.f32 %v9628_v42, %v9628_v42  ;;  %v9649_v59 = vadd.f32 1.0, %v3889_v0 }
 0x356   : > { %v1333_v34 = vsub.f32 1.0, %v1332_v48  ;;  %v1553_v7 = vadd.f32 0.0036580483, %v1552_v54  ;;  %5138 = vmatmul.f32.gmra.mxu0 %v4862_v28  ;;  %v1342_v17 = vand.u32 2147483648, %v9600_v13  ;;  %v3325_v30 = vmul.f32 %v3324_v4, %v8226_v38 }
 0x357   : > { %12297 = vst [vmem:[#allocation9_spill] sm:$0xff] %v9645_v9  ;;  %v1445_v18 = vmul.f32 %v1444_v60, %v9512_v46  ;;  %v9655_v25 = vmul.f32 0.70710677, %v9639_v44  ;;  %vm1337_vm0 = vweird.f32 %v6312_v12  ;;  %v1340_v40 = vand.u32 2147483647, %v9600_v13 }
 0x358   : > { %v1334_v55 = vmul.f32 %v6312_v12, %v1333_v34  ;;  %v1320_v2 = vmul.f32 %v1319_v57, %v9404_v37  ;;  %v1437_v56 = vadd.f32 0.18741608, %v1436_v31  ;;  %v3326_v0 = vadd.f32 0.112945676, %v3325_v30  ;;  %v12298_v31 = vld [vmem:[#allocation57_spill] sm:$0xff] }
 0x359   : > { %v1446_v1 = vadd.f32 0.112945676, %v1445_v18  ;;  %v9659_v54 = vmin.f32 %v1668_v61, 16.0  ;;  %vm1336_vm1 = vweird.f32 %v9600_v13  ;;  %6313 = vrcp.f32 %v9649_v59 }
 0x35a   : > { %v1335_v22 = vadd.f32 %v6312_v12, %v1334_v55  ;;  %v1554_v48 = vmul.f32 %v1553_v7, %v9578_v8  ;;  %vm1338_vm2 = vmor %vm1336_vm1, %vm1337_vm0  ;;  %v1343_v5 = vor.u32 1.1754944e-38, %v1342_v17  ;;  %v3327_v28 = vmul.f32 %v3326_v0, %v8226_v38 }
 0x35b   : > { %v1447_v4 = vmul.f32 %v1446_v1, %v9512_v46  ;;  %v1908_v37 = vmul.f32 %v9655_v25, %v9655_v25  ;;  %vm1341_vm3 = vcmp.eq.f32.partialorder %v1340_v40, 8.507059e+37  ;;  %v3441_v60 = vmul.f32 3.8918573e-05, %v12298_v31 }
 0x35c   : > { %v1339_v57 = vsel %vm1338_vm2, %v6312_v12, %v1335_v22  ;;  %v3328_v34 = vadd.f32 0.4994258, %v3327_v28  ;;  %v1561_v30 = vmul.f32 3.8918573e-05, %v9578_v8  ;;  %v9671_v7 = vmul.f32 0.5, %v9397_v10 }
 0x35d   : > { %v1344_v61 = vsel %vm1341_vm3, %v1343_v5, %v1339_v57  ;;  %v1448_v13 = vadd.f32 0.4994258, %v1447_v4  ;;  %v4156_v17 = vmul.f32 %v9607_v62, %v9466_v21  ;;  %v1670_v18 = vmul.f32 2.1237322e-06, %v9659_v54 }
 0x35e   : > { %12299 = vst [vmem:[#allocation33_spill] sm:$0xff] %v9671_v7  ;;  %v1345_v55 = vmul.f32 %v1344_v61, %v1320_v2  ;;  %v4273_v0 = vadd.f32 0.0036580483, %v4272_v19  ;;  %v3329_v12 = vmul.f32 %v3328_v34, %v8226_v38  ;;  %v3442_v1 = vadd.f32 0.001143296, %v3441_v60 }
 0x35f   : > { %v1449_v40 = vmul.f32 %v1448_v13, %v9512_v46  ;;  %v9678_v22 = vpop.eup %6313  ;;  %v4388_v5 = vmul.f32 %v9645_v9, %v9645_v9  ;;  %v1438_v10 = vmul.f32 %v1437_v56, %v9512_v46  ;;  %v1562_v4 = vadd.f32 0.001143296, %v1561_v30 }
 0x360   : > { %v6021_v28 = vclamps-f32 %v1345_v55, 1.0  ;;  %v1555_v57 = vadd.f32 0.05243302, %v1554_v48  ;;  %v9685_v62 = vadd.f32 %v9166_v51, %v8911_v6  ;;  %v9687_v19 = vmin.f32 %v1908_v37, 16.0 }
 0x361   : > { %v9689_v38 = vadd.f32 1.0, %v3329_v12  ;;  %v1671_v2 = vadd.f32 0.00028619796, %v1670_v18  ;;  %v687_v60 = vmul.f32 0.5, %v9389_v26  ;;  %v9692_v34 = vadd.f32 1.0, %v1449_v40 }
 0x362   : > { %v4719_v61 = vadd.f32 1.0, %v6021_v28  ;;  %v4274_v13 = vmul.f32 %v4273_v0, %v9571_v41  ;;  %v3443_v46 = vmul.f32 %v3442_v1, %v12298_v31  ;;  %v3892_v51 = vmul.f32 %v9678_v22, %v9649_v59 }
 0x363   : > { %6315 = vrcp.f32 %v9689_v38  ;;  %v4157_v56 = vadd.f32 0.18741608, %v4156_v17  ;;  %v9701_v48 = vadd.f32 %v9527_v36, %v7074_v52  ;;  %v1563_v26 = vmul.f32 %v1562_v4, %v9578_v8 }
 0x364   : > { %v4815_v37 = vmul.f32 %v4719_v61, %v687_v60  ;;  %v9706_v30 = vmul.f32 %v9566_v50, %v9233_v3  ;;  %v1439_v18 = vadd.f32 1.1283791, %v1438_v10  ;;  %v9709_v55 = vmul.f32 0.70710677, %v9685_v62 }
 0x365   : > { %12300 = vst [vmem:[#allocation17_spill] sm:$0xff] %v9701_v48  ;;  %v1921_v0 = vmul.f32 3.8918573e-05, %v9687_v19  ;;  %v9712_v12 = vmin.f32 %v4388_v5, 16.0  ;;  %v1556_v17 = vmul.f32 %v1555_v57, %v9578_v8  ;;  %v1672_v36 = vmul.f32 %v1671_v2, %v9659_v54 }
 0x366   : > { %12301 = vst [vmem:[#allocation18_spill] sm:$0xff] %v9706_v30  ;;  %5203 = vmatmul.f32.gmra.mxu1 %v4815_v37  ;;  %6317 = vrcp.f32 %v9692_v34  ;;  %v9719_v40 = vmul.f32 %v9605_v32, %v9392_v27  ;;  %v9721_v3 = vadd.f32 0.05243302, %v4274_v13  ;;  %v3444_v50 = vadd.f32 0.014752088, %v3443_v46 }
 0x367   : > { %v3893_v1 = vsub.f32 1.0, %v3892_v51  ;;  %v9724_v10 = vmul.f32 %v4157_v56, %v9466_v21  ;;  %v9727_v5 = vmul.f32 2.1237322e-06, %v9712_v12  ;;  %v9730_v28 = vmul.f32 0.70710677, %v9701_v48  ;;  %v607_v51 = vpop.f32.mrf.mxu2 }
 0x368   : > { %v1564_v4 = vadd.f32 0.014752088, %v1563_v26  ;;  %v1440_v2 = vmul.f32 %v1439_v18, %v9484_v53  ;;  %v1788_v32 = vmul.f32 %v9709_v55, %v9709_v55  ;;  %v1922_v60 = vadd.f32 0.001143296, %v1921_v0 }
 0x369   : > { %12302 = vst [vmem:[#allocation11_spill] sm:$0xff] %v9730_v28  ;;  %v6316_v57 = vpop.eup %6315  ;;  %v3445_v61 = vmul.f32 %v3444_v50, %v12298_v31  ;;  %v9736_v13 = vadd.f32 0.18741608, %v1556_v17  ;;  %v9738_v46 = vadd.f32 0.0036580483, %v1672_v36  ;;  %vm3336_vm4 = vweird.f32 %v9689_v38 }
 0x36a   : > { %v3332_v56 = vmul.f32 %v6316_v57, %v9689_v38  ;;  %v1565_v37 = vmul.f32 %v1564_v4, %v9578_v8  ;;  %v3342_v26 = vand.u32 2147483648, %v9689_v38  ;;  %v3894_v18 = vmul.f32 %v9678_v22, %v3893_v1 }
 0x36b   : > { %v3446_v53 = vadd.f32 0.112945676, %v3445_v61  ;;  %vm3337_vm5 = vweird.f32 %v6316_v57  ;;  %v3340_v17 = vand.u32 2147483647, %v9689_v38  ;;  %v9746_v36 = vmin.f32 %v1788_v32, 16.0 }
 0x36c   : > { %v6318_v49 = vpop.eup %6317  ;;  %v3333_v0 = vsub.f32 1.0, %v3332_v56  ;;  %v1566_v50 = vadd.f32 0.112945676, %v1565_v37  ;;  %v1923_v7 = vmul.f32 %v1922_v60, %v9687_v19  ;;  %v9750_v9 = vadd.f32 %v607_v51, %v8911_v6  ;;  %vm9758_vm7 = vmor %vm3336_vm4, %vm3337_vm5 }
 0x36d   : > { %v1452_v4 = vmul.f32 %v6318_v49, %v9692_v34  ;;  %v3447_v61 = vmul.f32 %v3446_v53, %v12298_v31  ;;  %vm3897_vm6 = vweird.f32 %v9678_v22  ;;  %v3343_v32 = vor.u32 1.1754944e-38, %v3342_v26 }
 0x36e   : > { %12303 = vst [vmem:[#allocation46_spill] sm:$0xff] %v9750_v9  ;;  %v3334_v43 = vmul.f32 %v6316_v57, %v3333_v0  ;;  %v1567_v1 = vmul.f32 %v1566_v50, %v9578_v8  ;;  %v3895_v51 = vadd.f32 %v9678_v22, %v3894_v18  ;;  %v3902_v37 = vand.u32 2147483648, %v9649_v59 }
 0x36f   : > { %v1453_v60 = vsub.f32 1.0, %v1452_v4  ;;  %vm3341_vm8 = vcmp.eq.f32.partialorder %v3340_v17, 8.507059e+37  ;;  %v1462_v53 = vand.u32 2147483648, %v9692_v34  ;;  %v3448_v0 = vadd.f32 0.4994258, %v3447_v61 }
 0x370   : > { %v3335_v21 = vadd.f32 %v6316_v57, %v3334_v43  ;;  %vm1457_vm9 = vweird.f32 %v6318_v49  ;;  %v1460_v48 = vand.u32 2147483647, %v9692_v34  ;;  %v1568_v38 = vadd.f32 0.4994258, %v1567_v1 }
 0x371   : > { %v1454_v50 = vmul.f32 %v6318_v49, %v1453_v60  ;;  %v3449_v26 = vmul.f32 %v3448_v0, %v12298_v31  ;;  %vm3896_vm10 = vweird.f32 %v9649_v59  ;;  %v3900_v18 = vand.u32 2147483647, %v9649_v59 }
 0x372   : > { %v3339_v30 = vsel %vm9758_vm7, %v6316_v57, %v3335_v21  ;;  %v9772_v43 = vmul.f32 0.70710677, %v9750_v9  ;;  %vm1456_vm11 = vweird.f32 %v9692_v34  ;;  %vm9777_vm12 = vmor %vm3896_vm10, %vm3897_vm6  ;;  %v12308_v21 = vld [vmem:[#allocation59_spill] sm:$0xff]  ;;  %v1463_v31 = vor.u32 1.1754944e-38, %v1462_v53 }
 0x373   : > { %v3344_v17 = vsel %vm3341_vm8, %v3343_v32, %v3339_v30  ;;  %v1455_v4 = vadd.f32 %v6318_v49, %v1454_v50  ;;  %vm1458_vm13 = vmor %vm1456_vm11, %vm1457_vm9  ;;  %v3899_v59 = vsel %vm9777_vm12, %v9678_v22, %v3895_v51  ;;  %v3903_v1 = vor.u32 1.1754944e-38, %v3902_v37 }
 0x374   : > { %v3345_v57 = vmul.f32 %v3344_v17, %v12308_v21  ;;  %vm1461_vm14 = vcmp.eq.f32.partialorder %v1460_v48, 8.507059e+37  ;;  %v9785_v30 = vadd.f32 1.0, %v3449_v26  ;;  %v1569_v34 = vmul.f32 %v1568_v38, %v9578_v8  ;;  %v12311_v21 = vld [vmem:[#allocation28_spill] sm:$0xff] }
 0x375   : > { %v1459_v56 = vsel %vm1458_vm13, %v6318_v49, %v1455_v4  ;;  %v1790_v32 = vmul.f32 2.1237322e-06, %v9746_v36  ;;  %vm3901_vm15 = vcmp.eq.f32.partialorder %v3900_v18, 8.507059e+37  ;;  %v1924_v50 = vadd.f32 0.014752088, %v1923_v7  ;;  %v12309_v7 = vld [vmem:[#allocation50_spill] sm:$0xff] }
 0x376   : > { %v6071_v60 = vclamps-f32 %v3345_v57, 1.0  ;;  %v1464_v0 = vsel %vm1461_vm14, %v1463_v31, %v1459_v56  ;;  %6319 = vrcp.f32 %v9785_v30  ;;  %v3904_v53 = vsel %vm3901_vm15, %v3903_v1, %v3899_v59 }
 0x377   : > { %v1465_v17 = vmul.f32 %v1464_v0, %v1440_v2  ;;  %v4391_v61 = vadd.f32 0.00028619796, %v9727_v5  ;;  %v4508_v49 = vmul.f32 %v9730_v28, %v9730_v28  ;;  %v2028_v22 = vmul.f32 %v9772_v43, %v9772_v43  ;;  %v12310_v5 = vld [vmem:[#allocation55_spill] sm:$0xff]  ;;  %v12317_v28 = vld [vmem:[#allocation20_spill] sm:$0xff] }
 0x378   : > { %v4769_v48 = vadd.f32 1.0, %v6071_v60  ;;  %v1558_v51 = vmul.f32 %v9736_v13, %v9578_v8  ;;  %v9797_v38 = vadd.f32 1.0, %v1569_v34  ;;  %v3561_v2 = vmul.f32 3.8918573e-05, %v12309_v7 }
 0x379   : > { %v6024_v37 = vclamps-f32 %v1465_v17, 1.0  ;;  %v1674_v26 = vmul.f32 %v9738_v46, %v9659_v54  ;;  %v1791_v18 = vadd.f32 0.00028619796, %v1790_v32  ;;  %v3905_v57 = vmul.f32 %v3904_v53, %v12311_v21 }
 0x37a   : > { %v4865_v4 = vmul.f32 %v4769_v48, %v12310_v5  ;;  %v1925_v31 = vmul.f32 %v1924_v50, %v9687_v19  ;;  %v690_v59 = vmul.f32 0.5, %v9473_v39  ;;  %6321 = vrcp.f32 %v9797_v38 }
 0x37b   : > { %v4722_v1 = vadd.f32 1.0, %v6024_v37  ;;  %v9808_v8 = vadd.f32 1.1283791, %v9719_v40  ;;  %v9811_v13 = vadd.f32 1.1283791, %v9724_v10  ;;  %v9814_v46 = vmul.f32 0.5, %v9510_v14 }
 0x37c   : > { %v9816_v56 = vmin.f32 %v2028_v22, 16.0  ;;  %5141 = vmatmul.f32.gmra.mxu0 %v4865_v4  ;;  %v6320_v34 = vpop.eup %6319  ;;  %v9820_v32 = vmul.f32 %v9721_v3, %v9571_v41  ;;  %v9823_v39 = vmul.f32 %v4391_v61, %v9712_v12  ;;  %v3562_v40 = vadd.f32 0.001143296, %v3561_v2 }
 0x37d   : > { %12312 = vst [vmem:[#allocation23_spill] sm:$0xff] %v9814_v46  ;;  %v4818_v60 = vmul.f32 %v4722_v1, %v690_v59  ;;  %v1559_v0 = vadd.f32 1.1283791, %v1558_v51  ;;  %v1792_v10 = vmul.f32 %v1791_v18, %v9746_v36  ;;  %v3452_v50 = vmul.f32 %v6320_v34, %v9785_v30 }
 0x37e   : > { %v6085_v14 = vclamps-f32 %v3905_v57, 1.0  ;;  %v9827_v17 = vmin.f32 %v4508_v49, 16.0  ;;  %v9829_v53 = vadd.f32 0.05243302, %v1674_v26  ;;  %v1926_v22 = vadd.f32 0.112945676, %v1925_v31 }
 0x37f   : > { %5206 = vmatmul.f32.gmra.mxu1 %v4818_v60  ;;  %v3563_v3 = vmul.f32 %v3562_v40, %v12309_v7  ;;  %v2041_v48 = vmul.f32 3.8918573e-05, %v9816_v56  ;;  %v3453_v61 = vsub.f32 1.0, %v3452_v50  ;;  %v3460_v37 = vand.u32 2147483647, %v9785_v30 }
 0x380   : > { %v3462_v51 = vand.u32 2147483648, %v9785_v30  ;;  %v6322_v2 = vpop.eup %6321  ;;  %vm3456_vm0 = vweird.f32 %v9785_v30  ;;  %vm3457_vm1 = vweird.f32 %v6320_v34  ;;  %v1681_v49 = vmul.f32 3.8918573e-05, %v9659_v54 }
 0x381   : > { %v3564_v18 = vadd.f32 0.014752088, %v3563_v3  ;;  %v1560_v26 = vmul.f32 %v1559_v0, %v9537_v29  ;;  %v1793_v5 = vadd.f32 0.0036580483, %v1792_v10  ;;  %v3681_v4 = vmul.f32 3.8918573e-05, %v8756_v11  ;;  %vm9842_vm2 = vmor %vm3456_vm0, %vm3457_vm1  ;;  %v610_v3 = vpop.f32.mrf.mxu2 }
 0x382   : > { %v4783_v21 = vadd.f32 1.0, %v6085_v14  ;;  %v1910_v57 = vmul.f32 2.1237322e-06, %v9687_v19  ;;  %v1927_v31 = vmul.f32 %v1926_v22, %v9687_v19  ;;  %v3454_v59 = vmul.f32 %v6320_v34, %v3453_v61 }
 0x383   : > { %v1572_v1 = vmul.f32 %v6322_v2, %v9797_v38  ;;  %v2042_v60 = vadd.f32 0.001143296, %v2041_v48  ;;  %vm9846_vm3 = vcmp.eq.f32.partialorder %v3460_v37, 8.507059e+37  ;;  %v3463_v29 = vor.u32 1.1754944e-38, %v3462_v51 }
 0x384   : > { %v3565_v0 = vmul.f32 %v3564_v18, %v12309_v7  ;;  %v3455_v10 = vadd.f32 %v6320_v34, %v3454_v59  ;;  %v1580_v14 = vand.u32 2147483647, %v9797_v38  ;;  %v1682_v22 = vadd.f32 0.001143296, %v1681_v49  ;;  %v9857_v18 = vpop.f32.mrf.mxu3 }
 0x385   : > { %v1573_v50 = vsub.f32 1.0, %v1572_v1  ;;  %v1582_v61 = vand.u32 2147483648, %v9797_v38  ;;  %v3682_v46 = vadd.f32 0.001143296, %v3681_v4  ;;  %v4879_v27 = vmul.f32 %v4783_v21, %v12317_v28  ;;  %12318 = vst [vmem:[#allocation22_spill] sm:$0xff] %v9857_v18  ;;  %v12319_v4 = vld [vmem:[#allocation35_spill] sm:$0xff] }
 0x386   : > { %v3566_v48 = vadd.f32 0.112945676, %v3565_v0  ;;  %v3459_v37 = vsel %vm9842_vm2, %v6320_v34, %v3455_v10  ;;  %vm1577_vm4 = vweird.f32 %v6322_v2  ;;  %v1683_v51 = vmul.f32 %v1682_v22, %v9659_v54 }
 0x387   : > { %v1574_v9 = vmul.f32 %v6322_v2, %v1573_v50  ;;  %v1911_v59 = vadd.f32 0.00028619796, %v1910_v57  ;;  %v2043_v1 = vmul.f32 %v2042_v60, %v9816_v56  ;;  %v3464_v49 = vsel %vm9846_vm3, %v3463_v29, %v3459_v37  ;;  %5043 = vmatmul.f32.gmra.mxu3 %v4879_v27 }
 0x388   : > { %v3567_v0 = vmul.f32 %v3566_v48, %v12309_v7  ;;  %v9864_v28 = vadd.f32 %v610_v3, %v8911_v6  ;;  %v3465_v34 = vmul.f32 %v3464_v49, %v12319_v4  ;;  %vm1576_vm5 = vweird.f32 %v9797_v38 }
 0x389   : > { %v1575_v21 = vadd.f32 %v6322_v2, %v1574_v9  ;;  %v1928_v30 = vadd.f32 0.4994258, %v1927_v31  ;;  %vm1578_vm6 = vmor %vm1576_vm5, %vm1577_vm4  ;;  %v1583_v10 = vor.u32 1.1754944e-38, %v1582_v61  ;;  %v3683_v60 = vmul.f32 %v3682_v46, %v8756_v11 }
 0x38a   : > { %v3568_v57 = vadd.f32 0.4994258, %v3567_v0  ;;  %v6074_v50 = vclamps-f32 %v3465_v34, 1.0  ;;  %vm1581_vm7 = vcmp.eq.f32.partialorder %v1580_v14, 8.507059e+37  ;;  %v1684_v29 = vadd.f32 0.014752088, %v1683_v51 }
 0x38b   : > { %v1579_v40 = vsel %vm1578_vm6, %v6322_v2, %v1575_v21  ;;  %v4510_v27 = vmul.f32 2.1237322e-06, %v9827_v17  ;;  %v1912_v22 = vmul.f32 %v1911_v59, %v9687_v19  ;;  %v2044_v3 = vadd.f32 0.014752088, %v2043_v1  ;;  %v12320_v59 = vld [vmem:[#allocation61_spill] sm:$0xff] }
 0x38c   : > { %v1584_v48 = vsel %vm1581_vm7, %v1583_v10, %v1579_v40  ;;  %v9872_v9 = vmul.f32 0.70710677, %v9864_v28  ;;  %v4772_v38 = vadd.f32 1.0, %v6074_v50  ;;  %v3569_v61 = vmul.f32 %v3568_v57, %v12309_v7 }
 0x38d   : > { %v1585_v31 = vmul.f32 %v1584_v48, %v1560_v26  ;;  %v1676_v46 = vmul.f32 %v9829_v53, %v9659_v54  ;;  %v1794_v2 = vmul.f32 %v1793_v5, %v9746_v36  ;;  %v1685_v14 = vmul.f32 %v1684_v29, %v9659_v54 }
 0x38e   : > { %v3684_v37 = vadd.f32 0.014752088, %v3683_v60  ;;  %v1929_v51 = vmul.f32 %v1928_v30, %v9687_v19  ;;  %v4868_v1 = vmul.f32 %v4772_v38, %v12320_v59  ;;  %v9881_v0 = vadd.f32 1.0, %v3569_v61 }
 0x38f   : > { %v6027_v49 = vclamps-f32 %v1585_v31, 1.0  ;;  %v1913_v4 = vadd.f32 0.0036580483, %v1912_v22  ;;  %v2045_v26 = vmul.f32 %v2044_v3, %v9816_v56  ;;  %v1686_v34 = vadd.f32 0.112945676, %v1685_v14 }
 0x390   : > { %v3685_v7 = vmul.f32 %v3684_v37, %v8756_v11  ;;  %v2148_v53 = vmul.f32 %v9872_v9, %v9872_v9  ;;  %5144 = vmatmul.f32.gmra.mxu0 %v4868_v1  ;;  %v693_v5 = vmul.f32 0.5, %v9516_v63  ;;  %6323 = vrcp.f32 %v9881_v0 }
 0x391   : > { %v4725_v21 = vadd.f32 1.0, %v6027_v49  ;;  %v9891_v30 = vmul.f32 %v9808_v8, %v9350_v20  ;;  %v9894_v10 = vadd.f32 0.18741608, %v9820_v32  ;;  %v4393_v57 = vadd.f32 0.0036580483, %v9823_v39 }
 0x392   : > { %v4511_v60 = vadd.f32 0.00028619796, %v4510_v27  ;;  %v1677_v50 = vadd.f32 0.18741608, %v1676_v46  ;;  %v9897_v40 = vadd.f32 1.0, %v1929_v51  ;;  %v1687_v22 = vmul.f32 %v1686_v34, %v9659_v54 }
 0x393   : > { %v4821_v29 = vmul.f32 %v4725_v21, %v693_v5  ;;  %v1795_v63 = vadd.f32 0.05243302, %v1794_v2  ;;  %v1914_v3 = vmul.f32 %v1913_v4, %v9687_v19  ;;  %v2046_v48 = vadd.f32 0.112945676, %v2045_v26  ;;  %v12321_v4 = vld [vmem:[#allocation49_spill] sm:$0xff] }
 0x394   : > { %v3686_v38 = vadd.f32 0.112945676, %v3685_v7  ;;  %v9903_v20 = vmul.f32 %v9811_v13, %v9432_v45  ;;  %v9905_v8 = vmin.f32 %v2148_v53, 16.0  ;;  %v1688_v32 = vadd.f32 0.4994258, %v1687_v22 }
 0x395   : > { %5209 = vmatmul.f32.gmra.mxu1 %v4821_v29  ;;  %v1801_v39 = vmul.f32 3.8918573e-05, %v9746_v36  ;;  %v9909_v27 = vmul.f32 %v4393_v57, %v9712_v12  ;;  %v9912_v31 = vmul.f32 %v4511_v60, %v9827_v17  ;;  %v9916_v61 = vadd.f32 %v9591_v35, %v7074_v52 }
 0x396   : > { %v3687_v46 = vmul.f32 %v3686_v38, %v8756_v11  ;;  %v6324_v45 = vpop.eup %6323  ;;  %v1678_v13 = vmul.f32 %v1677_v50, %v9659_v54  ;;  %6325 = vrcp.f32 %v9897_v40  ;;  %v1689_v2 = vmul.f32 %v1688_v32, %v9659_v54 }
 0x397   : > { %v1802_v14 = vadd.f32 0.001143296, %v1801_v39  ;;  %v1796_v37 = vmul.f32 %v1795_v63, %v9746_v36  ;;  %v1915_v51 = vadd.f32 0.05243302, %v1914_v3  ;;  %v2030_v59 = vmul.f32 2.1237322e-06, %v9816_v56 }
 0x398   : > { %v2047_v1 = vmul.f32 %v2046_v48, %v9816_v56  ;;  %v2161_v52 = vmul.f32 3.8918573e-05, %v9905_v8  ;;  %v3572_v35 = vmul.f32 %v6324_v45, %v9881_v0  ;;  %v9927_v49 = vadd.f32 1.0, %v1689_v2 }
 0x399   : > { %v4001_v26 = vmul.f32 3.8918573e-05, %v12321_v4  ;;  %vm3576_vm8 = vweird.f32 %v9881_v0  ;;  %v3582_v54 = vand.u32 2147483648, %v9881_v0  ;;  %v3688_v34 = vadd.f32 0.4994258, %v3687_v46 }
 0x39a   : > { %v1803_v7 = vmul.f32 %v1802_v14, %v9746_v36  ;;  %v3573_v53 = vsub.f32 1.0, %v3572_v35  ;;  %vm3577_vm9 = vweird.f32 %v6324_v45  ;;  %v3580_v5 = vand.u32 2147483647, %v9881_v0 }
 0x39b   : > { %6327 = vrcp.f32 %v9927_v49  ;;  %v1679_v21 = vadd.f32 1.1283791, %v1678_v13  ;;  %v1797_v57 = vadd.f32 0.18741608, %v1796_v37  ;;  %v2031_v60 = vadd.f32 0.00028619796, %v2030_v59  ;;  %vm9944_vm10 = vmor %vm3576_vm8, %vm3577_vm9 }
 0x39c   : > { %v3689_v50 = vmul.f32 %v3688_v34, %v8756_v11  ;;  %v9936_v29 = vpop.eup %6325  ;;  %v9939_v22 = vmul.f32 0.70710677, %v9916_v61  ;;  %v2048_v63 = vadd.f32 0.4994258, %v2047_v1  ;;  %v2162_v3 = vadd.f32 0.001143296, %v2161_v52  ;;  %v613_v1 = vpop.f32.mrf.mxu2 }
 0x39d   : > { %v3574_v48 = vmul.f32 %v6324_v45, %v3573_v53  ;;  %v1916_v38 = vmul.f32 %v1915_v51, %v9687_v19  ;;  %v3583_v39 = vor.u32 1.1754944e-38, %v3582_v54  ;;  %v1804_v46 = vadd.f32 0.014752088, %v1803_v7 }
 0x39e   : > { %v4002_v13 = vadd.f32 0.001143296, %v4001_v26  ;;  %vm3581_vm11 = vcmp.eq.f32.partialorder %v3580_v5, 8.507059e+37  ;;  %v9948_v2 = vadd.f32 1.0, %v3689_v50  ;;  %v3801_v14 = vmul.f32 3.8918573e-05, %v8995_v33 }
 0x39f   : > { %v3575_v11 = vadd.f32 %v6324_v45, %v3574_v48  ;;  %v1680_v37 = vmul.f32 %v1679_v21, %v9628_v42  ;;  %v9953_v59 = vmul.f32 %v1797_v57, %v9746_v36  ;;  %v9957_v0 = vmul.f32 %v9936_v29, %v9897_v40  ;;  %v12324_v57 = vld [vmem:[#allocation52_spill] sm:$0xff] }
 0x3a0   : > { %v2032_v51 = vmul.f32 %v2031_v60, %v9816_v56  ;;  %v2049_v35 = vmul.f32 %v2048_v63, %v9816_v56  ;;  %v2163_v26 = vmul.f32 %v2162_v3, %v9905_v8  ;;  %6329 = vrcp.f32 %v9948_v2 }
 0x3a1   : > { %v6328_v52 = vpop.eup %6327  ;;  %v3579_v54 = vsel %vm9944_vm10, %v6324_v45, %v3575_v11  ;;  %v1805_v7 = vmul.f32 %v1804_v46, %v9746_v36  ;;  %v4003_v53 = vmul.f32 %v4002_v13, %v12321_v4  ;;  %v1917_v5 = vadd.f32 0.18741608, %v1916_v38 }
 0x3a2   : > { %v3584_v42 = vsel %vm3581_vm11, %v3583_v39, %v3579_v54  ;;  %v1692_v34 = vmul.f32 %v6328_v52, %v9927_v49  ;;  %v9969_v21 = vadd.f32 %v613_v1, %v8911_v6  ;;  %v3802_v50 = vadd.f32 0.001143296, %v3801_v14 }
 0x3a3   : > { %v3585_v60 = vmul.f32 %v3584_v42, %v12324_v57  ;;  %v1933_v63 = vsub.f32 1.0, %v9957_v0  ;;  %v1700_v45 = vand.u32 2147483647, %v9927_v49  ;;  %v1702_v48 = vand.u32 2147483648, %v9927_v49 }
 0x3a4   : > { %v1693_v3 = vsub.f32 1.0, %v1692_v34  ;;  %v2033_v32 = vadd.f32 0.0036580483, %v2032_v51  ;;  %v9975_v39 = vadd.f32 1.0, %v2049_v35  ;;  %v2164_v46 = vadd.f32 0.014752088, %v2163_v26 }
 0x3a5   : > { %v6077_v11 = vclamps-f32 %v3585_v60, 1.0  ;;  %vm1697_vm12 = vweird.f32 %v6328_v52  ;;  %v1806_v38 = vadd.f32 0.112945676, %v1805_v7  ;;  %v4004_v1 = vadd.f32 0.014752088, %v4003_v53  ;;  %v12325_v26 = vld [vmem:[#allocation31_spill] sm:$0xff] }
 0x3a6   : > { %v1694_v13 = vmul.f32 %v6328_v52, %v1693_v3  ;;  %v6330_v54 = vpop.eup %6329  ;;  %v9978_v42 = vmul.f32 0.70710677, %v9969_v21  ;;  %vm1696_vm13 = vweird.f32 %v9927_v49  ;;  %v3803_v0 = vmul.f32 %v3802_v50, %v8995_v33 }
 0x3a7   : > { %v4775_v14 = vadd.f32 1.0, %v6077_v11  ;;  %vm1701_vm14 = vcmp.eq.f32.partialorder %v1700_v45, 8.507059e+37  ;;  %v1703_v51 = vor.u32 1.1754944e-38, %v1702_v48  ;;  %v3692_v35 = vmul.f32 %v6330_v54, %v9948_v2  ;;  %vm1698_vm15 = vmor %vm1696_vm13, %vm1697_vm12 }
 0x3a8   : > { %v1695_v34 = vadd.f32 %v6328_v52, %v1694_v13  ;;  %vm3696_vm0 = vweird.f32 %v9948_v2  ;;  %v3700_v7 = vand.u32 2147483647, %v9948_v2  ;;  %v3702_v53 = vand.u32 2147483648, %v9948_v2 }
 0x3a9   : > { %v4871_v57 = vmul.f32 %v4775_v14, %v12325_v26  ;;  %v3693_v3 = vsub.f32 1.0, %v3692_v35  ;;  %vm3697_vm1 = vweird.f32 %v6330_v54  ;;  %v1807_v49 = vmul.f32 %v1806_v38, %v9746_v36 }
 0x3aa   : > { %v1699_v60 = vsel %vm1698_vm15, %v6328_v52, %v1695_v34  ;;  %6331 = vrcp.f32 %v9975_v39  ;;  %v3804_v45 = vadd.f32 0.014752088, %v3803_v0  ;;  %v4005_v48 = vmul.f32 %v4004_v1, %v12321_v4  ;;  %vm9996_vm2 = vmor %vm3696_vm0, %vm3697_vm1 }
 0x3ab   : > { %5147 = vmatmul.f32.gmra.mxu0 %v4871_v57  ;;  %v1704_v50 = vsel %vm1701_vm14, %v1703_v51, %v1699_v60  ;;  %v2268_v11 = vmul.f32 %v9978_v42, %v9978_v42  ;;  %v3694_v14 = vmul.f32 %v6330_v54, %v3693_v3  ;;  %v1808_v26 = vadd.f32 0.4994258, %v1807_v49 }
 0x3ac   : > { %v1705_v13 = vmul.f32 %v1704_v50, %v1680_v37  ;;  %v2034_v18 = vmul.f32 %v2033_v32, %v9816_v56  ;;  %v2165_v52 = vmul.f32 %v2164_v46, %v9905_v8  ;;  %v3703_v34 = vor.u32 1.1754944e-38, %v3702_v53 }
 0x3ad   : > { %v3805_v0 = vmul.f32 %v3804_v45, %v8995_v33  ;;  %v3695_v51 = vadd.f32 %v6330_v54, %v3694_v14  ;;  %vm3701_vm3 = vcmp.eq.f32.partialorder %v3700_v7, 8.507059e+37  ;;  %v1809_v37 = vmul.f32 %v1808_v26, %v9746_v36 }
 0x3ae   : > { %v6030_v1 = vclamps-f32 %v1705_v13, 1.0  ;;  %v1934_v35 = vmul.f32 %v9936_v29, %v1933_v63  ;;  %v696_v32 = vmul.f32 0.5, %v9614_v23  ;;  %v4006_v46 = vadd.f32 0.112945676, %v4005_v48 }
 0x3af   : > { %v3806_v57 = vadd.f32 0.112945676, %v3805_v0  ;;  %v10004_v60 = vmin.f32 %v2268_v11, 16.0  ;;  %v3699_v3 = vsel %vm9996_vm2, %v6330_v54, %v3695_v51  ;;  %v10008_v53 = vadd.f32 1.0, %v1809_v37 }
 0x3b0   : > { %v4728_v2 = vadd.f32 1.0, %v6030_v1  ;;  %v10010_v49 = vpop.eup %6331  ;;  %v1918_v7 = vmul.f32 %v1917_v5, %v9687_v19  ;;  %v2166_v50 = vadd.f32 0.112945676, %v2165_v52  ;;  %v3704_v36 = vsel %vm3701_vm3, %v3703_v34, %v3699_v3  ;;  %v12330_v3 = vld [vmem:[#allocation65_spill] sm:$0xff] }
 0x3b1   : > { %v3807_v63 = vmul.f32 %v3806_v57, %v8995_v33  ;;  %v2035_v45 = vadd.f32 0.05243302, %v2034_v18  ;;  %v3705_v48 = vmul.f32 %v3704_v36, %v9297_v15  ;;  %6333 = vrcp.f32 %v10008_v53 }
 0x3b2   : > { %v4824_v23 = vmul.f32 %v4728_v2, %v696_v32  ;;  %v1799_v11 = vadd.f32 1.1283791, %v9953_v59  ;;  %vm1937_vm4 = vweird.f32 %v9936_v29  ;;  %v2150_v54 = vmul.f32 2.1237322e-06, %v9905_v8 }
 0x3b3   : > { %v4007_v13 = vmul.f32 %v4006_v46, %v12321_v4  ;;  %v1935_v19 = vadd.f32 %v9936_v29, %v1934_v35  ;;  %v2052_v5 = vmul.f32 %v10010_v49, %v9975_v39  ;;  %v2281_v18 = vmul.f32 3.8918573e-05, %v10004_v60 }
 0x3b4   : > { %5212 = vmatmul.f32.gmra.mxu1 %v4824_v23  ;;  %v6080_v14 = vclamps-f32 %v3705_v48, 1.0  ;;  %v1919_v15 = vadd.f32 1.1283791, %v1918_v7  ;;  %v1942_v26 = vand.u32 2147483648, %v9897_v40  ;;  %v2167_v59 = vmul.f32 %v2166_v50, %v9905_v8 }
 0x3b5   : > { %v3808_v52 = vadd.f32 0.4994258, %v3807_v63  ;;  %vm1936_vm5 = vweird.f32 %v9897_v40  ;;  %v1940_v38 = vand.u32 2147483647, %v9897_v40  ;;  %v2036_v34 = vmul.f32 %v2035_v45, %v9816_v56 }
 0x3b6   : > { %v4778_v0 = vadd.f32 1.0, %v6080_v14  ;;  %v10031_v1 = vmul.f32 %v9939_v22, %v9939_v22  ;;  %vm10035_vm6 = vmor %vm1936_vm5, %vm1937_vm4  ;;  %v2151_v37 = vadd.f32 0.00028619796, %v2150_v54  ;;  %v4008_v32 = vadd.f32 0.4994258, %v4007_v13 }
 0x3b7   : > { %v3809_v35 = vmul.f32 %v3808_v52, %v8995_v33  ;;  %v6334_v57 = vpop.eup %6333  ;;  %v1939_v40 = vsel %vm10035_vm6, %v9936_v29, %v1935_v19  ;;  %v2053_v46 = vsub.f32 1.0, %v2052_v5  ;;  %v2282_v2 = vadd.f32 0.001143296, %v2281_v18 }
 0x3b8   : > { %v4874_v7 = vmul.f32 %v4778_v0, %v12330_v3  ;;  %v1800_v50 = vmul.f32 %v1799_v11, %v9709_v55  ;;  %v1943_v36 = vor.u32 1.1754944e-38, %v1942_v26  ;;  %v2168_v63 = vadd.f32 0.4994258, %v2167_v59 }
 0x3b9   : > { %v1812_v45 = vmul.f32 %v6334_v57, %v10008_v53  ;;  %v1920_v23 = vmul.f32 %v1919_v15, %v9655_v25  ;;  %vm1941_vm7 = vcmp.eq.f32.partialorder %v1940_v38, 8.507059e+37  ;;  %v2037_v33 = vadd.f32 0.18741608, %v2036_v34 }
 0x3ba   : > { %5150 = vmatmul.f32.gmra.mxu0 %v4874_v7  ;;  %v10047_v48 = vadd.f32 1.0, %v3809_v35  ;;  %v1944_v54 = vsel %vm1941_vm7, %v1943_v36, %v1939_v40  ;;  %v2152_v29 = vmul.f32 %v2151_v37, %v9905_v8  ;;  %v4009_v19 = vmul.f32 %v4008_v32, %v12321_v4 }
 0x3bb   : > { %v1813_v13 = vsub.f32 1.0, %v1812_v45  ;;  %v2054_v5 = vmul.f32 %v10010_v49, %v2053_v46  ;;  %v2283_v55 = vmul.f32 %v2282_v2, %v10004_v60  ;;  %v1822_v11 = vand.u32 2147483648, %v10008_v53 }
 0x3bc   : > { %6335 = vrcp.f32 %v10047_v48  ;;  %v2169_v25 = vmul.f32 %v2168_v63, %v9905_v8  ;;  %vm1817_vm8 = vweird.f32 %v6334_v57  ;;  %v1820_v14 = vand.u32 2147483647, %v10008_v53 }
 0x3bd   : > { %v1814_v18 = vmul.f32 %v6334_v57, %v1813_v13  ;;  %v2038_v15 = vmul.f32 %v2037_v33, %v9816_v56  ;;  %vm2057_vm9 = vweird.f32 %v10010_v49  ;;  %v2060_v4 = vand.u32 2147483647, %v9975_v39 }
 0x3be   : > { %v2062_v26 = vand.u32 2147483648, %v9975_v39  ;;  %v2153_v59 = vadd.f32 0.0036580483, %v2152_v29  ;;  %vm1816_vm10 = vweird.f32 %v10008_v53  ;;  %v10062_v38 = vadd.f32 1.0, %v4009_v19 }
 0x3bf   : > { %v1815_v52 = vadd.f32 %v6334_v57, %v1814_v18  ;;  %v2055_v34 = vadd.f32 %v10010_v49, %v2054_v5  ;;  %v2284_v0 = vadd.f32 0.014752088, %v2283_v55  ;;  %vm1818_vm11 = vmor %vm1816_vm10, %vm1817_vm8  ;;  %v1823_v51 = vor.u32 1.1754944e-38, %v1822_v11 }
 0x3c0   : > { %v3921_v37 = vmul.f32 3.8918573e-05, %v9288_v16  ;;  %v1945_v56 = vmul.f32 %v1944_v54, %v1920_v23  ;;  %v10066_v35 = vadd.f32 1.0, %v2169_v25  ;;  %vm1821_vm12 = vcmp.eq.f32.partialorder %v1820_v14, 8.507059e+37 }
 0x3c1   : > { %v1819_v32 = vsel %vm1818_vm11, %v6334_v57, %v1815_v52  ;;  %v2039_v46 = vadd.f32 1.1283791, %v2038_v15  ;;  %vm2056_vm13 = vweird.f32 %v9975_v39  ;;  %vm10075_vm15 = vcmp.eq.f32.partialorder %v2060_v4, 8.507059e+37 }
 0x3c2   : > { %v6336_v40 = vpop.eup %6335  ;;  %v1824_v2 = vsel %vm1821_vm12, %v1823_v51, %v1819_v32  ;;  %v3922_v53 = vadd.f32 0.001143296, %v3921_v37  ;;  %vm10071_vm14 = vmor %vm2056_vm13, %vm2057_vm9  ;;  %v2063_v36 = vor.u32 1.1754944e-38, %v2062_v26  ;;  %6337 = vrcp.f32 %v10062_v38 }
 0x3c3   : > { %v1825_v63 = vmul.f32 %v1824_v2, %v1800_v50  ;;  %v2059_v39 = vsel %vm10071_vm14, %v10010_v49, %v2055_v34  ;;  %v2154_v57 = vmul.f32 %v2153_v59, %v9905_v8  ;;  %v2285_v45 = vmul.f32 %v2284_v0, %v10004_v60  ;;  %v616_v50 = vpop.f32.mrf.mxu2 }
 0x3c4   : > { %v3812_v23 = vmul.f32 %v6336_v40, %v10047_v48  ;;  %6339 = vrcp.f32 %v10066_v35  ;;  %v3822_v54 = vand.u32 2147483648, %v10047_v48  ;;  %v3923_v29 = vmul.f32 %v3922_v53, %v9288_v16 }
 0x3c5   : > { %v6033_v33 = vclamps-f32 %v1825_v63, 1.0  ;;  %vm3816_vm0 = vweird.f32 %v10047_v48  ;;  %vm3817_vm1 = vweird.f32 %v6336_v40  ;;  %v3820_v49 = vand.u32 2147483647, %v10047_v48 }
 0x3c6   : > { %v3813_v13 = vsub.f32 1.0, %v3812_v23  ;;  %v699_v19 = vmul.f32 0.5, %v9685_v62  ;;  %v6036_v55 = vclamps-f32 %v1945_v56, 1.0  ;;  %v3924_v11 = vadd.f32 0.014752088, %v3923_v29  ;;  %vm10101_vm2 = vmor %vm3816_vm0, %vm3817_vm1 }
 0x3c7   : > { %v4731_v5 = vadd.f32 1.0, %v6033_v33  ;;  %v4278_v25 = vmul.f32 %v9894_v10, %v9571_v41  ;;  %v2064_v18 = vsel %vm10075_vm15, %v2063_v36, %v2059_v39  ;;  %v2286_v14 = vadd.f32 0.112945676, %v2285_v45 }
 0x3c8   : > { %v3814_v15 = vmul.f32 %v6336_v40, %v3813_v13  ;;  %v10096_v4 = vpop.eup %6337  ;;  %v10099_v26 = vadd.f32 %v616_v50, %v8911_v6  ;;  %v3823_v62 = vor.u32 1.1754944e-38, %v3822_v54  ;;  %v3925_v52 = vmul.f32 %v3924_v11, %v9288_v16 }
 0x3c9   : > { %v4827_v59 = vmul.f32 %v4731_v5, %v699_v19  ;;  %v4513_v10 = vadd.f32 0.0036580483, %v9912_v31  ;;  %v2040_v34 = vmul.f32 %v2039_v46, %v9772_v43  ;;  %vm3821_vm3 = vcmp.eq.f32.partialorder %v3820_v49, 8.507059e+37 }
 0x3ca   : > { %v3815_v0 = vadd.f32 %v6336_v40, %v3814_v15  ;;  %v10108_v51 = vpop.eup %6339  ;;  %v4395_v37 = vadd.f32 0.05243302, %v9909_v27  ;;  %v10112_v56 = vmin.f32 %v10031_v1, 16.0  ;;  %v2155_v32 = vadd.f32 0.05243302, %v2154_v57 }
 0x3cb   : > { %5215 = vmatmul.f32.gmra.mxu1 %v4827_v59  ;;  %v4734_v2 = vadd.f32 1.0, %v6036_v55  ;;  %v2065_v53 = vmul.f32 %v2064_v18, %v2040_v34  ;;  %v2287_v3 = vmul.f32 %v2286_v14, %v10004_v60  ;;  %v4012_v43 = vmul.f32 %v10096_v4, %v10062_v38  ;;  %v619_v59 = vpop.f32.mrf.mxu2  ;;  %v12337_v34 = vld [vmem:[#allocation46_spill] sm:$0xff] }
 0x3cc   : > { %v3819_v31 = vsel %vm10101_vm2, %v6336_v40, %v3815_v0  ;;  %v702_v46 = vmul.f32 0.5, %v9639_v44  ;;  %v10121_v7 = vmul.f32 0.70710677, %v10099_v26  ;;  %v3926_v1 = vadd.f32 0.112945676, %v3925_v52 }
 0x3cd   : > { %v3824_v27 = vsel %vm3821_vm3, %v3823_v62, %v3819_v31  ;;  %v4514_v36 = vmul.f32 %v4513_v10, %v9827_v17  ;;  %v4630_v63 = vmul.f32 2.1237322e-06, %v10112_v56  ;;  %v2270_v39 = vmul.f32 2.1237322e-06, %v10004_v60 }
 0x3ce   : > { %v3825_v57 = vmul.f32 %v3824_v27, %v9559_v47  ;;  %v2156_v40 = vmul.f32 %v2155_v32, %v9905_v8  ;;  %v2172_v45 = vmul.f32 %v10108_v51, %v10066_v35  ;;  %v4830_v23 = vmul.f32 %v4734_v2, %v702_v46  ;;  %v12338_v2 = vld [vmem:[#allocation53_spill] sm:$0xff] }
 0x3cf   : > { %v3927_v44 = vmul.f32 %v3926_v1, %v9288_v16  ;;  %v2288_v33 = vadd.f32 0.4994258, %v2287_v3  ;;  %v6039_v29 = vclamps-f32 %v2065_v53, 1.0  ;;  %v4013_v50 = vsub.f32 1.0, %v4012_v43  ;;  %v12339_v3 = vld [vmem:[#allocation36_spill] sm:$0xff]  ;;  %v10152_v43 = vpop.f32.mrf.mxu0 }
 0x3d0   : > { %v6083_v54 = vclamps-f32 %v3825_v57, 1.0  ;;  %v4279_v13 = vadd.f32 1.1283791, %v4278_v25  ;;  %v10132_v49 = vmul.f32 0.5, %v9625_v58  ;;  %v2388_v19 = vmul.f32 %v10121_v7, %v10121_v7 }
 0x3d1   : > { %v3928_v47 = vadd.f32 0.4994258, %v3927_v44  ;;  %v4396_v5 = vmul.f32 %v4395_v37, %v9712_v12  ;;  %v4515_v55 = vadd.f32 0.05243302, %v4514_v36  ;;  %v2271_v11 = vadd.f32 0.00028619796, %v2270_v39 }
 0x3d2   : > { %v4781_v18 = vadd.f32 1.0, %v6083_v54  ;;  %v4631_v14 = vadd.f32 0.00028619796, %v4630_v63  ;;  %v2157_v15 = vadd.f32 0.18741608, %v2156_v40  ;;  %v4737_v62 = vadd.f32 1.0, %v6039_v29 }
 0x3d3   : > { %5218 = vmatmul.f32.gmra.mxu1 %v4830_v23  ;;  %v3929_v48 = vmul.f32 %v3928_v47, %v9288_v16  ;;  %v2173_v25 = vsub.f32 1.0, %v2172_v45  ;;  %v2289_v58 = vmul.f32 %v2288_v33, %v10004_v60  ;;  %v4014_v10 = vmul.f32 %v10096_v4, %v4013_v50 }
 0x3d4   : > { %v4877_v52 = vmul.f32 %v4781_v18, %v9371_v24  ;;  %v705_v0 = vmul.f32 0.5, %v12337_v34  ;;  %v10142_v37 = vmin.f32 %v2388_v19, 16.0  ;;  %v4121_v53 = vmul.f32 3.8918573e-05, %v12338_v2  ;;  %v12343_v34 = vld [vmem:[#allocation54_spill] sm:$0xff]  ;;  %v12350_v19 = vld [vmem:[#allocation13_spill] sm:$0xff] }
 0x3d5   : > { %v10144_v32 = vadd.f32 1.0, %v3929_v48  ;;  %v10148_v31 = vmul.f32 %v4279_v13, %v12339_v3  ;;  %v10150_v16 = vadd.f32 0.18741608, %v4396_v5  ;;  %v2272_v46 = vmul.f32 %v2271_v11, %v10004_v60 }
 0x3d6   : > { %v10156_v24 = vadd.f32 %v619_v59, %v8911_v6  ;;  %5153 = vmatmul.f32.gmra.mxu0 %v4877_v52  ;;  %v10159_v27 = vmul.f32 %v4515_v55, %v9827_v17  ;;  %v2158_v1 = vmul.f32 %v2157_v15, %v9905_v8  ;;  %v4833_v36 = vmul.f32 %v4737_v62, %v705_v0 }
 0x3d7   : > { %6341 = vrcp.f32 %v10144_v32  ;;  %v2174_v63 = vmul.f32 %v10108_v51, %v2173_v25  ;;  %v10164_v39 = vadd.f32 1.0, %v2289_v58  ;;  %v4015_v57 = vadd.f32 %v10096_v4, %v4014_v10 }
 0x3d8   : > { %vm4017_vm4 = vweird.f32 %v10096_v4  ;;  %v10169_v40 = vmul.f32 %v4631_v14, %v10112_v56  ;;  %v2401_v45 = vmul.f32 3.8918573e-05, %v10142_v37  ;;  %v4022_v23 = vand.u32 2147483648, %v10062_v38  ;;  %v12342_v14 = vld [vmem:[#allocation58_spill] sm:$0xff] }
 0x3d9   : > { %v4122_v44 = vadd.f32 0.001143296, %v4121_v53  ;;  %v2273_v8 = vadd.f32 0.0036580483, %v2272_v46  ;;  %v10174_v33 = vmul.f32 0.70710677, %v10156_v24  ;;  %vm4016_vm5 = vweird.f32 %v10062_v38 }
 0x3da   : > { %v4020_v54 = vand.u32 2147483647, %v10062_v38  ;;  %v10178_v29 = vadd.f32 1.1283791, %v2158_v1  ;;  %vm2176_vm6 = vweird.f32 %v10066_v35  ;;  %v2180_v50 = vand.u32 2147483647, %v10066_v35  ;;  %vm10183_vm7 = vmor %vm4016_vm5, %vm4017_vm4 }
 0x3db   : > { %v2182_v13 = vand.u32 2147483648, %v10066_v35  ;;  %5221 = vmatmul.f32.gmra.mxu1 %v4833_v36  ;;  %v2175_v47 = vadd.f32 %v10108_v51, %v2174_v63  ;;  %vm2177_vm8 = vweird.f32 %v10108_v51  ;;  %6343 = vrcp.f32 %v10164_v39 }
 0x3dc   : > { %v4019_v38 = vsel %vm10183_vm7, %v10096_v4, %v4015_v57  ;;  %v2402_v55 = vadd.f32 0.001143296, %v2401_v45  ;;  %v4023_v11 = vor.u32 1.1754944e-38, %v4022_v23  ;;  %v4123_v18 = vmul.f32 %v4122_v44, %v12338_v2  ;;  %vm10207_vm12 = vmor %vm2176_vm6, %vm2177_vm8 }
 0x3dd   : > { %v6342_v5 = vpop.eup %6341  ;;  %v4241_v15 = vmul.f32 3.8918573e-05, %v12342_v14  ;;  %v2274_v59 = vmul.f32 %v2273_v8, %v10004_v60  ;;  %v2508_v48 = vmul.f32 %v10174_v33, %v10174_v33  ;;  %vm4021_vm9 = vcmp.eq.f32.partialorder %v4020_v54, 8.507059e+37 }
 0x3de   : > { %v3932_v62 = vmul.f32 %v6342_v5, %v10144_v32  ;;  %vm3936_vm10 = vweird.f32 %v10144_v32  ;;  %v3942_v25 = vand.u32 2147483648, %v10144_v32  ;;  %v4024_v4 = vsel %vm4021_vm9, %v4023_v11, %v4019_v38 }
 0x3df   : > { %v4124_v58 = vadd.f32 0.014752088, %v4123_v18  ;;  %vm3937_vm11 = vweird.f32 %v6342_v5  ;;  %v3940_v10 = vand.u32 2147483647, %v10144_v32  ;;  %v4025_v0 = vmul.f32 %v4024_v4, %v12343_v34 }
 0x3e0   : > { %v3933_v52 = vsub.f32 1.0, %v3932_v62  ;;  %vm10211_vm13 = vcmp.eq.f32.partialorder %v2180_v50, 8.507059e+37  ;;  %v2403_v46 = vmul.f32 %v2402_v55, %v10142_v37  ;;  %v4242_v36 = vadd.f32 0.001143296, %v4241_v15  ;;  %vm10226_vm14 = vmor %vm3936_vm10, %vm3937_vm11  ;;  %v12351_v62 = vld [vmem:[#allocation48_spill] sm:$0xff] }
 0x3e1   : > { %v4125_v1 = vmul.f32 %v4124_v58, %v12338_v2  ;;  %v10217_v63 = vpop.eup %6343  ;;  %v2179_v57 = vsel %vm10207_vm12, %v10108_v51, %v2175_v47  ;;  %v2183_v35 = vor.u32 1.1754944e-38, %v2182_v13  ;;  %v2275_v45 = vadd.f32 0.05243302, %v2274_v59 }
 0x3e2   : > { %v3934_v23 = vmul.f32 %v6342_v5, %v3933_v52  ;;  %v10222_v44 = vmin.f32 %v2508_v48, 16.0  ;;  %v3943_v54 = vor.u32 1.1754944e-38, %v3942_v25  ;;  %v6088_v50 = vclamps-f32 %v4025_v0, 1.0  ;;  %v12352_v52 = vld [vmem:[#allocation24_spill] sm:$0xff] }
 0x3e3   : > { %v4041_v38 = vmul.f32 3.8918573e-05, %v12350_v19  ;;  %v2390_v55 = vmul.f32 2.1237322e-06, %v10142_v37  ;;  %vm3941_vm15 = vcmp.eq.f32.partialorder %v3940_v10, 8.507059e+37  ;;  %v4243_v15 = vmul.f32 %v4242_v36, %v12342_v14 }
 0x3e4   : > { %v3935_v11 = vadd.f32 %v6342_v5, %v3934_v23  ;;  %v4126_v51 = vadd.f32 0.112945676, %v4125_v1  ;;  %v2404_v13 = vadd.f32 0.014752088, %v2403_v46  ;;  %v4786_v47 = vadd.f32 1.0, %v6088_v50  ;;  %v12353_v46 = vld [vmem:[#allocation18_spill] sm:$0xff]  ;;  %v10244_v23 = vpop.f32.mrf.mxu3 }
 0x3e5   : > { %v4042_v18 = vadd.f32 0.001143296, %v4041_v38  ;;  %v2292_v32 = vmul.f32 %v10217_v63, %v10164_v39  ;;  %v4361_v25 = vmul.f32 3.8918573e-05, %v12351_v62  ;;  %v2521_v4 = vmul.f32 3.8918573e-05, %v10222_v44 }
 0x3e6   : > { %v3939_v59 = vsel %vm10226_vm14, %v6342_v5, %v3935_v11  ;;  %v4127_v48 = vmul.f32 %v4126_v51, %v12338_v2  ;;  %v4882_v10 = vmul.f32 %v4786_v47, %v12352_v52  ;;  %v2276_v0 = vmul.f32 %v2275_v45, %v10004_v60 }
 0x3e7   : > { %v3944_v58 = vsel %vm3941_vm15, %v3943_v54, %v3939_v59  ;;  %v4043_v34 = vmul.f32 %v4042_v18, %v12350_v19  ;;  %v2391_v53 = vadd.f32 0.00028619796, %v2390_v55  ;;  %v2184_v5 = vsel %vm10211_vm13, %v2183_v35, %v2179_v57 }
 0x3e8   : > { %v3945_v1 = vmul.f32 %v3944_v58, %v12353_v46  ;;  %v4128_v36 = vadd.f32 0.4994258, %v4127_v48  ;;  %v2405_v8 = vmul.f32 %v2404_v13, %v10142_v37  ;;  %5046 = vmatmul.f32.gmra.mxu3 %v4882_v10  ;;  %v4244_v54 = vadd.f32 0.014752088, %v4243_v15 }
 0x3e9   : > { %v4044_v50 = vadd.f32 0.014752088, %v4043_v34  ;;  %v2293_v38 = vsub.f32 1.0, %v2292_v32  ;;  %v4362_v47 = vadd.f32 0.001143296, %v4361_v25  ;;  %v2160_v45 = vmul.f32 %v10178_v29, %v9872_v9  ;;  %v12354_v25 = vld [vmem:[#allocation10_spill] sm:$0xff] }
 0x3ea   : > { %v6086_v11 = vclamps-f32 %v3945_v1, 1.0  ;;  %v4129_v51 = vmul.f32 %v4128_v36, %v12338_v2  ;;  %v2522_v55 = vadd.f32 0.001143296, %v2521_v4  ;;  %v4245_v59 = vmul.f32 %v4244_v54, %v12342_v14  ;;  %v12355_v4 = vld [vmem:[#allocation17_spill] sm:$0xff]  ;;  %v10270_v1 = vpop.f32.mrf.mxu0 }
 0x3eb   : > { %v4045_v18 = vmul.f32 %v4044_v50, %v12350_v19  ;;  %v2277_v3 = vadd.f32 0.18741608, %v2276_v0  ;;  %v2392_v57 = vmul.f32 %v2391_v53, %v10142_v37  ;;  %v2185_v15 = vmul.f32 %v2184_v5, %v2160_v45 }
 0x3ec   : > { %v4784_v35 = vadd.f32 1.0, %v6086_v11  ;;  %v10255_v13 = vadd.f32 1.0, %v4129_v51  ;;  %v2406_v32 = vadd.f32 0.112945676, %v2405_v8  ;;  %v4246_v58 = vadd.f32 0.112945676, %v4245_v59 }
 0x3ed   : > { %v4046_v48 = vadd.f32 0.112945676, %v4045_v18  ;;  %v2294_v2 = vmul.f32 %v10217_v63, %v2293_v38  ;;  %v4363_v9 = vmul.f32 %v4362_v47, %v12351_v62  ;;  %v4398_v29 = vmul.f32 %v10150_v16, %v9712_v12 }
 0x3ee   : > { %v4880_v52 = vmul.f32 %v4784_v35, %v12354_v25  ;;  %6345 = vrcp.f32 %v10255_v13  ;;  %v10264_v10 = vmul.f32 0.5, %v12355_v4  ;;  %v2523_v34 = vmul.f32 %v2522_v55, %v10222_v44 }
 0x3ef   : > { %v4047_v0 = vmul.f32 %v4046_v48, %v12350_v19  ;;  %v4517_v53 = vadd.f32 0.18741608, %v10159_v27  ;;  %v4633_v46 = vadd.f32 0.0036580483, %v10169_v40  ;;  %v2393_v36 = vadd.f32 0.0036580483, %v2392_v57 }
 0x3f0   : > { %5156 = vmatmul.f32.gmra.mxu0 %v4880_v52  ;;  %v4247_v5 = vmul.f32 %v4246_v58, %v12342_v14  ;;  %v708_v8 = vmul.f32 0.5, %v9864_v28  ;;  %v2278_v16 = vmul.f32 %v2277_v3, %v10004_v60  ;;  %vm2297_vm0 = vweird.f32 %v10217_v63 }
 0x3f1   : > { %v2407_v50 = vmul.f32 %v2406_v32, %v10142_v37  ;;  %v2295_v54 = vadd.f32 %v10217_v63, %v2294_v2  ;;  %v4048_v38 = vadd.f32 0.4994258, %v4047_v0  ;;  %v6042_v27 = vclamps-f32 %v2185_v15, 1.0 }
 0x3f2   : > { %v4364_v11 = vadd.f32 0.014752088, %v4363_v9  ;;  %vm2296_vm1 = vweird.f32 %v10164_v39  ;;  %v2302_v40 = vand.u32 2147483648, %v10164_v39  ;;  %v2524_v51 = vadd.f32 0.014752088, %v2523_v34 }
 0x3f3   : > { %v4248_v47 = vadd.f32 0.4994258, %v4247_v5  ;;  %v2300_v28 = vand.u32 2147483647, %v10164_v39  ;;  %v2394_v60 = vmul.f32 %v2393_v36, %v10142_v37  ;;  %v4049_v55 = vmul.f32 %v4048_v38, %v12350_v19  ;;  %vm10285_vm2 = vmor %vm2296_vm1, %vm2297_vm0 }
 0x3f4   : > { %v6346_v45 = vpop.eup %6345  ;;  %v4740_v18 = vadd.f32 1.0, %v6042_v27  ;;  %v2279_v59 = vadd.f32 1.1283791, %v2278_v16  ;;  %v2408_v57 = vadd.f32 0.4994258, %v2407_v50  ;;  %v2299_v39 = vsel %vm10285_vm2, %v10217_v63, %v2295_v54 }
 0x3f5   : > { %v4132_v35 = vmul.f32 %v6346_v45, %v10255_v13  ;;  %v4249_v15 = vmul.f32 %v4248_v47, %v12342_v14  ;;  %v10294_v32 = vadd.f32 1.0, %v4049_v55  ;;  %v4365_v48 = vmul.f32 %v4364_v11, %v12351_v62  ;;  %v622_v14 = vpop.f32.mrf.mxu2 }
 0x3f6   : > { %v4836_v19 = vmul.f32 %v4740_v18, %v708_v8  ;;  %v2303_v58 = vor.u32 1.1754944e-38, %v2302_v40  ;;  %v2525_v2 = vmul.f32 %v2524_v51, %v10222_v44  ;;  %v4634_v9 = vmul.f32 %v4633_v46, %v10112_v56 }
 0x3f7   : > { %v4133_v25 = vsub.f32 1.0, %v4132_v35  ;;  %v10298_v52 = vadd.f32 1.0, %v4249_v15  ;;  %vm2301_vm3 = vcmp.eq.f32.partialorder %v2300_v28, 8.507059e+37  ;;  %v2395_v4 = vadd.f32 0.05243302, %v2394_v60  ;;  %v12358_v15 = vld [vmem:[#allocation14_spill] sm:$0xff] }
 0x3f8   : > { %6347 = vrcp.f32 %v10294_v32  ;;  %5224 = vmatmul.f32.gmra.mxu1 %v4836_v19  ;;  %v2304_v63 = vsel %vm2301_vm3, %v2303_v58, %v2299_v39  ;;  %v2409_v34 = vmul.f32 %v2408_v57, %v10142_v37  ;;  %v2510_v0 = vmul.f32 2.1237322e-06, %v10222_v44  ;;  %v12359_v19 = vld [vmem:[#allocation64_spill] sm:$0xff] }
 0x3f9   : > { %v4134_v36 = vmul.f32 %v6346_v45, %v4133_v25  ;;  %vm4137_vm4 = vweird.f32 %v6346_v45  ;;  %v4142_v5 = vand.u32 2147483648, %v10255_v13  ;;  %6349 = vrcp.f32 %v10298_v52 }
 0x3fa   : > { %v4366_v8 = vadd.f32 0.112945676, %v4365_v48  ;;  %v2280_v46 = vmul.f32 %v2279_v59, %v9978_v42  ;;  %v2526_v16 = vadd.f32 0.112945676, %v2525_v2  ;;  %v10308_v50 = vadd.f32 %v622_v14, %v8911_v6  ;;  %v12360_v2 = vld [vmem:[#allocation60_spill] sm:$0xff] }
 0x3fb   : > { %v4140_v54 = vand.u32 2147483647, %v10255_v13  ;;  %v10311_v38 = vadd.f32 1.1283791, %v4398_v29  ;;  %v10314_v27 = vmul.f32 %v4517_v53, %v9827_v17  ;;  %v4135_v11 = vadd.f32 %v6346_v45, %v4134_v36 }
 0x3fc   : > { %vm4136_vm5 = vweird.f32 %v10255_v13  ;;  %v10317_v40 = vadd.f32 0.05243302, %v4634_v9  ;;  %v10319_v51 = vmul.f32 %v2304_v63, %v2280_v46  ;;  %v2396_v42 = vmul.f32 %v2395_v4, %v10142_v37 }
 0x3fd   : > { %v10322_v47 = vadd.f32 1.0, %v2409_v34  ;;  %vm4138_vm6 = vmor %vm4136_vm5, %vm4137_vm4  ;;  %v2511_v60 = vadd.f32 0.00028619796, %v2510_v0  ;;  %v4143_v55 = vor.u32 1.1754944e-38, %v4142_v5  ;;  %v4367_v53 = vmul.f32 %v4366_v8, %v12351_v62 }
 0x3fe   : > { %v6348_v28 = vpop.eup %6347  ;;  %v4139_v29 = vsel %vm4138_vm6, %v6346_v45, %v4135_v11  ;;  %v2527_v18 = vmul.f32 %v2526_v16, %v10222_v44  ;;  %v10328_v13 = vmul.f32 0.70710677, %v10308_v50  ;;  %vm4141_vm7 = vcmp.eq.f32.partialorder %v4140_v54, 8.507059e+37 }
 0x3ff   : > { %v4052_v59 = vmul.f32 %v6348_v28, %v10294_v32  ;;  %v6350_v3 = vpop.eup %6349  ;;  %v4062_v57 = vand.u32 2147483648, %v10294_v32  ;;  %v4144_v35 = vsel %vm4141_vm7, %v4143_v55, %v4139_v29  ;;  %v4161_v39 = vmul.f32 3.8918573e-05, %v12358_v15 }
 0x400   : > { %v4481_v48 = vmul.f32 3.8918573e-05, %v12359_v19  ;;  %vm4056_vm8 = vweird.f32 %v10294_v32  ;;  %vm4057_vm9 = vweird.f32 %v6348_v28  ;;  %v4060_v58 = vand.u32 2147483647, %v10294_v32 }
 0x401   : > { %v4053_v45 = vsub.f32 1.0, %v4052_v59  ;;  %6351 = vrcp.f32 %v10322_v47  ;;  %v4145_v25 = vmul.f32 %v4144_v35, %v12360_v2  ;;  %v4162_v9 = vadd.f32 0.001143296, %v4161_v39  ;;  %vm10342_vm10 = vmor %vm4056_vm8, %vm4057_vm9 }
 0x402   : > { %v4368_v4 = vadd.f32 0.4994258, %v4367_v53  ;;  %v2512_v14 = vmul.f32 %v2511_v60, %v10222_v44  ;;  %v2528_v63 = vadd.f32 0.4994258, %v2527_v18  ;;  %v4252_v0 = vmul.f32 %v6350_v3, %v10298_v52 }
 0x403   : > { %v4054_v34 = vmul.f32 %v6348_v28, %v4053_v45  ;;  %v2628_v36 = vmul.f32 %v10328_v13, %v10328_v13  ;;  %v4063_v32 = vor.u32 1.1754944e-38, %v4062_v57  ;;  %v6091_v8 = vclamps-f32 %v4145_v25, 1.0  ;;  %v12363_v45 = vld [vmem:[#allocation56_spill] sm:$0xff] }
 0x404   : > { %v4163_v46 = vmul.f32 %v4162_v9, %v12358_v15  ;;  %vm4061_vm11 = vcmp.eq.f32.partialorder %v4060_v58, 8.507059e+37  ;;  %v4253_v54 = vsub.f32 1.0, %v4252_v0  ;;  %v4482_v11 = vadd.f32 0.001143296, %v4481_v48 }
 0x405   : > { %v4055_v16 = vadd.f32 %v6348_v28, %v4054_v34  ;;  %v4789_v60 = vadd.f32 1.0, %v6091_v8  ;;  %v4262_v55 = vand.u32 2147483648, %v10298_v52  ;;  %v4369_v53 = vmul.f32 %v4368_v4, %v12351_v62 }
 0x406   : > { %v4164_v29 = vadd.f32 0.014752088, %v4163_v46  ;;  %v4254_v59 = vmul.f32 %v6350_v3, %v4253_v54  ;;  %vm4257_vm12 = vweird.f32 %v6350_v3  ;;  %v4260_v57 = vand.u32 2147483647, %v10298_v52 }
 0x407   : > { %v4059_v18 = vsel %vm10342_vm10, %v6348_v28, %v4055_v16  ;;  %v10352_v35 = vpop.eup %6351  ;;  %v4885_v58 = vmul.f32 %v4789_v60, %v12363_v45  ;;  %v10356_v2 = vadd.f32 1.0, %v4369_v53  ;;  %vm4256_vm13 = vweird.f32 %v10298_v52  ;;  %v10361_v28 = vpop.f32.mrf.mxu3 }
 0x408   : > { %v4064_v39 = vsel %vm4061_vm11, %v4063_v32, %v4059_v18  ;;  %v4165_v48 = vmul.f32 %v4164_v29, %v12358_v15  ;;  %v4255_v9 = vadd.f32 %v6350_v3, %v4254_v59  ;;  %v4483_v62 = vmul.f32 %v4482_v11, %v12359_v19  ;;  %vm4258_vm14 = vmor %vm4256_vm13, %vm4257_vm12 }
 0x409   : > { %v4065_v25 = vmul.f32 %v4064_v39, %v9891_v30  ;;  %v10363_v4 = vmin.f32 %v2628_v36, 16.0  ;;  %5049 = vmatmul.f32.gmra.mxu3 %v4885_v58  ;;  %v4263_v0 = vor.u32 1.1754944e-38, %v4262_v55  ;;  %6353 = vrcp.f32 %v10356_v2  ;;  %v12364_v55 = vld [vmem:[#allocation62_spill] sm:$0xff] }
 0x40a   : > { %v4166_v34 = vadd.f32 0.112945676, %v4165_v48  ;;  %v2397_v5 = vadd.f32 0.18741608, %v2396_v42  ;;  %v4259_v8 = vsel %vm4258_vm14, %v6350_v3, %v4255_v9  ;;  %vm4261_vm15 = vcmp.eq.f32.partialorder %v4260_v57, 8.507059e+37 }
 0x40b   : > { %v6089_v32 = vclamps-f32 %v4065_v25, 1.0  ;;  %v10368_v30 = vadd.f32 1.1283791, %v10314_v27  ;;  %v2412_v52 = vmul.f32 %v10352_v35, %v10322_v47  ;;  %v4264_v46 = vsel %vm4261_vm15, %v4263_v0, %v4259_v8  ;;  %v10386_v25 = vpop.f32.mrf.mxu0 }
 0x40c   : > { %v4167_v36 = vmul.f32 %v4166_v34, %v12358_v15  ;;  %v2513_v16 = vadd.f32 0.0036580483, %v2512_v14  ;;  %v6045_v11 = vclamps-f32 %v10319_v51, 1.0  ;;  %v4484_v60 = vadd.f32 0.014752088, %v4483_v62  ;;  %v12365_v14 = vld [vmem:[#allocation15_spill] sm:$0xff] }
 0x40d   : > { %v4787_v54 = vadd.f32 1.0, %v6089_v32  ;;  %v2529_v29 = vmul.f32 %v2528_v63, %v10222_v44  ;;  %v2641_v42 = vmul.f32 3.8918573e-05, %v10363_v4  ;;  %v4265_v53 = vmul.f32 %v4264_v46, %v12364_v55  ;;  %v625_v63 = vpop.f32.mrf.mxu2 }
 0x40e   : > { %v4168_v3 = vadd.f32 0.4994258, %v4167_v36  ;;  %v10379_v27 = vmul.f32 %v10317_v40, %v10112_v56  ;;  %v711_v18 = vmul.f32 0.5, %v9969_v21  ;;  %v2398_v59 = vmul.f32 %v2397_v5, %v10142_v37 }
 0x40f   : > { %v4883_v57 = vmul.f32 %v4787_v54, %v12365_v14  ;;  %v6354_v39 = vpop.eup %6353  ;;  %v2413_v51 = vsub.f32 1.0, %v2412_v52  ;;  %v2420_v45 = vand.u32 2147483647, %v10322_v47  ;;  %v4743_v48 = vadd.f32 1.0, %v6045_v11  ;;  %v12367_v11 = vld [vmem:[#allocation47_spill] sm:$0xff] }
 0x410   : > { %v4169_v58 = vmul.f32 %v4168_v3, %v12358_v15  ;;  %v2514_v9 = vmul.f32 %v2513_v16, %v10222_v44  ;;  %v6094_v40 = vclamps-f32 %v4265_v53, 1.0  ;;  %v4372_v21 = vmul.f32 %v6354_v39, %v10356_v2  ;;  %v12366_v16 = vld [vmem:[#allocation5_spill] sm:$0xff] }
 0x411   : > { %5159 = vmatmul.f32.gmra.mxu0 %v4883_v57  ;;  %v4485_v37 = vmul.f32 %v4484_v60, %v12359_v19  ;;  %v10391_v62 = vadd.f32 1.0, %v2529_v29  ;;  %v2642_v34 = vadd.f32 0.001143296, %v2641_v42  ;;  %v4839_v5 = vmul.f32 %v4743_v48, %v711_v18  ;;  %v10407_v18 = vpop.f32.mrf.mxu3 }
 0x412   : > { %v10393_v0 = vadd.f32 1.0, %v4169_v58  ;;  %v2422_v32 = vand.u32 2147483648, %v10322_v47  ;;  %v10397_v15 = vadd.f32 %v625_v63, %v8911_v6  ;;  %v4792_v8 = vadd.f32 1.0, %v6094_v40 }
 0x413   : > { %v4373_v52 = vsub.f32 1.0, %v4372_v21  ;;  %5227 = vmatmul.f32.gmra.mxu1 %v4839_v5  ;;  %v4380_v36 = vand.u32 2147483647, %v10356_v2  ;;  %v4382_v46 = vand.u32 2147483648, %v10356_v2  ;;  %v4601_v54 = vmul.f32 3.8918573e-05, %v12366_v16 }
 0x414   : > { %6355 = vrcp.f32 %v10393_v0  ;;  %v4888_v60 = vmul.f32 %v4792_v8, %v12367_v11  ;;  %vm4377_vm0 = vweird.f32 %v6354_v39  ;;  %v4486_v42 = vadd.f32 0.112945676, %v4485_v37 }
 0x415   : > { %v4374_v29 = vmul.f32 %v6354_v39, %v4373_v52  ;;  %v2414_v3 = vmul.f32 %v10352_v35, %v2413_v51  ;;  %v2515_v55 = vadd.f32 0.05243302, %v2514_v9  ;;  %6357 = vrcp.f32 %v10391_v62 }
 0x416   : > { %v2643_v53 = vmul.f32 %v2642_v34, %v10363_v4  ;;  %v10410_v14 = vmul.f32 0.70710677, %v10397_v15  ;;  %5052 = vmatmul.f32.gmra.mxu3 %v4888_v60  ;;  %vm4376_vm1 = vweird.f32 %v10356_v2  ;;  %v4487_v63 = vmul.f32 %v4486_v42, %v12359_v19 }
 0x417   : > { %v4375_v57 = vadd.f32 %v6354_v39, %v4374_v29  ;;  %v2399_v58 = vadd.f32 1.1283791, %v2398_v59  ;;  %vm2416_vm2 = vweird.f32 %v10322_v47  ;;  %vm4378_vm3 = vmor %vm4376_vm1, %vm4377_vm0  ;;  %v4383_v51 = vor.u32 1.1754944e-38, %v4382_v46 }
 0x418   : > { %v4602_v48 = vadd.f32 0.001143296, %v4601_v54  ;;  %vm10415_vm4 = vcmp.eq.f32.partialorder %v2420_v45, 8.507059e+37  ;;  %v2423_v40 = vor.u32 1.1754944e-38, %v2422_v32  ;;  %vm4381_vm5 = vcmp.eq.f32.partialorder %v4380_v36, 8.507059e+37  ;;  %v12370_v36 = vld [vmem:[#allocation6_spill] sm:$0xff] }
 0x419   : > { %v4379_v21 = vsel %vm4378_vm3, %v6354_v39, %v4375_v57  ;;  %v4488_v37 = vadd.f32 0.4994258, %v4487_v63  ;;  %v2415_v5 = vadd.f32 %v10352_v35, %v2414_v3  ;;  %vm2417_vm6 = vweird.f32 %v10352_v35 }
 0x41a   : > { %v6356_v34 = vpop.eup %6355  ;;  %v2516_v2 = vmul.f32 %v2515_v55, %v10222_v44  ;;  %v4384_v59 = vsel %vm4381_vm5, %v4383_v51, %v4379_v21  ;;  %v2644_v8 = vadd.f32 0.014752088, %v2643_v53  ;;  %v2748_v52 = vmul.f32 %v10410_v14, %v10410_v14  ;;  %vm10434_vm7 = vmor %vm2416_vm2, %vm2417_vm6  ;;  %v628_v21 = vpop.f32.mrf.mxu2 }
 0x41b   : > { %v4172_v45 = vmul.f32 %v6356_v34, %v10393_v0  ;;  %v4182_v46 = vand.u32 2147483648, %v10393_v0  ;;  %v10426_v32 = vpop.eup %6357  ;;  %v4281_v39 = vmul.f32 3.8918573e-05, %v9571_v41  ;;  %v4385_v54 = vmul.f32 %v4384_v59, %v12370_v36 }
 0x41c   : > { %v4489_v11 = vmul.f32 %v4488_v37, %v12359_v19  ;;  %v4603_v60 = vmul.f32 %v4602_v48, %v12366_v16  ;;  %vm4176_vm8 = vweird.f32 %v10393_v0  ;;  %vm4177_vm9 = vweird.f32 %v6356_v34 }
 0x41d   : > { %v4173_v42 = vsub.f32 1.0, %v4172_v45  ;;  %v4180_v3 = vand.u32 2147483647, %v10393_v0  ;;  %v2419_v55 = vsel %vm10434_vm7, %v10352_v35, %v2415_v5  ;;  %v4282_v53 = vadd.f32 0.001143296, %v4281_v39  ;;  %vm10448_vm10 = vmor %vm4176_vm8, %vm4177_vm9 }
 0x41e   : > { %v6097_v19 = vclamps-f32 %v4385_v54, 1.0  ;;  %v10443_v57 = vadd.f32 1.0, %v4489_v11  ;;  %v2517_v63 = vadd.f32 0.18741608, %v2516_v2  ;;  %v2532_v47 = vmul.f32 %v10426_v32, %v10391_v62  ;;  %v12375_v54 = vld [vmem:[#allocation63_spill] sm:$0xff] }
 0x41f   : > { %v2645_v51 = vmul.f32 %v2644_v8, %v10363_v4  ;;  %v4174_v48 = vmul.f32 %v6356_v34, %v4173_v42  ;;  %v4183_v0 = vor.u32 1.1754944e-38, %v4182_v46  ;;  %v4283_v59 = vmul.f32 %v4282_v53, %v9571_v41 }
 0x420   : > { %v4795_v35 = vadd.f32 1.0, %v6097_v19  ;;  %v4604_v5 = vadd.f32 0.014752088, %v4603_v60  ;;  %v10453_v45 = vmin.f32 %v2748_v52, 16.0  ;;  %vm4181_vm11 = vcmp.eq.f32.partialorder %v4180_v3, 8.507059e+37  ;;  %v10466_v60 = vpop.f32.mrf.mxu3 }
 0x421   : > { %v4175_v39 = vadd.f32 %v6356_v34, %v4174_v48  ;;  %6359 = vrcp.f32 %v10443_v57  ;;  %v2400_v2 = vmul.f32 %v2399_v58, %v10121_v7  ;;  %v2424_v8 = vsel %vm10415_vm4, %v2423_v40, %v2419_v55 }
 0x422   : > { %v4284_v36 = vadd.f32 0.014752088, %v4283_v59  ;;  %v4891_v11 = vmul.f32 %v4795_v35, %v12375_v54  ;;  %v2533_v29 = vsub.f32 1.0, %v2532_v47  ;;  %v2630_v46 = vmul.f32 2.1237322e-06, %v10363_v4  ;;  %v12376_v47 = vld [vmem:[#allocation9_spill] sm:$0xff] }
 0x423   : > { %v10462_v42 = vadd.f32 %v628_v21, %v8911_v6  ;;  %v4179_v52 = vsel %vm10448_vm10, %v6356_v34, %v4175_v39  ;;  %v2646_v3 = vadd.f32 0.112945676, %v2645_v51  ;;  %v4605_v58 = vmul.f32 %v4604_v5, %v12366_v16 }
 0x424   : > { %v4184_v53 = vsel %vm4181_vm11, %v4183_v0, %v4179_v52  ;;  %v4285_v7 = vmul.f32 %v4284_v36, %v9571_v41  ;;  %5055 = vmatmul.f32.gmra.mxu3 %v4891_v11  ;;  %v2425_v9 = vmul.f32 %v2424_v8, %v2400_v2  ;;  %v2518_v40 = vmul.f32 %v2517_v63, %v10222_v44 }
 0x425   : > { %v2761_v55 = vmul.f32 3.8918573e-05, %v10453_v45  ;;  %v4185_v19 = vmul.f32 %v4184_v53, %v9903_v20  ;;  %v10475_v48 = vmul.f32 %v10311_v38, %v12376_v47  ;;  %v10478_v34 = vadd.f32 0.18741608, %v10379_v27 }
 0x426   : > { %v4286_v51 = vadd.f32 0.112945676, %v4285_v7  ;;  %v4606_v21 = vadd.f32 0.112945676, %v4605_v58  ;;  %v2534_v0 = vmul.f32 %v10426_v32, %v2533_v29  ;;  %v2631_v59 = vadd.f32 0.00028619796, %v2630_v46 }
 0x427   : > { %v6360_v37 = vpop.eup %6359  ;;  %v10482_v35 = vmul.f32 0.70710677, %v10462_v42  ;;  %v6092_v44 = vclamps-f32 %v4185_v19, 1.0  ;;  %v2647_v63 = vmul.f32 %v2646_v3, %v10363_v4  ;;  %v2519_v27 = vadd.f32 1.1283791, %v2518_v40  ;;  %v12377_v3 = vld [vmem:[#allocation33_spill] sm:$0xff] }
 0x428   : > { %v4287_v20 = vmul.f32 %v4286_v51, %v9571_v41  ;;  %v4492_v38 = vmul.f32 %v6360_v37, %v10443_v57  ;;  %v4607_v5 = vmul.f32 %v4606_v21, %v12366_v16  ;;  %v2762_v39 = vadd.f32 0.001143296, %v2761_v55  ;;  %v10496_v55 = vpop.f32.mrf.mxu0 }
 0x429   : > { %v4790_v2 = vadd.f32 1.0, %v6092_v44  ;;  %v6048_v8 = vclamps-f32 %v2425_v9, 1.0  ;;  %v714_v36 = vmul.f32 0.5, %v10099_v26  ;;  %vm2537_vm12 = vweird.f32 %v10426_v32 }
 0x42a   : > { %v4288_v54 = vadd.f32 0.4994258, %v4287_v20  ;;  %v4493_v11 = vsub.f32 1.0, %v4492_v38  ;;  %v4608_v29 = vadd.f32 0.4994258, %v4607_v5  ;;  %v2632_v46 = vmul.f32 %v2631_v59, %v10363_v4 }
 0x42b   : > { %v2868_v52 = vmul.f32 %v10482_v35, %v10482_v35  ;;  %v4886_v53 = vmul.f32 %v4790_v2, %v12377_v3  ;;  %v2535_v7 = vadd.f32 %v10426_v32, %v2534_v0  ;;  %v2648_v58 = vadd.f32 0.4994258, %v2647_v63  ;;  %v10512_v38 = vld [vmem:[%s12009_s4] ss:$0 sm:$0xff] }
 0x42c   : > { %v4289_v40 = vmul.f32 %v4288_v54, %v9571_v41  ;;  %v4746_v9 = vadd.f32 1.0, %v6048_v8  ;;  %v4494_v26 = vmul.f32 %v6360_v37, %v4493_v11  ;;  %vm4497_vm13 = vweird.f32 %v6360_v37  ;;  %v631_v41 = vpop.f32.mrf.mxu2 }
 0x42d   : > { %5162 = vmatmul.f32.gmra.mxu0 %v4886_v53  ;;  %v4502_v19 = vand.u32 2147483648, %v10443_v57  ;;  %v4609_v47 = vmul.f32 %v4608_v29, %v12366_v16  ;;  %v2763_v51 = vmul.f32 %v2762_v39, %v10453_v45  ;;  %v4500_v0 = vand.u32 2147483647, %v10443_v57 }
 0x42e   : > { %v10501_v21 = vadd.f32 1.0, %v4289_v40  ;;  %v4842_v59 = vmul.f32 %v4746_v9, %v714_v36  ;;  %v10504_v44 = vmin.f32 %v2868_v52, 16.0  ;;  %v4495_v63 = vadd.f32 %v6360_v37, %v4494_v26  ;;  %v12382_v52 = vld [vmem:[#allocation11_spill] sm:$0xff] }
 0x42f   : > { %vm4496_vm14 = vweird.f32 %v10443_v57  ;;  %v10507_v20 = vadd.f32 1.0, %v4609_v47  ;;  %vm2536_vm15 = vweird.f32 %v10391_v62  ;;  %v2540_v16 = vand.u32 2147483647, %v10391_v62 }
 0x430   : > { %v2542_v5 = vand.u32 2147483648, %v10391_v62  ;;  %6361 = vrcp.f32 %v10501_v21  ;;  %5230 = vmatmul.f32.gmra.mxu1 %v4842_v59  ;;  %vm4498_vm0 = vmor %vm4496_vm14, %vm4497_vm13  ;;  %v2633_v39 = vadd.f32 0.0036580483, %v2632_v46  ;;  %v4503_v8 = vor.u32 1.1754944e-38, %v4502_v19 }
 0x431   : > { %vm10521_vm1 = vmor %vm2536_vm15, %vm2537_vm12  ;;  %v4499_v2 = vsel %vm4498_vm0, %v6360_v37, %v4495_v63  ;;  %6363 = vrcp.f32 %v10507_v20  ;;  %v10527_v36 = vmul.f32 0.5, %v9916_v61  ;;  %v10533_v54 = vadd.f32 %v631_v41, %v8911_v6  ;;  %v12383_v61 = vld [vmem:[#allocation41_spill] sm:$0xff] }
 0x432   : > { %v2539_v62 = vsel %vm10521_vm1, %v10426_v32, %v2535_v7  ;;  %vm4501_vm2 = vcmp.eq.f32.partialorder %v4500_v0, 8.507059e+37  ;;  %v2649_v11 = vmul.f32 %v2648_v58, %v10363_v4  ;;  %v2764_v29 = vadd.f32 0.014752088, %v2763_v51  ;;  %v12384_v32 = vld [vmem:[#allocation8_spill] sm:$0xff] }
 0x433   : > { %12380 = vst [vmem:[#allocation40_spill] sm:$0xff] %v10527_v36  ;;  %v2881_v46 = vmul.f32 3.8918573e-05, %v10504_v44  ;;  %v4504_v37 = vsel %vm4501_vm2, %v4503_v8, %v4499_v2  ;;  %v10539_v3 = vmul.f32 %v10368_v30, %v12382_v52  ;;  %v10543_v53 = vadd.f32 %v10512_v38, %v12383_v61  ;;  %v10565_v8 = vpop.f32.mrf.mxu0 }
 0x434   : > { %12381 = vst [vmem:[#allocation43_spill] sm:$0xff] %v10533_v54  ;;  %v2543_v40 = vor.u32 1.1754944e-38, %v2542_v5  ;;  %v4505_v7 = vmul.f32 %v4504_v37, %v12384_v32  ;;  %v10548_v9 = vmul.f32 %v10478_v34, %v10112_v56  ;;  %v2520_v58 = vmul.f32 %v2519_v27, %v10174_v33 }
 0x435   : > { %vm2541_vm3 = vcmp.eq.f32.partialorder %v2540_v16, 8.507059e+37  ;;  %v2634_v26 = vmul.f32 %v2633_v39, %v10363_v4  ;;  %v2750_v30 = vmul.f32 2.1237322e-06, %v10453_v45  ;;  %v10554_v51 = vmul.f32 0.70710677, %v10533_v54  ;;  %v12389_v54 = vld [vmem:[#allocation7_spill] sm:$0xff] }
 0x436   : > { %v6362_v19 = vpop.eup %6361  ;;  %v2544_v47 = vsel %vm2541_vm3, %v2543_v40, %v2539_v62  ;;  %v6100_v59 = vclamps-f32 %v4505_v7, 1.0  ;;  %v10556_v41 = vadd.f32 1.0, %v2649_v11  ;;  %v2765_v63 = vmul.f32 %v2764_v29, %v10453_v45  ;;  %v12386_v29 = vld [vmem:[#allocation66_spill] sm:$0xff]  ;;  %v10572_v7 = vpop.f32.mrf.mxu3 }
 0x437   : > { %12385 = vst [vmem:[#allocation12_spill] sm:$0xff] %v10554_v51  ;;  %v6364_v0 = vpop.eup %6363  ;;  %v2882_v34 = vadd.f32 0.001143296, %v2881_v46  ;;  %v4292_v5 = vmul.f32 %v6362_v19, %v10501_v21  ;;  %v4302_v33 = vand.u32 2147483648, %v10501_v21  ;;  %v4401_v27 = vmul.f32 3.8918573e-05, %v9712_v12 }
 0x438   : > { %v4798_v16 = vadd.f32 1.0, %v6100_v59  ;;  %v4612_v57 = vmul.f32 %v6364_v0, %v10507_v20  ;;  %vm4296_vm4 = vweird.f32 %v10501_v21  ;;  %vm4297_vm5 = vweird.f32 %v6362_v19 }
 0x439   : > { %v4293_v39 = vsub.f32 1.0, %v4292_v5  ;;  %v4300_v2 = vand.u32 2147483647, %v10501_v21  ;;  %v2988_v62 = vmul.f32 %v10554_v51, %v10554_v51  ;;  %v4402_v11 = vadd.f32 0.001143296, %v4401_v27  ;;  %vm10574_vm6 = vmor %vm4296_vm4, %vm4297_vm5 }
 0x43a   : > { %v4894_v46 = vmul.f32 %v4798_v16, %v12386_v29  ;;  %v4613_v37 = vsub.f32 1.0, %v4612_v57  ;;  %v2766_v52 = vadd.f32 0.112945676, %v2765_v63  ;;  %v2883_v61 = vmul.f32 %v2882_v34, %v10504_v44 }
 0x43b   : > { %v4294_v40 = vmul.f32 %v6362_v19, %v4293_v39  ;;  %v4622_v32 = vand.u32 2147483648, %v10507_v20  ;;  %v4303_v21 = vor.u32 1.1754944e-38, %v4302_v33  ;;  %v4403_v5 = vmul.f32 %v4402_v11, %v9712_v12 }
 0x43c   : > { %5058 = vmatmul.f32.gmra.mxu3 %v4894_v46  ;;  %v4614_v27 = vmul.f32 %v6364_v0, %v4613_v37  ;;  %v4620_v16 = vand.u32 2147483647, %v10507_v20  ;;  %6365 = vrcp.f32 %v10556_v41  ;;  %vm4301_vm7 = vcmp.eq.f32.partialorder %v4300_v2, 8.507059e+37  ;;  %v634_v37 = vpop.f32.mrf.mxu2 }
 0x43d   : > { %v4295_v63 = vadd.f32 %v6362_v19, %v4294_v40  ;;  %vm4617_vm8 = vweird.f32 %v6364_v0  ;;  %v10581_v34 = vmin.f32 %v2988_v62, 16.0  ;;  %v4404_v57 = vadd.f32 0.014752088, %v4403_v5 }
 0x43e   : > { %v4615_v39 = vadd.f32 %v6364_v0, %v4614_v27  ;;  %vm4616_vm9 = vweird.f32 %v10507_v20  ;;  %v2767_v29 = vmul.f32 %v2766_v52, %v10453_v45  ;;  %v2884_v33 = vadd.f32 0.014752088, %v2883_v61 }
 0x43f   : > { %v4299_v11 = vsel %vm10574_vm6, %v6362_v19, %v4295_v63  ;;  %vm4618_vm10 = vmor %vm4616_vm9, %vm4617_vm8  ;;  %v4623_v46 = vor.u32 1.1754944e-38, %v4622_v32  ;;  %v4405_v40 = vmul.f32 %v4404_v57, %v9712_v12  ;;  %vm4621_vm11 = vcmp.eq.f32.partialorder %v4620_v16, 8.507059e+37 }
 0x440   : > { %v4304_v36 = vsel %vm4301_vm7, %v4303_v21, %v4299_v11  ;;  %v4619_v2 = vsel %vm4618_vm10, %v6364_v0, %v4615_v39  ;;  %v2545_v62 = vmul.f32 %v2544_v47, %v2520_v58  ;;  %v2635_v51 = vadd.f32 0.05243302, %v2634_v26  ;;  %v12390_v58 = vld [vmem:[#allocation22_spill] sm:$0xff] }
 0x441   : > { %v4305_v5 = vmul.f32 %v4304_v36, %v10148_v31  ;;  %v4624_v27 = vsel %vm4621_vm11, %v4623_v46, %v4619_v2  ;;  %v2751_v20 = vadd.f32 0.00028619796, %v2750_v30  ;;  %v3001_v52 = vmul.f32 3.8918573e-05, %v10581_v34  ;;  %v5097_v31 = vpop.f32.mrf.mxu0  ;;  %v12391_v2 = vld [vmem:[#allocation23_spill] sm:$0xff] }
 0x442   : > { %v4406_v61 = vadd.f32 0.112945676, %v4405_v40  ;;  %v4625_v59 = vmul.f32 %v4624_v27, %v12389_v54  ;;  %v10591_v19 = vpop.eup %6365  ;;  %v4639_v32 = vadd.f32 1.1283791, %v10548_v9  ;;  %v2768_v21 = vadd.f32 0.4994258, %v2767_v29 }
 0x443   : > { %v10595_v63 = vadd.f32 %v634_v37, %v8911_v6  ;;  %v6095_v0 = vclamps-f32 %v4305_v5, 1.0  ;;  %v4973_v26 = vadd.f32 %v10512_v38, %v12390_v58  ;;  %v2885_v36 = vmul.f32 %v2884_v33, %v10504_v44 }
 0x444   : > { %v4407_v47 = vmul.f32 %v4406_v61, %v9712_v12  ;;  %v6103_v30 = vclamps-f32 %v4625_v59, 1.0  ;;  %v717_v54 = vmul.f32 0.5, %v10156_v24  ;;  %v2636_v16 = vmul.f32 %v2635_v51, %v10363_v4  ;;  %v12392_v59 = vld [vmem:[#allocation29_spill] sm:$0xff] }
 0x445   : > { %v4793_v57 = vadd.f32 1.0, %v6095_v0  ;;  %v6051_v9 = vclamps-f32 %v2545_v62, 1.0  ;;  %v2752_v39 = vmul.f32 %v2751_v20, %v10453_v45  ;;  %v3002_v29 = vadd.f32 0.001143296, %v3001_v52 }
 0x446   : > { %v4408_v11 = vadd.f32 0.4994258, %v4407_v47  ;;  %v4801_v46 = vadd.f32 1.0, %v6103_v30  ;;  %v2652_v37 = vmul.f32 %v10591_v19, %v10556_v41  ;;  %v2769_v40 = vmul.f32 %v2768_v21, %v10453_v45 }
 0x447   : > { %v10608_v33 = vmul.f32 0.70710677, %v10595_v63  ;;  %v4889_v5 = vmul.f32 %v4793_v57, %v12391_v2  ;;  %v2870_v24 = vmul.f32 2.1237322e-06, %v10504_v44  ;;  %v2886_v51 = vadd.f32 0.112945676, %v2885_v36  ;;  %v10623_v36 = vpop.f32.mrf.mxu3 }
 0x448   : > { %v4409_v62 = vmul.f32 %v4408_v11, %v9712_v12  ;;  %v4749_v27 = vadd.f32 1.0, %v6051_v9  ;;  %v4976_v20 = vadd.f32 %v10512_v38, %v10244_v23  ;;  %v4979_v52 = vadd.f32 %v10512_v38, %v10361_v28 }
 0x449   : > { %v2637_v61 = vadd.f32 0.18741608, %v2636_v16  ;;  %5165 = vmatmul.f32.gmra.mxu0 %v4889_v5  ;;  %v4897_v21 = vmul.f32 %v4801_v46, %v12392_v59  ;;  %v2753_v0 = vadd.f32 0.0036580483, %v2752_v39  ;;  %v3003_v58 = vmul.f32 %v3002_v29, %v10581_v34  ;;  %v5100_v46 = vpop.f32.mrf.mxu0 }
 0x44a   : > { %v10619_v47 = vadd.f32 1.0, %v4409_v62  ;;  %v4845_v30 = vmul.f32 %v4749_v27, %v717_v54  ;;  %v4982_v12 = vadd.f32 %v10512_v38, %v10407_v18  ;;  %v2653_v57 = vsub.f32 1.0, %v2652_v37 }
 0x44b   : > { %v10625_v23 = vadd.f32 1.0, %v2769_v40  ;;  %v3108_v28 = vmul.f32 %v10608_v33, %v10608_v33  ;;  %5061 = vmatmul.f32.gmra.mxu3 %v4897_v21  ;;  %v4985_v16 = vadd.f32 %v10512_v38, %v10466_v60  ;;  %v2871_v9 = vadd.f32 0.00028619796, %v2870_v24 }
 0x44c   : > { %v2887_v39 = vmul.f32 %v2886_v51, %v10504_v44  ;;  %6367 = vrcp.f32 %v10619_v47  ;;  %5233 = vmatmul.f32.gmra.mxu1 %v4845_v30  ;;  %v10634_v18 = vmul.f32 %v4639_v32, %v9939_v22  ;;  %v10638_v54 = vadd.f32 %v10152_v43, %v10543_v53  ;;  %v637_v53 = vpop.f32.mrf.mxu2 }
 0x44d   : > { %v10641_v29 = vadd.f32 %v10270_v1, %v4973_v26  ;;  %v2638_v11 = vmul.f32 %v2637_v61, %v10363_v4  ;;  %v10645_v60 = vadd.f32 %v10386_v25, %v4976_v20  ;;  %v2660_v37 = vand.u32 2147483647, %v10556_v41 }
 0x44e   : > { %v2754_v40 = vmul.f32 %v2753_v0, %v10453_v45  ;;  %v3004_v2 = vadd.f32 0.014752088, %v3003_v58  ;;  %v10650_v22 = vadd.f32 %v10496_v55, %v4979_v52  ;;  %v2654_v43 = vmul.f32 %v10591_v19, %v2653_v57 }
 0x44f   : > { %6369 = vrcp.f32 %v10625_v23  ;;  %v10654_v1 = vmin.f32 %v3108_v28, 16.0  ;;  %v10657_v4 = vadd.f32 %v10565_v8, %v4982_v12  ;;  %v10659_v25 = vadd.f32 %v5097_v31, %v4985_v16 }
 0x450   : > { %v2872_v32 = vmul.f32 %v2871_v9, %v10504_v44  ;;  %v2888_v26 = vadd.f32 0.4994258, %v2887_v39  ;;  %v4988_v5 = vadd.f32 %v10512_v38, %v10572_v7  ;;  %v2639_v55 = vadd.f32 1.1283791, %v2638_v11 }
 0x451   : > { %vm2656_vm12 = vweird.f32 %v10556_v41  ;;  %v2662_v24 = vand.u32 2147483648, %v10556_v41  ;;  %vm10666_vm13 = vcmp.eq.f32.partialorder %v2660_v37, 8.507059e+37  ;;  %v2755_v8 = vadd.f32 0.05243302, %v2754_v40 }
 0x452   : > { %v6368_v51 = vpop.eup %6367  ;;  %v3005_v31 = vmul.f32 %v3004_v2, %v10581_v34  ;;  %v10672_v27 = vadd.f32 %v637_v53, %v8911_v6  ;;  %v2655_v20 = vadd.f32 %v10591_v19, %v2654_v43  ;;  %vm2657_vm14 = vweird.f32 %v10591_v19  ;;  %v4993_v43 = vpop.f32.mrf.mxu3 }
 0x453   : > { %v3121_v7 = vmul.f32 3.8918573e-05, %v10654_v1  ;;  %v4412_v52 = vmul.f32 %v6368_v51, %v10619_v47  ;;  %v2873_v61 = vadd.f32 0.0036580483, %v2872_v32  ;;  %v2889_v59 = vmul.f32 %v2888_v26, %v10504_v44  ;;  %vm10689_vm1 = vmor %vm2656_vm12, %vm2657_vm14 }
 0x454   : > { %v4422_v21 = vand.u32 2147483648, %v10619_v47  ;;  %v4521_v0 = vmul.f32 3.8918573e-05, %v9827_v17  ;;  %vm4416_vm15 = vweird.f32 %v10619_v47  ;;  %vm4417_vm0 = vweird.f32 %v6368_v51 }
 0x455   : > { %v10681_v58 = vpop.eup %6369  ;;  %v4413_v30 = vsub.f32 1.0, %v4412_v52  ;;  %v4420_v12 = vand.u32 2147483647, %v10619_v47  ;;  %v10685_v57 = vadd.f32 %v5100_v46, %v4988_v5  ;;  %v3006_v16 = vadd.f32 0.112945676, %v3005_v31  ;;  %v10699_v46 = vpop.f32.mrf.mxu0  ;;  %vm10708_vm2 = vmor %vm4416_vm15, %vm4417_vm0 }
 0x456   : > { %v10694_v9 = vmul.f32 0.70710677, %v10672_v27  ;;  %v4522_v39 = vadd.f32 0.001143296, %v4521_v0  ;;  %v2659_v11 = vsel %vm10689_vm1, %v10591_v19, %v2655_v20  ;;  %v2663_v37 = vor.u32 1.1754944e-38, %v2662_v24 }
 0x457   : > { %v3122_v40 = vadd.f32 0.001143296, %v3121_v7  ;;  %v4414_v2 = vmul.f32 %v6368_v51, %v4413_v30  ;;  %v2772_v41 = vmul.f32 %v10681_v58, %v10625_v23  ;;  %v10703_v53 = vadd.f32 1.0, %v2889_v59 }
 0x458   : > { %v4423_v26 = vor.u32 1.1754944e-38, %v4422_v21  ;;  %v4523_v19 = vmul.f32 %v4522_v39, %v9827_v17  ;;  %v2756_v5 = vmul.f32 %v2755_v8, %v10453_v45  ;;  %v2874_v24 = vmul.f32 %v2873_v61, %v10504_v44  ;;  %v640_v61 = vpop.f32.mrf.mxu2 }
 0x459   : > { %v4415_v31 = vadd.f32 %v6368_v51, %v4414_v2  ;;  %vm4421_vm3 = vcmp.eq.f32.partialorder %v4420_v12, 8.507059e+37  ;;  %v2664_v20 = vsel %vm10666_vm13, %v2663_v37, %v2659_v11  ;;  %v3007_v7 = vmul.f32 %v3006_v16, %v10581_v34 }
 0x45a   : > { %v3228_v47 = vmul.f32 %v10694_v9, %v10694_v9  ;;  %v4524_v52 = vadd.f32 0.014752088, %v4523_v19  ;;  %v2640_v59 = vmul.f32 %v2639_v55, %v10328_v13  ;;  %v2990_v21 = vmul.f32 2.1237322e-06, %v10581_v34 }
 0x45b   : > { %v3123_v0 = vmul.f32 %v3122_v40, %v10654_v1  ;;  %v4419_v8 = vsel %vm10708_vm2, %v6368_v51, %v4415_v31  ;;  %v2773_v30 = vsub.f32 1.0, %v2772_v41  ;;  %6371 = vrcp.f32 %v10703_v53 }
 0x45c   : > { %v4424_v62 = vsel %vm4421_vm3, %v4423_v26, %v4419_v8  ;;  %v4525_v12 = vmul.f32 %v4524_v52, %v9827_v17  ;;  %v2665_v28 = vmul.f32 %v2664_v20, %v2640_v59  ;;  %v2757_v16 = vadd.f32 0.18741608, %v2756_v5  ;;  %v4996_v52 = vpop.f32.mrf.mxu3 }
 0x45d   : > { %v2875_v39 = vadd.f32 0.05243302, %v2874_v24  ;;  %v4425_v11 = vmul.f32 %v4424_v62, %v10475_v48  ;;  %v4991_v13 = vadd.f32 %v10512_v38, %v10623_v36  ;;  %v3008_v55 = vadd.f32 0.4994258, %v3007_v7 }
 0x45e   : > { %v10730_v37 = vmin.f32 %v3228_v47, 16.0  ;;  %v4526_v40 = vadd.f32 0.112945676, %v4525_v12  ;;  %v2991_v51 = vadd.f32 0.00028619796, %v2990_v21  ;;  %v10733_v32 = vadd.f32 %v640_v61, %v8911_v6  ;;  %v5106_v47 = vpop.f32.mrf.mxu0 }
 0x45f   : > { %v3124_v2 = vadd.f32 0.014752088, %v3123_v0  ;;  %v6098_v41 = vclamps-f32 %v4425_v11, 1.0  ;;  %v720_v26 = vmul.f32 0.5, %v10308_v50  ;;  %v4994_v19 = vadd.f32 %v10512_v38, %v4993_v43 }
 0x460   : > { %v2774_v5 = vmul.f32 %v10681_v58, %v2773_v30  ;;  %v4527_v48 = vmul.f32 %v4526_v40, %v9827_v17  ;;  %v2758_v36 = vmul.f32 %v2757_v16, %v10453_v45  ;;  %v2876_v24 = vmul.f32 %v2875_v39, %v10504_v44 }
 0x461   : > { %v4796_v31 = vadd.f32 1.0, %v6098_v41  ;;  %v6054_v20 = vclamps-f32 %v2665_v28, 1.0  ;;  %v10741_v7 = vpop.eup %6371  ;;  %vm2776_vm4 = vweird.f32 %v10625_v23  ;;  %v3009_v50 = vmul.f32 %v3008_v55, %v10581_v34 }
 0x462   : > { %v3241_v43 = vmul.f32 3.8918573e-05, %v10730_v37  ;;  %v4528_v59 = vadd.f32 0.4994258, %v4527_v48  ;;  %v2992_v21 = vmul.f32 %v2991_v51, %v10581_v34  ;;  %v3125_v0 = vmul.f32 %v3124_v2, %v10654_v1 }
 0x463   : > { %v4892_v45 = vmul.f32 %v4796_v31, %v10132_v49  ;;  %v10750_v8 = vmul.f32 0.70710677, %v10733_v32  ;;  %v2775_v61 = vadd.f32 %v10681_v58, %v2774_v5  ;;  %vm2777_vm5 = vweird.f32 %v10681_v58  ;;  %v643_v49 = vpop.f32.mrf.mxu2 }
 0x464   : > { %v4529_v30 = vmul.f32 %v4528_v59, %v9827_v17  ;;  %v4752_v62 = vadd.f32 1.0, %v6054_v20  ;;  %v2780_v12 = vand.u32 2147483647, %v10625_v23  ;;  %v2782_v28 = vand.u32 2147483648, %v10625_v23  ;;  %vm10765_vm6 = vmor %vm2776_vm4, %vm2777_vm5 }
 0x465   : > { %v2877_v16 = vadd.f32 0.18741608, %v2876_v24  ;;  %v2892_v39 = vmul.f32 %v10741_v7, %v10703_v53  ;;  %5168 = vmatmul.f32.gmra.mxu0 %v4892_v45  ;;  %v10759_v11 = vadd.f32 1.0, %v3009_v50  ;;  %v3242_v55 = vadd.f32 0.001143296, %v3241_v43 }
 0x466   : > { %v10761_v40 = vadd.f32 1.0, %v4529_v30  ;;  %v4848_v51 = vmul.f32 %v4752_v62, %v720_v26  ;;  %v2759_v2 = vadd.f32 1.1283791, %v2758_v36  ;;  %v2993_v41 = vadd.f32 0.0036580483, %v2992_v21 }
 0x467   : > { %v3126_v5 = vadd.f32 0.112945676, %v3125_v0  ;;  %v3348_v48 = vmul.f32 %v10750_v8, %v10750_v8  ;;  %v2779_v24 = vsel %vm10765_vm6, %v10681_v58, %v2775_v61  ;;  %v3110_v31 = vmul.f32 2.1237322e-06, %v10654_v1  ;;  %v5109_v61 = vpop.f32.mrf.mxu0 }
 0x468   : > { %6373 = vrcp.f32 %v10761_v40  ;;  %5236 = vmatmul.f32.gmra.mxu1 %v4848_v51  ;;  %v10777_v23 = vadd.f32 %v643_v49, %v8911_v6  ;;  %v10780_v26 = vadd.f32 %v10699_v46, %v4991_v13  ;;  %vm2781_vm7 = vcmp.eq.f32.partialorder %v2780_v12, 8.507059e+37 }
 0x469   : > { %v2783_v36 = vor.u32 1.1754944e-38, %v2782_v28  ;;  %v4997_v20 = vadd.f32 %v10512_v38, %v4996_v52  ;;  %v2878_v50 = vmul.f32 %v2877_v16, %v10504_v44  ;;  %v2893_v43 = vsub.f32 1.0, %v2892_v39  ;;  %v4999_v52 = vpop.f32.mrf.mxu3 }
 0x46a   : > { %6375 = vrcp.f32 %v10759_v11  ;;  %v3243_v58 = vmul.f32 %v3242_v55, %v10730_v37  ;;  %v2994_v21 = vmul.f32 %v2993_v41, %v10581_v34  ;;  %v3127_v0 = vmul.f32 %v3126_v5, %v10654_v1 }
 0x46b   : > { %v2784_v59 = vsel %vm2781_vm7, %v2783_v36, %v2779_v24  ;;  %v10788_v45 = vmin.f32 %v3348_v48, 16.0  ;;  %v10790_v46 = vadd.f32 %v5106_v47, %v4994_v19  ;;  %v2760_v13 = vmul.f32 %v2759_v2, %v10410_v14 }
 0x46c   : > { %v3111_v30 = vadd.f32 0.00028619796, %v3110_v31  ;;  %v10794_v44 = vmul.f32 0.70710677, %v10777_v23  ;;  %v10797_v62 = vmul.f32 0.5, %v10397_v15  ;;  %v10799_v12 = vadd.f32 %v5109_v61, %v4997_v20 }
 0x46d   : > { %v10802_v28 = vmul.f32 0.5, %v10462_v42  ;;  %v10805_v16 = vadd.f32 %v10512_v38, %v4999_v52  ;;  %v10807_v47 = vmul.f32 %v2784_v59, %v2760_v13  ;;  %v10809_v14 = vadd.f32 1.1283791, %v2878_v50 }
 0x46e   : > { %v6374_v19 = vpop.eup %6373  ;;  %v2894_v39 = vmul.f32 %v10741_v7, %v2893_v43  ;;  %v3244_v49 = vadd.f32 0.014752088, %v3243_v58  ;;  %v2995_v55 = vadd.f32 0.05243302, %v2994_v21  ;;  %v3128_v51 = vadd.f32 0.4994258, %v3127_v0 }
 0x46f   : > { %v3361_v15 = vmul.f32 3.8918573e-05, %v10788_v45  ;;  %v4532_v2 = vmul.f32 %v6374_v19, %v10761_v40  ;;  %v3112_v42 = vmul.f32 %v3111_v30, %v10654_v1  ;;  %v4542_v41 = vand.u32 2147483648, %v10761_v40 }
 0x470   : > { %v10814_v17 = vpop.eup %6375  ;;  %v3468_v5 = vmul.f32 %v10794_v44, %v10794_v44  ;;  %v4641_v48 = vmul.f32 3.8918573e-05, %v10112_v56  ;;  %vm4536_vm8 = vweird.f32 %v10761_v40  ;;  %vm4537_vm9 = vweird.f32 %v6374_v19 }
 0x471   : > { %v4533_v24 = vsub.f32 1.0, %v4532_v2  ;;  %v4540_v31 = vand.u32 2147483647, %v10761_v40  ;;  %vm2897_vm10 = vweird.f32 %v10741_v7  ;;  %v2900_v36 = vand.u32 2147483647, %v10703_v53  ;;  %vm10830_vm11 = vmor %vm4536_vm8, %vm4537_vm9 }
 0x472   : > { %v3245_v20 = vmul.f32 %v3244_v49, %v10730_v37  ;;  %v4642_v50 = vadd.f32 0.001143296, %v4641_v48  ;;  %v3012_v43 = vmul.f32 %v10814_v17, %v10759_v11  ;;  %v3129_v58 = vmul.f32 %v3128_v51, %v10654_v1 }
 0x473   : > { %v3362_v59 = vadd.f32 0.001143296, %v3361_v15  ;;  %v4534_v21 = vmul.f32 %v6374_v19, %v4533_v24  ;;  %v2895_v0 = vadd.f32 %v10741_v7, %v2894_v39  ;;  %v4543_v40 = vor.u32 1.1754944e-38, %v4542_v41 }
 0x474   : > { %v10834_v61 = vmin.f32 %v3468_v5, 16.0  ;;  %v4643_v52 = vmul.f32 %v4642_v50, %v10112_v56  ;;  %v2996_v30 = vmul.f32 %v2995_v55, %v10581_v34  ;;  %v3113_v49 = vadd.f32 0.0036580483, %v3112_v42 }
 0x475   : > { %v4535_v2 = vadd.f32 %v6374_v19, %v4534_v21  ;;  %vm4541_vm12 = vcmp.eq.f32.partialorder %v4540_v31, 8.507059e+37  ;;  %vm2896_vm13 = vweird.f32 %v10703_v53  ;;  %v2902_v51 = vand.u32 2147483648, %v10703_v53 }
 0x476   : > { %v3246_v15 = vadd.f32 0.112945676, %v3245_v20  ;;  %v4644_v39 = vadd.f32 0.014752088, %v4643_v52  ;;  %v3013_v48 = vsub.f32 1.0, %v3012_v43  ;;  %v10840_v24 = vadd.f32 1.0, %v3129_v58  ;;  %vm10847_vm14 = vmor %vm2896_vm13, %vm2897_vm10 }
 0x477   : > { %v3363_v41 = vmul.f32 %v3362_v59, %v10788_v45  ;;  %v4539_v5 = vsel %vm10830_vm11, %v6374_v19, %v4535_v2  ;;  %v3230_v42 = vmul.f32 2.1237322e-06, %v10730_v37  ;;  %v3481_v53 = vmul.f32 3.8918573e-05, %v10834_v61 }
 0x478   : > { %v4544_v31 = vsel %vm4541_vm12, %v4543_v40, %v4539_v5  ;;  %v4645_v20 = vmul.f32 %v4644_v39, %v10112_v56  ;;  %v2899_v50 = vsel %vm10847_vm14, %v10741_v7, %v2895_v0  ;;  %v2997_v43 = vadd.f32 0.18741608, %v2996_v30  ;;  %v5112_v0 = vpop.f32.mrf.mxu0 }
 0x479   : > { %v3114_v19 = vmul.f32 %v3113_v49, %v10654_v1  ;;  %v4545_v58 = vmul.f32 %v4544_v31, %v10539_v3  ;;  %vm2901_vm15 = vcmp.eq.f32.partialorder %v2900_v36, 8.507059e+37  ;;  %v2903_v59 = vor.u32 1.1754944e-38, %v2902_v51  ;;  %v646_v51 = vpop.f32.mrf.mxu2 }
 0x47a   : > { %v3247_v21 = vmul.f32 %v3246_v15, %v10730_v37  ;;  %v4646_v13 = vadd.f32 0.112945676, %v4645_v20  ;;  %v3014_v40 = vmul.f32 %v10814_v17, %v3013_v48  ;;  %6377 = vrcp.f32 %v10840_v24  ;;  %v5002_v48 = vpop.f32.mrf.mxu3 }
 0x47b   : > { %v3364_v52 = vadd.f32 0.014752088, %v3363_v41  ;;  %v6101_v2 = vclamps-f32 %v4545_v58, 1.0  ;;  %v2904_v39 = vsel %vm2901_vm15, %v2903_v59, %v2899_v50  ;;  %v3231_v5 = vadd.f32 0.00028619796, %v3230_v42 }
 0x47c   : > { %v3482_v55 = vadd.f32 0.001143296, %v3481_v53  ;;  %v4647_v7 = vmul.f32 %v4646_v13, %v10112_v56  ;;  %v2998_v30 = vmul.f32 %v2997_v43, %v10581_v34  ;;  %v3115_v3 = vadd.f32 0.05243302, %v3114_v19 }
 0x47d   : > { %v4799_v36 = vadd.f32 1.0, %v6101_v2  ;;  %v6057_v49 = vclamps-f32 %v10807_v47, 1.0  ;;  %v3022_v15 = vand.u32 2147483648, %v10759_v11  ;;  %v3248_v31 = vadd.f32 0.4994258, %v3247_v21 }
 0x47e   : > { %v4648_v20 = vadd.f32 0.4994258, %v4647_v7  ;;  %v10867_v41 = vadd.f32 %v646_v51, %v8911_v6  ;;  %v3015_v42 = vadd.f32 %v10814_v17, %v3014_v40  ;;  %vm3017_vm0 = vweird.f32 %v10814_v17 }
 0x47f   : > { %v3365_v53 = vmul.f32 %v3364_v52, %v10788_v45  ;;  %v4895_v34 = vmul.f32 %v4799_v36, %v10264_v10  ;;  %v3232_v50 = vmul.f32 %v3231_v5, %v10730_v37  ;;  %v3483_v47 = vmul.f32 %v3482_v55, %v10834_v61 }
 0x480   : > { %v4649_v43 = vmul.f32 %v4648_v20, %v10112_v56  ;;  %v4755_v19 = vadd.f32 1.0, %v6057_v49  ;;  %v10876_v58 = vpop.eup %6377  ;;  %vm3016_vm1 = vweird.f32 %v10759_v11  ;;  %v3020_v59 = vand.u32 2147483647, %v10759_v11 }
 0x481   : > { %v5003_v21 = vadd.f32 %v10512_v38, %v5002_v48  ;;  %v3116_v13 = vmul.f32 %v3115_v3, %v10654_v1  ;;  %5171 = vmatmul.f32.gmra.mxu0 %v4895_v34  ;;  %vm10882_vm2 = vmor %vm3016_vm1, %vm3017_vm0  ;;  %v3249_v40 = vmul.f32 %v3248_v31, %v10730_v37  ;;  %v10891_v2 = vmul.f32 0.70710677, %v10867_v41  ;;  %v12407_v48 = vld [vmem:[#allocation43_spill] sm:$0xff] }
 0x482   : > { %v10887_v52 = vadd.f32 1.0, %v4649_v43  ;;  %v4851_v56 = vmul.f32 %v4755_v19, %v10797_v62  ;;  %v2999_v5 = vadd.f32 1.1283791, %v2998_v30  ;;  %v3019_v11 = vsel %vm10882_vm2, %v10814_v17, %v3015_v42 }
 0x483   : > { %v3023_v55 = vor.u32 1.1754944e-38, %v3022_v15  ;;  %v3366_v7 = vadd.f32 0.112945676, %v3365_v53  ;;  %v3132_v3 = vmul.f32 %v10876_v58, %v10840_v24  ;;  %v3233_v36 = vadd.f32 0.0036580483, %v3232_v50  ;;  %v12408_v53 = vld [vmem:[#allocation12_spill] sm:$0xff]  ;;  %v5115_v50 = vpop.f32.mrf.mxu0 }
 0x484   : > { %v3484_v49 = vadd.f32 0.014752088, %v3483_v47  ;;  %6379 = vrcp.f32 %v10887_v52  ;;  %5239 = vmatmul.f32.gmra.mxu1 %v4851_v56  ;;  %v2880_v62 = vmul.f32 %v10809_v14, %v10482_v35  ;;  %v10902_v51 = vadd.f32 %v5112_v0, %v10805_v16  ;;  %v5005_v47 = vpop.f32.mrf.mxu3 }
 0x485   : > { %vm3021_vm3 = vcmp.eq.f32.partialorder %v3020_v59, 8.507059e+37  ;;  %v3117_v30 = vadd.f32 0.18741608, %v3116_v13  ;;  %v10905_v17 = vmul.f32 0.5, %v12407_v48  ;;  %v10907_v31 = vadd.f32 1.0, %v3249_v40  ;;  %v649_v48 = vpop.f32.mrf.mxu2 }
 0x486   : > { %v3024_v15 = vsel %vm3021_vm3, %v3023_v55, %v3019_v11  ;;  %v3588_v20 = vmul.f32 %v10891_v2, %v10891_v2  ;;  %v2905_v42 = vmul.f32 %v2904_v39, %v2880_v62  ;;  %v3000_v34 = vmul.f32 %v2999_v5, %v12408_v53 }
 0x487   : > { %v3350_v35 = vmul.f32 2.1237322e-06, %v10788_v45  ;;  %v3367_v16 = vmul.f32 %v3366_v7, %v10788_v45  ;;  %v10914_v14 = vadd.f32 %v5115_v50, %v5003_v21  ;;  %v3133_v0 = vsub.f32 1.0, %v3132_v3 }
 0x488   : > { %v3234_v43 = vmul.f32 %v3233_v36, %v10730_v37  ;;  %v3485_v19 = vmul.f32 %v3484_v49, %v10834_v61  ;;  %v10918_v59 = vmul.f32 %v3024_v15, %v3000_v34  ;;  %v10921_v13 = vmul.f32 0.5, %v10595_v63 }
 0x489   : > { %12409 = vst [vmem:[#allocation30_spill] sm:$0xff] %v10914_v14  ;;  %v3118_v39 = vmul.f32 %v3117_v30, %v10654_v1  ;;  %v10925_v10 = vadd.f32 %v10512_v38, %v5005_v47  ;;  %v3140_v21 = vand.u32 2147483647, %v10840_v24  ;;  %v3142_v56 = vand.u32 2147483648, %v10840_v24  ;;  %v5195_v30 = vpop.f32.mrf.mxu1 }
 0x48a   : > { %v6380_v40 = vpop.eup %6379  ;;  %6381 = vrcp.f32 %v10907_v31  ;;  %v10930_v5 = vmin.f32 %v3588_v20, 16.0  ;;  %vm3137_vm4 = vweird.f32 %v10876_v58  ;;  %v3351_v11 = vadd.f32 0.00028619796, %v3350_v35 }
 0x48b   : > { %v3368_v55 = vadd.f32 0.4994258, %v3367_v16  ;;  %v4652_v63 = vmul.f32 %v6380_v40, %v10887_v52  ;;  %v3134_v1 = vmul.f32 %v10876_v58, %v3133_v0  ;;  %v3235_v7 = vadd.f32 0.05243302, %v3234_v43 }
 0x48c   : > { %v3486_v3 = vadd.f32 0.112945676, %v3485_v19  ;;  %v4662_v36 = vand.u32 2147483648, %v10887_v52  ;;  %vm4656_vm5 = vweird.f32 %v10887_v52  ;;  %vm4657_vm6 = vweird.f32 %v6380_v40 }
 0x48d   : > { %v4653_v49 = vsub.f32 1.0, %v4652_v63  ;;  %v4660_v62 = vand.u32 2147483647, %v10887_v52  ;;  %v3601_v15 = vmul.f32 3.8918573e-05, %v10930_v5  ;;  %v5196_v20 = vadd.f32 %v5195_v30, %v10638_v54  ;;  %vm10951_vm7 = vmor %vm4656_vm5, %vm4657_vm6 }
 0x48e   : > { %v6060_v53 = vclamps-f32 %v2905_v42, 1.0  ;;  %v10941_v34 = vadd.f32 %v649_v48, %v8911_v6  ;;  %v3352_v50 = vmul.f32 %v3351_v11, %v10788_v45  ;;  %v3369_v35 = vmul.f32 %v3368_v55, %v10788_v45 }
 0x48f   : > { %v3470_v16 = vmul.f32 2.1237322e-06, %v10834_v61  ;;  %v4654_v0 = vmul.f32 %v6380_v40, %v4653_v49  ;;  %v3487_v43 = vmul.f32 %v3486_v3, %v10834_v61  ;;  %v4663_v54 = vor.u32 1.1754944e-38, %v4662_v36  ;;  %v5118_v49 = vpop.f32.mrf.mxu0 }
 0x490   : > { %v10946_v47 = vpop.eup %6381  ;;  %v6106_v42 = vmul.f32 -1.442695, %v5196_v20  ;;  %v4758_v63 = vadd.f32 1.0, %v6060_v53  ;;  %v3135_v11 = vadd.f32 %v10876_v58, %v3134_v1  ;;  %v3236_v55 = vmul.f32 %v3235_v7, %v10730_v37 }
 0x491   : > { %v4655_v30 = vadd.f32 %v6380_v40, %v4654_v0  ;;  %vm4661_vm8 = vcmp.eq.f32.partialorder %v4660_v62, 8.507059e+37  ;;  %v3602_v48 = vadd.f32 0.001143296, %v3601_v15  ;;  %v10959_v52 = vmul.f32 0.70710677, %v10941_v34 }
 0x492   : > { %6383 = vpow2.f32 %v6106_v42  ;;  %v4854_v3 = vmul.f32 %v4758_v63, %v10802_v28  ;;  %v3252_v14 = vmul.f32 %v10946_v47, %v10907_v31  ;;  %v3353_v36 = vadd.f32 0.0036580483, %v3352_v50  ;;  %v5008_v42 = vpop.f32.mrf.mxu3 }
 0x493   : > { %v10963_v20 = vadd.f32 1.0, %v3369_v35  ;;  %v4659_v1 = vsel %vm10951_vm7, %v6380_v40, %v4655_v30  ;;  %v3471_v7 = vadd.f32 0.00028619796, %v3470_v16  ;;  %v3488_v53 = vadd.f32 0.4994258, %v3487_v43 }
 0x494   : > { %v4664_v62 = vsel %vm4661_vm8, %v4663_v54, %v4659_v1  ;;  %5242 = vmatmul.f32.gmra.mxu1 %v4854_v3  ;;  %v3708_v15 = vmul.f32 %v10959_v52, %v10959_v52  ;;  %v3119_v28 = vadd.f32 1.1283791, %v3118_v39  ;;  %vm3136_vm9 = vweird.f32 %v10840_v24 }
 0x495   : > { %vm10970_vm10 = vcmp.eq.f32.partialorder %v3140_v21, 8.507059e+37  ;;  %v4665_v50 = vmul.f32 %v4664_v62, %v10634_v18  ;;  %vm10977_vm11 = vmor %vm3136_vm9, %vm3137_vm4  ;;  %v3143_v35 = vor.u32 1.1754944e-38, %v3142_v56  ;;  %v3237_v16 = vadd.f32 0.18741608, %v3236_v55  ;;  %v12416_v62 = vld [vmem:[#allocation40_spill] sm:$0xff] }
 0x496   : > { %v3603_v43 = vmul.f32 %v3602_v48, %v10930_v5  ;;  %v10982_v19 = vmin.f32 %v3708_v15, 16.0  ;;  %v3139_v24 = vsel %vm10977_vm11, %v10876_v58, %v3135_v11  ;;  %v3253_v39 = vsub.f32 1.0, %v3252_v14 }
 0x497   : > { %v3354_v21 = vmul.f32 %v3353_v36, %v10788_v45  ;;  %v6104_v18 = vclamps-f32 %v4665_v50, 1.0  ;;  %6385 = vrcp.f32 %v10963_v20  ;;  %v3472_v63 = vmul.f32 %v3471_v7, %v10834_v61  ;;  %v5121_v40 = vpop.f32.mrf.mxu0 }
 0x498   : > { %v6384_v54 = vpop.eup %6383  ;;  %v3489_v56 = vmul.f32 %v3488_v53, %v10834_v61  ;;  %v3721_v55 = vmul.f32 3.8918573e-05, %v10982_v19  ;;  %v5009_v30 = vadd.f32 %v10512_v38, %v5008_v42  ;;  %v3590_v58 = vmul.f32 2.1237322e-06, %v10930_v5  ;;  %v652_v42 = vpop.f32.mrf.mxu2 }
 0x499   : > { %v4802_v48 = vadd.f32 1.0, %v6104_v18  ;;  %v10994_v14 = vadd.f32 1.0, %v6384_v54  ;;  %v3120_v11 = vmul.f32 %v3119_v28, %v10608_v33  ;;  %v3144_v3 = vsel %vm10970_vm10, %v3143_v35, %v3139_v24 }
 0x49a   : > { %v3238_v36 = vmul.f32 %v3237_v16, %v10730_v37  ;;  %v3604_v1 = vadd.f32 0.014752088, %v3603_v43  ;;  %v3254_v7 = vmul.f32 %v10946_v47, %v3253_v39  ;;  %v3355_v53 = vadd.f32 0.05243302, %v3354_v21  ;;  %v5198_v21 = vpop.f32.mrf.mxu1 }
 0x49b   : > { %v4898_v15 = vmul.f32 %v4802_v48, %v12416_v62  ;;  %v3722_v38 = vadd.f32 0.001143296, %v3721_v55  ;;  %v11003_v50 = vadd.f32 %v5118_v49, %v10925_v10  ;;  %v3473_v18 = vadd.f32 0.0036580483, %v3472_v63 }
 0x49c   : > { %v11005_v54 = vadd.f32 1.0, %v3489_v56  ;;  %6387 = vrcp.f32 %v10994_v14  ;;  %v11012_v33 = vmul.f32 %v3144_v3, %v3120_v11  ;;  %v11015_v37 = vmul.f32 0.5, %v10672_v27 }
 0x49d   : > { %v11017_v28 = vadd.f32 %v5121_v40, %v5009_v30  ;;  %5174 = vmatmul.f32.gmra.mxu0 %v4898_v15  ;;  %v3591_v10 = vadd.f32 0.00028619796, %v3590_v58  ;;  %v11019_v49 = vpop.eup %6385  ;;  %v3239_v0 = vadd.f32 1.1283791, %v3238_v36  ;;  %v3260_v35 = vand.u32 2147483647, %v10907_v31 }
 0x49e   : > { %v3262_v16 = vand.u32 2147483648, %v10907_v31  ;;  %v3605_v43 = vmul.f32 %v3604_v1, %v10930_v5  ;;  %v3255_v24 = vadd.f32 %v10946_v47, %v3254_v7  ;;  %vm3257_vm12 = vweird.f32 %v10946_v47 }
 0x49f   : > { %v3356_v27 = vmul.f32 %v3355_v53, %v10788_v45  ;;  %v3723_v39 = vmul.f32 %v3722_v38, %v10982_v19  ;;  %v3474_v63 = vmul.f32 %v3473_v18, %v10834_v61  ;;  %6389 = vrcp.f32 %v11005_v54 }
 0x4a0   : > { %v5199_v56 = vadd.f32 %v5198_v21, %v10641_v29  ;;  %v6063_v55 = vclamps-f32 %v10918_v59, 1.0  ;;  %vm3256_vm13 = vweird.f32 %v10907_v31  ;;  %v3372_v30 = vmul.f32 %v11019_v49, %v10963_v20 }
 0x4a1   : > { %v3592_v48 = vmul.f32 %v3591_v10, %v10930_v5  ;;  %v11038_v58 = vadd.f32 %v652_v42, %v8911_v6  ;;  %v3240_v3 = vmul.f32 %v3239_v0, %v10694_v9  ;;  %vm11043_vm14 = vmor %vm3256_vm13, %vm3257_vm12  ;;  %vm11047_vm15 = vcmp.eq.f32.partialorder %v3260_v35, 8.507059e+37 }
 0x4a2   : > { %v6388_v11 = vpop.eup %6387  ;;  %v3606_v31 = vadd.f32 0.112945676, %v3605_v43  ;;  %v6107_v59 = vmul.f32 -1.442695, %v5199_v56  ;;  %v3259_v1 = vsel %vm11043_vm14, %v10946_v47, %v3255_v24  ;;  %v3263_v7 = vor.u32 1.1754944e-38, %v3262_v16 }
 0x4a3   : > { %v5420_v9 = vmul.f32 %v6388_v11, %v10994_v14  ;;  %v3724_v53 = vadd.f32 0.014752088, %v3723_v39  ;;  %v3357_v62 = vadd.f32 0.18741608, %v3356_v27  ;;  %v3475_v15 = vadd.f32 0.05243302, %v3474_v63  ;;  %v5011_v27 = vpop.f32.mrf.mxu3 }
 0x4a4   : > { %6391 = vpow2.f32 %v6107_v59  ;;  %v4761_v38 = vadd.f32 1.0, %v6063_v55  ;;  %v3373_v40 = vsub.f32 1.0, %v3372_v30  ;;  %v3593_v18 = vadd.f32 0.0036580483, %v3592_v48  ;;  %v11079_v55 = vld [vmem:[%s12009_s4] ss:$0 sm:$0xff] }
 0x4a5   : > { %v5421_v10 = vsub.f32 1.0, %v5420_v9  ;;  %v11061_v0 = vmul.f32 0.70710677, %v11038_v58  ;;  %v11063_v35 = vpop.eup %6389  ;;  %v3607_v47 = vmul.f32 %v3606_v31, %v10930_v5  ;;  %v5428_v16 = vand.u32 2147483647, %v10994_v14 }
 0x4a6   : > { %v5430_v43 = vand.u32 2147483648, %v10994_v14  ;;  %v4857_v24 = vmul.f32 %v4761_v38, %v10905_v17  ;;  %vm5425_vm0 = vweird.f32 %v6388_v11  ;;  %v3725_v21 = vmul.f32 %v3724_v53, %v10982_v19 }
 0x4a7   : > { %v5422_v39 = vmul.f32 %v6388_v11, %v5421_v10  ;;  %v3828_v42 = vmul.f32 %v11061_v0, %v11061_v0  ;;  %v3264_v63 = vsel %vm11047_vm15, %v3263_v7, %v3259_v1  ;;  %v3358_v56 = vmul.f32 %v3357_v62, %v10788_v45 }
 0x4a8   : > { %v5012_v17 = vadd.f32 %v11079_v55, %v5011_v27  ;;  %v3476_v30 = vmul.f32 %v3475_v15, %v10834_v61  ;;  %5245 = vmatmul.f32.gmra.mxu1 %v4857_v24  ;;  %v3492_v48 = vmul.f32 %v11063_v35, %v11005_v54  ;;  %v3594_v36 = vmul.f32 %v3593_v18, %v10930_v5 }
 0x4a9   : > { %v5423_v31 = vadd.f32 %v6388_v11, %v5422_v39  ;;  %vm5424_vm1 = vweird.f32 %v10994_v14  ;;  %v3374_v45 = vmul.f32 %v11019_v49, %v3373_v40  ;;  %v3608_v59 = vadd.f32 0.4994258, %v3607_v47 }
 0x4aa   : > { %v6392_v29 = vpop.eup %6391  ;;  %vm5426_vm2 = vmor %vm5424_vm1, %vm5425_vm0  ;;  %v5431_v1 = vor.u32 1.1754944e-38, %v5430_v43  ;;  %vm5899_vm3 = vcmask 130048   ;;  %vm5429_vm4 = vcmp.eq.f32.partialorder %v5428_v16, 8.507059e+37  ;;  %v3726_v9 = vadd.f32 0.112945676, %v3725_v21 }
 0x4ab   : > { %v5427_v7 = vsel %vm5426_vm2, %v6388_v11, %v5423_v31  ;;  %v11094_v53 = vmin.f32 %v3828_v42, 16.0  ;;  %v3359_v14 = vadd.f32 1.1283791, %v3358_v56  ;;  %v3477_v62 = vadd.f32 0.18741608, %v3476_v30 }
 0x4ac   : > { %v5432_v15 = vsel %vm5429_vm4, %v5431_v1, %v5427_v7  ;;  %v11096_v38 = vadd.f32 1.0, %v6392_v29  ;;  %v11098_v40 = vmul.f32 %v3264_v63, %v3240_v3  ;;  %v11101_v18 = vmul.f32 0.5, %v10733_v32  ;;  %v5124_v3 = vpop.f32.mrf.mxu0 }
 0x4ad   : > { %v3493_v10 = vsub.f32 1.0, %v3492_v48  ;;  %v3595_v47 = vadd.f32 0.05243302, %v3594_v36  ;;  %5900 = vst.msk [vmem:[%s11091_s12] sm:$0xff] %vm5899_vm3, %v5432_v15  ;;  %v3382_v11 = vand.u32 2147483648, %v10963_v20  ;;  %v3609_v16 = vmul.f32 %v3608_v59, %v10930_v5 }
 0x4ae   : > { %v3710_v43 = vmul.f32 2.1237322e-06, %v10982_v19  ;;  %6393 = vrcp.f32 %v11096_v38  ;;  %v11110_v24 = vadd.f32 %v11019_v49, %v3374_v45  ;;  %vm3377_vm5 = vweird.f32 %v11019_v49 }
 0x4af   : > { %v3727_v32 = vmul.f32 %v3726_v9, %v10982_v19  ;;  %v3841_v27 = vmul.f32 3.8918573e-05, %v11094_v53  ;;  %v11116_v39 = vmul.f32 %v3359_v14, %v10750_v8  ;;  %vm3376_vm6 = vweird.f32 %v10963_v20 }
 0x4b0   : > { %v11119_v21 = vadd.f32 %v5124_v3, %v5012_v17  ;;  %v3478_v42 = vmul.f32 %v3477_v62, %v10834_v61  ;;  %v3380_v63 = vand.u32 2147483647, %v10963_v20  ;;  %v3494_v56 = vmul.f32 %v11063_v35, %v3493_v10  ;;  %vm11125_vm7 = vmor %vm3376_vm6, %vm3377_vm5  ;;  %v5014_v17 = vpop.f32.mrf.mxu3  ;;  %v5201_v10 = vpop.f32.mrf.mxu1 }
 0x4b1   : > { %v3596_v30 = vmul.f32 %v3595_v47, %v10930_v5  ;;  %v3842_v48 = vadd.f32 0.001143296, %v3841_v27  ;;  %v11129_v31 = vor.u32 1.1754944e-38, %v3382_v11  ;;  %v11132_v8 = vmul.f32 0.5, %v10777_v23  ;;  %v655_v47 = vpop.f32.mrf.mxu2 }
 0x4b2   : > { %v11134_v29 = vadd.f32 1.0, %v3609_v16  ;;  %v3711_v61 = vadd.f32 0.00028619796, %v3710_v43  ;;  %v3379_v20 = vsel %vm11125_vm7, %v11019_v49, %v11110_v24  ;;  %v11141_v45 = vadd.f32 %v11079_v55, %v5014_v17 }
 0x4b3   : > { %v3728_v59 = vadd.f32 0.4994258, %v3727_v32  ;;  %v3843_v1 = vmul.f32 %v3842_v48, %v11094_v53  ;;  %v3479_v9 = vadd.f32 1.1283791, %v3478_v42  ;;  %vm3496_vm8 = vweird.f32 %v11005_v54 }
 0x4b4   : > { %v6394_v7 = vpop.eup %6393  ;;  %vm3497_vm9 = vweird.f32 %v11063_v35  ;;  %v3500_v23 = vand.u32 2147483647, %v11005_v54  ;;  %v3495_v14 = vadd.f32 %v11063_v35, %v3494_v56  ;;  %v3597_v62 = vadd.f32 0.18741608, %v3596_v30  ;;  %v5127_v36 = vpop.f32.mrf.mxu0 }
 0x4b5   : > { %v5435_v15 = vmul.f32 %v6394_v7, %v11096_v38  ;;  %v3844_v49 = vadd.f32 0.014752088, %v3843_v1  ;;  %vm11149_vm10 = vcmp.eq.f32.partialorder %v3380_v63, 8.507059e+37  ;;  %6395 = vrcp.f32 %v11134_v29  ;;  %vm11173_vm12 = vmor %vm3496_vm8, %vm3497_vm9 }
 0x4b6   : > { %v3712_v16 = vmul.f32 %v3711_v61, %v10982_v19  ;;  %v5202_v43 = vadd.f32 %v5201_v10, %v10645_v60  ;;  %v6066_v24 = vclamps-f32 %v11012_v33, 1.0  ;;  %v3729_v3 = vmul.f32 %v3728_v59, %v10982_v19 }
 0x4b7   : > { %v5436_v32 = vsub.f32 1.0, %v5435_v15  ;;  %v3845_v27 = vmul.f32 %v3844_v49, %v11094_v53  ;;  %v11160_v42 = vadd.f32 %v655_v47, %v8911_v6  ;;  %v5445_v63 = vand.u32 2147483648, %v11096_v38 }
 0x4b8   : > { %v3830_v56 = vmul.f32 2.1237322e-06, %v11094_v53  ;;  %v6108_v30 = vmul.f32 -1.442695, %v5202_v43  ;;  %v4764_v48 = vadd.f32 1.0, %v6066_v24  ;;  %vm5440_vm11 = vweird.f32 %v6394_v7 }
 0x4b9   : > { %v5437_v17 = vmul.f32 %v6394_v7, %v5436_v32  ;;  %v5443_v60 = vand.u32 2147483647, %v11096_v38  ;;  %v3846_v33 = vadd.f32 0.112945676, %v3845_v27  ;;  %v3713_v61 = vadd.f32 0.0036580483, %v3712_v16 }
 0x4ba   : > { %6397 = vpow2.f32 %v6108_v30  ;;  %v4860_v59 = vmul.f32 %v4764_v48, %v10921_v13  ;;  %v11167_v1 = vmul.f32 0.70710677, %v11160_v42  ;;  %v3502_v49 = vand.u32 2147483648, %v11005_v54  ;;  %v5017_v13 = vpop.f32.mrf.mxu3 }
 0x4bb   : > { %v5438_v10 = vadd.f32 %v6394_v7, %v5437_v17  ;;  %vm5439_vm13 = vweird.f32 %v11096_v38  ;;  %v3847_v47 = vmul.f32 %v3846_v33, %v11094_v53  ;;  %v11180_v16 = vpop.eup %6395  ;;  %v11182_v43 = vadd.f32 1.0, %v3729_v3 }
 0x4bc   : > { %vm5441_vm14 = vmor %vm5439_vm13, %vm5440_vm11  ;;  %v5446_v24 = vor.u32 1.1754944e-38, %v5445_v63  ;;  %v3831_v32 = vadd.f32 0.00028619796, %v3830_v56  ;;  %5248 = vmatmul.f32.gmra.mxu1 %v4860_v59  ;;  %v3948_v27 = vmul.f32 %v11167_v1, %v11167_v1  ;;  %v3499_v54 = vsel %vm11173_vm12, %v11063_v35, %v3495_v14 }
 0x4bd   : > { %v3598_v38 = vmul.f32 %v3597_v62, %v10930_v5  ;;  %v5442_v30 = vsel %vm5441_vm14, %v6394_v7, %v5438_v10  ;;  %vm5444_vm15 = vcmp.eq.f32.partialorder %v5443_v60, 8.507059e+37  ;;  %v3714_v3 = vmul.f32 %v3713_v61, %v10982_v19 }
 0x4be   : > { %v5447_v48 = vsel %vm5444_vm15, %v5446_v24, %v5442_v30  ;;  %v3848_v17 = vadd.f32 0.4994258, %v3847_v47  ;;  %v11192_v33 = vmin.f32 %v3948_v27, 16.0  ;;  %v3384_v63 = vsel %vm11149_vm10, %v11129_v31, %v3379_v20  ;;  %v5130_v47 = vpop.f32.mrf.mxu0 }
 0x4bf   : > { %v3480_v56 = vmul.f32 %v3479_v9, %v10794_v44  ;;  %v3503_v59 = vor.u32 1.1754944e-38, %v3502_v49  ;;  %v3612_v35 = vmul.f32 %v11180_v16, %v11134_v29  ;;  %5901 = vst.msk [vmem:[%s11091_s12 + $0x8] sm:$0xff] %vm5899_vm3, %v5447_v48  ;;  %vm3501_vm0 = vcmp.eq.f32.partialorder %v3500_v23, 8.507059e+37 }
 0x4c0   : > { %v6398_v5 = vpop.eup %6397  ;;  %6399 = vrcp.f32 %v11182_v43  ;;  %v3832_v7 = vmul.f32 %v3831_v32, %v11094_v53  ;;  %v3961_v14 = vmul.f32 3.8918573e-05, %v11192_v33  ;;  %v5018_v11 = vadd.f32 %v11079_v55, %v5017_v13 }
 0x4c1   : > { %v3504_v62 = vsel %vm3501_vm0, %v3503_v59, %v3499_v54  ;;  %v11206_v31 = vadd.f32 1.0, %v6398_v5  ;;  %v3950_v44 = vmul.f32 2.1237322e-06, %v11192_v33  ;;  %v3599_v20 = vadd.f32 1.1283791, %v3598_v38  ;;  %v658_v59 = vpop.f32.mrf.mxu2 }
 0x4c2   : > { %v3715_v9 = vadd.f32 0.05243302, %v3714_v3  ;;  %v3849_v60 = vmul.f32 %v3848_v17, %v11094_v53  ;;  %v3962_v61 = vadd.f32 0.001143296, %v3961_v14  ;;  %v11211_v23 = vmul.f32 %v3384_v63, %v11116_v39  ;;  %v5020_v30 = vpop.f32.mrf.mxu3  ;;  %v5204_v63 = vpop.f32.mrf.mxu1 }
 0x4c3   : > { %v11214_v15 = vadd.f32 %v5127_v36, %v11141_v45  ;;  %v11217_v49 = vmul.f32 0.5, %v10867_v41  ;;  %v3613_v10 = vsub.f32 1.0, %v3612_v35  ;;  %v11219_v13 = vmul.f32 %v3504_v62, %v3480_v56 }
 0x4c4   : > { %v3622_v24 = vand.u32 2147483648, %v11134_v29  ;;  %v3833_v32 = vadd.f32 0.0036580483, %v3832_v7  ;;  %6401 = vrcp.f32 %v11206_v31  ;;  %v11223_v27 = vadd.f32 %v5130_v47, %v5018_v11 }
 0x4c5   : > { %v11226_v39 = vmul.f32 0.5, %v10941_v34  ;;  %v3951_v54 = vadd.f32 0.00028619796, %v3950_v44  ;;  %v3963_v45 = vmul.f32 %v3962_v61, %v11192_v33  ;;  %v11232_v41 = vmul.f32 %v3599_v20, %v10891_v2 }
 0x4c6   : > { %v11229_v36 = vpop.eup %6399  ;;  %vm3616_vm1 = vweird.f32 %v11134_v29  ;;  %v3716_v38 = vmul.f32 %v3715_v9, %v10982_v19  ;;  %v11236_v3 = vadd.f32 1.0, %v3849_v60  ;;  %v3614_v48 = vmul.f32 %v11180_v16, %v3613_v10 }
 0x4c7   : > { %v3620_v34 = vand.u32 2147483647, %v11134_v29  ;;  %v3964_v17 = vadd.f32 0.014752088, %v3963_v45  ;;  %v6069_v56 = vclamps-f32 %v11098_v40, 1.0  ;;  %v11241_v35 = vor.u32 1.1754944e-38, %v3622_v24  ;;  %v5133_v45 = vpop.f32.mrf.mxu0 }
 0x4c8   : > { %v3834_v2 = vmul.f32 %v3833_v32, %v11094_v53  ;;  %v5205_v5 = vadd.f32 %v5204_v63, %v10650_v22  ;;  %v11246_v7 = vadd.f32 %v658_v59, %v8911_v6  ;;  %v3732_v14 = vmul.f32 %v11229_v36, %v11182_v43 }
 0x4c9   : > { %v3952_v62 = vmul.f32 %v3951_v54, %v11192_v33  ;;  %v3965_v11 = vmul.f32 %v3964_v17, %v11192_v33  ;;  %v4767_v44 = vadd.f32 1.0, %v6069_v56  ;;  %v3717_v40 = vadd.f32 0.18741608, %v3716_v38 }
 0x4ca   : > { %v6402_v20 = vpop.eup %6401  ;;  %v5021_v9 = vadd.f32 %v11079_v55, %v5020_v30  ;;  %6403 = vrcp.f32 %v11236_v3  ;;  %v6109_v60 = vmul.f32 -1.442695, %v5205_v5  ;;  %v3615_v22 = vadd.f32 %v11180_v16, %v3614_v48 }
 0x4cb   : > { %vm3617_vm2 = vweird.f32 %v11180_v16  ;;  %v5450_v61 = vmul.f32 %v6402_v20, %v11206_v31  ;;  %v3966_v10 = vadd.f32 0.112945676, %v3965_v11  ;;  %v3835_v47 = vadd.f32 0.05243302, %v3834_v2 }
 0x4cc   : > { %6405 = vpow2.f32 %v6109_v60  ;;  %v4863_v24 = vmul.f32 %v4767_v44, %v11015_v37  ;;  %v11259_v32 = vmul.f32 0.70710677, %v11246_v7  ;;  %vm11261_vm4 = vcmp.eq.f32.partialorder %v3620_v34, 8.507059e+37  ;;  %vm11276_vm5 = vmor %vm3616_vm1, %vm3617_vm2 }
 0x4cd   : > { %v3733_v55 = vsub.f32 1.0, %v3732_v14  ;;  %v5451_v38 = vsub.f32 1.0, %v5450_v61  ;;  %v3953_v30 = vadd.f32 0.0036580483, %v3952_v62  ;;  %v3967_v48 = vmul.f32 %v3966_v10, %v11192_v33 }
 0x4ce   : > { %v3718_v17 = vmul.f32 %v3717_v40, %v10982_v19  ;;  %v11267_v63 = vadd.f32 %v5133_v45, %v5021_v9  ;;  %v5460_v56 = vand.u32 2147483648, %v11206_v31  ;;  %5251 = vmatmul.f32.gmra.mxu1 %v4863_v24  ;;  %v4068_v37 = vmul.f32 %v11259_v32, %v11259_v32 }
 0x4cf   : > { %v5452_v59 = vmul.f32 %v6402_v20, %v5451_v38  ;;  %vm5455_vm6 = vweird.f32 %v6402_v20  ;;  %v5458_v19 = vand.u32 2147483647, %v11206_v31  ;;  %v3968_v2 = vadd.f32 0.4994258, %v3967_v48 }
 0x4d0   : > { %v11281_v5 = vpop.eup %6403  ;;  %v3619_v14 = vsel %vm11276_vm5, %v11180_v16, %v3615_v22  ;;  %v11287_v62 = vmul.f32 0.5, %v11038_v58  ;;  %v3836_v29 = vmul.f32 %v3835_v47, %v11094_v53  ;;  %v11290_v11 = vmin.f32 %v4068_v37, 16.0 }
 0x4d1   : > { %v3734_v44 = vmul.f32 %v11229_v36, %v3733_v55  ;;  %v5453_v40 = vadd.f32 %v6402_v20, %v5452_v59  ;;  %vm5454_vm7 = vweird.f32 %v11206_v31  ;;  %v3954_v9 = vmul.f32 %v3953_v30, %v11192_v33 }
 0x4d2   : > { %v6406_v60 = vpop.eup %6405  ;;  %v3719_v61 = vadd.f32 1.1283791, %v3718_v17  ;;  %v3740_v10 = vand.u32 2147483647, %v11182_v43  ;;  %vm5456_vm8 = vmor %vm5454_vm7, %vm5455_vm6  ;;  %v5461_v58 = vor.u32 1.1754944e-38, %v5460_v56  ;;  %v3969_v16 = vmul.f32 %v3968_v2, %v11192_v33  ;;  %v5207_v17 = vpop.f32.mrf.mxu1 }
 0x4d3   : > { %v3852_v22 = vmul.f32 %v11281_v5, %v11236_v3  ;;  %v5457_v47 = vsel %vm5456_vm8, %v6402_v20, %v5453_v40  ;;  %vm5459_vm9 = vcmp.eq.f32.partialorder %v5458_v19, 8.507059e+37  ;;  %v4081_v24 = vmul.f32 3.8918573e-05, %v11290_v11 }
 0x4d4   : > { %v3742_v31 = vand.u32 2147483648, %v11182_v43  ;;  %v3837_v55 = vadd.f32 0.18741608, %v3836_v29  ;;  %v5462_v45 = vsel %vm5459_vm9, %v5461_v58, %v5457_v47  ;;  %v11302_v38 = vadd.f32 1.0, %v6406_v60 }
 0x4d5   : > { %v3735_v30 = vadd.f32 %v11229_v36, %v3734_v44  ;;  %vm3737_vm10 = vweird.f32 %v11229_v36  ;;  %5902 = vst.msk [vmem:[%s11091_s12 + $0x10] sm:$0xff] %vm5899_vm3, %v5462_v45  ;;  %v3955_v48 = vadd.f32 0.05243302, %v3954_v9  ;;  %v6072_v56 = vclamps-f32 %v11211_v23, 1.0  ;;  %v661_v9 = vpop.f32.mrf.mxu2 }
 0x4d6   : > { %v11312_v20 = vsel %vm11261_vm4, %v11241_v35, %v3619_v14  ;;  %v11314_v37 = vadd.f32 1.0, %v3969_v16  ;;  %6407 = vrcp.f32 %v11302_v38  ;;  %v4070_v34 = vmul.f32 2.1237322e-06, %v11290_v11 }
 0x4d7   : > { %v11319_v59 = vmul.f32 %v3719_v61, %v10959_v52  ;;  %vm3736_vm11 = vweird.f32 %v11182_v43  ;;  %v3853_v19 = vsub.f32 1.0, %v3852_v22  ;;  %v4082_v2 = vadd.f32 0.001143296, %v4081_v24 }
 0x4d8   : > { %vm11322_vm12 = vmor %vm3736_vm11, %vm3737_vm10  ;;  %vm11326_vm13 = vcmp.eq.f32.partialorder %v3740_v10, 8.507059e+37  ;;  %v3743_v54 = vor.u32 1.1754944e-38, %v3742_v31  ;;  %v3838_v14 = vmul.f32 %v3837_v55, %v11094_v53  ;;  %v5208_v29 = vadd.f32 %v5207_v17, %v10657_v4 }
 0x4d9   : > { %v3739_v52 = vsel %vm11322_vm12, %v11229_v36, %v3735_v30  ;;  %v3956_v43 = vmul.f32 %v3955_v48, %v11192_v33  ;;  %v4083_v44 = vmul.f32 %v4082_v2, %v11290_v11  ;;  %v4770_v40 = vadd.f32 1.0, %v6072_v56 }
 0x4da   : > { %6409 = vrcp.f32 %v11314_v37  ;;  %v4071_v60 = vadd.f32 0.00028619796, %v4070_v34  ;;  %v6110_v61 = vmul.f32 -1.442695, %v5208_v29  ;;  %v11339_v10 = vadd.f32 %v661_v9, %v8911_v6  ;;  %v5210_v55 = vpop.f32.mrf.mxu1 }
 0x4db   : > { %v3854_v53 = vmul.f32 %v11281_v5, %v3853_v19  ;;  %v4084_v4 = vadd.f32 0.014752088, %v4083_v44  ;;  %v4866_v58 = vmul.f32 %v4770_v40, %v11101_v18  ;;  %v6075_v36 = vclamps-f32 %v11219_v13, 1.0 }
 0x4dc   : > { %v6408_v16 = vpop.eup %6407  ;;  %v11346_v22 = vsel %vm11326_vm13, %v3743_v54, %v3739_v52  ;;  %v11348_v47 = vadd.f32 1.1283791, %v3838_v14  ;;  %v11351_v24 = vmul.f32 0.5, %v11160_v42  ;;  %6411 = vpow2.f32 %v6110_v61 }
 0x4dd   : > { %vm3856_vm14 = vweird.f32 %v11236_v3  ;;  %vm3857_vm15 = vweird.f32 %v11281_v5  ;;  %v3862_v31 = vand.u32 2147483648, %v11236_v3  ;;  %v5465_v18 = vmul.f32 %v6408_v16, %v11302_v38  ;;  %5254 = vmatmul.f32.gmra.mxu1 %v4866_v58 }
 0x4de   : > { %v4085_v13 = vmul.f32 %v4084_v4, %v11290_v11  ;;  %v3957_v45 = vadd.f32 0.18741608, %v3956_v43  ;;  %v4072_v30 = vmul.f32 %v4071_v60, %v11290_v11  ;;  %v11360_v48 = vmul.f32 0.70710677, %v11339_v10  ;;  %v664_v43 = vpop.f32.mrf.mxu2  ;;  %vm11390_vm5 = vmor %vm3856_vm14, %vm3857_vm15 }
 0x4df   : > { %v5211_v42 = vadd.f32 %v5210_v55, %v10659_v25  ;;  %v3855_v17 = vadd.f32 %v11281_v5, %v3854_v53  ;;  %v5466_v56 = vsub.f32 1.0, %v5465_v18  ;;  %v4773_v19 = vadd.f32 1.0, %v6075_v36 }
 0x4e0   : > { %v4086_v34 = vadd.f32 0.112945676, %v4085_v13  ;;  %v11364_v2 = vpop.eup %6409  ;;  %v5473_v23 = vand.u32 2147483647, %v11302_v38  ;;  %v5475_v35 = vand.u32 2147483648, %v11302_v38  ;;  %v4188_v54 = vmul.f32 %v11360_v48, %v11360_v48 }
 0x4e1   : > { %v6111_v14 = vmul.f32 -1.442695, %v5211_v42  ;;  %v5467_v29 = vmul.f32 %v6408_v16, %v5466_v56  ;;  %vm5470_vm0 = vweird.f32 %v6408_v16  ;;  %v4869_v25 = vmul.f32 %v4773_v19, %v11132_v8 }
 0x4e2   : > { %v4087_v52 = vmul.f32 %v4086_v34, %v11290_v11  ;;  %v6412_v44 = vpop.eup %6411  ;;  %vm5469_vm1 = vweird.f32 %v11302_v38  ;;  %v4073_v40 = vadd.f32 0.0036580483, %v4072_v30  ;;  %v11373_v9 = vmin.f32 %v4188_v54, 16.0 }
 0x4e3   : > { %6413 = vpow2.f32 %v6111_v14  ;;  %v3972_v60 = vmul.f32 %v11364_v2, %v11314_v37  ;;  %v5468_v61 = vadd.f32 %v6408_v16, %v5467_v29  ;;  %v11377_v4 = vadd.f32 1.0, %v6412_v44  ;;  %vm5471_vm2 = vmor %vm5469_vm1, %vm5470_vm0 }
 0x4e4   : > { %v4088_v53 = vadd.f32 0.4994258, %v4087_v52  ;;  %v5476_v58 = vor.u32 1.1754944e-38, %v5475_v35  ;;  %v4190_v8 = vmul.f32 2.1237322e-06, %v11373_v9  ;;  %v11382_v38 = vadd.f32 %v664_v43, %v8911_v6  ;;  %v5213_v35 = vpop.f32.mrf.mxu1 }
 0x4e5   : > { %v4201_v36 = vmul.f32 3.8918573e-05, %v11373_v9  ;;  %v3860_v18 = vand.u32 2147483647, %v11236_v3  ;;  %v5472_v13 = vsel %vm5471_vm2, %v6408_v16, %v5468_v61  ;;  %vm5474_vm4 = vcmp.eq.f32.partialorder %v5473_v23, 8.507059e+37  ;;  %5257 = vmatmul.f32.gmra.mxu1 %v4869_v25 }
 0x4e6   : > { %v4089_v55 = vmul.f32 %v4088_v53, %v11290_v11  ;;  %v3863_v42 = vor.u32 1.1754944e-38, %v3862_v31  ;;  %v3958_v56 = vmul.f32 %v3957_v45, %v11192_v33  ;;  %v5477_v34 = vsel %vm5474_vm4, %v5476_v58, %v5472_v13 }
 0x4e7   : > { %6415 = vrcp.f32 %v11377_v4  ;;  %v3859_v16 = vsel %vm11390_vm5, %v11281_v5, %v3855_v17  ;;  %v3973_v19 = vsub.f32 1.0, %v3972_v60  ;;  %5903 = vst.msk [vmem:[%s11091_s12 + $0x18] sm:$0xff] %vm5899_vm3, %v5477_v34  ;;  %v4074_v23 = vmul.f32 %v4073_v40, %v11290_v11 }
 0x4e8   : > { %v11402_v3 = vadd.f32 1.0, %v4089_v55  ;;  %v3625_v31 = vmul.f32 %v11312_v20, %v11232_v41  ;;  %v4191_v33 = vadd.f32 0.00028619796, %v4190_v8  ;;  %v4202_v45 = vadd.f32 0.001143296, %v4201_v36 }
 0x4e9   : > { %v6414_v54 = vpop.eup %6413  ;;  %v11407_v14 = vmul.f32 0.70710677, %v11382_v38  ;;  %v11411_v5 = vmul.f32 %v11346_v22, %v11319_v59  ;;  %v11415_v17 = vmul.f32 %v11348_v47, %v11061_v0  ;;  %vm3861_vm6 = vcmp.eq.f32.partialorder %v3860_v18, 8.507059e+37 }
 0x4ea   : > { %v11418_v29 = vmul.f32 0.5, %v11246_v7  ;;  %v11420_v52 = vsel %vm3861_vm6, %v3863_v42, %v3859_v16  ;;  %v11422_v41 = vadd.f32 1.1283791, %v3958_v56  ;;  %v3982_v20 = vand.u32 2147483648, %v11314_v37 }
 0x4eb   : > { %v4203_v25 = vmul.f32 %v4202_v45, %v11373_v9  ;;  %v4075_v43 = vadd.f32 0.05243302, %v4074_v23  ;;  %6417 = vrcp.f32 %v11402_v3  ;;  %v11427_v59 = vadd.f32 1.0, %v6414_v54 }
 0x4ec   : > { %v4308_v0 = vmul.f32 %v11407_v14, %v11407_v14  ;;  %v3974_v7 = vmul.f32 %v11364_v2, %v3973_v19  ;;  %v4192_v47 = vmul.f32 %v4191_v33, %v11373_v9  ;;  %v5214_v40 = vadd.f32 %v5213_v35, %v10685_v57  ;;  %v11453_v54 = vpop.f32.mrf.mxu1 }
 0x4ed   : > { %v6416_v22 = vpop.eup %6415  ;;  %v4204_v44 = vadd.f32 0.014752088, %v4203_v25  ;;  %vm3976_vm7 = vweird.f32 %v11314_v37  ;;  %v3980_v60 = vand.u32 2147483647, %v11314_v37  ;;  %6419 = vrcp.f32 %v11427_v59 }
 0x4ee   : > { %v5480_v61 = vmul.f32 %v6416_v22, %v11377_v4  ;;  %vm3977_vm8 = vweird.f32 %v11364_v2  ;;  %v3983_v53 = vor.u32 1.1754944e-38, %v3982_v20  ;;  %v5490_v58 = vand.u32 2147483648, %v11377_v4 }
 0x4ef   : > { %v4205_v8 = vmul.f32 %v4204_v44, %v11373_v9  ;;  %v11441_v18 = vmin.f32 %v4308_v0, 16.0  ;;  %v6112_v13 = vmul.f32 -1.442695, %v5214_v40  ;;  %v6078_v57 = vclamps-f32 %v3625_v31, 1.0  ;;  %vm11466_vm13 = vmor %vm3976_vm7, %vm3977_vm8 }
 0x4f0   : > { %v5481_v36 = vsub.f32 1.0, %v5480_v61  ;;  %v3975_v55 = vadd.f32 %v11364_v2, %v3974_v7  ;;  %v4076_v30 = vmul.f32 %v4075_v43, %v11290_v11  ;;  %v4193_v42 = vadd.f32 0.0036580483, %v4192_v47 }
 0x4f1   : > { %v4206_v56 = vadd.f32 0.112945676, %v4205_v8  ;;  %v11445_v34 = vpop.eup %6417  ;;  %vm11447_vm9 = vcmp.eq.f32.partialorder %v3980_v60, 8.507059e+37  ;;  %vm5485_vm10 = vweird.f32 %v6416_v22  ;;  %v5488_v23 = vand.u32 2147483647, %v11377_v4  ;;  %v667_v8 = vpop.f32.mrf.mxu2 }
 0x4f2   : > { %v5482_v19 = vmul.f32 %v6416_v22, %v5481_v36  ;;  %v4310_v35 = vmul.f32 2.1237322e-06, %v11441_v18  ;;  %vm5484_vm11 = vweird.f32 %v11377_v4  ;;  %v5491_v31 = vor.u32 1.1754944e-38, %v5490_v58 }
 0x4f3   : > { %v4207_v33 = vmul.f32 %v4206_v56, %v11373_v9  ;;  %v4321_v45 = vmul.f32 3.8918573e-05, %v11441_v18  ;;  %v6420_v20 = vpop.eup %6419  ;;  %6421 = vpow2.f32 %v6112_v13  ;;  %v4776_v0 = vadd.f32 1.0, %v6078_v57  ;;  %vm5486_vm12 = vmor %vm5484_vm11, %vm5485_vm10 }
 0x4f4   : > { %v5483_v25 = vadd.f32 %v6416_v22, %v5482_v19  ;;  %v4311_v43 = vadd.f32 0.00028619796, %v4310_v35  ;;  %v4092_v7 = vmul.f32 %v11445_v34, %v11402_v3  ;;  %v4194_v47 = vmul.f32 %v4193_v42, %v11373_v9 }
 0x4f5   : > { %v4208_v44 = vadd.f32 0.4994258, %v4207_v33  ;;  %v5495_v4 = vmul.f32 %v6420_v20, %v11427_v59  ;;  %v4077_v60 = vadd.f32 0.18741608, %v4076_v30  ;;  %vm5489_vm14 = vcmp.eq.f32.partialorder %v5488_v23, 8.507059e+37 }
 0x4f6   : > { %v5487_v61 = vsel %vm5486_vm12, %v6416_v22, %v5483_v25  ;;  %v4322_v58 = vadd.f32 0.001143296, %v4321_v45  ;;  %v3979_v36 = vsel %vm11466_vm13, %v11364_v2, %v3975_v55  ;;  %v5503_v42 = vand.u32 2147483647, %v11427_v59 }
 0x4f7   : > { %v5492_v13 = vsel %vm5489_vm14, %v5491_v31, %v5487_v61  ;;  %v4209_v57 = vmul.f32 %v4208_v44, %v11373_v9  ;;  %v5496_v37 = vsub.f32 1.0, %v5495_v4  ;;  %v4312_v56 = vmul.f32 %v4311_v43, %v11441_v18  ;;  %v11496_v44 = vpop.f32.mrf.mxu1 }
 0x4f8   : > { %5904 = vst.msk [vmem:[%s11091_s12 + $0x20] sm:$0xff] %vm5899_vm3, %v5492_v13  ;;  %v4323_v30 = vmul.f32 %v4322_v58, %v11441_v18  ;;  %v4872_v22 = vmul.f32 %v4776_v0, %v11217_v49  ;;  %v4093_v19 = vsub.f32 1.0, %v4092_v7  ;;  %v4195_v23 = vadd.f32 0.05243302, %v4194_v47 }
 0x4f9   : > { %v5505_v35 = vand.u32 2147483648, %v11427_v59  ;;  %v11482_v2 = vadd.f32 %v667_v8, %v8911_v6  ;;  %v6422_v55 = vpop.eup %6421  ;;  %v11484_v31 = vadd.f32 1.0, %v4209_v57  ;;  %v5497_v33 = vmul.f32 %v6420_v20, %v5496_v37 }
 0x4fa   : > { %vm5500_vm15 = vweird.f32 %v6420_v20  ;;  %v4324_v45 = vadd.f32 0.014752088, %v4323_v30  ;;  %5260 = vmatmul.f32.gmra.mxu1 %v4872_v22  ;;  %v11488_v25 = vmul.f32 %v11420_v52, %v11415_v17  ;;  %v3960_v49 = vmul.f32 %v11422_v41, %v11167_v1  ;;  %v670_v22 = vpop.f32.mrf.mxu2 }
 0x4fb   : > { %v3984_v43 = vsel %vm11447_vm9, %v3983_v53, %v3979_v36  ;;  %v4078_v0 = vmul.f32 %v4077_v60, %v11290_v11  ;;  %v5498_v7 = vadd.f32 %v6420_v20, %v5497_v33  ;;  %vm5499_vm0 = vweird.f32 %v11427_v59 }
 0x4fc   : > { %vm5504_vm1 = vcmp.eq.f32.partialorder %v5503_v42, 8.507059e+37  ;;  %v4313_v47 = vadd.f32 0.0036580483, %v4312_v56  ;;  %vm5501_vm2 = vmor %vm5499_vm0, %vm5500_vm15  ;;  %v5506_v4 = vor.u32 1.1754944e-38, %v5505_v35  ;;  %v4325_v17 = vmul.f32 %v4324_v45, %v11441_v18 }
 0x4fd   : > { %v11499_v52 = vadd.f32 1.0, %v6422_v55  ;;  %v11502_v1 = vmul.f32 0.70710677, %v11482_v2  ;;  %v4094_v41 = vmul.f32 %v11445_v34, %v4093_v19  ;;  %v4196_v11 = vmul.f32 %v4195_v23, %v11373_v9 }
 0x4fe   : > { %6423 = vrcp.f32 %v11484_v31  ;;  %v5502_v59 = vsel %vm5501_vm2, %v6420_v20, %v5498_v7  ;;  %v4079_v53 = vadd.f32 1.1283791, %v4078_v0  ;;  %v4326_v40 = vadd.f32 0.112945676, %v4325_v17 }
 0x4ff   : > { %v5507_v16 = vsel %vm5504_vm1, %v5506_v4, %v5502_v59  ;;  %6425 = vrcp.f32 %v11499_v52  ;;  %v11509_v60 = vmul.f32 0.5, %v11339_v10  ;;  %v11514_v61 = vmul.f32 0.5, %v11382_v38 }
 0x500   : > { %5905 = vst.msk [vmem:[%s11091_s12 + $0x28] sm:$0xff] %vm5899_vm3, %v5507_v16  ;;  %v4314_v58 = vmul.f32 %v4313_v47, %v11441_v18  ;;  %v4428_v8 = vmul.f32 %v11502_v1, %v11502_v1  ;;  %v4100_v20 = vand.u32 2147483647, %v11402_v3  ;;  %v4327_v36 = vmul.f32 %v4326_v40, %v11441_v18  ;;  %v11554_v47 = vpop.f32.mrf.mxu1 }
 0x501   : > { %v5217_v13 = vadd.f32 %v11453_v54, %v10780_v26  ;;  %v6081_v10 = vclamps-f32 %v11411_v5, 1.0  ;;  %v11524_v57 = vmul.f32 %v3984_v43, %v3960_v49  ;;  %v4095_v42 = vadd.f32 %v11445_v34, %v4094_v41 }
 0x502   : > { %vm4097_vm4 = vweird.f32 %v11445_v34  ;;  %v4197_v38 = vadd.f32 0.18741608, %v4196_v11  ;;  %v4080_v37 = vmul.f32 %v4079_v53, %v11259_v32  ;;  %vm4096_vm5 = vweird.f32 %v11402_v3 }
 0x503   : > { %v4328_v56 = vadd.f32 0.4994258, %v4327_v36  ;;  %v11530_v30 = vmin.f32 %v4428_v8, 16.0  ;;  %v4102_v26 = vand.u32 2147483648, %v11402_v3  ;;  %v4315_v5 = vadd.f32 0.05243302, %v4314_v58  ;;  %vm11535_vm6 = vmor %vm4096_vm5, %vm4097_vm4 }
 0x504   : > { %v11532_v19 = vpop.eup %6423  ;;  %v6113_v54 = vmul.f32 -1.442695, %v5217_v13  ;;  %v4779_v23 = vadd.f32 1.0, %v6081_v10  ;;  %vm11539_vm7 = vcmp.eq.f32.partialorder %v4100_v20, 8.507059e+37  ;;  %v4099_v3 = vsel %vm11535_vm6, %v11445_v34, %v4095_v42 }
 0x505   : > { %v6426_v35 = vpop.eup %6425  ;;  %v4329_v33 = vmul.f32 %v4328_v56, %v11441_v18  ;;  %v4430_v45 = vmul.f32 2.1237322e-06, %v11530_v30  ;;  %v4441_v49 = vmul.f32 3.8918573e-05, %v11530_v30  ;;  %v4198_v43 = vmul.f32 %v4197_v38, %v11373_v9 }
 0x506   : > { %v5510_v0 = vmul.f32 %v6426_v35, %v11499_v52  ;;  %v11552_v7 = vadd.f32 %v670_v22, %v8911_v6  ;;  %6427 = vpow2.f32 %v6113_v54  ;;  %v4212_v11 = vmul.f32 %v11532_v19, %v11484_v31 }
 0x507   : > { %v11556_v4 = vadd.f32 1.0, %v4329_v33  ;;  %v4431_v17 = vadd.f32 0.00028619796, %v4430_v45  ;;  %v4442_v41 = vadd.f32 0.001143296, %v4441_v49  ;;  %v4316_v59 = vmul.f32 %v4315_v5, %v11441_v18 }
 0x508   : > { %v5511_v34 = vsub.f32 1.0, %v5510_v0  ;;  %v4875_v9 = vmul.f32 %v4779_v23, %v11226_v39  ;;  %v4103_v53 = vor.u32 1.1754944e-38, %v4102_v26  ;;  %v5518_v16 = vand.u32 2147483647, %v11499_v52 }
 0x509   : > { %6429 = vrcp.f32 %v11556_v4  ;;  %v5520_v40 = vand.u32 2147483648, %v11499_v52  ;;  %vm5515_vm8 = vweird.f32 %v6426_v35  ;;  %v4432_v8 = vmul.f32 %v4431_v17, %v11530_v30 }
 0x50a   : > { %v5512_v58 = vmul.f32 %v6426_v35, %v5511_v34  ;;  %v4443_v20 = vmul.f32 %v4442_v41, %v11530_v30  ;;  %5263 = vmatmul.f32.gmra.mxu1 %v4875_v9  ;;  %v4104_v36 = vsel %vm11539_vm7, %v4103_v53, %v4099_v3  ;;  %v4199_v13 = vadd.f32 1.1283791, %v4198_v43  ;;  %v673_v34 = vpop.f32.mrf.mxu2 }
 0x50b   : > { %vm5514_vm9 = vweird.f32 %v11499_v52  ;;  %v11571_v39 = vmul.f32 0.70710677, %v11552_v7  ;;  %v4213_v10 = vsub.f32 1.0, %v4212_v11  ;;  %v4317_v42 = vadd.f32 0.18741608, %v4316_v59 }
 0x50c   : > { %v5513_v38 = vadd.f32 %v6426_v35, %v5512_v58  ;;  %v4444_v56 = vadd.f32 0.014752088, %v4443_v20  ;;  %v6428_v22 = vpop.eup %6427  ;;  %vm5516_vm10 = vmor %vm5514_vm9, %vm5515_vm8  ;;  %v5521_v26 = vor.u32 1.1754944e-38, %v5520_v40  ;;  %v4433_v5 = vadd.f32 0.0036580483, %v4432_v8 }
 0x50d   : > { %v4548_v54 = vmul.f32 %v11571_v39, %v11571_v39  ;;  %v5220_v23 = vadd.f32 %v11496_v44, %v10790_v46  ;;  %vm5519_vm11 = vcmp.eq.f32.partialorder %v5518_v16, 8.507059e+37  ;;  %v11578_v32 = vadd.f32 1.0, %v6428_v22 }
 0x50e   : > { %v5517_v55 = vsel %vm5516_vm10, %v6426_v35, %v5513_v38  ;;  %v4445_v52 = vmul.f32 %v4444_v56, %v11530_v30  ;;  %v11582_v45 = vmul.f32 %v4104_v36, %v4080_v37  ;;  %v11587_v0 = vmul.f32 %v4199_v13, %v11360_v48  ;;  %v11593_v35 = vpop.f32.mrf.mxu1 }
 0x50f   : > { %v11580_v33 = vpop.eup %6429  ;;  %v5522_v49 = vsel %vm5519_vm11, %v5521_v26, %v5517_v55  ;;  %v11584_v3 = vmin.f32 %v4548_v54, 16.0  ;;  %v6114_v43 = vmul.f32 -1.442695, %v5220_v23  ;;  %v4214_v17 = vmul.f32 %v11532_v19, %v4213_v10 }
 0x510   : > { %v4318_v46 = vmul.f32 %v4317_v42, %v11441_v18  ;;  %5906 = vst.msk [vmem:[%s11091_s12 + $0x30] sm:$0xff] %vm5899_vm3, %v5522_v49  ;;  %v4446_v44 = vadd.f32 0.112945676, %v4445_v52  ;;  %vm4216_vm12 = vweird.f32 %v11484_v31  ;;  %v4434_v37 = vmul.f32 %v4433_v5, %v11530_v30 }
 0x511   : > { %6431 = vrcp.f32 %v11578_v32  ;;  %v6084_v41 = vclamps-f32 %v11488_v25, 1.0  ;;  %v4220_v48 = vand.u32 2147483647, %v11484_v31  ;;  %v4332_v11 = vmul.f32 %v11580_v33, %v11556_v4 }
 0x512   : > { %v4447_v18 = vmul.f32 %v4446_v44, %v11530_v30  ;;  %v4550_v59 = vmul.f32 2.1237322e-06, %v11584_v3  ;;  %vm4217_vm13 = vweird.f32 %v11532_v19  ;;  %v4222_v9 = vand.u32 2147483648, %v11484_v31 }
 0x513   : > { %v4561_v53 = vmul.f32 3.8918573e-05, %v11584_v3  ;;  %6433 = vpow2.f32 %v6114_v43  ;;  %v4215_v16 = vadd.f32 %v11532_v19, %v4214_v17  ;;  %v4319_v25 = vadd.f32 1.1283791, %v4318_v46  ;;  %vm11620_vm14 = vmor %vm4216_vm12, %vm4217_vm13 }
 0x514   : > { %v4448_v40 = vadd.f32 0.4994258, %v4447_v18  ;;  %v4551_v58 = vadd.f32 0.00028619796, %v4550_v59  ;;  %v4435_v8 = vadd.f32 0.05243302, %v4434_v37  ;;  %v11609_v13 = vadd.f32 %v673_v34, %v8911_v6 }
 0x515   : > { %v4562_v20 = vadd.f32 0.001143296, %v4561_v53  ;;  %v4782_v36 = vadd.f32 1.0, %v6084_v41  ;;  %v4333_v10 = vsub.f32 1.0, %v4332_v11  ;;  %v11612_v42 = vmul.f32 0.5, %v11482_v2 }
 0x516   : > { %v4449_v38 = vmul.f32 %v4448_v40, %v11530_v30  ;;  %v4552_v56 = vmul.f32 %v4551_v58, %v11584_v3  ;;  %vm11624_vm15 = vcmp.eq.f32.partialorder %v4220_v48, 8.507059e+37  ;;  %v4223_v5 = vor.u32 1.1754944e-38, %v4222_v9  ;;  %v11647_v41 = vpop.f32.mrf.mxu1 }
 0x517   : > { %v6432_v22 = vpop.eup %6431  ;;  %v4563_v2 = vmul.f32 %v4562_v20, %v11584_v3  ;;  %v4878_v54 = vmul.f32 %v4782_v36, %v11287_v62  ;;  %v4219_v23 = vsel %vm11620_vm14, %v11532_v19, %v4215_v16  ;;  %v11637_v52 = vmul.f32 0.70710677, %v11609_v13 }
 0x518   : > { %v11633_v55 = vadd.f32 1.0, %v4449_v38  ;;  %v5525_v31 = vmul.f32 %v6432_v22, %v11578_v32  ;;  %v11640_v43 = vmul.f32 %v4319_v25, %v11407_v14  ;;  %v4436_v17 = vmul.f32 %v4435_v8, %v11530_v30 }
 0x519   : > { %v6434_v49 = vpop.eup %6433  ;;  %v4553_v46 = vadd.f32 0.0036580483, %v4552_v56  ;;  %v4564_v44 = vadd.f32 0.014752088, %v4563_v2  ;;  %5266 = vmatmul.f32.gmra.mxu1 %v4878_v54  ;;  %v4334_v62 = vmul.f32 %v11580_v33, %v4333_v10  ;;  %vm4336_vm0 = vweird.f32 %v11556_v4 }
 0x51a   : > { %v4340_v19 = vand.u32 2147483647, %v11556_v4  ;;  %v4342_v37 = vand.u32 2147483648, %v11556_v4  ;;  %v4224_v48 = vsel %vm11624_vm15, %v4223_v5, %v4219_v23  ;;  %6435 = vrcp.f32 %v11633_v55 }
 0x51b   : > { %v5526_v14 = vsub.f32 1.0, %v5525_v31  ;;  %v4554_v11 = vmul.f32 %v4553_v46, %v11584_v3  ;;  %v5535_v18 = vand.u32 2147483648, %v11578_v32  ;;  %v4565_v59 = vmul.f32 %v4564_v44, %v11584_v3 }
 0x51c   : > { %v11655_v34 = vadd.f32 1.0, %v6434_v49  ;;  %v4668_v9 = vmul.f32 %v11637_v52, %v11637_v52  ;;  %v4437_v53 = vadd.f32 0.18741608, %v4436_v17  ;;  %vm5530_vm1 = vweird.f32 %v6432_v22 }
 0x51d   : > { %v5527_v16 = vmul.f32 %v6432_v22, %v5526_v14  ;;  %v5533_v25 = vand.u32 2147483647, %v11578_v32  ;;  %v4335_v40 = vadd.f32 %v11580_v33, %v4334_v62  ;;  %vm4337_vm2 = vweird.f32 %v11580_v33 }
 0x51e   : > { %v4566_v58 = vadd.f32 0.112945676, %v4565_v59  ;;  %6437 = vrcp.f32 %v11655_v34  ;;  %vm5529_vm4 = vweird.f32 %v11578_v32  ;;  %v4555_v20 = vadd.f32 0.05243302, %v4554_v11  ;;  %vm11674_vm6 = vmor %vm4336_vm0, %vm4337_vm2  ;;  %v11687_v23 = vpop.f32.mrf.mxu1 }
 0x51f   : > { %v5528_v8 = vadd.f32 %v6432_v22, %v5527_v16  ;;  %v11664_v36 = vmin.f32 %v4668_v9, 16.0  ;;  %vm5531_vm5 = vmor %vm5529_vm4, %vm5530_vm1  ;;  %v5536_v10 = vor.u32 1.1754944e-38, %v5535_v18  ;;  %v5223_v56 = vadd.f32 %v11554_v47, %v10799_v12 }
 0x520   : > { %v4567_v38 = vmul.f32 %v4566_v58, %v11584_v3  ;;  %v6087_v26 = vclamps-f32 %v11524_v57, 1.0  ;;  %v11670_v6 = vpop.eup %6435  ;;  %vm11678_vm7 = vcmp.eq.f32.partialorder %v4340_v19, 8.507059e+37  ;;  %v4438_v2 = vmul.f32 %v4437_v53, %v11530_v30 }
 0x521   : > { %v5532_v54 = vsel %vm5531_vm5, %v6432_v22, %v5528_v8  ;;  %vm5534_vm8 = vcmp.eq.f32.partialorder %v5533_v25, 8.507059e+37  ;;  %v4339_v12 = vsel %vm11674_vm6, %v11580_v33, %v4335_v40  ;;  %v4670_v4 = vmul.f32 2.1237322e-06, %v11664_v36 }
 0x522   : > { %v5537_v57 = vsel %vm5534_vm8, %v5536_v10, %v5532_v54  ;;  %v4568_v47 = vadd.f32 0.4994258, %v4567_v38  ;;  %v4343_v31 = vor.u32 1.1754944e-38, %v4342_v37  ;;  %v4556_v49 = vmul.f32 %v4555_v20, %v11584_v3 }
 0x523   : > { %5907 = vst.msk [vmem:[%s11091_s12 + $0x38] sm:$0xff] %vm5899_vm3, %v5537_v57  ;;  %v4681_v17 = vmul.f32 3.8918573e-05, %v11664_v36  ;;  %v6115_v30 = vmul.f32 -1.442695, %v5223_v56  ;;  %v4452_v46 = vmul.f32 %v11670_v6, %v11633_v55  ;;  %v4785_v62 = vadd.f32 1.0, %v6087_v26 }
 0x524   : > { %v6438_v22 = vpop.eup %6437  ;;  %v4569_v33 = vmul.f32 %v4568_v47, %v11584_v3  ;;  %v4671_v44 = vadd.f32 0.00028619796, %v4670_v4  ;;  %v4344_v19 = vsel %vm11678_vm7, %v4343_v31, %v4339_v12  ;;  %v4439_v14 = vadd.f32 1.1283791, %v4438_v2 }
 0x525   : > { %v5540_v37 = vmul.f32 %v6438_v22, %v11655_v34  ;;  %v5548_v11 = vand.u32 2147483647, %v11655_v34  ;;  %v4682_v9 = vadd.f32 0.001143296, %v4681_v17  ;;  %6439 = vpow2.f32 %v6115_v30 }
 0x526   : > { %v11700_v18 = vadd.f32 1.0, %v4569_v33  ;;  %v4672_v59 = vmul.f32 %v4671_v44, %v11664_v36  ;;  %v11704_v53 = vmul.f32 %v4224_v48, %v11587_v0  ;;  %v5550_v25 = vand.u32 2147483648, %v11655_v34  ;;  %v12455_v33 = vld [vmem:[#allocation30_spill] sm:$0xff] }
 0x527   : > { %v5541_v16 = vsub.f32 1.0, %v5540_v37  ;;  %v4881_v40 = vmul.f32 %v4785_v62, %v11351_v24  ;;  %v11709_v58 = vmul.f32 %v4344_v19, %v11640_v43  ;;  %v4453_v8 = vsub.f32 1.0, %v4452_v46  ;;  %v11722_v43 = vpop.f32.mrf.mxu1 }
 0x528   : > { %v4557_v20 = vadd.f32 0.18741608, %v4556_v49  ;;  %6441 = vrcp.f32 %v11700_v18  ;;  %vm5545_vm9 = vweird.f32 %v6438_v22  ;;  %v4673_v38 = vadd.f32 0.0036580483, %v4672_v59 }
 0x529   : > { %v5542_v10 = vmul.f32 %v6438_v22, %v5541_v16  ;;  %v4683_v56 = vmul.f32 %v4682_v9, %v11664_v36  ;;  %5269 = vmatmul.f32.gmra.mxu1 %v4881_v40  ;;  %v11714_v0 = vmul.f32 %v4439_v14, %v11502_v1  ;;  %v4460_v48 = vand.u32 2147483647, %v11633_v55 }
 0x52a   : > { %vm5544_vm10 = vweird.f32 %v11655_v34  ;;  %vm11718_vm11 = vcmp.eq.f32.partialorder %v5548_v11, 8.507059e+37  ;;  %v5551_v5 = vor.u32 1.1754944e-38, %v5550_v25  ;;  %v4674_v32 = vmul.f32 %v4673_v38, %v11664_v36 }
 0x52b   : > { %v5543_v26 = vadd.f32 %v6438_v22, %v5542_v10  ;;  %v4684_v2 = vadd.f32 0.014752088, %v4683_v56  ;;  %v6440_v54 = vpop.eup %6439  ;;  %v4454_v12 = vmul.f32 %v11670_v6, %v4453_v8  ;;  %v4558_v1 = vmul.f32 %v4557_v20, %v11584_v3  ;;  %vm5546_vm12 = vmor %vm5544_vm10, %vm5545_vm9 }
 0x52c   : > { %v5226_v34 = vadd.f32 %v11593_v35, %v10902_v51  ;;  %v6090_v57 = vclamps-f32 %v11582_v45, 1.0  ;;  %v4675_v4 = vadd.f32 0.05243302, %v4674_v32  ;;  %v11732_v49 = vadd.f32 1.0, %v6440_v54 }
 0x52d   : > { %v5547_v47 = vsel %vm5546_vm12, %v6438_v22, %v5543_v26  ;;  %v4685_v31 = vmul.f32 %v4684_v2, %v11664_v36  ;;  %v5229_v44 = vadd.f32 %v11647_v41, %v12455_v33  ;;  %v4462_v51 = vand.u32 2147483648, %v11633_v55 }
 0x52e   : > { %v11734_v17 = vpop.eup %6441  ;;  %v5552_v30 = vsel %vm11718_vm11, %v5551_v5, %v5547_v47  ;;  %v6116_v46 = vmul.f32 -1.442695, %v5226_v34  ;;  %v4788_v3 = vadd.f32 1.0, %v6090_v57  ;;  %v4676_v35 = vmul.f32 %v4675_v4, %v11664_v36 }
 0x52f   : > { %v4572_v45 = vmul.f32 %v11734_v17, %v11700_v18  ;;  %5908 = vst.msk [vmem:[%s11091_s12 + $0x40] sm:$0xff] %vm5899_vm3, %v5552_v30  ;;  %v4686_v22 = vadd.f32 0.112945676, %v4685_v31  ;;  %v4455_v62 = vadd.f32 %v11670_v6, %v4454_v12  ;;  %vm4456_vm13 = vweird.f32 %v11633_v55  ;;  %v5237_v16 = vpop.f32.mrf.mxu1 }
 0x530   : > { %vm4457_vm14 = vweird.f32 %v11670_v6  ;;  %6443 = vrcp.f32 %v11732_v49  ;;  %vm11750_vm15 = vcmp.eq.f32.partialorder %v4460_v48, 8.507059e+37  ;;  %v4559_v37 = vadd.f32 1.1283791, %v4558_v1 }
 0x531   : > { %v4573_v19 = vsub.f32 1.0, %v4572_v45  ;;  %v4687_v14 = vmul.f32 %v4686_v22, %v11664_v36  ;;  %6445 = vpow2.f32 %v6116_v46  ;;  %v4677_v11 = vadd.f32 0.18741608, %v4676_v35  ;;  %vm11756_vm0 = vmor %vm4456_vm13, %vm4457_vm14 }
 0x532   : > { %v4884_v59 = vmul.f32 %v4788_v3, %v11418_v29  ;;  %v6117_v9 = vmul.f32 -1.442695, %v5229_v44  ;;  %v4463_v25 = vor.u32 1.1754944e-38, %v4462_v51  ;;  %v6093_v20 = vclamps-f32 %v11704_v53, 1.0 }
 0x533   : > { %v4574_v40 = vmul.f32 %v11734_v17, %v4573_v19  ;;  %v4688_v8 = vadd.f32 0.4994258, %v4687_v14  ;;  %v4459_v10 = vsel %vm11756_vm0, %v11670_v6, %v4455_v62  ;;  %vm4577_vm1 = vweird.f32 %v11734_v17 }
 0x534   : > { %5272 = vmatmul.f32.gmra.mxu1 %v4884_v59  ;;  %6447 = vpow2.f32 %v6117_v9  ;;  %v5232_v29 = vadd.f32 %v11687_v23, %v11003_v50  ;;  %v4582_v56 = vand.u32 2147483648, %v11700_v18  ;;  %v4791_v24 = vadd.f32 1.0, %v6093_v20 }
 0x535   : > { %v4575_v38 = vadd.f32 %v11734_v17, %v4574_v40  ;;  %v4689_v48 = vmul.f32 %v4688_v8, %v11664_v36  ;;  %v4560_v53 = vmul.f32 %v4559_v37, %v11571_v39  ;;  %vm4576_vm2 = vweird.f32 %v11700_v18 }
 0x536   : > { %v6444_v26 = vpop.eup %6443  ;;  %v4580_v6 = vand.u32 2147483647, %v11700_v18  ;;  %v4678_v5 = vmul.f32 %v4677_v11, %v11664_v36  ;;  %v4464_v50 = vsel %vm11750_vm15, %v4463_v25, %v4459_v10  ;;  %vm11779_vm4 = vmor %vm4576_vm2, %vm4577_vm1  ;;  %v6096_v54 = vclamps-f32 %v11709_v58, 1.0 }
 0x537   : > { %v6446_v32 = vpop.eup %6445  ;;  %v11783_v2 = vadd.f32 1.0, %v4689_v48  ;;  %v5555_v39 = vmul.f32 %v6444_v26, %v11732_v49  ;;  %v4579_v36 = vsel %vm11779_vm4, %v11734_v17, %v4575_v38  ;;  %v4887_v12 = vmul.f32 %v4791_v24, %v11509_v60  ;;  %v11797_v30 = vpop.f32.mrf.mxu1 }
 0x538   : > { %v11790_v18 = vadd.f32 1.0, %v6446_v32  ;;  %v6118_v1 = vmul.f32 -1.442695, %v5232_v29  ;;  %v4583_v34 = vor.u32 1.1754944e-38, %v4582_v56  ;;  %v5563_v57 = vand.u32 2147483647, %v11732_v49 }
 0x539   : > { %6449 = vrcp.f32 %v11783_v2  ;;  %v5565_v47 = vand.u32 2147483648, %v11732_v49  ;;  %vm4581_vm5 = vcmp.eq.f32.partialorder %v4580_v6, 8.507059e+37  ;;  %v4679_v31 = vadd.f32 1.1283791, %v4678_v5 }
 0x53a   : > { %v6448_v4 = vpop.eup %6447  ;;  %v5556_v58 = vsub.f32 1.0, %v5555_v39  ;;  %6451 = vrcp.f32 %v11790_v18  ;;  %v4465_v17 = vmul.f32 %v4464_v50, %v11714_v0  ;;  %v4584_v46 = vsel %vm4581_vm5, %v4583_v34, %v4579_v36 }
 0x53b   : > { %vm5559_vm6 = vweird.f32 %v11732_v49  ;;  %v11801_v60 = vadd.f32 1.0, %v6448_v4  ;;  %vm5560_vm7 = vweird.f32 %v6444_v26  ;;  %6453 = vpow2.f32 %v6118_v1 }
 0x53c   : > { %v5557_v3 = vmul.f32 %v6444_v26, %v5556_v58  ;;  %5275 = vmatmul.f32.gmra.mxu1 %v4887_v12  ;;  %v4794_v33 = vadd.f32 1.0, %v6096_v54  ;;  %v4700_v44 = vand.u32 2147483647, %v11783_v2  ;;  %vm11804_vm8 = vcmp.eq.f32.partialorder %v5563_v57, 8.507059e+37  ;;  %vm5561_vm10 = vmor %vm5559_vm6, %vm5560_vm7  ;;  %v5136_v57 = vpop.f32.mrf.mxu0 }
 0x53d   : > { %v5566_v45 = vor.u32 1.1754944e-38, %v5565_v47  ;;  %6455 = vrcp.f32 %v11801_v60  ;;  %v11809_v0 = vmul.f32 %v4584_v46, %v4560_v53  ;;  %v11812_v35 = vmul.f32 %v4679_v31, %v11637_v52  ;;  %v11822_v52 = vpop.f32.mrf.mxu3 }
 0x53e   : > { %v4702_v22 = vand.u32 2147483648, %v11783_v2  ;;  %v5558_v62 = vadd.f32 %v6444_v26, %v5557_v3  ;;  %vm4696_vm9 = vweird.f32 %v11783_v2  ;;  %vm5574_vm11 = vweird.f32 %v11790_v18 }
 0x53f   : > { %v6450_v41 = vpop.eup %6449  ;;  %v5235_v19 = vadd.f32 %v11722_v43, %v11017_v28  ;;  %v5238_v14 = vadd.f32 %v5237_v16, %v11119_v21  ;;  %v4890_v9 = vmul.f32 %v4794_v33, %v11514_v61  ;;  %v6099_v55 = vclamps-f32 %v4465_v17, 1.0  ;;  %v5243_v20 = vpop.f32.mrf.mxu1 }
 0x540   : > { %v6452_v37 = vpop.eup %6451  ;;  %v4692_v11 = vmul.f32 %v6450_v41, %v11783_v2  ;;  %v5562_v59 = vsel %vm5561_vm10, %v6444_v26, %v5558_v62  ;;  %vm11826_vm12 = vcmp.eq.f32.partialorder %v4700_v44, 8.507059e+37  ;;  %v5578_v21 = vand.u32 2147483647, %v11790_v18  ;;  %v11875_v62 = vld [vmem:[%s12009_s4] ss:$0 sm:$0xff] }
 0x541   : > { %v5567_v25 = vsel %vm11804_vm8, %v5566_v45, %v5562_v59  ;;  %v5570_v28 = vmul.f32 %v6452_v37, %v11790_v18  ;;  %v6454_v43 = vpop.eup %6453  ;;  %v4703_v40 = vor.u32 1.1754944e-38, %v4702_v22  ;;  %v5580_v8 = vand.u32 2147483648, %v11790_v18 }
 0x542   : > { %v4693_v16 = vsub.f32 1.0, %v4692_v11  ;;  %5909 = vst.msk [vmem:[%s11091_s12 + $0x48] sm:$0xff] %vm5899_vm3, %v5567_v25  ;;  %v6119_v61 = vmul.f32 -1.442695, %v5235_v19  ;;  %vm4697_vm13 = vweird.f32 %v6450_v41  ;;  %v11837_v38 = vadd.f32 1.0, %v6454_v43 }
 0x543   : > { %v6456_v10 = vpop.eup %6455  ;;  %v5571_v29 = vsub.f32 1.0, %v5570_v28  ;;  %v6120_v56 = vmul.f32 -1.442695, %v5238_v14  ;;  %v4797_v26 = vadd.f32 1.0, %v6099_v55  ;;  %vm5575_vm14 = vweird.f32 %v6452_v37  ;;  %vm4698_vm0 = vmor %vm4696_vm9, %vm4697_vm13 }
 0x544   : > { %v4694_v48 = vmul.f32 %v6450_v41, %v4693_v16  ;;  %v5585_v24 = vmul.f32 %v6456_v10, %v11801_v60  ;;  %5278 = vmatmul.f32.gmra.mxu1 %v4890_v9  ;;  %6457 = vpow2.f32 %v6119_v61  ;;  %vm11840_vm15 = vcmp.eq.f32.partialorder %v5578_v21, 8.507059e+37  ;;  %vm5576_vm1 = vmor %vm5574_vm11, %vm5575_vm14  ;;  %v5139_v21 = vpop.f32.mrf.mxu0 }
 0x545   : > { %v5572_v53 = vmul.f32 %v6452_v37, %v5571_v29  ;;  %6459 = vrcp.f32 %v11837_v38  ;;  %v5595_v50 = vand.u32 2147483648, %v11801_v60  ;;  %v6102_v23 = vclamps-f32 %v11809_v0, 1.0  ;;  %v11859_v58 = vpop.f32.mrf.mxu3 }
 0x546   : > { %v4695_v5 = vadd.f32 %v6450_v41, %v4694_v48  ;;  %v5586_v32 = vsub.f32 1.0, %v5585_v24  ;;  %v5581_v54 = vor.u32 1.1754944e-38, %v5580_v8  ;;  %v5593_v36 = vand.u32 2147483647, %v11801_v60 }
 0x547   : > { %v5573_v39 = vadd.f32 %v6452_v37, %v5572_v53  ;;  %6461 = vpow2.f32 %v6120_v56  ;;  %vm5590_vm2 = vweird.f32 %v6456_v10  ;;  %v4893_v34 = vmul.f32 %v4797_v26, %v11612_v42  ;;  %v5246_v42 = vpop.f32.mrf.mxu1 }
 0x548   : > { %v4699_v12 = vsel %vm4698_vm0, %v6450_v41, %v4695_v5  ;;  %v5587_v1 = vmul.f32 %v6456_v10, %v5586_v32  ;;  %vm5589_vm4 = vweird.f32 %v11801_v60  ;;  %v5241_v4 = vadd.f32 %v11797_v30, %v11214_v15 }
 0x549   : > { %v4704_v47 = vsel %vm11826_vm12, %v4703_v40, %v4699_v12  ;;  %v5577_v2 = vsel %vm5576_vm1, %v6452_v37, %v5573_v39  ;;  %v5596_v46 = vor.u32 1.1754944e-38, %v5595_v50  ;;  %v4800_v3 = vadd.f32 1.0, %v6102_v23  ;;  %vm5591_vm5 = vmor %vm5589_vm4, %vm5590_vm2 }
 0x54a   : > { %v6458_v31 = vpop.eup %6457  ;;  %v5582_v18 = vsel %vm11840_vm15, %v5581_v54, %v5577_v2  ;;  %v5588_v17 = vadd.f32 %v6456_v10, %v5587_v1  ;;  %v6121_v44 = vmul.f32 -1.442695, %v5241_v4  ;;  %v5244_v15 = vadd.f32 %v5243_v20, %v11223_v27 }
 0x54b   : > { %v6460_v33 = vpop.eup %6459  ;;  %5910 = vst.msk [vmem:[%s11091_s12 + $0x50] sm:$0xff] %vm5899_vm3, %v5582_v18  ;;  %v11866_v60 = vadd.f32 1.0, %v6458_v31  ;;  %v5247_v30 = vadd.f32 %v5246_v42, %v11267_v63  ;;  %v4705_v51 = vmul.f32 %v4704_v47, %v11812_v35  ;;  %vm5594_vm6 = vcmp.eq.f32.partialorder %v5593_v36, 8.507059e+37 }
 0x54c   : > { %v5592_v45 = vsel %vm5591_vm5, %v6456_v10, %v5588_v17  ;;  %v5600_v0 = vmul.f32 %v6460_v33, %v11837_v38  ;;  %5281 = vmatmul.f32.gmra.mxu1 %v4893_v34  ;;  %v5024_v41 = vadd.f32 %v11875_v62, %v11822_v52  ;;  %v768_v27 = vmul.f32 0.5, %v11552_v7 }
 0x54d   : > { %v6462_v22 = vpop.eup %6461  ;;  %v5597_v19 = vsel %vm5594_vm6, %v5596_v46, %v5592_v45  ;;  %6463 = vrcp.f32 %v11866_v60  ;;  %v5608_v35 = vand.u32 2147483647, %v11837_v38  ;;  %v5610_v37 = vand.u32 2147483648, %v11837_v38  ;;  %v5029_v8 = vpop.f32.mrf.mxu3 }
 0x54e   : > { %5911 = vst.msk [vmem:[%s11091_s12 + $0x58] sm:$0xff] %vm5899_vm3, %v5597_v19  ;;  %v5601_v63 = vsub.f32 1.0, %v5600_v0  ;;  %v11884_v14 = vadd.f32 1.0, %v6462_v22  ;;  %6465 = vpow2.f32 %v6121_v44  ;;  %v4896_v11 = vmul.f32 %v4800_v3, %v768_v27  ;;  %v5142_v46 = vpop.f32.mrf.mxu0 }
 0x54f   : > { %v6122_v59 = vmul.f32 -1.442695, %v5244_v15  ;;  %v6123_v9 = vmul.f32 -1.442695, %v5247_v30  ;;  %vm5605_vm7 = vweird.f32 %v6460_v33  ;;  %v6105_v7 = vclamps-f32 %v4705_v51, 1.0  ;;  %v5249_v25 = vpop.f32.mrf.mxu1 }
 0x550   : > { %v5602_v55 = vmul.f32 %v6460_v33, %v5601_v63  ;;  %6467 = vrcp.f32 %v11884_v14  ;;  %v5137_v52 = vadd.f32 %v5136_v57, %v5024_v41  ;;  %vm5604_vm8 = vweird.f32 %v11837_v38 }
 0x551   : > { %6469 = vpow2.f32 %v6122_v59  ;;  %vm5606_vm9 = vmor %vm5604_vm8, %vm5605_vm7  ;;  %v5611_v43 = vor.u32 1.1754944e-38, %v5610_v37  ;;  %vm5609_vm10 = vcmp.eq.f32.partialorder %v5608_v35, 8.507059e+37  ;;  %v4803_v10 = vadd.f32 1.0, %v6105_v7 }
 0x552   : > { %v5603_v49 = vadd.f32 %v6460_v33, %v5602_v55  ;;  %6471 = vpow2.f32 %v6123_v9  ;;  %v5250_v16 = vadd.f32 %v5249_v25, %v5137_v52  ;;  %v771_v24 = vmul.f32 0.5, %v11609_v13 }
 0x553   : > { %v6464_v28 = vpop.eup %6463  ;;  %v5623_v6 = vand.u32 2147483647, %v11866_v60  ;;  %v5625_v5 = vand.u32 2147483648, %v11866_v60  ;;  %v5027_v13 = vadd.f32 %v11875_v62, %v11859_v58  ;;  %vm5619_vm12 = vweird.f32 %v11866_v60 }
 0x554   : > { %v6466_v40 = vpop.eup %6465  ;;  %v5607_v61 = vsel %vm5606_vm9, %v6460_v33, %v5603_v49  ;;  %v5615_v20 = vmul.f32 %v6464_v28, %v11866_v60  ;;  %5284 = vmatmul.f32.gmra.mxu1 %v4896_v11  ;;  %v6124_v38 = vmul.f32 -1.442695, %v5250_v16  ;;  %vm5620_vm11 = vweird.f32 %v6464_v28 }
 0x555   : > { %v5612_v29 = vsel %vm5609_vm10, %v5611_v43, %v5607_v61  ;;  %v11890_v56 = vadd.f32 1.0, %v6466_v40  ;;  %v4899_v39 = vmul.f32 %v4803_v10, %v771_v24  ;;  %v5640_v34 = vand.u32 2147483648, %v11884_v14  ;;  %vm5621_vm13 = vmor %vm5619_vm12, %vm5620_vm11  ;;  %v5032_v33 = vpop.f32.mrf.mxu3 }
 0x556   : > { %v6468_v48 = vpop.eup %6467  ;;  %5912 = vst.msk [vmem:[%s11091_s12 + $0x60] sm:$0xff] %vm5899_vm3, %v5612_v29  ;;  %v5616_v26 = vsub.f32 1.0, %v5615_v20  ;;  %v5626_v47 = vor.u32 1.1754944e-38, %v5625_v5  ;;  %v5638_v4 = vand.u32 2147483647, %v11884_v14  ;;  %v5030_v31 = vadd.f32 %v11875_v62, %v5029_v8  ;;  %v5145_v29 = vpop.f32.mrf.mxu0 }
 0x557   : > { %v6470_v53 = vpop.eup %6469  ;;  %v5630_v32 = vmul.f32 %v6468_v48, %v11884_v14  ;;  %6473 = vrcp.f32 %v11890_v56  ;;  %v5252_v57 = vpop.f32.mrf.mxu1  ;;  %vm5635_vm14 = vweird.f32 %v6468_v48  ;;  %vm5624_vm15 = vcmp.eq.f32.partialorder %v5623_v6, 8.507059e+37 }
 0x558   : > { %v6472_v50 = vpop.eup %6471  ;;  %v5617_v23 = vmul.f32 %v6464_v28, %v5616_v26  ;;  %v11899_v54 = vadd.f32 1.0, %v6470_v53  ;;  %6475 = vpow2.f32 %v6124_v38  ;;  %v5140_v17 = vadd.f32 %v5139_v21, %v5027_v13 }
 0x559   : > { %v5631_v36 = vsub.f32 1.0, %v5630_v32  ;;  %v11903_v12 = vadd.f32 1.0, %v6472_v50  ;;  %vm5634_vm0 = vweird.f32 %v11884_v14  ;;  %v5641_v60 = vor.u32 1.1754944e-38, %v5640_v34 }
 0x55a   : > { %v5618_v1 = vadd.f32 %v6464_v28, %v5617_v23  ;;  %6477 = vrcp.f32 %v11899_v54  ;;  %vm5636_vm1 = vmor %vm5634_vm0, %vm5635_vm14  ;;  %v5653_v15 = vand.u32 2147483647, %v11890_v56  ;;  %vm5639_vm2 = vcmp.eq.f32.partialorder %v5638_v4, 8.507059e+37 }
 0x55b   : > { %v5632_v2 = vmul.f32 %v6468_v48, %v5631_v36  ;;  %6479 = vrcp.f32 %v11903_v12  ;;  %v5655_v45 = vand.u32 2147483648, %v11890_v56  ;;  %v5253_v0 = vadd.f32 %v5252_v57, %v5140_v17 }
 0x55c   : > { %v5622_v58 = vsel %vm5621_vm13, %v6464_v28, %v5618_v1  ;;  %5287 = vmatmul.f32.gmra.mxu1 %v4899_v39  ;;  %v5143_v41 = vadd.f32 %v5142_v46, %v5030_v31  ;;  %v5033_v35 = vadd.f32 %v11875_v62, %v5032_v33  ;;  %vm5649_vm4 = vweird.f32 %v11890_v56 }
 0x55d   : > { %v6474_v18 = vpop.eup %6473  ;;  %v5627_v3 = vsel %vm5624_vm15, %v5626_v47, %v5622_v58  ;;  %v5633_v42 = vadd.f32 %v6468_v48, %v5632_v2  ;;  %v6125_v37 = vmul.f32 -1.442695, %v5253_v0  ;;  %vm11925_vm6 = vcmp.eq.f32.partialorder %v5653_v15, 8.507059e+37  ;;  %v5035_v58 = vpop.f32.mrf.mxu3 }
 0x55e   : > { %5913 = vst.msk [vmem:[%s11091_s12 + $0x68] sm:$0xff] %vm5899_vm3, %v5627_v3  ;;  %v5645_v44 = vmul.f32 %v6474_v18, %v11890_v56  ;;  %v6476_v30 = vpop.eup %6475  ;;  %vm5650_vm5 = vweird.f32 %v6474_v18  ;;  %v5656_v7 = vor.u32 1.1754944e-38, %v5655_v45  ;;  %vm5664_vm7 = vweird.f32 %v11899_v54  ;;  %v5148_v15 = vpop.f32.mrf.mxu0 }
 0x55f   : > { %v5637_v51 = vsel %vm5636_vm1, %v6468_v48, %v5633_v42  ;;  %v11918_v63 = vadd.f32 1.0, %v6476_v30  ;;  %v5255_v55 = vpop.f32.mrf.mxu1  ;;  %v5670_v28 = vand.u32 2147483648, %v11899_v54  ;;  %vm5651_vm8 = vmor %vm5649_vm4, %vm5650_vm5  ;;  %v5668_v16 = vand.u32 2147483647, %v11899_v54 }
 0x560   : > { %v6478_v22 = vpop.eup %6477  ;;  %v5642_v27 = vsel %vm5639_vm2, %v5641_v60, %v5637_v51  ;;  %v5646_v19 = vsub.f32 1.0, %v5645_v44  ;;  %v5256_v21 = vadd.f32 %v5255_v55, %v5143_v41  ;;  %v5683_v61 = vand.u32 2147483647, %v11903_v12 }
 0x561   : > { %5914 = vst.msk [vmem:[%s11091_s12 + $0x70] sm:$0xff] %vm5899_vm3, %v5642_v27  ;;  %v5660_v14 = vmul.f32 %v6478_v22, %v11899_v54  ;;  %v6480_v11 = vpop.eup %6479  ;;  %6481 = vrcp.f32 %v11918_v63  ;;  %vm5665_vm9 = vweird.f32 %v6478_v22  ;;  %v5685_v20 = vand.u32 2147483648, %v11903_v12 }
 0x562   : > { %v5647_v59 = vmul.f32 %v6474_v18, %v5646_v19  ;;  %v5675_v49 = vmul.f32 %v6480_v11, %v11903_v12  ;;  %6483 = vpow2.f32 %v6125_v37  ;;  %v6126_v10 = vmul.f32 -1.442695, %v5256_v21  ;;  %vm5666_vm11 = vmor %vm5664_vm7, %vm5665_vm9 }
 0x563   : > { %v5661_v52 = vsub.f32 1.0, %v5660_v14  ;;  %vm5680_vm10 = vweird.f32 %v6480_v11  ;;  %v5146_v26 = vadd.f32 %v5145_v29, %v5033_v35  ;;  %v5671_v53 = vor.u32 1.1754944e-38, %v5670_v28 }
 0x564   : > { %v5648_v25 = vadd.f32 %v6474_v18, %v5647_v59  ;;  %v5676_v40 = vsub.f32 1.0, %v5675_v49  ;;  %vm5679_vm12 = vweird.f32 %v11903_v12  ;;  %6485 = vpow2.f32 %v6126_v10 }
 0x565   : > { %v5662_v43 = vmul.f32 %v6478_v22, %v5661_v52  ;;  %vm5669_vm13 = vcmp.eq.f32.partialorder %v5668_v16, 8.507059e+37  ;;  %vm5681_vm14 = vmor %vm5679_vm12, %vm5680_vm10  ;;  %vm5684_vm15 = vcmp.eq.f32.partialorder %v5683_v61, 8.507059e+37  ;;  %v5686_v39 = vor.u32 1.1754944e-38, %v5685_v20 }
 0x566   : > { %v5652_v8 = vsel %vm5651_vm8, %v6474_v18, %v5648_v25  ;;  %v5677_v24 = vmul.f32 %v6480_v11, %v5676_v40  ;;  %v5700_v57 = vand.u32 2147483648, %v11918_v63  ;;  %v5698_v2 = vand.u32 2147483647, %v11918_v63 }
 0x567   : > { %v5657_v38 = vsel %vm11925_vm6, %v5656_v7, %v5652_v8  ;;  %v5663_v48 = vadd.f32 %v6478_v22, %v5662_v43  ;;  %v6482_v56 = vpop.eup %6481  ;;  %v5258_v13 = vpop.f32.mrf.mxu1  ;;  %vm5694_vm1 = vweird.f32 %v11918_v63  ;;  %v5036_v42 = vadd.f32 %v11875_v62, %v5035_v58 }
 0x568   : > { %5915 = vst.msk [vmem:[%s11091_s12 + $0x78] sm:$0xff] %vm5899_vm3, %v5657_v38  ;;  %v5678_v5 = vadd.f32 %v6480_v11, %v5677_v24  ;;  %v5690_v32 = vmul.f32 %v6482_v56, %v11918_v63  ;;  %v6484_v50 = vpop.eup %6483  ;;  %v5259_v34 = vadd.f32 %v5258_v13, %v5146_v26  ;;  %vm5695_vm0 = vweird.f32 %v6482_v56  ;;  %v5038_v43 = vpop.f32.mrf.mxu3 }
 0x569   : > { %v5667_v6 = vsel %vm5666_vm11, %v6478_v22, %v5663_v48  ;;  %v5406_v1 = vadd.f32 1.0, %v6484_v50  ;;  %vm5696_vm2 = vmor %vm5694_vm1, %vm5695_vm0  ;;  %v5701_v46 = vor.u32 1.1754944e-38, %v5700_v57  ;;  %vm5699_vm4 = vcmp.eq.f32.partialorder %v5698_v2, 8.507059e+37  ;;  %v5151_v26 = vpop.f32.mrf.mxu0 }
 0x56a   : > { %v5672_v23 = vsel %vm5669_vm13, %v5671_v53, %v5667_v6  ;;  %v5682_v54 = vsel %vm5681_vm14, %v6480_v11, %v5678_v5  ;;  %v5691_v36 = vsub.f32 1.0, %v5690_v32  ;;  %v6486_v4 = vpop.eup %6485  ;;  %v6127_v31 = vmul.f32 -1.442695, %v5259_v34 }
 0x56b   : > { %5916 = vst.msk [vmem:[%s11091_s12 + $0x80] sm:$0xff] %vm5899_vm3, %v5672_v23  ;;  %v5687_v12 = vsel %vm5684_vm15, %v5686_v39, %v5682_v54  ;;  %6487 = vrcp.f32 %v5406_v1  ;;  %v5407_v17 = vadd.f32 1.0, %v6486_v4  ;;  %v5149_v51 = vadd.f32 %v5148_v15, %v5036_v42 }
 0x56c   : > { %5917 = vst.msk [vmem:[%s11091_s12 + $0x88] sm:$0xff] %vm5899_vm3, %v5687_v12  ;;  %v5692_v47 = vmul.f32 %v6482_v56, %v5691_v36  ;;  %6489 = vpow2.f32 %v6127_v31  ;;  %v5713_v22 = vand.u32 2147483647, %v5406_v1  ;;  %v5715_v41 = vand.u32 2147483648, %v5406_v1 }
 0x56d   : > { %6491 = vrcp.f32 %v5407_v17  ;;  %vm5709_vm6 = vweird.f32 %v5406_v1  ;;  %v5728_v55 = vand.u32 2147483647, %v5407_v17  ;;  %v5730_v7 = vand.u32 2147483648, %v5407_v17 }
 0x56e   : > { %v5693_v18 = vadd.f32 %v6482_v56, %v5692_v47  ;;  %vm5714_vm8 = vcmp.eq.f32.partialorder %v5713_v22, 8.507059e+37  ;;  %v5716_v9 = vor.u32 1.1754944e-38, %v5715_v41  ;;  %vm5724_vm10 = vweird.f32 %v5407_v17 }
 0x56f   : > { %v5731_v16 = vor.u32 1.1754944e-38, %v5730_v7  ;;  %vm5729_vm12 = vcmp.eq.f32.partialorder %v5728_v55, 8.507059e+37  ;;  %v5039_v10 = vadd.f32 %v11875_v62, %v5038_v43 }
 0x570   : > { %v5697_v3 = vsel %vm5696_vm2, %v6482_v56, %v5693_v18  ;;  %v5041_v36 = vpop.f32.mrf.mxu3 }
 0x571   : > { %v5702_v33 = vsel %vm5699_vm4, %v5701_v46, %v5697_v3  ;;  %v6488_v60 = vpop.eup %6487  ;;  %v5152_v53 = vadd.f32 %v5151_v26, %v5039_v10  ;;  %v5042_v2 = vadd.f32 %v11875_v62, %v5041_v36  ;;  %v5154_v4 = vpop.f32.mrf.mxu0 }
 0x572   : > { %5918 = vst.msk [vmem:[%s11091_s12 + $0x90] sm:$0xff] %vm5899_vm3, %v5702_v33  ;;  %v5705_v44 = vmul.f32 %v6488_v60, %v5406_v1  ;;  %v6490_v30 = vpop.eup %6489  ;;  %vm5710_vm5 = vweird.f32 %v6488_v60 }
 0x573   : > { %v6492_v0 = vpop.eup %6491  ;;  %v5408_v27 = vadd.f32 1.0, %v6490_v30  ;;  %vm5711_vm7 = vmor %vm5709_vm6, %vm5710_vm5  ;;  %v5155_v3 = vadd.f32 %v5154_v4, %v5042_v2 }
 0x574   : > { %v5706_v45 = vsub.f32 1.0, %v5705_v44  ;;  %v5720_v35 = vmul.f32 %v6492_v0, %v5407_v17  ;;  %vm5725_vm9 = vweird.f32 %v6492_v0 }
 0x575   : > { %6493 = vrcp.f32 %v5408_v27  ;;  %vm5726_vm11 = vmor %vm5724_vm10, %vm5725_vm9  ;;  %v5745_v38 = vand.u32 2147483648, %v5408_v27  ;;  %v5743_v56 = vand.u32 2147483647, %v5408_v27  ;;  %vm5739_vm14 = vweird.f32 %v5408_v27 }
 0x576   : > { %v5707_v63 = vmul.f32 %v6488_v60, %v5706_v45  ;;  %v5721_v11 = vsub.f32 1.0, %v5720_v35 }
 0x577   : > { %v5261_v19 = vpop.f32.mrf.mxu1  ;;  %v5746_v5 = vor.u32 1.1754944e-38, %v5745_v38  ;;  %vm5744_vm0 = vcmp.eq.f32.partialorder %v5743_v56, 8.507059e+37 }
 0x578   : > { %v5262_v14 = vadd.f32 %v5261_v19, %v5149_v51  ;;  %v5708_v37 = vadd.f32 %v6488_v60, %v5707_v63  ;;  %v5722_v49 = vmul.f32 %v6492_v0, %v5721_v11  ;;  %v5044_v42 = vpop.f32.mrf.mxu3 }
 0x579   : > { %v5157_v51 = vpop.f32.mrf.mxu0  ;;  %v5045_v35 = vadd.f32 %v11875_v62, %v5044_v42 }
 0x57a   : > { %v6128_v59 = vmul.f32 -1.442695, %v5262_v14  ;;  %v5712_v52 = vsel %vm5711_vm7, %v6488_v60, %v5708_v37  ;;  %v5723_v28 = vadd.f32 %v6492_v0, %v5722_v49 }
 0x57b   : > { %v5717_v25 = vsel %vm5714_vm8, %v5716_v9, %v5712_v52  ;;  %v6494_v21 = vpop.eup %6493  ;;  %v5158_v9 = vadd.f32 %v5157_v51, %v5045_v35 }
 0x57c   : > { %6495 = vpow2.f32 %v6128_v59  ;;  %5919 = vst.msk [vmem:[%s11091_s12 + $0x98] sm:$0xff] %vm5899_vm3, %v5717_v25  ;;  %v5727_v40 = vsel %vm5726_vm11, %v6492_v0, %v5723_v28  ;;  %v5735_v8 = vmul.f32 %v6494_v21, %v5408_v27  ;;  %vm5740_vm13 = vweird.f32 %v6494_v21 }
 0x57d   : > { %v5732_v61 = vsel %vm5729_vm12, %v5731_v16, %v5727_v40  ;;  %vm5741_vm15 = vmor %vm5739_vm14, %vm5740_vm13 }
 0x57e   : > { %5920 = vst.msk [vmem:[%s11091_s12 + $0xa0] sm:$0xff] %vm5899_vm3, %v5732_v61  ;;  %v5736_v29 = vsub.f32 1.0, %v5735_v8 }
 0x580   : > { %v5737_v24 = vmul.f32 %v6494_v21, %v5736_v29  ;;  %v5047_v22 = vpop.f32.mrf.mxu3 }
 0x581   : > { %v5160_v55 = vpop.f32.mrf.mxu0  ;;  %v5048_v16 = vadd.f32 %v11875_v62, %v5047_v22 }
 0x582   : > { %v6496_v20 = vpop.eup %6495  ;;  %v5738_v6 = vadd.f32 %v6494_v21, %v5737_v24 }
 0x583   : > { %v5409_v48 = vadd.f32 1.0, %v6496_v20  ;;  %v5161_v29 = vadd.f32 %v5160_v55, %v5048_v16 }
 0x584   : > { %v5742_v50 = vsel %vm5741_vm15, %v6494_v21, %v5738_v6 }
 0x585   : > { %6497 = vrcp.f32 %v5409_v48  ;;  %v5747_v39 = vsel %vm5744_vm0, %v5746_v5, %v5742_v50  ;;  %v5760_v12 = vand.u32 2147483648, %v5409_v48  ;;  %v5758_v47 = vand.u32 2147483647, %v5409_v48 }
 0x586   : > { %5921 = vst.msk [vmem:[%s11091_s12 + $0xa8] sm:$0xff] %vm5899_vm3, %v5747_v39  ;;  %vm5754_vm2 = vweird.f32 %v5409_v48 }
 0x587   : > { %v5264_v32 = vpop.f32.mrf.mxu1  ;;  %v5761_v18 = vor.u32 1.1754944e-38, %v5760_v12  ;;  %vm5759_vm5 = vcmp.eq.f32.partialorder %v5758_v47, 8.507059e+37 }
 0x588   : > { %v5265_v23 = vadd.f32 %v5264_v32, %v5152_v53  ;;  %v5050_v25 = vpop.f32.mrf.mxu3 }
 0x589   : > { %v5163_v61 = vpop.f32.mrf.mxu0  ;;  %v5051_v32 = vadd.f32 %v11875_v62, %v5050_v25 }
 0x58a   : > { %v6129_v13 = vmul.f32 -1.442695, %v5265_v23 }
 0x58b   : > { %v6498_v54 = vpop.eup %6497  ;;  %v5164_v39 = vadd.f32 %v5163_v61, %v5051_v32 }
 0x58c   : > { %v5750_v1 = vmul.f32 %v6498_v54, %v5409_v48  ;;  %6499 = vpow2.f32 %v6129_v13  ;;  %vm5755_vm1 = vweird.f32 %v6498_v54 }
 0x58d   : > { %vm5756_vm4 = vmor %vm5754_vm2, %vm5755_vm1 }
 0x58e   : > { %v5751_v34 = vsub.f32 1.0, %v5750_v1 }
 0x590   : > { %v5752_v57 = vmul.f32 %v6498_v54, %v5751_v34  ;;  %v5053_v6 = vpop.f32.mrf.mxu3 }
 0x591   : > { %v5166_v13 = vpop.f32.mrf.mxu0  ;;  %v5054_v12 = vadd.f32 %v11875_v62, %v5053_v6 }
 0x592   : > { %v6500_v31 = vpop.eup %6499  ;;  %v5753_v58 = vadd.f32 %v6498_v54, %v5752_v57 }
 0x593   : > { %v5410_v17 = vadd.f32 1.0, %v6500_v31 }
 0x594   : > { %v5757_v46 = vsel %vm5756_vm4, %v6498_v54, %v5753_v58 }
 0x595   : > { %v5762_v33 = vsel %vm5759_vm5, %v5761_v18, %v5757_v46  ;;  %6501 = vrcp.f32 %v5410_v17  ;;  %v5775_v41 = vand.u32 2147483648, %v5410_v17  ;;  %v5773_v19 = vand.u32 2147483647, %v5410_v17 }
 0x596   : > { %5922 = vst.msk [vmem:[%s11091_s12 + $0xb0] sm:$0xff] %vm5899_vm3, %v5762_v33  ;;  %v5267_v60 = vpop.f32.mrf.mxu1  ;;  %vm5769_vm7 = vweird.f32 %v5410_v17  ;;  %v5167_v46 = vadd.f32 %v5166_v13, %v5054_v12 }
 0x597   : > { %v5268_v44 = vadd.f32 %v5267_v60, %v5155_v3  ;;  %v5776_v11 = vor.u32 1.1754944e-38, %v5775_v41  ;;  %vm5774_vm9 = vcmp.eq.f32.partialorder %v5773_v19, 8.507059e+37 }
 0x598   : > { %v5056_v2 = vpop.f32.mrf.mxu3 }
 0x599   : > { %v6130_v15 = vmul.f32 -1.442695, %v5268_v44  ;;  %v5169_v44 = vpop.f32.mrf.mxu0  ;;  %v5057_v51 = vadd.f32 %v11875_v62, %v5056_v2 }
 0x59b   : > { %v6502_v30 = vpop.eup %6501  ;;  %6503 = vpow2.f32 %v6130_v15 }
 0x59c   : > { %v5765_v45 = vmul.f32 %v6502_v30, %v5410_v17  ;;  %vm5770_vm6 = vweird.f32 %v6502_v30 }
 0x59d   : > { %vm5771_vm8 = vmor %vm5769_vm7, %vm5770_vm6 }
 0x59e   : > { %v5766_v0 = vsub.f32 1.0, %v5765_v45 }
 0x5a0   : > { %v5767_v27 = vmul.f32 %v6502_v30, %v5766_v0 }
 0x5a1   : > { %v6504_v63 = vpop.eup %6503  ;;  %v5172_v25 = vpop.f32.mrf.mxu0 }
 0x5a2   : > { %v5768_v14 = vadd.f32 %v6502_v30, %v5767_v27  ;;  %v5411_v37 = vadd.f32 1.0, %v6504_v63  ;;  %v5059_v27 = vpop.f32.mrf.mxu3  ;;  %v5170_v63 = vadd.f32 %v5169_v44, %v5057_v51 }
 0x5a4   : > { %v5772_v59 = vsel %vm5771_vm8, %v6502_v30, %v5768_v14  ;;  %6505 = vrcp.f32 %v5411_v37  ;;  %v5790_v8 = vand.u32 2147483648, %v5411_v37  ;;  %v5788_v10 = vand.u32 2147483647, %v5411_v37 }
 0x5a5   : > { %v5777_v7 = vsel %vm5774_vm9, %v5776_v11, %v5772_v59  ;;  %vm5784_vm11 = vweird.f32 %v5411_v37 }
 0x5a6   : > { %5923 = vst.msk [vmem:[%s11091_s12 + $0xb8] sm:$0xff] %vm5899_vm3, %v5777_v7  ;;  %v5270_v52 = vpop.f32.mrf.mxu1  ;;  %v5791_v56 = vor.u32 1.1754944e-38, %v5790_v8  ;;  %vm5789_vm13 = vcmp.eq.f32.partialorder %v5788_v10, 8.507059e+37  ;;  %v5060_v7 = vadd.f32 %v11875_v62, %v5059_v27 }
 0x5a7   : > { %v5271_v49 = vadd.f32 %v5270_v52, %v5158_v9 }
 0x5a8   : > { %v5173_v8 = vadd.f32 %v5172_v25, %v5060_v7 }
 0x5a9   : > { %v6131_v28 = vmul.f32 -1.442695, %v5271_v49 }
 0x5aa   : > { %v6506_v21 = vpop.eup %6505  ;;  %v5062_v10 = vpop.f32.mrf.mxu3 }
 0x5ab   : > { %v5780_v43 = vmul.f32 %v6506_v21, %v5411_v37  ;;  %6507 = vpow2.f32 %v6131_v28  ;;  %vm5785_vm10 = vweird.f32 %v6506_v21 }
 0x5ac   : > { %vm5786_vm12 = vmor %vm5784_vm11, %vm5785_vm10 }
 0x5ad   : > { %v5781_v40 = vsub.f32 1.0, %v5780_v43 }
 0x5af   : > { %v5782_v20 = vmul.f32 %v6506_v21, %v5781_v40 }
 0x5b1   : > { %v6508_v38 = vpop.eup %6507  ;;  %v5783_v48 = vadd.f32 %v6506_v21, %v5782_v20  ;;  %v5273_v24 = vpop.f32.mrf.mxu1 }
 0x5b2   : > { %v5412_v26 = vadd.f32 1.0, %v6508_v38  ;;  %v5274_v53 = vadd.f32 %v5273_v24, %v5161_v29 }
 0x5b3   : > { %v5787_v5 = vsel %vm5786_vm12, %v6506_v21, %v5783_v48 }
 0x5b4   : > { %v5792_v50 = vsel %vm5789_vm13, %v5791_v56, %v5787_v5  ;;  %6509 = vrcp.f32 %v5412_v26  ;;  %v6132_v23 = vmul.f32 -1.442695, %v5274_v53  ;;  %v5805_v31 = vand.u32 2147483648, %v5412_v26 }
 0x5b5   : > { %5924 = vst.msk [vmem:[%s11091_s12 + $0xc0] sm:$0xff] %vm5899_vm3, %v5792_v50  ;;  %v5803_v17 = vand.u32 2147483647, %v5412_v26  ;;  %vm5799_vm15 = vweird.f32 %v5412_v26  ;;  %v5063_v53 = vadd.f32 %v11875_v62, %v5062_v10 }
 0x5b6   : > { %6511 = vpow2.f32 %v6132_v23  ;;  %v5806_v33 = vor.u32 1.1754944e-38, %v5805_v31 }
 0x5b7   : > { %vm5804_vm1 = vcmp.eq.f32.partialorder %v5803_v17, 8.507059e+37 }
 0x5b9   : > { %v5276_v54 = vpop.f32.mrf.mxu1 }
 0x5ba   : > { %v6510_v36 = vpop.eup %6509  ;;  %v5277_v1 = vadd.f32 %v5276_v54, %v5164_v39  ;;  %v5175_v54 = vpop.f32.mrf.mxu0 }
 0x5bb   : > { %v5795_v34 = vmul.f32 %v6510_v36, %v5412_v26  ;;  %vm5800_vm14 = vweird.f32 %v6510_v36 }
 0x5bc   : > { %v6133_v57 = vmul.f32 -1.442695, %v5277_v1  ;;  %v6512_v47 = vpop.eup %6511  ;;  %vm5801_vm0 = vmor %vm5799_vm15, %vm5800_vm14  ;;  %v5176_v1 = vadd.f32 %v5175_v54, %v5063_v53 }
 0x5bd   : > { %v5796_v4 = vsub.f32 1.0, %v5795_v34  ;;  %v5413_v58 = vadd.f32 1.0, %v6512_v47 }
 0x5be   : > { %6513 = vpow2.f32 %v6133_v57 }
 0x5bf   : > { %v5797_v18 = vmul.f32 %v6510_v36, %v5796_v4  ;;  %6515 = vrcp.f32 %v5413_v58  ;;  %v5820_v37 = vand.u32 2147483648, %v5413_v58  ;;  %v5818_v9 = vand.u32 2147483647, %v5413_v58 }
 0x5c0   : > { %vm5814_vm4 = vweird.f32 %v5413_v58 }
 0x5c1   : > { %v5798_v3 = vadd.f32 %v6510_v36, %v5797_v18  ;;  %v5279_v42 = vpop.f32.mrf.mxu1  ;;  %v5821_v43 = vor.u32 1.1754944e-38, %v5820_v37  ;;  %vm5819_vm6 = vcmp.eq.f32.partialorder %v5818_v9, 8.507059e+37 }
 0x5c2   : > { %v5280_v60 = vadd.f32 %v5279_v42, %v5167_v46 }
 0x5c3   : > { %v5802_v15 = vsel %vm5801_vm0, %v6510_v36, %v5798_v3 }
 0x5c4   : > { %v6514_v30 = vpop.eup %6513  ;;  %v5807_v45 = vsel %vm5804_vm1, %v5806_v33, %v5802_v15  ;;  %v6134_v0 = vmul.f32 -1.442695, %v5280_v60 }
 0x5c5   : > { %5925 = vst.msk [vmem:[%s11091_s12 + $0xc8] sm:$0xff] %vm5899_vm3, %v5807_v45  ;;  %v5414_v22 = vadd.f32 1.0, %v6514_v30  ;;  %v6516_v41 = vpop.eup %6515 }
 0x5c6   : > { %6517 = vpow2.f32 %v6134_v0  ;;  %v5810_v19 = vmul.f32 %v6516_v41, %v5413_v58  ;;  %vm5815_vm2 = vweird.f32 %v6516_v41 }
 0x5c7   : > { %6519 = vrcp.f32 %v5414_v22  ;;  %vm5816_vm5 = vmor %vm5814_vm4, %vm5815_vm2  ;;  %v5835_v29 = vand.u32 2147483648, %v5414_v22  ;;  %v5833_v24 = vand.u32 2147483647, %v5414_v22  ;;  %vm5829_vm8 = vweird.f32 %v5414_v22 }
 0x5c8   : > { %v5811_v35 = vsub.f32 1.0, %v5810_v19 }
 0x5c9   : > { %v5282_v14 = vpop.f32.mrf.mxu1  ;;  %v5836_v50 = vor.u32 1.1754944e-38, %v5835_v29  ;;  %vm5834_vm10 = vcmp.eq.f32.partialorder %v5833_v24, 8.507059e+37 }
 0x5ca   : > { %v5283_v11 = vadd.f32 %v5282_v14, %v5170_v63  ;;  %v5812_v59 = vmul.f32 %v6516_v41, %v5811_v35 }
 0x5cc   : > { %v6518_v55 = vpop.eup %6517  ;;  %v6135_v52 = vmul.f32 -1.442695, %v5283_v11  ;;  %v5813_v28 = vadd.f32 %v6516_v41, %v5812_v59 }
 0x5cd   : > { %v6520_v49 = vpop.eup %6519  ;;  %v5415_v21 = vadd.f32 1.0, %v6518_v55 }
 0x5ce   : > { %v5825_v16 = vmul.f32 %v6520_v49, %v5414_v22  ;;  %6521 = vpow2.f32 %v6135_v52  ;;  %v5817_v40 = vsel %vm5816_vm5, %v6516_v41, %v5813_v28  ;;  %vm5830_vm7 = vweird.f32 %v6520_v49 }
 0x5cf   : > { %6523 = vrcp.f32 %v5415_v21  ;;  %v5822_v61 = vsel %vm5819_vm6, %v5821_v43, %v5817_v40  ;;  %vm5831_vm9 = vmor %vm5829_vm8, %vm5830_vm7  ;;  %v5850_v62 = vand.u32 2147483648, %v5415_v21  ;;  %v5848_v47 = vand.u32 2147483647, %v5415_v21 }
 0x5d0   : > { %v5826_v20 = vsub.f32 1.0, %v5825_v16  ;;  %5926 = vst.msk [vmem:[%s11091_s12 + $0xd0] sm:$0xff] %vm5899_vm3, %v5822_v61  ;;  %vm5844_vm12 = vweird.f32 %v5415_v21 }
 0x5d1   : > { %v5285_v38 = vpop.f32.mrf.mxu1  ;;  %v5851_v17 = vor.u32 1.1754944e-38, %v5850_v62  ;;  %vm5849_vm14 = vcmp.eq.f32.partialorder %v5848_v47, 8.507059e+37 }
 0x5d2   : > { %v5827_v48 = vmul.f32 %v6520_v49, %v5826_v20  ;;  %v5286_v56 = vadd.f32 %v5285_v38, %v5173_v8 }
 0x5d4   : > { %v6522_v26 = vpop.eup %6521  ;;  %v5828_v6 = vadd.f32 %v6520_v49, %v5827_v48  ;;  %v6136_v5 = vmul.f32 -1.442695, %v5286_v56 }
 0x5d5   : > { %v6524_v32 = vpop.eup %6523  ;;  %v5416_v23 = vadd.f32 1.0, %v6522_v26 }
 0x5d6   : > { %v5832_v39 = vsel %vm5831_vm9, %v6520_v49, %v5828_v6  ;;  %v5840_v13 = vmul.f32 %v6524_v32, %v5415_v21  ;;  %6525 = vpow2.f32 %v6136_v5  ;;  %vm5845_vm11 = vweird.f32 %v6524_v32 }
 0x5d7   : > { %v5837_v36 = vsel %vm5834_vm10, %v5836_v50, %v5832_v39  ;;  %6527 = vrcp.f32 %v5416_v23  ;;  %vm5846_vm13 = vmor %vm5844_vm12, %vm5845_vm11  ;;  %v5865_v44 = vand.u32 2147483648, %v5416_v23  ;;  %v5863_v30 = vand.u32 2147483647, %v5416_v23 }
 0x5d8   : > { %5927 = vst.msk [vmem:[%s11091_s12 + $0xd8] sm:$0xff] %vm5899_vm3, %v5837_v36  ;;  %v5841_v34 = vsub.f32 1.0, %v5840_v13  ;;  %vm5859_vm0 = vweird.f32 %v5416_v23 }
 0x5d9   : > { %v5288_v12 = vpop.f32.mrf.mxu1  ;;  %v5866_v22 = vor.u32 1.1754944e-38, %v5865_v44  ;;  %vm5864_vm2 = vcmp.eq.f32.partialorder %v5863_v30, 8.507059e+37 }
 0x5da   : > { %v5842_v57 = vmul.f32 %v6524_v32, %v5841_v34  ;;  %v5289_v2 = vadd.f32 %v5288_v12, %v5176_v1 }
 0x5dc   : > { %v6526_v4 = vpop.eup %6525  ;;  %v5843_v31 = vadd.f32 %v6524_v32, %v5842_v57  ;;  %v6137_v58 = vmul.f32 -1.442695, %v5289_v2 }
 0x5dd   : > { %v6528_v18 = vpop.eup %6527  ;;  %v5417_v46 = vadd.f32 1.0, %v6526_v4 }
 0x5de   : > { %v5847_v3 = vsel %vm5846_vm13, %v6524_v32, %v5843_v31  ;;  %v5855_v42 = vmul.f32 %v6528_v18, %v5416_v23  ;;  %6529 = vpow2.f32 %v6137_v58  ;;  %vm5860_vm15 = vweird.f32 %v6528_v18 }
 0x5df   : > { %v5852_v33 = vsel %vm5849_vm14, %v5851_v17, %v5847_v3  ;;  %6531 = vrcp.f32 %v5417_v46  ;;  %vm5861_vm1 = vmor %vm5859_vm0, %vm5860_vm15  ;;  %v5880_v14 = vand.u32 2147483648, %v5417_v46  ;;  %v5878_v11 = vand.u32 2147483647, %v5417_v46 }
 0x5e0   : > { %5928 = vst.msk [vmem:[%s11091_s12 + $0xe0] sm:$0xff] %vm5899_vm3, %v5852_v33  ;;  %v5856_v60 = vsub.f32 1.0, %v5855_v42  ;;  %vm5874_vm5 = vweird.f32 %v5417_v46 }
 0x5e1   : > { %v5881_v55 = vor.u32 1.1754944e-38, %v5880_v14  ;;  %vm5879_vm7 = vcmp.eq.f32.partialorder %v5878_v11, 8.507059e+37 }
 0x5e2   : > { %v5857_v15 = vmul.f32 %v6528_v18, %v5856_v60 }
 0x5e4   : > { %v6530_v51 = vpop.eup %6529  ;;  %v5858_v45 = vadd.f32 %v6528_v18, %v5857_v15 }
 0x5e5   : > { %v6532_v0 = vpop.eup %6531  ;;  %v5418_v41 = vadd.f32 1.0, %v6530_v51 }
 0x5e6   : > { %v5862_v27 = vsel %vm5861_vm1, %v6528_v18, %v5858_v45  ;;  %v5870_v19 = vmul.f32 %v6532_v0, %v5417_v46  ;;  %vm5875_vm4 = vweird.f32 %v6532_v0 }
 0x5e7   : > { %v5867_v63 = vsel %vm5864_vm2, %v5866_v22, %v5862_v27  ;;  %6533 = vrcp.f32 %v5418_v41  ;;  %vm5876_vm6 = vmor %vm5874_vm5, %vm5875_vm4  ;;  %v5895_v28 = vand.u32 2147483648, %v5418_v41  ;;  %v5893_v43 = vand.u32 2147483647, %v5418_v41 }
 0x5e8   : > { %5929 = vst.msk [vmem:[%s11091_s12 + $0xe8] sm:$0xff] %vm5899_vm3, %v5867_v63  ;;  %v5871_v35 = vsub.f32 1.0, %v5870_v19  ;;  %vm5889_vm9 = vweird.f32 %v5418_v41 }
 0x5e9   : > { %v5896_v40 = vor.u32 1.1754944e-38, %v5895_v28  ;;  %vm5894_vm11 = vcmp.eq.f32.partialorder %v5893_v43, 8.507059e+37 }
 0x5ea   : > { %v5872_v37 = vmul.f32 %v6532_v0, %v5871_v35 }
 0x5ec   : > { %v5873_v59 = vadd.f32 %v6532_v0, %v5872_v37 }
 0x5ed   : > { %v6534_v9 = vpop.eup %6533 }
 0x5ee   : > { %v5877_v7 = vsel %vm5876_vm6, %v6532_v0, %v5873_v59  ;;  %v5885_v52 = vmul.f32 %v6534_v9, %v5418_v41  ;;  %vm5890_vm8 = vweird.f32 %v6534_v9 }
 0x5ef   : > { %v5882_v49 = vsel %vm5879_vm7, %v5881_v55, %v5877_v7  ;;  %vm5891_vm10 = vmor %vm5889_vm9, %vm5890_vm8 }
 0x5f0   : > { %5930 = vst.msk [vmem:[%s11091_s12 + $0xf0] sm:$0xff] %vm5899_vm3, %v5882_v49  ;;  %v5886_v25 = vsub.f32 1.0, %v5885_v52 }
 0x5f2   : > { %v5887_v21 = vmul.f32 %v6534_v9, %v5886_v25 }
 0x5f4   : > { %v5888_v16 = vadd.f32 %v6534_v9, %v5887_v21 }
 0x5f6   : > { %v5892_v8 = vsel %vm5891_vm10, %v6534_v9, %v5888_v16 }
 0x5f7   : > { %v5897_v61 = vsel %vm5894_vm11, %v5896_v40, %v5892_v8 }
 0x5f8   : > { %5931 = vst.msk [vmem:[%s11091_s12 + $0xf8] sm:$0xff] %vm5899_vm3, %v5897_v61 }
 0x5f9 PF: > { %p15_p7 = scmp.ge.s32.totalorder %s6671_s23, 4   ;;  %s12470_s18 = smov %s6609_s19 }
 0x5fa   : > { %s12471_s19 = smov %s6613_s20  ;;  %s12472_s20 = smov %s6681_s26 }
 0x5fb   : > { %s12473_s21 = smov %s6671_s23  ;;  %17 = sbr.rel (!%p15_p7) target bundleno = 3 (0x3), region = 80 }
 0x600   :  { %5954 = vsyncpa [#allocation3], 1 }
 0x601   :  { %5956 = vsyncpa [#allocation3 + $0x1], 1 }

</bundles_post_ra>
